<compile_context>
chip_gen: v7x
topology: tpu7x:2x2x1
jax: 0.10.0
libtpu: 0.0.40
codegen_flags: <defaults>
</compile_context>

<pallas_src>
import functools

import jax
import jax.numpy as jnp
from jax import lax
from jax.experimental import pallas as pl
from jax.experimental.pallas import tpu as pltpu

SELU_ALPHA = 1.6732632423543772848170429916717
SELU_SCALE = 1.0507009873554804934193349852946
IN_EPS = 1e-5


# ----------------------------- in-kernel helpers -----------------------------

def _selu(x):
    return SELU_SCALE * jnp.where(x > 0, x, SELU_ALPHA * (jnp.exp(x) - 1.0))


def _instance_norm(x):
    # x: (C, HW) -- per-channel normalization over the spatial (lane) axis.
    # Two-pass mean / variance (matches F.instance_norm, avoids the
    # E[x^2] - mu^2 cancellation flagged in review).
    mu = jnp.mean(x, axis=1, keepdims=True)
    xc = x - mu
    var = jnp.mean(xc * xc, axis=1, keepdims=True)
    return xc * lax.rsqrt(var + IN_EPS)


def _conv3x3_vpu(h, taps_ref, masks_ref, W2):
    # 3x3 "same" conv entirely on the VPU: for each of the 9 taps the input is
    # lane-rolled (XLU), border-masked, and accumulated with scalar broadcast
    # FMAs whose weights are read from SMEM.  No tiny (Ct,Ct) MXU launches.
    #   h:        (Ct, HW2) flattened (C, H2*W2) sample
    #   taps_ref: SMEM (9*Ct*Ct,), taps[k*Ct*Ct + o*Ct + i] = torch_w[o,i,ky,kx]
    #   masks_ref:(9, HW2) zero-padding validity masks (shared by both convs)
    Ct, HW2 = h.shape
    acc = [jnp.zeros((1, HW2), jnp.float32) for _ in range(Ct)]
    for dy in (-1, 0, 1):
        for dx in (-1, 0, 1):
            k = (dy + 1) * 3 + (dx + 1)
            off = dy * W2 + dx
            if off == 0:
                shm = h                                     # center tap: mask == 1
            else:
                sh = pltpu.roll(h, shift=(-off) % HW2, axis=1)
                shm = sh * masks_ref[k:k + 1, :]            # zero-padding mask
            for i in range(Ct):
                row = shm[i:i + 1, :]                       # (1, HW2)
                for o in range(Ct):
                    w = taps_ref[k * Ct * Ct + o * Ct + i]  # scalar from SMEM
                    acc[o] = acc[o] + w * row
    return jnp.concatenate(acc, axis=0)                     # (Ct, HW2)


# --------------------------------- kernel ------------------------------------

def _block_kernel(W2, x_ref, aff_ref, u_ref, masks_ref,
                  wc1_ref, wada_ref, wc4_ref, w2t_ref, w3t_ref, y_ref):
    Cin = x_ref.shape[1]
    Ct = wc1_ref.shape[0]

    x = x_ref[0].astype(jnp.float32)          # (Cin, HW)

    # packed per-sample affine params: (n_params, 2); col 0 = w, col 1 = b
    aff = aff_ref[0]
    w1 = aff[0:Cin, 0:1];                     b1 = aff[0:Cin, 1:2]
    w2 = aff[Cin:Cin + Ct, 0:1];              b2 = aff[Cin:Cin + Ct, 1:2]
    w3 = aff[Cin + Ct:Cin + 2 * Ct, 0:1];     b3 = aff[Cin + Ct:Cin + 2 * Ct, 1:2]
    w4 = aff[Cin + 2 * Ct:Cin + 3 * Ct, 0:1]; b4 = aff[Cin + 2 * Ct:Cin + 3 * Ct, 1:2]

    # x = F.instance_norm(x)
    xn = _instance_norm(x)

    # low-res main path: affine/SELU -> conv1 (1x1) -> IN -> affine/SELU
    a1 = _selu(w1 * xn + b1)
    c1 = jnp.dot(wc1_ref[...], a1, preferred_element_type=jnp.float32)   # (Ct, HW)
    h2 = _selu(w2 * _instance_norm(c1) + b2)                             # (Ct, HW)

    # Fused nearest-neighbor upsample: ONE bf16 dot for xn AND h2.
    # (adaDim is a 1x1 conv, so adaDim(upsample(xn)) == wada @ upsample(xn).)
    stacked = jnp.concatenate([xn, h2], axis=0).astype(jnp.bfloat16)     # (Cin+Ct, HW)
    up = jnp.dot(stacked, u_ref[...],
                 preferred_element_type=jnp.float32)                     # (Cin+Ct, HW2)
    h2u = up[Cin:Cin + Ct, :]                                            # (Ct, HW2)

    # conv2 (3x3) -> IN -> affine/SELU -> conv3 (3x3) -> IN -> affine/SELU
    c2 = _conv3x3_vpu(h2u, w2t_ref, masks_ref, W2)
    h3 = _selu(w3 * _instance_norm(c2) + b3)
    c3 = _conv3x3_vpu(h3, w3t_ref, masks_ref, W2)
    a4 = _selu(w4 * _instance_norm(c3) + b4)

    # conv4 (1x1) + residual = adaDim(upsampled xn); computed LAST so the
    # (Cout, HW2) residual is never live across the conv chain.
    xn_up = up[0:Cin, :]                                                 # (Cin, HW2)
    y_ref[0] = (jnp.dot(wc4_ref[...], a4, preferred_element_type=jnp.float32)
                + jnp.dot(wada_ref[...], xn_up, preferred_element_type=jnp.float32))


# ------------------------------ parameter setup -------------------------------

def _spectral_normalize(w, iters=10):
    # PyTorch spectral_norm view: (out, in*kh*kw); deterministic power iteration.
    mat = w.reshape(w.shape[0], -1)
    u = jnp.ones((mat.shape[0],), jnp.float32) / jnp.sqrt(mat.shape[0])
    v = jnp.ones((mat.shape[1],), jnp.float32) / jnp.sqrt(mat.shape[1])
    for _ in range(iters):
        v = mat.T @ u
        v = v / (jnp.linalg.norm(v) + 1e-12)
        u = mat @ v
        u = u / (jnp.linalg.norm(u) + 1e-12)
    sigma = u @ (mat @ v)
    return w / sigma


def init_params(key, in_channels, out_channels):
    temp = max(1, in_channels // 4)
    ks = jax.random.split(key, 5)

    def conv_w(k, cout, cin, kh, kw):
        w = 0.1 * jax.random.normal(k, (cout, cin, kh, kw), jnp.float32)
        return _spectral_normalize(w)

    return {
        "adaDim": conv_w(ks[0], out_channels, in_channels, 1, 1),
        "conv1": conv_w(ks[1], temp, in_channels, 1, 1),
        "conv2": conv_w(ks[2], temp, temp, 3, 3),
        "conv3": conv_w(ks[3], temp, temp, 3, 3),
        "conv4": conv_w(ks[4], out_channels, temp, 1, 1),
    }


# --------------------------------- wrapper ------------------------------------

def big_residual_block_up(x_nchw, w, b, params, *, scale=2):
    x_nchw = x_nchw.astype(jnp.float32)
    N, Cin, H, W = x_nchw.shape
    Ct = params["conv1"].shape[0]
    Cout = params["adaDim"].shape[0]
    HW = H * W
    H2, W2 = H * scale, W * scale
    HW2 = H2 * W2
    n_params = Cin + 3 * Ct

    # pack per-sample affine params into one array: (N, n_params, 2)
    aff = jnp.stack([w.astype(jnp.float32), b.astype(jnp.float32)], axis=-1)

    # conv weights in (out, in) orientation for the (C, HW) layout
    wc1 = params["conv1"][:, :, 0, 0]                              # (Ct, Cin)
    wada = params["adaDim"][:, :, 0, 0]                            # (Cout, Cin)
    wc4 = params["conv4"][:, :, 0, 0]                              # (Cout, Ct)
    # flattened 3x3 taps [k, o, i] with k = ky*3+kx -> scalar SMEM reads
    w2flat = jnp.transpose(params["conv2"], (2, 3, 0, 1)).reshape(-1)   # (9*Ct*Ct,)
    w3flat = jnp.transpose(params["conv3"], (2, 3, 0, 1)).reshape(-1)   # (9*Ct*Ct,)

    # nearest-neighbor upsample as a 0/1 matmul operand: (HW, HW2), bf16 (exact)
    p2 = jnp.arange(HW2, dtype=jnp.int32)
    r2 = p2 // W2
    c2 = p2 % W2
    src = (r2 // scale) * W + (c2 // scale)
    U = (jnp.arange(HW, dtype=jnp.int32)[:, None] == src[None, :]).astype(jnp.bfloat16)

    # 3x3 zero-padding validity masks on the upsampled grid: (9, HW2)
    mlist = []
    for dy in (-1, 0, 1):
        for dx in (-1, 0, 1):
            valid = ((r2 + dy >= 0) & (r2 + dy < H2) &
                     (c2 + dx >= 0) & (c2 + dx < W2))
            mlist.append(valid)
    masks = jnp.stack(mlist).astype(jnp.float32)

    # NCHW -> (N, C, H*W): channels on sublanes, spatial on lanes (no transpose)
    x_flat = x_nchw.reshape(N, Cin, HW)

    per_sample = lambda shape: pl.BlockSpec(
        shape, lambda n: (n,) + (0,) * (len(shape) - 1))
    shared = lambda shape: pl.BlockSpec(shape, lambda n: (0,) * len(shape))
    smem_spec = pl.BlockSpec(memory_space=pltpu.MemorySpace.SMEM)

    flops_per_sample = 2 * (Ct * Cin * HW                 # conv1
                            + (Cin + Ct) * HW * HW2       # fused upsample dot
                            + 2 * 9 * Ct * Ct * HW2       # conv2 + conv3 (VPU)
                            + (Cout * Ct + Cout * Cin) * HW2)   # conv4 + adaDim
    trans_per_sample = HW * (Cin + Ct) + 2 * HW2 * Ct
    bytes_accessed = (4 * N * (Cin * HW + n_params * 2 + Cout * HW2)
                      + 2 * HW * HW2 + 4 * 9 * HW2
                      + 4 * (Ct * Cin + Cout * Cin + Cout * Ct + 2 * 9 * Ct * Ct))

    y = pl.pallas_call(
        functools.partial(_block_kernel, W2),
        out_shape=jax.ShapeDtypeStruct((N, Cout, HW2), jnp.float32),
        grid=(N,),
        in_specs=[per_sample((1, Cin, HW)),        # x
                  per_sample((1, n_params, 2)),    # packed affine w/b
                  shared((HW, HW2)),               # upsample matrix (bf16)
                  shared((9, HW2)),                # 3x3 padding masks
                  shared((Ct, Cin)),               # conv1
                  shared((Cout, Cin)),             # adaDim
                  shared((Cout, Ct)),              # conv4
                  smem_spec,                       # conv2 taps (SMEM scalars)
                  smem_spec],                      # conv3 taps (SMEM scalars)
        out_specs=per_sample((1, Cout, HW2)),
        compiler_params=pltpu.CompilerParams(dimension_semantics=("parallel",)),
        cost_estimate=pl.CostEstimate(flops=N * flops_per_sample,
                                      transcendentals=N * trans_per_sample,
                                      bytes_accessed=bytes_accessed),
    )(x_flat, aff, U, masks, wc1, wada, wc4, w2flat, w3flat)

    # (N, Cout, H2*W2) -> NCHW (no transpose needed)
    return y.reshape(N, Cout, H2, W2)


# ----------------------------------- main -------------------------------------

if __name__ == "__main__":
    N = 2
    in_channels = 8
    out_channels = 16
    H = W = 16
    scale = 2
    temp = max(1, in_channels // 4)
    n_params = in_channels + 3 * temp  # 14

    key = jax.random.PRNGKey(0)
    kx, kw, kb, kp = jax.random.split(key, 4)
    x = jax.random.normal(kx, (N, in_channels, H, W), jnp.float32)
    w_aff = jax.random.normal(kw, (N, n_params), jnp.float32)
    b_aff = jax.random.normal(kb, (N, n_params), jnp.float32)
    params = init_params(kp, in_channels, out_channels)

    out = big_residual_block_up(x, w_aff, b_aff, params, scale=scale)
    out = jax.block_until_ready(out)
    assert out.shape == (N, out_channels, H * scale, W * scale)
    assert bool(jnp.all(jnp.isfinite(out)))
    print("KERNEL_OK")
</pallas_src>

<mosaic_0001>
module attributes {stable_mosaic.version = 11 : i64} {
  func.func @_block_kernel(%arg0: i32, %arg1: memref<1x8x256xf32, #tpu.memory_space<vmem>>, %arg2: memref<1x14x2xf32, #tpu.memory_space<vmem>>, %arg3: memref<256x1024xbf16, #tpu.memory_space<vmem>>, %arg4: memref<9x1024xf32, #tpu.memory_space<vmem>>, %arg5: memref<2x8xf32, #tpu.memory_space<vmem>>, %arg6: memref<16x8xf32, #tpu.memory_space<vmem>>, %arg7: memref<16x2xf32, #tpu.memory_space<vmem>>, %arg8: memref<36xf32, #tpu.memory_space<smem>>, %arg9: memref<36xf32, #tpu.memory_space<smem>>, %arg10: memref<1x16x1024xf32, #tpu.memory_space<vmem>>) attributes {dimension_semantics = [#tpu.dimension_semantics<parallel>], iteration_bounds = array<i64: 2>, scalar_prefetch = 0 : i64, scratch_operands = 0 : i64, tpu.core_type = #tpu.core_type<tc>, window_params = [{transform_indices = @transform_0, window_bounds = array<i64: 1, 8, 256>}, {transform_indices = @transform_1, window_bounds = array<i64: 1, 14, 2>}, {pipeline_mode = #tpu.pipeline_mode<synchronous>, transform_indices = @transform_2, window_bounds = array<i64: 256, 1024>}, {pipeline_mode = #tpu.pipeline_mode<synchronous>, transform_indices = @transform_3, window_bounds = array<i64: 9, 1024>}, {pipeline_mode = #tpu.pipeline_mode<synchronous>, transform_indices = @transform_4, window_bounds = array<i64: 2, 8>}, {pipeline_mode = #tpu.pipeline_mode<synchronous>, transform_indices = @transform_5, window_bounds = array<i64: 16, 8>}, {pipeline_mode = #tpu.pipeline_mode<synchronous>, transform_indices = @transform_6, window_bounds = array<i64: 16, 2>}, {transform_indices = @transform_7, window_bounds = array<i64: 36>}, {transform_indices = @transform_8, window_bounds = array<i64: 36>}, {transform_indices = @transform_9, window_bounds = array<i64: 1, 16, 1024>}]} {
    %c0 = arith.constant 0 : index
    %c0_0 = arith.constant 0 : index
    %c0_1 = arith.constant 0 : index
    %0 = vector.load %arg1[%c0, %c0_0, %c0_1] : memref<1x8x256xf32, #tpu.memory_space<vmem>>, vector<1x8x256xf32>
    %1 = vector.shape_cast %0 : vector<1x8x256xf32> to vector<8x256xf32>
    %c0_2 = arith.constant 0 : index
    %c0_3 = arith.constant 0 : index
    %c0_4 = arith.constant 0 : index
    %2 = vector.load %arg2[%c0_2, %c0_3, %c0_4] : memref<1x14x2xf32, #tpu.memory_space<vmem>>, vector<1x14x2xf32>
    %3 = vector.shape_cast %2 : vector<1x14x2xf32> to vector<14x2xf32>
    %4 = vector.extract_strided_slice %3 {offsets = [0, 0], sizes = [8, 1], strides = [1, 1]} : vector<14x2xf32> to vector<8x1xf32>
    %5 = vector.extract_strided_slice %3 {offsets = [0, 1], sizes = [8, 1], strides = [1, 1]} : vector<14x2xf32> to vector<8x1xf32>
    %6 = vector.extract_strided_slice %3 {offsets = [8, 0], sizes = [2, 1], strides = [1, 1]} : vector<14x2xf32> to vector<2x1xf32>
    %7 = vector.extract_strided_slice %3 {offsets = [8, 1], sizes = [2, 1], strides = [1, 1]} : vector<14x2xf32> to vector<2x1xf32>
    %8 = vector.extract_strided_slice %3 {offsets = [10, 0], sizes = [2, 1], strides = [1, 1]} : vector<14x2xf32> to vector<2x1xf32>
    %9 = vector.extract_strided_slice %3 {offsets = [10, 1], sizes = [2, 1], strides = [1, 1]} : vector<14x2xf32> to vector<2x1xf32>
    %10 = vector.extract_strided_slice %3 {offsets = [12, 0], sizes = [2, 1], strides = [1, 1]} : vector<14x2xf32> to vector<2x1xf32>
    %11 = vector.extract_strided_slice %3 {offsets = [12, 1], sizes = [2, 1], strides = [1, 1]} : vector<14x2xf32> to vector<2x1xf32>
    %cst = arith.constant dense<0.000000e+00> : vector<8xf32>
    %12 = vector.multi_reduction <add>, %1, %cst [1] : vector<8x256xf32> to vector<8xf32>
    %13 = vector.shape_cast %12 : vector<8xf32> to vector<8x1xf32>
    %cst_5 = arith.constant 2.560000e+02 : f32
    %14 = vector.broadcast %cst_5 : f32 to vector<8x1xf32>
    %15 = arith.divf %13, %14 : vector<8x1xf32>
    %16 = vector.broadcast %15 : vector<8x1xf32> to vector<8x256xf32>
    %17 = arith.subf %1, %16 : vector<8x256xf32>
    %18 = arith.mulf %17, %17 : vector<8x256xf32>
    %cst_6 = arith.constant dense<0.000000e+00> : vector<8xf32>
    %19 = vector.multi_reduction <add>, %18, %cst_6 [1] : vector<8x256xf32> to vector<8xf32>
    %20 = vector.shape_cast %19 : vector<8xf32> to vector<8x1xf32>
    %cst_7 = arith.constant 2.560000e+02 : f32
    %21 = vector.broadcast %cst_7 : f32 to vector<8x1xf32>
    %22 = arith.divf %20, %21 : vector<8x1xf32>
    %cst_8 = arith.constant 9.99999974E-6 : f32
    %23 = vector.broadcast %cst_8 : f32 to vector<8x1xf32>
    %24 = arith.addf %22, %23 : vector<8x1xf32>
    %25 = math.rsqrt %24 : vector<8x1xf32>
    %26 = vector.broadcast %25 : vector<8x1xf32> to vector<8x256xf32>
    %27 = arith.mulf %17, %26 : vector<8x256xf32>
    %28 = vector.broadcast %4 : vector<8x1xf32> to vector<8x256xf32>
    %29 = arith.mulf %28, %27 : vector<8x256xf32>
    %30 = vector.broadcast %5 : vector<8x1xf32> to vector<8x256xf32>
    %31 = arith.addf %29, %30 : vector<8x256xf32>
    %cst_9 = arith.constant 0.000000e+00 : f32
    %32 = vector.broadcast %cst_9 : f32 to vector<8x256xf32>
    %33 = arith.cmpf ogt, %31, %32 : vector<8x256xf32>
    %34 = math.exp %31 : vector<8x256xf32>
    %cst_10 = arith.constant 1.000000e+00 : f32
    %35 = vector.broadcast %cst_10 : f32 to vector<8x256xf32>
    %36 = arith.subf %34, %35 : vector<8x256xf32>
    %cst_11 = arith.constant 1.67326319 : f32
    %37 = vector.broadcast %cst_11 : f32 to vector<8x256xf32>
    %38 = arith.mulf %37, %36 : vector<8x256xf32>
    %39 = arith.select %33, %31, %38 : vector<8x256xi1>, vector<8x256xf32>
    %cst_12 = arith.constant 1.05070102 : f32
    %40 = vector.broadcast %cst_12 : f32 to vector<8x256xf32>
    %41 = arith.mulf %40, %39 : vector<8x256xf32>
    %c0_13 = arith.constant 0 : index
    %c0_14 = arith.constant 0 : index
    %42 = vector.load %arg5[%c0_13, %c0_14] : memref<2x8xf32, #tpu.memory_space<vmem>>, vector<2x8xf32>
    %cst_15 = arith.constant dense<0.000000e+00> : vector<2x256xf32>
    %43 = tpu.matmul %42, %41, %cst_15 {dimension_numbers = #tpu.dot_dimension_numbers<[1], [0], [0], [1], [0, 0, 1, 1], [], []>} : vector<2x8xf32>, vector<8x256xf32>, vector<2x256xf32> -> vector<2x256xf32>
    %cst_16 = arith.constant dense<0.000000e+00> : vector<2xf32>
    %44 = vector.multi_reduction <add>, %43, %cst_16 [1] : vector<2x256xf32> to vector<2xf32>
    %45 = vector.shape_cast %44 : vector<2xf32> to vector<2x1xf32>
    %cst_17 = arith.constant 2.560000e+02 : f32
    %46 = vector.broadcast %cst_17 : f32 to vector<2x1xf32>
    %47 = arith.divf %45, %46 : vector<2x1xf32>
    %48 = vector.broadcast %47 : vector<2x1xf32> to vector<2x256xf32>
    %49 = arith.subf %43, %48 : vector<2x256xf32>
    %50 = arith.mulf %49, %49 : vector<2x256xf32>
    %cst_18 = arith.constant dense<0.000000e+00> : vector<2xf32>
    %51 = vector.multi_reduction <add>, %50, %cst_18 [1] : vector<2x256xf32> to vector<2xf32>
    %52 = vector.shape_cast %51 : vector<2xf32> to vector<2x1xf32>
    %cst_19 = arith.constant 2.560000e+02 : f32
    %53 = vector.broadcast %cst_19 : f32 to vector<2x1xf32>
    %54 = arith.divf %52, %53 : vector<2x1xf32>
    %cst_20 = arith.constant 9.99999974E-6 : f32
    %55 = vector.broadcast %cst_20 : f32 to vector<2x1xf32>
    %56 = arith.addf %54, %55 : vector<2x1xf32>
    %57 = math.rsqrt %56 : vector<2x1xf32>
    %58 = vector.broadcast %57 : vector<2x1xf32> to vector<2x256xf32>
    %59 = arith.mulf %49, %58 : vector<2x256xf32>
    %60 = vector.broadcast %6 : vector<2x1xf32> to vector<2x256xf32>
    %61 = arith.mulf %60, %59 : vector<2x256xf32>
    %62 = vector.broadcast %7 : vector<2x1xf32> to vector<2x256xf32>
    %63 = arith.addf %61, %62 : vector<2x256xf32>
    %cst_21 = arith.constant 0.000000e+00 : f32
    %64 = vector.broadcast %cst_21 : f32 to vector<2x256xf32>
    %65 = arith.cmpf ogt, %63, %64 : vector<2x256xf32>
    %66 = math.exp %63 : vector<2x256xf32>
    %cst_22 = arith.constant 1.000000e+00 : f32
    %67 = vector.broadcast %cst_22 : f32 to vector<2x256xf32>
    %68 = arith.subf %66, %67 : vector<2x256xf32>
    %cst_23 = arith.constant 1.67326319 : f32
    %69 = vector.broadcast %cst_23 : f32 to vector<2x256xf32>
    %70 = arith.mulf %69, %68 : vector<2x256xf32>
    %71 = arith.select %65, %63, %70 : vector<2x256xi1>, vector<2x256xf32>
    %cst_24 = arith.constant 1.05070102 : f32
    %72 = vector.broadcast %cst_24 : f32 to vector<2x256xf32>
    %73 = arith.mulf %72, %71 : vector<2x256xf32>
    %74 = tpu.concatenate %27, %73 in 0 : vector<8x256xf32>, vector<2x256xf32> -> vector<10x256xf32>
    %75 = arith.truncf %74 : vector<10x256xf32> to vector<10x256xbf16>
    %c0_25 = arith.constant 0 : index
    %c0_26 = arith.constant 0 : index
    %76 = vector.load %arg3[%c0_25, %c0_26] : memref<256x1024xbf16, #tpu.memory_space<vmem>>, vector<256x1024xbf16>
    %cst_27 = arith.constant dense<0.000000e+00> : vector<10x1024xf32>
    %77 = tpu.matmul %75, %76, %cst_27 {dimension_numbers = #tpu.dot_dimension_numbers<[1], [0], [0], [1], [0, 0, 1, 1], [], []>} : vector<10x256xbf16>, vector<256x1024xbf16>, vector<10x1024xf32> -> vector<10x1024xf32>
    %78 = vector.extract_strided_slice %77 {offsets = [8, 0], sizes = [2, 1024], strides = [1, 1]} : vector<10x1024xf32> to vector<2x1024xf32>
    %cst_28 = arith.constant 0.000000e+00 : f32
    %79 = vector.broadcast %cst_28 : f32 to vector<1x1024xf32>
    %cst_29 = arith.constant 0.000000e+00 : f32
    %80 = vector.broadcast %cst_29 : f32 to vector<1x1024xf32>
    %c33_i32 = arith.constant 33 : i32
    %81 = tpu.dynamic_rotate %78 by %c33_i32 dim 1 : vector<2x1024xf32>, i32 -> vector<2x1024xf32>
    %c0_30 = arith.constant 0 : index
    %c0_31 = arith.constant 0 : index
    %82 = vector.load %arg4[%c0_30, %c0_31] : memref<9x1024xf32, #tpu.memory_space<vmem>>, vector<1x1024xf32>
    %83 = vector.broadcast %82 : vector<1x1024xf32> to vector<2x1024xf32>
    %84 = arith.mulf %81, %83 : vector<2x1024xf32>
    %85 = vector.extract_strided_slice %84 {offsets = [0, 0], sizes = [1, 1024], strides = [1, 1]} : vector<2x1024xf32> to vector<1x1024xf32>
    %c0_32 = arith.constant 0 : index
    %86 = memref.load %arg8[%c0_32] : memref<36xf32, #tpu.memory_space<smem>>
    %87 = vector.broadcast %86 : f32 to vector<1x1024xf32>
    %88 = arith.mulf %87, %85 : vector<1x1024xf32>
    %89 = arith.addf %79, %88 : vector<1x1024xf32>
    %c2 = arith.constant 2 : index
    %90 = memref.load %arg8[%c2] : memref<36xf32, #tpu.memory_space<smem>>
    %91 = vector.broadcast %90 : f32 to vector<1x1024xf32>
    %92 = arith.mulf %91, %85 : vector<1x1024xf32>
    %93 = arith.addf %80, %92 : vector<1x1024xf32>
    %94 = vector.extract_strided_slice %84 {offsets = [1, 0], sizes = [1, 1024], strides = [1, 1]} : vector<2x1024xf32> to vector<1x1024xf32>
    %c1 = arith.constant 1 : index
    %95 = memref.load %arg8[%c1] : memref<36xf32, #tpu.memory_space<smem>>
    %96 = vector.broadcast %95 : f32 to vector<1x1024xf32>
    %97 = arith.mulf %96, %94 : vector<1x1024xf32>
    %98 = arith.addf %89, %97 : vector<1x1024xf32>
    %c3 = arith.constant 3 : index
    %99 = memref.load %arg8[%c3] : memref<36xf32, #tpu.memory_space<smem>>
    %100 = vector.broadcast %99 : f32 to vector<1x1024xf32>
    %101 = arith.mulf %100, %94 : vector<1x1024xf32>
    %102 = arith.addf %93, %101 : vector<1x1024xf32>
    %c32_i32 = arith.constant 32 : i32
    %103 = tpu.dynamic_rotate %78 by %c32_i32 dim 1 : vector<2x1024xf32>, i32 -> vector<2x1024xf32>
    %c1_33 = arith.constant 1 : index
    %c0_34 = arith.constant 0 : index
    %104 = vector.load %arg4[%c1_33, %c0_34] : memref<9x1024xf32, #tpu.memory_space<vmem>>, vector<1x1024xf32>
    %105 = vector.broadcast %104 : vector<1x1024xf32> to vector<2x1024xf32>
    %106 = arith.mulf %103, %105 : vector<2x1024xf32>
    %107 = vector.extract_strided_slice %106 {offsets = [0, 0], sizes = [1, 1024], strides = [1, 1]} : vector<2x1024xf32> to vector<1x1024xf32>
    %c4 = arith.constant 4 : index
    %108 = memref.load %arg8[%c4] : memref<36xf32, #tpu.memory_space<smem>>
    %109 = vector.broadcast %108 : f32 to vector<1x1024xf32>
    %110 = arith.mulf %109, %107 : vector<1x1024xf32>
    %111 = arith.addf %98, %110 : vector<1x1024xf32>
    %c6 = arith.constant 6 : index
    %112 = memref.load %arg8[%c6] : memref<36xf32, #tpu.memory_space<smem>>
    %113 = vector.broadcast %112 : f32 to vector<1x1024xf32>
    %114 = arith.mulf %113, %107 : vector<1x1024xf32>
    %115 = arith.addf %102, %114 : vector<1x1024xf32>
    %116 = vector.extract_strided_slice %106 {offsets = [1, 0], sizes = [1, 1024], strides = [1, 1]} : vector<2x1024xf32> to vector<1x1024xf32>
    %c5 = arith.constant 5 : index
    %117 = memref.load %arg8[%c5] : memref<36xf32, #tpu.memory_space<smem>>
    %118 = vector.broadcast %117 : f32 to vector<1x1024xf32>
    %119 = arith.mulf %118, %116 : vector<1x1024xf32>
    %120 = arith.addf %111, %119 : vector<1x1024xf32>
    %c7 = arith.constant 7 : index
    %121 = memref.load %arg8[%c7] : memref<36xf32, #tpu.memory_space<smem>>
    %122 = vector.broadcast %121 : f32 to vector<1x1024xf32>
    %123 = arith.mulf %122, %116 : vector<1x1024xf32>
    %124 = arith.addf %115, %123 : vector<1x1024xf32>
    %c31_i32 = arith.constant 31 : i32
    %125 = tpu.dynamic_rotate %78 by %c31_i32 dim 1 : vector<2x1024xf32>, i32 -> vector<2x1024xf32>
    %c2_35 = arith.constant 2 : index
    %c0_36 = arith.constant 0 : index
    %126 = vector.load %arg4[%c2_35, %c0_36] : memref<9x1024xf32, #tpu.memory_space<vmem>>, vector<1x1024xf32>
    %127 = vector.broadcast %126 : vector<1x1024xf32> to vector<2x1024xf32>
    %128 = arith.mulf %125, %127 : vector<2x1024xf32>
    %129 = vector.extract_strided_slice %128 {offsets = [0, 0], sizes = [1, 1024], strides = [1, 1]} : vector<2x1024xf32> to vector<1x1024xf32>
    %c8 = arith.constant 8 : index
    %130 = memref.load %arg8[%c8] : memref<36xf32, #tpu.memory_space<smem>>
    %131 = vector.broadcast %130 : f32 to vector<1x1024xf32>
    %132 = arith.mulf %131, %129 : vector<1x1024xf32>
    %133 = arith.addf %120, %132 : vector<1x1024xf32>
    %c10 = arith.constant 10 : index
    %134 = memref.load %arg8[%c10] : memref<36xf32, #tpu.memory_space<smem>>
    %135 = vector.broadcast %134 : f32 to vector<1x1024xf32>
    %136 = arith.mulf %135, %129 : vector<1x1024xf32>
    %137 = arith.addf %124, %136 : vector<1x1024xf32>
    %138 = vector.extract_strided_slice %128 {offsets = [1, 0], sizes = [1, 1024], strides = [1, 1]} : vector<2x1024xf32> to vector<1x1024xf32>
    %c9 = arith.constant 9 : index
    %139 = memref.load %arg8[%c9] : memref<36xf32, #tpu.memory_space<smem>>
    %140 = vector.broadcast %139 : f32 to vector<1x1024xf32>
    %141 = arith.mulf %140, %138 : vector<1x1024xf32>
    %142 = arith.addf %133, %141 : vector<1x1024xf32>
    %c11 = arith.constant 11 : index
    %143 = memref.load %arg8[%c11] : memref<36xf32, #tpu.memory_space<smem>>
    %144 = vector.broadcast %143 : f32 to vector<1x1024xf32>
    %145 = arith.mulf %144, %138 : vector<1x1024xf32>
    %146 = arith.addf %137, %145 : vector<1x1024xf32>
    %c1_i32 = arith.constant 1 : i32
    %147 = tpu.dynamic_rotate %78 by %c1_i32 dim 1 : vector<2x1024xf32>, i32 -> vector<2x1024xf32>
    %c3_37 = arith.constant 3 : index
    %c0_38 = arith.constant 0 : index
    %148 = vector.load %arg4[%c3_37, %c0_38] : memref<9x1024xf32, #tpu.memory_space<vmem>>, vector<1x1024xf32>
    %149 = vector.broadcast %148 : vector<1x1024xf32> to vector<2x1024xf32>
    %150 = arith.mulf %147, %149 : vector<2x1024xf32>
    %151 = vector.extract_strided_slice %150 {offsets = [0, 0], sizes = [1, 1024], strides = [1, 1]} : vector<2x1024xf32> to vector<1x1024xf32>
    %c12 = arith.constant 12 : index
    %152 = memref.load %arg8[%c12] : memref<36xf32, #tpu.memory_space<smem>>
    %153 = vector.broadcast %152 : f32 to vector<1x1024xf32>
    %154 = arith.mulf %153, %151 : vector<1x1024xf32>
    %155 = arith.addf %142, %154 : vector<1x1024xf32>
    %c14 = arith.constant 14 : index
    %156 = memref.load %arg8[%c14] : memref<36xf32, #tpu.memory_space<smem>>
    %157 = vector.broadcast %156 : f32 to vector<1x1024xf32>
    %158 = arith.mulf %157, %151 : vector<1x1024xf32>
    %159 = arith.addf %146, %158 : vector<1x1024xf32>
    %160 = vector.extract_strided_slice %150 {offsets = [1, 0], sizes = [1, 1024], strides = [1, 1]} : vector<2x1024xf32> to vector<1x1024xf32>
    %c13 = arith.constant 13 : index
    %161 = memref.load %arg8[%c13] : memref<36xf32, #tpu.memory_space<smem>>
    %162 = vector.broadcast %161 : f32 to vector<1x1024xf32>
    %163 = arith.mulf %162, %160 : vector<1x1024xf32>
    %164 = arith.addf %155, %163 : vector<1x1024xf32>
    %c15 = arith.constant 15 : index
    %165 = memref.load %arg8[%c15] : memref<36xf32, #tpu.memory_space<smem>>
    %166 = vector.broadcast %165 : f32 to vector<1x1024xf32>
    %167 = arith.mulf %166, %160 : vector<1x1024xf32>
    %168 = arith.addf %159, %167 : vector<1x1024xf32>
    %169 = vector.extract_strided_slice %78 {offsets = [0, 0], sizes = [1, 1024], strides = [1, 1]} : vector<2x1024xf32> to vector<1x1024xf32>
    %c16 = arith.constant 16 : index
    %170 = memref.load %arg8[%c16] : memref<36xf32, #tpu.memory_space<smem>>
    %171 = vector.broadcast %170 : f32 to vector<1x1024xf32>
    %172 = arith.mulf %171, %169 : vector<1x1024xf32>
    %173 = arith.addf %164, %172 : vector<1x1024xf32>
    %c18 = arith.constant 18 : index
    %174 = memref.load %arg8[%c18] : memref<36xf32, #tpu.memory_space<smem>>
    %175 = vector.broadcast %174 : f32 to vector<1x1024xf32>
    %176 = arith.mulf %175, %169 : vector<1x1024xf32>
    %177 = arith.addf %168, %176 : vector<1x1024xf32>
    %178 = vector.extract_strided_slice %78 {offsets = [1, 0], sizes = [1, 1024], strides = [1, 1]} : vector<2x1024xf32> to vector<1x1024xf32>
    %c17 = arith.constant 17 : index
    %179 = memref.load %arg8[%c17] : memref<36xf32, #tpu.memory_space<smem>>
    %180 = vector.broadcast %179 : f32 to vector<1x1024xf32>
    %181 = arith.mulf %180, %178 : vector<1x1024xf32>
    %182 = arith.addf %173, %181 : vector<1x1024xf32>
    %c19 = arith.constant 19 : index
    %183 = memref.load %arg8[%c19] : memref<36xf32, #tpu.memory_space<smem>>
    %184 = vector.broadcast %183 : f32 to vector<1x1024xf32>
    %185 = arith.mulf %184, %178 : vector<1x1024xf32>
    %186 = arith.addf %177, %185 : vector<1x1024xf32>
    %c1023_i32 = arith.constant 1023 : i32
    %187 = tpu.dynamic_rotate %78 by %c1023_i32 dim 1 : vector<2x1024xf32>, i32 -> vector<2x1024xf32>
    %c5_39 = arith.constant 5 : index
    %c0_40 = arith.constant 0 : index
    %188 = vector.load %arg4[%c5_39, %c0_40] : memref<9x1024xf32, #tpu.memory_space<vmem>>, vector<1x1024xf32>
    %189 = vector.broadcast %188 : vector<1x1024xf32> to vector<2x1024xf32>
    %190 = arith.mulf %187, %189 : vector<2x1024xf32>
    %191 = vector.extract_strided_slice %190 {offsets = [0, 0], sizes = [1, 1024], strides = [1, 1]} : vector<2x1024xf32> to vector<1x1024xf32>
    %c20 = arith.constant 20 : index
    %192 = memref.load %arg8[%c20] : memref<36xf32, #tpu.memory_space<smem>>
    %193 = vector.broadcast %192 : f32 to vector<1x1024xf32>
    %194 = arith.mulf %193, %191 : vector<1x1024xf32>
    %195 = arith.addf %182, %194 : vector<1x1024xf32>
    %c22 = arith.constant 22 : index
    %196 = memref.load %arg8[%c22] : memref<36xf32, #tpu.memory_space<smem>>
    %197 = vector.broadcast %196 : f32 to vector<1x1024xf32>
    %198 = arith.mulf %197, %191 : vector<1x1024xf32>
    %199 = arith.addf %186, %198 : vector<1x1024xf32>
    %200 = vector.extract_strided_slice %190 {offsets = [1, 0], sizes = [1, 1024], strides = [1, 1]} : vector<2x1024xf32> to vector<1x1024xf32>
    %c21 = arith.constant 21 : index
    %201 = memref.load %arg8[%c21] : memref<36xf32, #tpu.memory_space<smem>>
    %202 = vector.broadcast %201 : f32 to vector<1x1024xf32>
    %203 = arith.mulf %202, %200 : vector<1x1024xf32>
    %204 = arith.addf %195, %203 : vector<1x1024xf32>
    %c23 = arith.constant 23 : index
    %205 = memref.load %arg8[%c23] : memref<36xf32, #tpu.memory_space<smem>>
    %206 = vector.broadcast %205 : f32 to vector<1x1024xf32>
    %207 = arith.mulf %206, %200 : vector<1x1024xf32>
    %208 = arith.addf %199, %207 : vector<1x1024xf32>
    %c993_i32 = arith.constant 993 : i32
    %209 = tpu.dynamic_rotate %78 by %c993_i32 dim 1 : vector<2x1024xf32>, i32 -> vector<2x1024xf32>
    %c6_41 = arith.constant 6 : index
    %c0_42 = arith.constant 0 : index
    %210 = vector.load %arg4[%c6_41, %c0_42] : memref<9x1024xf32, #tpu.memory_space<vmem>>, vector<1x1024xf32>
    %211 = vector.broadcast %210 : vector<1x1024xf32> to vector<2x1024xf32>
    %212 = arith.mulf %209, %211 : vector<2x1024xf32>
    %213 = vector.extract_strided_slice %212 {offsets = [0, 0], sizes = [1, 1024], strides = [1, 1]} : vector<2x1024xf32> to vector<1x1024xf32>
    %c24 = arith.constant 24 : index
    %214 = memref.load %arg8[%c24] : memref<36xf32, #tpu.memory_space<smem>>
    %215 = vector.broadcast %214 : f32 to vector<1x1024xf32>
    %216 = arith.mulf %215, %213 : vector<1x1024xf32>
    %217 = arith.addf %204, %216 : vector<1x1024xf32>
    %c26 = arith.constant 26 : index
    %218 = memref.load %arg8[%c26] : memref<36xf32, #tpu.memory_space<smem>>
    %219 = vector.broadcast %218 : f32 to vector<1x1024xf32>
    %220 = arith.mulf %219, %213 : vector<1x1024xf32>
    %221 = arith.addf %208, %220 : vector<1x1024xf32>
    %222 = vector.extract_strided_slice %212 {offsets = [1, 0], sizes = [1, 1024], strides = [1, 1]} : vector<2x1024xf32> to vector<1x1024xf32>
    %c25 = arith.constant 25 : index
    %223 = memref.load %arg8[%c25] : memref<36xf32, #tpu.memory_space<smem>>
    %224 = vector.broadcast %223 : f32 to vector<1x1024xf32>
    %225 = arith.mulf %224, %222 : vector<1x1024xf32>
    %226 = arith.addf %217, %225 : vector<1x1024xf32>
    %c27 = arith.constant 27 : index
    %227 = memref.load %arg8[%c27] : memref<36xf32, #tpu.memory_space<smem>>
    %228 = vector.broadcast %227 : f32 to vector<1x1024xf32>
    %229 = arith.mulf %228, %222 : vector<1x1024xf32>
    %230 = arith.addf %221, %229 : vector<1x1024xf32>
    %c992_i32 = arith.constant 992 : i32
    %231 = tpu.dynamic_rotate %78 by %c992_i32 dim 1 : vector<2x1024xf32>, i32 -> vector<2x1024xf32>
    %c7_43 = arith.constant 7 : index
    %c0_44 = arith.constant 0 : index
    %232 = vector.load %arg4[%c7_43, %c0_44] : memref<9x1024xf32, #tpu.memory_space<vmem>>, vector<1x1024xf32>
    %233 = vector.broadcast %232 : vector<1x1024xf32> to vector<2x1024xf32>
    %234 = arith.mulf %231, %233 : vector<2x1024xf32>
    %235 = vector.extract_strided_slice %234 {offsets = [0, 0], sizes = [1, 1024], strides = [1, 1]} : vector<2x1024xf32> to vector<1x1024xf32>
    %c28 = arith.constant 28 : index
    %236 = memref.load %arg8[%c28] : memref<36xf32, #tpu.memory_space<smem>>
    %237 = vector.broadcast %236 : f32 to vector<1x1024xf32>
    %238 = arith.mulf %237, %235 : vector<1x1024xf32>
    %239 = arith.addf %226, %238 : vector<1x1024xf32>
    %c30 = arith.constant 30 : index
    %240 = memref.load %arg8[%c30] : memref<36xf32, #tpu.memory_space<smem>>
    %241 = vector.broadcast %240 : f32 to vector<1x1024xf32>
    %242 = arith.mulf %241, %235 : vector<1x1024xf32>
    %243 = arith.addf %230, %242 : vector<1x1024xf32>
    %244 = vector.extract_strided_slice %234 {offsets = [1, 0], sizes = [1, 1024], strides = [1, 1]} : vector<2x1024xf32> to vector<1x1024xf32>
    %c29 = arith.constant 29 : index
    %245 = memref.load %arg8[%c29] : memref<36xf32, #tpu.memory_space<smem>>
    %246 = vector.broadcast %245 : f32 to vector<1x1024xf32>
    %247 = arith.mulf %246, %244 : vector<1x1024xf32>
    %248 = arith.addf %239, %247 : vector<1x1024xf32>
    %c31 = arith.constant 31 : index
    %249 = memref.load %arg8[%c31] : memref<36xf32, #tpu.memory_space<smem>>
    %250 = vector.broadcast %249 : f32 to vector<1x1024xf32>
    %251 = arith.mulf %250, %244 : vector<1x1024xf32>
    %252 = arith.addf %243, %251 : vector<1x1024xf32>
    %c991_i32 = arith.constant 991 : i32
    %253 = tpu.dynamic_rotate %78 by %c991_i32 dim 1 : vector<2x1024xf32>, i32 -> vector<2x1024xf32>
    %c8_45 = arith.constant 8 : index
    %c0_46 = arith.constant 0 : index
    %254 = vector.load %arg4[%c8_45, %c0_46] : memref<9x1024xf32, #tpu.memory_space<vmem>>, vector<1x1024xf32>
    %255 = vector.broadcast %254 : vector<1x1024xf32> to vector<2x1024xf32>
    %256 = arith.mulf %253, %255 : vector<2x1024xf32>
    %257 = vector.extract_strided_slice %256 {offsets = [0, 0], sizes = [1, 1024], strides = [1, 1]} : vector<2x1024xf32> to vector<1x1024xf32>
    %c32 = arith.constant 32 : index
    %258 = memref.load %arg8[%c32] : memref<36xf32, #tpu.memory_space<smem>>
    %259 = vector.broadcast %258 : f32 to vector<1x1024xf32>
    %260 = arith.mulf %259, %257 : vector<1x1024xf32>
    %261 = arith.addf %248, %260 : vector<1x1024xf32>
    %c34 = arith.constant 34 : index
    %262 = memref.load %arg8[%c34] : memref<36xf32, #tpu.memory_space<smem>>
    %263 = vector.broadcast %262 : f32 to vector<1x1024xf32>
    %264 = arith.mulf %263, %257 : vector<1x1024xf32>
    %265 = arith.addf %252, %264 : vector<1x1024xf32>
    %266 = vector.extract_strided_slice %256 {offsets = [1, 0], sizes = [1, 1024], strides = [1, 1]} : vector<2x1024xf32> to vector<1x1024xf32>
    %c33 = arith.constant 33 : index
    %267 = memref.load %arg8[%c33] : memref<36xf32, #tpu.memory_space<smem>>
    %268 = vector.broadcast %267 : f32 to vector<1x1024xf32>
    %269 = arith.mulf %268, %266 : vector<1x1024xf32>
    %270 = arith.addf %261, %269 : vector<1x1024xf32>
    %c35 = arith.constant 35 : index
    %271 = memref.load %arg8[%c35] : memref<36xf32, #tpu.memory_space<smem>>
    %272 = vector.broadcast %271 : f32 to vector<1x1024xf32>
    %273 = arith.mulf %272, %266 : vector<1x1024xf32>
    %274 = arith.addf %265, %273 : vector<1x1024xf32>
    %275 = tpu.concatenate %270, %274 in 0 : vector<1x1024xf32>, vector<1x1024xf32> -> vector<2x1024xf32>
    %cst_47 = arith.constant dense<0.000000e+00> : vector<2xf32>
    %276 = vector.multi_reduction <add>, %275, %cst_47 [1] : vector<2x1024xf32> to vector<2xf32>
    %277 = vector.shape_cast %276 : vector<2xf32> to vector<2x1xf32>
    %cst_48 = arith.constant 1.024000e+03 : f32
    %278 = vector.broadcast %cst_48 : f32 to vector<2x1xf32>
    %279 = arith.divf %277, %278 : vector<2x1xf32>
    %280 = vector.broadcast %279 : vector<2x1xf32> to vector<2x1024xf32>
    %281 = arith.subf %275, %280 : vector<2x1024xf32>
    %282 = arith.mulf %281, %281 : vector<2x1024xf32>
    %cst_49 = arith.constant dense<0.000000e+00> : vector<2xf32>
    %283 = vector.multi_reduction <add>, %282, %cst_49 [1] : vector<2x1024xf32> to vector<2xf32>
    %284 = vector.shape_cast %283 : vector<2xf32> to vector<2x1xf32>
    %cst_50 = arith.constant 1.024000e+03 : f32
    %285 = vector.broadcast %cst_50 : f32 to vector<2x1xf32>
    %286 = arith.divf %284, %285 : vector<2x1xf32>
    %cst_51 = arith.constant 9.99999974E-6 : f32
    %287 = vector.broadcast %cst_51 : f32 to vector<2x1xf32>
    %288 = arith.addf %286, %287 : vector<2x1xf32>
    %289 = math.rsqrt %288 : vector<2x1xf32>
    %290 = vector.broadcast %289 : vector<2x1xf32> to vector<2x1024xf32>
    %291 = arith.mulf %281, %290 : vector<2x1024xf32>
    %292 = vector.broadcast %8 : vector<2x1xf32> to vector<2x1024xf32>
    %293 = arith.mulf %292, %291 : vector<2x1024xf32>
    %294 = vector.broadcast %9 : vector<2x1xf32> to vector<2x1024xf32>
    %295 = arith.addf %293, %294 : vector<2x1024xf32>
    %cst_52 = arith.constant 0.000000e+00 : f32
    %296 = vector.broadcast %cst_52 : f32 to vector<2x1024xf32>
    %297 = arith.cmpf ogt, %295, %296 : vector<2x1024xf32>
    %298 = math.exp %295 : vector<2x1024xf32>
    %cst_53 = arith.constant 1.000000e+00 : f32
    %299 = vector.broadcast %cst_53 : f32 to vector<2x1024xf32>
    %300 = arith.subf %298, %299 : vector<2x1024xf32>
    %cst_54 = arith.constant 1.67326319 : f32
    %301 = vector.broadcast %cst_54 : f32 to vector<2x1024xf32>
    %302 = arith.mulf %301, %300 : vector<2x1024xf32>
    %303 = arith.select %297, %295, %302 : vector<2x1024xi1>, vector<2x1024xf32>
    %cst_55 = arith.constant 1.05070102 : f32
    %304 = vector.broadcast %cst_55 : f32 to vector<2x1024xf32>
    %305 = arith.mulf %304, %303 : vector<2x1024xf32>
    %cst_56 = arith.constant 0.000000e+00 : f32
    %306 = vector.broadcast %cst_56 : f32 to vector<1x1024xf32>
    %cst_57 = arith.constant 0.000000e+00 : f32
    %307 = vector.broadcast %cst_57 : f32 to vector<1x1024xf32>
    %c33_i32_58 = arith.constant 33 : i32
    %308 = tpu.dynamic_rotate %305 by %c33_i32_58 dim 1 : vector<2x1024xf32>, i32 -> vector<2x1024xf32>
    %c0_59 = arith.constant 0 : index
    %c0_60 = arith.constant 0 : index
    %309 = vector.load %arg4[%c0_59, %c0_60] : memref<9x1024xf32, #tpu.memory_space<vmem>>, vector<1x1024xf32>
    %310 = vector.broadcast %309 : vector<1x1024xf32> to vector<2x1024xf32>
    %311 = arith.mulf %308, %310 : vector<2x1024xf32>
    %312 = vector.extract_strided_slice %311 {offsets = [0, 0], sizes = [1, 1024], strides = [1, 1]} : vector<2x1024xf32> to vector<1x1024xf32>
    %c0_61 = arith.constant 0 : index
    %313 = memref.load %arg9[%c0_61] : memref<36xf32, #tpu.memory_space<smem>>
    %314 = vector.broadcast %313 : f32 to vector<1x1024xf32>
    %315 = arith.mulf %314, %312 : vector<1x1024xf32>
    %316 = arith.addf %306, %315 : vector<1x1024xf32>
    %c2_62 = arith.constant 2 : index
    %317 = memref.load %arg9[%c2_62] : memref<36xf32, #tpu.memory_space<smem>>
    %318 = vector.broadcast %317 : f32 to vector<1x1024xf32>
    %319 = arith.mulf %318, %312 : vector<1x1024xf32>
    %320 = arith.addf %307, %319 : vector<1x1024xf32>
    %321 = vector.extract_strided_slice %311 {offsets = [1, 0], sizes = [1, 1024], strides = [1, 1]} : vector<2x1024xf32> to vector<1x1024xf32>
    %c1_63 = arith.constant 1 : index
    %322 = memref.load %arg9[%c1_63] : memref<36xf32, #tpu.memory_space<smem>>
    %323 = vector.broadcast %322 : f32 to vector<1x1024xf32>
    %324 = arith.mulf %323, %321 : vector<1x1024xf32>
    %325 = arith.addf %316, %324 : vector<1x1024xf32>
    %c3_64 = arith.constant 3 : index
    %326 = memref.load %arg9[%c3_64] : memref<36xf32, #tpu.memory_space<smem>>
    %327 = vector.broadcast %326 : f32 to vector<1x1024xf32>
    %328 = arith.mulf %327, %321 : vector<1x1024xf32>
    %329 = arith.addf %320, %328 : vector<1x1024xf32>
    %c32_i32_65 = arith.constant 32 : i32
    %330 = tpu.dynamic_rotate %305 by %c32_i32_65 dim 1 : vector<2x1024xf32>, i32 -> vector<2x1024xf32>
    %c1_66 = arith.constant 1 : index
    %c0_67 = arith.constant 0 : index
    %331 = vector.load %arg4[%c1_66, %c0_67] : memref<9x1024xf32, #tpu.memory_space<vmem>>, vector<1x1024xf32>
    %332 = vector.broadcast %331 : vector<1x1024xf32> to vector<2x1024xf32>
    %333 = arith.mulf %330, %332 : vector<2x1024xf32>
    %334 = vector.extract_strided_slice %333 {offsets = [0, 0], sizes = [1, 1024], strides = [1, 1]} : vector<2x1024xf32> to vector<1x1024xf32>
    %c4_68 = arith.constant 4 : index
    %335 = memref.load %arg9[%c4_68] : memref<36xf32, #tpu.memory_space<smem>>
    %336 = vector.broadcast %335 : f32 to vector<1x1024xf32>
    %337 = arith.mulf %336, %334 : vector<1x1024xf32>
    %338 = arith.addf %325, %337 : vector<1x1024xf32>
    %c6_69 = arith.constant 6 : index
    %339 = memref.load %arg9[%c6_69] : memref<36xf32, #tpu.memory_space<smem>>
    %340 = vector.broadcast %339 : f32 to vector<1x1024xf32>
    %341 = arith.mulf %340, %334 : vector<1x1024xf32>
    %342 = arith.addf %329, %341 : vector<1x1024xf32>
    %343 = vector.extract_strided_slice %333 {offsets = [1, 0], sizes = [1, 1024], strides = [1, 1]} : vector<2x1024xf32> to vector<1x1024xf32>
    %c5_70 = arith.constant 5 : index
    %344 = memref.load %arg9[%c5_70] : memref<36xf32, #tpu.memory_space<smem>>
    %345 = vector.broadcast %344 : f32 to vector<1x1024xf32>
    %346 = arith.mulf %345, %343 : vector<1x1024xf32>
    %347 = arith.addf %338, %346 : vector<1x1024xf32>
    %c7_71 = arith.constant 7 : index
    %348 = memref.load %arg9[%c7_71] : memref<36xf32, #tpu.memory_space<smem>>
    %349 = vector.broadcast %348 : f32 to vector<1x1024xf32>
    %350 = arith.mulf %349, %343 : vector<1x1024xf32>
    %351 = arith.addf %342, %350 : vector<1x1024xf32>
    %c31_i32_72 = arith.constant 31 : i32
    %352 = tpu.dynamic_rotate %305 by %c31_i32_72 dim 1 : vector<2x1024xf32>, i32 -> vector<2x1024xf32>
    %c2_73 = arith.constant 2 : index
    %c0_74 = arith.constant 0 : index
    %353 = vector.load %arg4[%c2_73, %c0_74] : memref<9x1024xf32, #tpu.memory_space<vmem>>, vector<1x1024xf32>
    %354 = vector.broadcast %353 : vector<1x1024xf32> to vector<2x1024xf32>
    %355 = arith.mulf %352, %354 : vector<2x1024xf32>
    %356 = vector.extract_strided_slice %355 {offsets = [0, 0], sizes = [1, 1024], strides = [1, 1]} : vector<2x1024xf32> to vector<1x1024xf32>
    %c8_75 = arith.constant 8 : index
    %357 = memref.load %arg9[%c8_75] : memref<36xf32, #tpu.memory_space<smem>>
    %358 = vector.broadcast %357 : f32 to vector<1x1024xf32>
    %359 = arith.mulf %358, %356 : vector<1x1024xf32>
    %360 = arith.addf %347, %359 : vector<1x1024xf32>
    %c10_76 = arith.constant 10 : index
    %361 = memref.load %arg9[%c10_76] : memref<36xf32, #tpu.memory_space<smem>>
    %362 = vector.broadcast %361 : f32 to vector<1x1024xf32>
    %363 = arith.mulf %362, %356 : vector<1x1024xf32>
    %364 = arith.addf %351, %363 : vector<1x1024xf32>
    %365 = vector.extract_strided_slice %355 {offsets = [1, 0], sizes = [1, 1024], strides = [1, 1]} : vector<2x1024xf32> to vector<1x1024xf32>
    %c9_77 = arith.constant 9 : index
    %366 = memref.load %arg9[%c9_77] : memref<36xf32, #tpu.memory_space<smem>>
    %367 = vector.broadcast %366 : f32 to vector<1x1024xf32>
    %368 = arith.mulf %367, %365 : vector<1x1024xf32>
    %369 = arith.addf %360, %368 : vector<1x1024xf32>
    %c11_78 = arith.constant 11 : index
    %370 = memref.load %arg9[%c11_78] : memref<36xf32, #tpu.memory_space<smem>>
    %371 = vector.broadcast %370 : f32 to vector<1x1024xf32>
    %372 = arith.mulf %371, %365 : vector<1x1024xf32>
    %373 = arith.addf %364, %372 : vector<1x1024xf32>
    %c1_i32_79 = arith.constant 1 : i32
    %374 = tpu.dynamic_rotate %305 by %c1_i32_79 dim 1 : vector<2x1024xf32>, i32 -> vector<2x1024xf32>
    %c3_80 = arith.constant 3 : index
    %c0_81 = arith.constant 0 : index
    %375 = vector.load %arg4[%c3_80, %c0_81] : memref<9x1024xf32, #tpu.memory_space<vmem>>, vector<1x1024xf32>
    %376 = vector.broadcast %375 : vector<1x1024xf32> to vector<2x1024xf32>
    %377 = arith.mulf %374, %376 : vector<2x1024xf32>
    %378 = vector.extract_strided_slice %377 {offsets = [0, 0], sizes = [1, 1024], strides = [1, 1]} : vector<2x1024xf32> to vector<1x1024xf32>
    %c12_82 = arith.constant 12 : index
    %379 = memref.load %arg9[%c12_82] : memref<36xf32, #tpu.memory_space<smem>>
    %380 = vector.broadcast %379 : f32 to vector<1x1024xf32>
    %381 = arith.mulf %380, %378 : vector<1x1024xf32>
    %382 = arith.addf %369, %381 : vector<1x1024xf32>
    %c14_83 = arith.constant 14 : index
    %383 = memref.load %arg9[%c14_83] : memref<36xf32, #tpu.memory_space<smem>>
    %384 = vector.broadcast %383 : f32 to vector<1x1024xf32>
    %385 = arith.mulf %384, %378 : vector<1x1024xf32>
    %386 = arith.addf %373, %385 : vector<1x1024xf32>
    %387 = vector.extract_strided_slice %377 {offsets = [1, 0], sizes = [1, 1024], strides = [1, 1]} : vector<2x1024xf32> to vector<1x1024xf32>
    %c13_84 = arith.constant 13 : index
    %388 = memref.load %arg9[%c13_84] : memref<36xf32, #tpu.memory_space<smem>>
    %389 = vector.broadcast %388 : f32 to vector<1x1024xf32>
    %390 = arith.mulf %389, %387 : vector<1x1024xf32>
    %391 = arith.addf %382, %390 : vector<1x1024xf32>
    %c15_85 = arith.constant 15 : index
    %392 = memref.load %arg9[%c15_85] : memref<36xf32, #tpu.memory_space<smem>>
    %393 = vector.broadcast %392 : f32 to vector<1x1024xf32>
    %394 = arith.mulf %393, %387 : vector<1x1024xf32>
    %395 = arith.addf %386, %394 : vector<1x1024xf32>
    %396 = vector.extract_strided_slice %305 {offsets = [0, 0], sizes = [1, 1024], strides = [1, 1]} : vector<2x1024xf32> to vector<1x1024xf32>
    %c16_86 = arith.constant 16 : index
    %397 = memref.load %arg9[%c16_86] : memref<36xf32, #tpu.memory_space<smem>>
    %398 = vector.broadcast %397 : f32 to vector<1x1024xf32>
    %399 = arith.mulf %398, %396 : vector<1x1024xf32>
    %400 = arith.addf %391, %399 : vector<1x1024xf32>
    %c18_87 = arith.constant 18 : index
    %401 = memref.load %arg9[%c18_87] : memref<36xf32, #tpu.memory_space<smem>>
    %402 = vector.broadcast %401 : f32 to vector<1x1024xf32>
    %403 = arith.mulf %402, %396 : vector<1x1024xf32>
    %404 = arith.addf %395, %403 : vector<1x1024xf32>
    %405 = vector.extract_strided_slice %305 {offsets = [1, 0], sizes = [1, 1024], strides = [1, 1]} : vector<2x1024xf32> to vector<1x1024xf32>
    %c17_88 = arith.constant 17 : index
    %406 = memref.load %arg9[%c17_88] : memref<36xf32, #tpu.memory_space<smem>>
    %407 = vector.broadcast %406 : f32 to vector<1x1024xf32>
    %408 = arith.mulf %407, %405 : vector<1x1024xf32>
    %409 = arith.addf %400, %408 : vector<1x1024xf32>
    %c19_89 = arith.constant 19 : index
    %410 = memref.load %arg9[%c19_89] : memref<36xf32, #tpu.memory_space<smem>>
    %411 = vector.broadcast %410 : f32 to vector<1x1024xf32>
    %412 = arith.mulf %411, %405 : vector<1x1024xf32>
    %413 = arith.addf %404, %412 : vector<1x1024xf32>
    %c1023_i32_90 = arith.constant 1023 : i32
    %414 = tpu.dynamic_rotate %305 by %c1023_i32_90 dim 1 : vector<2x1024xf32>, i32 -> vector<2x1024xf32>
    %c5_91 = arith.constant 5 : index
    %c0_92 = arith.constant 0 : index
    %415 = vector.load %arg4[%c5_91, %c0_92] : memref<9x1024xf32, #tpu.memory_space<vmem>>, vector<1x1024xf32>
    %416 = vector.broadcast %415 : vector<1x1024xf32> to vector<2x1024xf32>
    %417 = arith.mulf %414, %416 : vector<2x1024xf32>
    %418 = vector.extract_strided_slice %417 {offsets = [0, 0], sizes = [1, 1024], strides = [1, 1]} : vector<2x1024xf32> to vector<1x1024xf32>
    %c20_93 = arith.constant 20 : index
    %419 = memref.load %arg9[%c20_93] : memref<36xf32, #tpu.memory_space<smem>>
    %420 = vector.broadcast %419 : f32 to vector<1x1024xf32>
    %421 = arith.mulf %420, %418 : vector<1x1024xf32>
    %422 = arith.addf %409, %421 : vector<1x1024xf32>
    %c22_94 = arith.constant 22 : index
    %423 = memref.load %arg9[%c22_94] : memref<36xf32, #tpu.memory_space<smem>>
    %424 = vector.broadcast %423 : f32 to vector<1x1024xf32>
    %425 = arith.mulf %424, %418 : vector<1x1024xf32>
    %426 = arith.addf %413, %425 : vector<1x1024xf32>
    %427 = vector.extract_strided_slice %417 {offsets = [1, 0], sizes = [1, 1024], strides = [1, 1]} : vector<2x1024xf32> to vector<1x1024xf32>
    %c21_95 = arith.constant 21 : index
    %428 = memref.load %arg9[%c21_95] : memref<36xf32, #tpu.memory_space<smem>>
    %429 = vector.broadcast %428 : f32 to vector<1x1024xf32>
    %430 = arith.mulf %429, %427 : vector<1x1024xf32>
    %431 = arith.addf %422, %430 : vector<1x1024xf32>
    %c23_96 = arith.constant 23 : index
    %432 = memref.load %arg9[%c23_96] : memref<36xf32, #tpu.memory_space<smem>>
    %433 = vector.broadcast %432 : f32 to vector<1x1024xf32>
    %434 = arith.mulf %433, %427 : vector<1x1024xf32>
    %435 = arith.addf %426, %434 : vector<1x1024xf32>
    %c993_i32_97 = arith.constant 993 : i32
    %436 = tpu.dynamic_rotate %305 by %c993_i32_97 dim 1 : vector<2x1024xf32>, i32 -> vector<2x1024xf32>
    %c6_98 = arith.constant 6 : index
    %c0_99 = arith.constant 0 : index
    %437 = vector.load %arg4[%c6_98, %c0_99] : memref<9x1024xf32, #tpu.memory_space<vmem>>, vector<1x1024xf32>
    %438 = vector.broadcast %437 : vector<1x1024xf32> to vector<2x1024xf32>
    %439 = arith.mulf %436, %438 : vector<2x1024xf32>
    %440 = vector.extract_strided_slice %439 {offsets = [0, 0], sizes = [1, 1024], strides = [1, 1]} : vector<2x1024xf32> to vector<1x1024xf32>
    %c24_100 = arith.constant 24 : index
    %441 = memref.load %arg9[%c24_100] : memref<36xf32, #tpu.memory_space<smem>>
    %442 = vector.broadcast %441 : f32 to vector<1x1024xf32>
    %443 = arith.mulf %442, %440 : vector<1x1024xf32>
    %444 = arith.addf %431, %443 : vector<1x1024xf32>
    %c26_101 = arith.constant 26 : index
    %445 = memref.load %arg9[%c26_101] : memref<36xf32, #tpu.memory_space<smem>>
    %446 = vector.broadcast %445 : f32 to vector<1x1024xf32>
    %447 = arith.mulf %446, %440 : vector<1x1024xf32>
    %448 = arith.addf %435, %447 : vector<1x1024xf32>
    %449 = vector.extract_strided_slice %439 {offsets = [1, 0], sizes = [1, 1024], strides = [1, 1]} : vector<2x1024xf32> to vector<1x1024xf32>
    %c25_102 = arith.constant 25 : index
    %450 = memref.load %arg9[%c25_102] : memref<36xf32, #tpu.memory_space<smem>>
    %451 = vector.broadcast %450 : f32 to vector<1x1024xf32>
    %452 = arith.mulf %451, %449 : vector<1x1024xf32>
    %453 = arith.addf %444, %452 : vector<1x1024xf32>
    %c27_103 = arith.constant 27 : index
    %454 = memref.load %arg9[%c27_103] : memref<36xf32, #tpu.memory_space<smem>>
    %455 = vector.broadcast %454 : f32 to vector<1x1024xf32>
    %456 = arith.mulf %455, %449 : vector<1x1024xf32>
    %457 = arith.addf %448, %456 : vector<1x1024xf32>
    %c992_i32_104 = arith.constant 992 : i32
    %458 = tpu.dynamic_rotate %305 by %c992_i32_104 dim 1 : vector<2x1024xf32>, i32 -> vector<2x1024xf32>
    %c7_105 = arith.constant 7 : index
    %c0_106 = arith.constant 0 : index
    %459 = vector.load %arg4[%c7_105, %c0_106] : memref<9x1024xf32, #tpu.memory_space<vmem>>, vector<1x1024xf32>
    %460 = vector.broadcast %459 : vector<1x1024xf32> to vector<2x1024xf32>
    %461 = arith.mulf %458, %460 : vector<2x1024xf32>
    %462 = vector.extract_strided_slice %461 {offsets = [0, 0], sizes = [1, 1024], strides = [1, 1]} : vector<2x1024xf32> to vector<1x1024xf32>
    %c28_107 = arith.constant 28 : index
    %463 = memref.load %arg9[%c28_107] : memref<36xf32, #tpu.memory_space<smem>>
    %464 = vector.broadcast %463 : f32 to vector<1x1024xf32>
    %465 = arith.mulf %464, %462 : vector<1x1024xf32>
    %466 = arith.addf %453, %465 : vector<1x1024xf32>
    %c30_108 = arith.constant 30 : index
    %467 = memref.load %arg9[%c30_108] : memref<36xf32, #tpu.memory_space<smem>>
    %468 = vector.broadcast %467 : f32 to vector<1x1024xf32>
    %469 = arith.mulf %468, %462 : vector<1x1024xf32>
    %470 = arith.addf %457, %469 : vector<1x1024xf32>
    %471 = vector.extract_strided_slice %461 {offsets = [1, 0], sizes = [1, 1024], strides = [1, 1]} : vector<2x1024xf32> to vector<1x1024xf32>
    %c29_109 = arith.constant 29 : index
    %472 = memref.load %arg9[%c29_109] : memref<36xf32, #tpu.memory_space<smem>>
    %473 = vector.broadcast %472 : f32 to vector<1x1024xf32>
    %474 = arith.mulf %473, %471 : vector<1x1024xf32>
    %475 = arith.addf %466, %474 : vector<1x1024xf32>
    %c31_110 = arith.constant 31 : index
    %476 = memref.load %arg9[%c31_110] : memref<36xf32, #tpu.memory_space<smem>>
    %477 = vector.broadcast %476 : f32 to vector<1x1024xf32>
    %478 = arith.mulf %477, %471 : vector<1x1024xf32>
    %479 = arith.addf %470, %478 : vector<1x1024xf32>
    %c991_i32_111 = arith.constant 991 : i32
    %480 = tpu.dynamic_rotate %305 by %c991_i32_111 dim 1 : vector<2x1024xf32>, i32 -> vector<2x1024xf32>
    %c8_112 = arith.constant 8 : index
    %c0_113 = arith.constant 0 : index
    %481 = vector.load %arg4[%c8_112, %c0_113] : memref<9x1024xf32, #tpu.memory_space<vmem>>, vector<1x1024xf32>
    %482 = vector.broadcast %481 : vector<1x1024xf32> to vector<2x1024xf32>
    %483 = arith.mulf %480, %482 : vector<2x1024xf32>
    %484 = vector.extract_strided_slice %483 {offsets = [0, 0], sizes = [1, 1024], strides = [1, 1]} : vector<2x1024xf32> to vector<1x1024xf32>
    %c32_114 = arith.constant 32 : index
    %485 = memref.load %arg9[%c32_114] : memref<36xf32, #tpu.memory_space<smem>>
    %486 = vector.broadcast %485 : f32 to vector<1x1024xf32>
    %487 = arith.mulf %486, %484 : vector<1x1024xf32>
    %488 = arith.addf %475, %487 : vector<1x1024xf32>
    %c34_115 = arith.constant 34 : index
    %489 = memref.load %arg9[%c34_115] : memref<36xf32, #tpu.memory_space<smem>>
    %490 = vector.broadcast %489 : f32 to vector<1x1024xf32>
    %491 = arith.mulf %490, %484 : vector<1x1024xf32>
    %492 = arith.addf %479, %491 : vector<1x1024xf32>
    %493 = vector.extract_strided_slice %483 {offsets = [1, 0], sizes = [1, 1024], strides = [1, 1]} : vector<2x1024xf32> to vector<1x1024xf32>
    %c33_116 = arith.constant 33 : index
    %494 = memref.load %arg9[%c33_116] : memref<36xf32, #tpu.memory_space<smem>>
    %495 = vector.broadcast %494 : f32 to vector<1x1024xf32>
    %496 = arith.mulf %495, %493 : vector<1x1024xf32>
    %497 = arith.addf %488, %496 : vector<1x1024xf32>
    %c35_117 = arith.constant 35 : index
    %498 = memref.load %arg9[%c35_117] : memref<36xf32, #tpu.memory_space<smem>>
    %499 = vector.broadcast %498 : f32 to vector<1x1024xf32>
    %500 = arith.mulf %499, %493 : vector<1x1024xf32>
    %501 = arith.addf %492, %500 : vector<1x1024xf32>
    %502 = tpu.concatenate %497, %501 in 0 : vector<1x1024xf32>, vector<1x1024xf32> -> vector<2x1024xf32>
    %cst_118 = arith.constant dense<0.000000e+00> : vector<2xf32>
    %503 = vector.multi_reduction <add>, %502, %cst_118 [1] : vector<2x1024xf32> to vector<2xf32>
    %504 = vector.shape_cast %503 : vector<2xf32> to vector<2x1xf32>
    %cst_119 = arith.constant 1.024000e+03 : f32
    %505 = vector.broadcast %cst_119 : f32 to vector<2x1xf32>
    %506 = arith.divf %504, %505 : vector<2x1xf32>
    %507 = vector.broadcast %506 : vector<2x1xf32> to vector<2x1024xf32>
    %508 = arith.subf %502, %507 : vector<2x1024xf32>
    %509 = arith.mulf %508, %508 : vector<2x1024xf32>
    %cst_120 = arith.constant dense<0.000000e+00> : vector<2xf32>
    %510 = vector.multi_reduction <add>, %509, %cst_120 [1] : vector<2x1024xf32> to vector<2xf32>
    %511 = vector.shape_cast %510 : vector<2xf32> to vector<2x1xf32>
    %cst_121 = arith.constant 1.024000e+03 : f32
    %512 = vector.broadcast %cst_121 : f32 to vector<2x1xf32>
    %513 = arith.divf %511, %512 : vector<2x1xf32>
    %cst_122 = arith.constant 9.99999974E-6 : f32
    %514 = vector.broadcast %cst_122 : f32 to vector<2x1xf32>
    %515 = arith.addf %513, %514 : vector<2x1xf32>
    %516 = math.rsqrt %515 : vector<2x1xf32>
    %517 = vector.broadcast %516 : vector<2x1xf32> to vector<2x1024xf32>
    %518 = arith.mulf %508, %517 : vector<2x1024xf32>
    %519 = vector.broadcast %10 : vector<2x1xf32> to vector<2x1024xf32>
    %520 = arith.mulf %519, %518 : vector<2x1024xf32>
    %521 = vector.broadcast %11 : vector<2x1xf32> to vector<2x1024xf32>
    %522 = arith.addf %520, %521 : vector<2x1024xf32>
    %cst_123 = arith.constant 0.000000e+00 : f32
    %523 = vector.broadcast %cst_123 : f32 to vector<2x1024xf32>
    %524 = arith.cmpf ogt, %522, %523 : vector<2x1024xf32>
    %525 = math.exp %522 : vector<2x1024xf32>
    %cst_124 = arith.constant 1.000000e+00 : f32
    %526 = vector.broadcast %cst_124 : f32 to vector<2x1024xf32>
    %527 = arith.subf %525, %526 : vector<2x1024xf32>
    %cst_125 = arith.constant 1.67326319 : f32
    %528 = vector.broadcast %cst_125 : f32 to vector<2x1024xf32>
    %529 = arith.mulf %528, %527 : vector<2x1024xf32>
    %530 = arith.select %524, %522, %529 : vector<2x1024xi1>, vector<2x1024xf32>
    %cst_126 = arith.constant 1.05070102 : f32
    %531 = vector.broadcast %cst_126 : f32 to vector<2x1024xf32>
    %532 = arith.mulf %531, %530 : vector<2x1024xf32>
    %533 = vector.extract_strided_slice %77 {offsets = [0, 0], sizes = [8, 1024], strides = [1, 1]} : vector<10x1024xf32> to vector<8x1024xf32>
    %c0_127 = arith.constant 0 : index
    %c0_128 = arith.constant 0 : index
    %534 = vector.load %arg7[%c0_127, %c0_128] : memref<16x2xf32, #tpu.memory_space<vmem>>, vector<16x2xf32>
    %cst_129 = arith.constant dense<0.000000e+00> : vector<16x1024xf32>
    %535 = tpu.matmul %534, %532, %cst_129 {dimension_numbers = #tpu.dot_dimension_numbers<[1], [0], [0], [1], [0, 0, 1, 1], [], []>} : vector<16x2xf32>, vector<2x1024xf32>, vector<16x1024xf32> -> vector<16x1024xf32>
    %c0_130 = arith.constant 0 : index
    %c0_131 = arith.constant 0 : index
    %536 = vector.load %arg6[%c0_130, %c0_131] : memref<16x8xf32, #tpu.memory_space<vmem>>, vector<16x8xf32>
    %cst_132 = arith.constant dense<0.000000e+00> : vector<16x1024xf32>
    %537 = tpu.matmul %536, %533, %cst_132 {dimension_numbers = #tpu.dot_dimension_numbers<[1], [0], [0], [1], [0, 0, 1, 1], [], []>} : vector<16x8xf32>, vector<8x1024xf32>, vector<16x1024xf32> -> vector<16x1024xf32>
    %538 = arith.addf %535, %537 : vector<16x1024xf32>
    %c0_133 = arith.constant 0 : index
    %c0_134 = arith.constant 0 : index
    %c0_135 = arith.constant 0 : index
    %539 = vector.load %arg10[%c0_133, %c0_134, %c0_135] : memref<1x16x1024xf32, #tpu.memory_space<vmem>>, vector<1x16x1024xf32>
    %540 = vector.shape_cast %539 : vector<1x16x1024xf32> to vector<16x1024xf32>
    %541 = vector.shape_cast %538 : vector<16x1024xf32> to vector<1x16x1024xf32>
    tpu.vector_store %arg10[%c0_133, %c0_134, %c0_135], %541 {strides = array<i32>} : memref<1x16x1024xf32, #tpu.memory_space<vmem>>, vector<1x16x1024xf32>,
    return
  }
  func.func @transform_0(%arg0: i32) -> (i32, i32, i32) {
    %c0_i32 = arith.constant 0 : i32
    %c0_i32_0 = arith.constant 0 : i32
    %c0_i32_1 = arith.constant 0 : i32
    return %arg0, %c0_i32, %c0_i32_0 : i32, i32, i32
  }
  func.func @transform_1(%arg0: i32) -> (i32, i32, i32) {
    %c0_i32 = arith.constant 0 : i32
    %c0_i32_0 = arith.constant 0 : i32
    %c0_i32_1 = arith.constant 0 : i32
    return %arg0, %c0_i32, %c0_i32_0 : i32, i32, i32
  }
  func.func @transform_2(%arg0: i32) -> (i32, i32) {
    %c0_i32 = arith.constant 0 : i32
    %c0_i32_0 = arith.constant 0 : i32
    %c0_i32_1 = arith.constant 0 : i32
    return %c0_i32, %c0_i32_0 : i32, i32
  }
  func.func @transform_3(%arg0: i32) -> (i32, i32) {
    %c0_i32 = arith.constant 0 : i32
    %c0_i32_0 = arith.constant 0 : i32
    %c0_i32_1 = arith.constant 0 : i32
    return %c0_i32, %c0_i32_0 : i32, i32
  }
  func.func @transform_4(%arg0: i32) -> (i32, i32) {
    %c0_i32 = arith.constant 0 : i32
    %c0_i32_0 = arith.constant 0 : i32
    %c0_i32_1 = arith.constant 0 : i32
    return %c0_i32, %c0_i32_0 : i32, i32
  }
  func.func @transform_5(%arg0: i32) -> (i32, i32) {
    %c0_i32 = arith.constant 0 : i32
    %c0_i32_0 = arith.constant 0 : i32
    %c0_i32_1 = arith.constant 0 : i32
    return %c0_i32, %c0_i32_0 : i32, i32
  }
  func.func @transform_6(%arg0: i32) -> (i32, i32) {
    %c0_i32 = arith.constant 0 : i32
    %c0_i32_0 = arith.constant 0 : i32
    %c0_i32_1 = arith.constant 0 : i32
    return %c0_i32, %c0_i32_0 : i32, i32
  }
  func.func @transform_7(%arg0: i32) -> i32 {
    %c0_i32 = arith.constant 0 : i32
    %c0_i32_0 = arith.constant 0 : i32
    return %c0_i32 : i32
  }
  func.func @transform_8(%arg0: i32) -> i32 {
    %c0_i32 = arith.constant 0 : i32
    %c0_i32_0 = arith.constant 0 : i32
    return %c0_i32 : i32
  }
  func.func @transform_9(%arg0: i32) -> (i32, i32, i32) {
    %c0_i32 = arith.constant 0 : i32
    %c0_i32_0 = arith.constant 0 : i32
    %c0_i32_1 = arith.constant 0 : i32
    return %arg0, %c0_i32, %c0_i32_0 : i32, i32, i32
  }
}

</mosaic_0001>

<bundles_post_ra>
// kernel: tpu_custom_call.1
= control target key start
LH: loop header
LB: loop body
LE: loop exit
PB: predicated region body
PF: predicated region fallthrough
CT: control target
= control target key end

     0   :  { %s10054_s0 = inlined_call_operand.vmem [shape: f32[2,8,256], index: 0, kind: input, shape index: {}]   ;;  %s10055_s1 = inlined_call_operand.vmem [shape: f32[2,14,2], index: 1, kind: input, shape index: {}]   ;;  %s10056_s2 = inlined_call_operand.hbm [shape: bf16[256,1024], index: 2, kind: input, shape index: {}]   ;;  %s10057_s3 = inlined_call_operand.hbm [shape: f32[9,1024], index: 3, kind: input, shape index: {}]   ;;  %s10058_s4 = inlined_call_operand.vmem [shape: f32[2,8], index: 4, kind: input, shape index: {}]   ;;  %s10059_s5 = inlined_call_operand.vmem [shape: f32[16,8], index: 5, kind: input, shape index: {}]   ;;  %s10060_s6 = inlined_call_operand.vmem [shape: f32[16,2], index: 6, kind: input, shape index: {}]   ;;  %s10061_s7 = inlined_call_operand.vmem [shape: f32[36], index: 7, kind: input, shape index: {}]   ;;  %s10062_s8 = inlined_call_operand.vmem [shape: f32[36], index: 8, kind: input, shape index: {}]   ;;  %s10063_s9 = inlined_call_operand.hbm [shape: f32[2,16,1024], index: 9, kind: output, shape index: {}]  }
   0x1   :  { %10329 = sst [smem:[#allocation169_spill]] %s10054_s0 }
   0x2   :  { %10330 = sst [smem:[#allocation170_spill]] %s10055_s1 }
   0x3   :  { %10331 = sst [smem:[#allocation171_spill]] %s10056_s2 }
   0x4   :  { %10332 = sst [smem:[#allocation172_spill]] %s10057_s3 }
   0x5   :  { %10333 = sst [smem:[#allocation173_spill]] %s10058_s4 }
   0x6   :  { %14 = vsyncpa [#allocation3], 0 }
   0x7   :  { %15 = vsyncpa [#allocation7], 0 }
   0x8   :  { %16 = vsyncpa [#allocation5], 0 }
   0x9   :  { %17 = vsyncpa [#allocation10], 0 }
   0xa   :  { %18 = vsyncpa [#allocation4], 0 }
   0xb   :  { %20 = vsyncpa [#allocation4 + $0x1], 0  ;;  %s6502_s30 = smov 0   ;;  %s6504_s10 = smov 0  }
   0xc   :  { %s6506_s11 = smov 0   ;;  %s6508_s12 = smov 0  }
   0xd LB: > { %10334 = sst [smem:[#allocation17_spill]] %s6424_s11  ;;  %s6523_s13 = sadd.s32 4294967295, %s6428_s12   ;;  %s6428_s12 = sphi %s6508_s12, %s11007_s12   ;;  %s6424_s11 = sphi %s6506_s11, %s11009_s11   ;;  %s6420_s10 = sphi %s6504_s10, %s11011_s10   ;;  %s6416_s30 = sphi %s6502_s30, %s11010_s30  }
   0xe   : > { %s5830_s14 = sadd.s32 4294967294, %s6428_s12   ;;  %s6527_s15 = sadd.s32 1, %s6428_s12  }
   0xf   : > { %10335 = sst [smem:[#allocation18_spill]] %s6527_s15  ;;  %s232_s16 = sadd.s32 1, %s6424_s11 }
  0x10   : > { %s229_s17 = ssub.s32 %s6428_s12, %s6527_s15  ;;  %p242_p0 = scmp.ne.s32.totalorder %s6424_s11, %s6420_s10 }
  0x11   : > { %p230_p1 = scmp.eq.s32.totalorder %s229_s17, 0  ;;  %p243_p2 = scmp.eq.s32.totalorder %s6523_s13, 1 }
  0x12   : > { %p248_p3 = scmp.ne.s32.totalorder %s6420_s10, %s6416_s30  ;;  %p249_p4 = scmp.eq.s32.totalorder %s5830_s14, 1 }
  0x13   : > { %s6538_s18 = scalar_select %p230_p1, %s6424_s11, %s232_s16  }
  0x14   : > { %p6540_p5 = por %p243_p2, %p242_p0  ;;  %p6544_p6 = por %p249_p4, %p248_p3 }
  0x15   : > { %10336 = sst [smem:[#allocation19_spill]] %s6538_s18  ;;  %p5831_p7 = scmp.ge.s32.totalorder %s6428_s12, 1 }
  0x16   : > { %s10337_s19 = scalar_select %p6540_p5, 1, 0 }
  0x17   : > { %s10338_s20 = scalar_select %p6544_p6, 1, 0 }
  0x18   : > { %p256_p8 = scmp.lt.s32.totalorder %s6428_s12, 3  ;;  %p10064_p9 = scmp.eq.s32.totalorder %s6523_s13, 0 }
  0x19   : > { %10339 = sst [smem:[#allocation20_spill]] %s10338_s20  ;;  %s6430_s22 = smov [#allocation2]  }
  0x1a   : > { %p6551_p10 = pnand %p5831_p7, %p256_p8  ;;  %s268_s23 = sshll.u32 %s6430_s22, 4  ;;  %s269_s23 = int_to_ptr.vmem [resolvable:$true] %s268_s23 }
  0x1b   : > { %s6431_s25 = smov [#allocation6]   ;;  %s10342_s2 = sld [smem:[#allocation171_spill]] }
  0x1c   : > { %s10340_s21 = scalar_select %p6551_p10, 1, 0 }
  0x1d   : > { %p6132_p11 = pneg %p6551_p10  ;;  %s281_s26 = sshll.u32 %s6431_s25, 4  ;;  %s6563_s26 = int_to_ptr.vmem [resolvable:$true] %s281_s26 }
  0x1f   : > { %p6559_p12 = pnand %p10064_p9, %p6132_p11 }
  0x21   : > { %s6264_s29 = scalar_lea.hbm %s10342_s2, 16384  ;;  %p6573_p0 = pneg %p6559_p12 }
  0x22   : > { %p6265_p13 = scmp.ne.s32.totalorder %s10342_s2, %s6264_s29  ;;  %p6271_p3 = scmp.lt.u32.totalorder %s6264_s29, %s10342_s2 }
  0x24   : > { %p6267_p1 = pnand %p6573_p0, %p6265_p13 }
  0x26   : > { %p6268_p2 = pneg %p6267_p1 }
  0x28   : > { %p6273_p4 = pnand %p6271_p3, %p6268_p2 }
  0x2a   : > { %6276 = shalt.err (!%p6273_p4)
}
  0x2b   : > { %s6277_s27 = scalar_lea.vmem %s269_s23, 16384  ;;  %p6285_p9 = scmp.lt.s32.totalorder %s269_s23, %s269_s23 }
  0x2c   : > { %p6278_p7 = scmp.ne.s32.totalorder %s269_s23, %s6277_s27  ;;  %p6286_p6 = scmp.lt.s32.totalorder %s6277_s27, %s6277_s27 }
  0x2e   : > { %p6280_p8 = pnand %p6278_p7, %p6573_p0  ;;  %p6287_p5 = por %p6286_p6, %p6285_p9 }
  0x30   : > { %p6281_p11 = pneg %p6280_p8 }
  0x32   : > { %p6288_p10 = pnand %p6287_p5, %p6281_p11 }
  0x34   : > { %6291 = shalt.err (!%p6288_p10)
}
  0x35   : > { %s6432_s28 = smov 512   ;;  %s6433_s14 = smov 32  }
  0x36   : > { %6135 = dma.hbm_to_vmem [thread:$0]  (!%p6559_p12), %s10342_s2, 16384, %s269_s23, [#allocation3], %s6432_s28, %s6432_s28, %s6433_s14  }
  0x37   : > { %s10344_s3 = sld [smem:[#allocation172_spill]] }
  0x3d   : > { %s6292_s18 = scalar_lea.hbm %s10344_s3, 2048 }
  0x3e   : > { %p6293_p13 = scmp.ne.s32.totalorder %s10344_s3, %s6292_s18  ;;  %p6299_p9 = scmp.lt.u32.totalorder %s6292_s18, %s10344_s3 }
  0x40   : > { %p6295_p5 = pnand %p6293_p13, %p6573_p0 }
  0x42   : > { %p6296_p6 = pneg %p6295_p5 }
  0x44   : > { %p6301_p10 = pnand %p6299_p9, %p6296_p6 }
  0x46   : > { %6304 = shalt.err (!%p6301_p10)
}
  0x47   : > { %s6305_s23 = scalar_lea.vmem %s6563_s26, 2048  ;;  %p6313_p4 = scmp.lt.s32.totalorder %s6563_s26, %s6563_s26 }
  0x48   : > { %p6306_p1 = scmp.ne.s32.totalorder %s6563_s26, %s6305_s23  ;;  %p6314_p7 = scmp.lt.s32.totalorder %s6305_s23, %s6305_s23 }
  0x4a   : > { %p6308_p2 = pnand %p6306_p1, %p6573_p0  ;;  %p6315_p8 = por %p6314_p7, %p6313_p4 }
  0x4c   : > { %p6309_p3 = pneg %p6308_p2 }
  0x4e   : > { %p6316_p11 = pnand %p6315_p8, %p6309_p3 }
  0x50   : > { %6319 = shalt.err (!%p6316_p11)
}
  0x51   : > { %s6434_s11 = smov 1024   ;;  %s6435_s15 = smov 64  }
  0x52   : > { %6138 = dma.hbm_to_vmem [thread:$0]  (!%p6559_p12), %s10344_s3, 2048, %s6563_s26, [#allocation7], %s6434_s11, %s6434_s11, %s6435_s15  }
  0x53   : > { %s304_s16 = sshll.u32 %s10061_s7, 4  ;;  %s315_s25 = sshll.u32 %s10062_s8, 4  ;;  %s305_s16 = int_to_ptr.vmem [resolvable:$true] %s304_s16  ;;  %s316_s25 = int_to_ptr.vmem [resolvable:$true] %s315_s25 }
  0x54   : > { %s6320_s27 = scalar_lea.vmem %s305_s16, 16  ;;  %p6328_p9 = scmp.lt.s32.totalorder %s305_s16, %s305_s16 }
  0x55   : > { %p6321_p13 = scmp.ne.s32.totalorder %s305_s16, %s6320_s27  ;;  %p6329_p10 = scmp.lt.s32.totalorder %s6320_s27, %s6320_s27 }
  0x57   : > { %p6323_p5 = pnand %p6321_p13, %p6573_p0  ;;  %p6330_p1 = por %p6329_p10, %p6328_p9 }
  0x59   : > { %p6324_p6 = pneg %p6323_p5 }
  0x5b   : > { %p6331_p2 = pnand %p6330_p1, %p6324_p6 }
  0x5d   : > { %6334 = shalt.err (!%p6331_p2)
}
  0x5e   : > { %s6436_s26 = smov [#allocation8]   ;;  %s6335_s23 = scalar_lea.vmem %s316_s25, 16 }
  0x5f   : > { %6141 = dma.vmem_to_smem (!%p6559_p12), %s305_s16, 16, %s6436_s26, [#allocation5]  }
  0x60   : > { %p6336_p3 = scmp.ne.s32.totalorder %s316_s25, %s6335_s23  ;;  %p6343_p8 = scmp.lt.s32.totalorder %s316_s25, %s316_s25 }
  0x61   : > { %p6344_p11 = scmp.lt.s32.totalorder %s6335_s23, %s6335_s23 }
  0x62   : > { %p6338_p4 = pnand %p6336_p3, %p6573_p0 }
  0x63   : > { %p6345_p13 = por %p6344_p11, %p6343_p8 }
  0x64   : > { %p6339_p7 = pneg %p6338_p4 }
  0x66   : > { %p6346_p5 = pnand %p6345_p13, %p6339_p7 }
  0x68   : > { %6349 = shalt.err (!%p6346_p5)
}
  0x69   : > { %s6437_s11 = smov [#allocation9]   ;;  %p10345_p6 = scmp.ne.s32.totalorder %s10340_s21, 0 }
  0x6a   : > { %6144 = dma.vmem_to_smem (!%p6559_p12), %s316_s25, 16, %s6437_s11, [#allocation10]  }
  0x6b   : > { %344 = sbr.rel (%p10345_p6) target bundleno = 2900 (0xb54), region = 56 }
  0x72   : > { %p10346_p9 = scmp.eq.s32.totalorder %s6523_s13, 0 }
  0x74   : > { %6395 = dma.done.wait (%p10346_p9), [#allocation3], 16384   ;;  %p10347_p10 = pmov %p10346_p9 }
  0x75   : > { %p10348_p0 = pmov %p10346_p9 }
  0x76   : > { %6397 = vsyncadd (%p10347_p10), [#allocation3], 4294950912 }
  0x77   : > { %6399 = dma.done.wait (%p10348_p0), [#allocation7], 2048   ;;  %p10349_p1 = pmov %p10348_p0 }
  0x78   : > { %p10350_p2 = pmov %p10348_p0 }
  0x79   : > { %6401 = vsyncadd (%p10349_p1), [#allocation7], 4294965248 }
  0x7a   : > { %6403 = dma.done.wait (%p10350_p2), [#allocation5], 16   ;;  %p10351_p12 = pmov %p10348_p0 }
  0x7b   : > { %p10352_p3 = pmov %p10348_p0 }
  0x7c   : > { %6405 = vsyncadd (%p10351_p12), [#allocation5], 4294967280 }
  0x7d   : > { %6407 = dma.done.wait (%p10352_p3), [#allocation10], 16   ;;  %p10353_p4 = pmov %p10348_p0 }
  0x7f   : > { %6409 = vsyncadd (%p10353_p4), [#allocation10], 4294967280 }
  0x80   : > { %362 = sfence }
  0x81   : > { %p398_p7 = scmp.lt.s32.totalorder %s6523_s13, 1  ;;  %s10354_s0 = sld [smem:[#allocation169_spill]]  ;;  %v6438_v3 = vmov 0   ;;  %v6439_v5 = vmov 1   ;;  %v10087_v13 = vmov 0.0   ;;  %vm457_vm2 = vcmask 64512  }
  0x82   : > { %s10355_s1 = sld [smem:[#allocation170_spill]]  ;;  %6211 = vset.pattern.permute.xlu1 %v6438_v3  ;;  %6213 = vset.pattern.permute.xlu0 %v6438_v3  ;;  %s10356_s4 = sld [smem:[#allocation173_spill]]  ;;  %vm532_vm3 = vcmask 1041408   ;;  %v582_v45 = vld [vmem:[#allocation2] sm:$0xff]  ;;  %v583_v47 = vld [vmem:[#allocation2 + $0x8] sm:$0xff]  ;;  %vm3251_vm14 = vcmask 1040384  }
  0x83   : > { %s399_s21 = scalar_select %p398_p7, %s6523_s13, 1  ;;  %525 = vmatprep.mubr.f32.mxu0 %v10087_v13  ;;  %v586_v46 = vld [vmem:[#allocation2 + $0x20] sm:$0xff]  ;;  %v587_v49 = vld [vmem:[#allocation2 + $0x28] sm:$0xff] }
  0x84   : > { %v5853_v48 = vcombine.high %v582_v45, %v586_v46  ;;  %v5852_v50 = vcombine.low %v582_v45, %v586_v46  ;;  %v590_v51 = vld [vmem:[#allocation2 + $0x40] sm:$0xff]  ;;  %v5854_v53 = vcombine.low %v583_v47, %v587_v49  ;;  %v5855_v54 = vcombine.high %v583_v47, %v587_v49  ;;  %v591_v56 = vld [vmem:[#allocation2 + $0x48] sm:$0xff]  ;;  %s10081_s27 = smov 31   ;;  %s10083_s26 = smov 33  }
  0x85   : > { %s6095_s24 = sshll.u32 %s399_s21, 4  ;;  %v594_v52 = vld [vmem:[#allocation2 + $0x60] sm:$0xff]  ;;  %v595_v57 = vld [vmem:[#allocation2 + $0x68] sm:$0xff]  ;;  %s10071_s23 = smov 1  }
  0x86   : > { %v5861_v55 = vcombine.high %v590_v51, %v594_v52  ;;  %v598_v58 = vld [vmem:[#allocation2 + $0x80] sm:$0xff]  ;;  %1350 = vmatprep.subr.bf16.mxu1 %v5853_v48  ;;  %v5863_v59 = vcombine.high %v591_v56, %v595_v57  ;;  %v599_v61 = vld [vmem:[#allocation2 + $0x88] sm:$0xff]  ;;  %v5860_v63 = vcombine.low %v590_v51, %v594_v52  ;;  %s10075_s11 = smov 96   ;;  %s10073_s21 = smov 32  }
  0x87   : > { %s402_s18 = scalar_lea.vmem %s10354_s0, %s6095_s24  ;;  %v602_v60 = vld [vmem:[#allocation2 + $0xa0] sm:$0xff]  ;;  %v603_v62 = vld [vmem:[#allocation2 + $0xa8] sm:$0xff]  ;;  %1351 = vmatpush1.bf16.msra.mxu1 %v5852_v50  ;;  %s10079_s17 = smov 97  }
  0x88   : > { %v408_v0 = vld [vmem:[%s402_s18] sm:$0xff]  ;;  %v409_v1 = vld [vmem:[%s402_s18 + $0x8] sm:$0xff]  ;;  %s6652_s14 = scalar_lea.vmem %s10355_s1, %s6095_s24  ;;  %1352 = vmatprep.subr.bf16.mxu1 %v5861_v55  ;;  %s10085_s24 = smov 127  }
  0x89   : > { %v412_v2 = vadd.f32 %v409_v1, %v408_v0  ;;  %v410_v4 = vld [vmem:[%s6652_s14] sm:$0xff]  ;;  %v6675_v44 = vld [vmem:[%s6652_s14 + $0x8] sm:$0x3f]  ;;  %s5997_s15 = sld [smem:[#allocation8 + $0x11]]  ;;  %s5995_s18 = sld [smem:[#allocation8 + $0x10]] }
  0x8a   : > { %431 = vperm.xlu1 %6211, %v410_v4   ;;  %v456_v38 = vld [vmem:[%s10356_s4] sm:$0x3]  ;;  %v631_v45 = vld [vmem:[#allocation2 + $0x188] sm:$0xff]  ;;  %s5998_s20 = sld [smem:[#allocation8 + $0x13]]  ;;  %s5996_s28 = sld [smem:[#allocation8 + $0x12]] }
  0x8b   : > { %413 = vadd.xlane.f32.xlu0 %v412_v2  ;;  %v5871_v2 = vcombine.high %v599_v61, %v603_v62  ;;  %v606_v3 = vld [vmem:[#allocation2 + $0xc0] sm:$0xff]  ;;  %1353 = vmatpush1.bf16.msra.mxu1 %v5860_v63  ;;  %v639_v52 = vld [vmem:[#allocation2 + $0x1c8] sm:$0xff]  ;;  %s10077_s14 = smov 95   ;;  %s6830_s16 = sld [smem:[#allocation8]] }
  0x8c   : > { %v638_v50 = vld [vmem:[#allocation2 + $0x1c0] sm:$0xff]  ;;  %s6832_s29 = sld [smem:[#allocation8 + $0x2]]  ;;  %s6841_s22 = sld [smem:[#allocation8 + $0x1]] }
  0x8d   : > { %v642_v51 = vld [vmem:[#allocation2 + $0x1e0] sm:$0xff]  ;;  %s6843_s25 = sld [smem:[#allocation8 + $0x3]]  ;;  %s6953_s0 = sld [smem:[#allocation8 + $0x19]] }
  0x8e   : > { %6212 = vset.pattern.permute.xlu1 %v6439_v5  ;;  %s6955_s1 = sld [smem:[#allocation8 + $0x1b]]  ;;  %s10384_s3 = smov 31  }
  0x8f   : > { %437 = vperm.xlu1 %6212, %v410_v4   ;;  %v610_v4 = vld [vmem:[#allocation2 + $0xe0] sm:$0xff]  ;;  %s6981_s2 = sld [smem:[#allocation8 + $0xb]]  ;;  %s10385_s4 = smov 97  }
  0x90   : > { %p11004_p11 = scmp.ne.s32.totalorder %s10337_s19, 0 }
 0x109   : > { %v432_v17 = vpop.permute.xlu1 %431 }
 0x10e   : > { %v438_v21 = vpop.permute.xlu1 %437 }
 0x118   : > { %v414_v6 = vpop.xlane.xlu0 %413 }
 0x119   : > { %v416_v7 = vmul.f32 0.00390625, %v414_v6  ;;  %v611_v6 = vld [vmem:[#allocation2 + $0xe8] sm:$0xff] }
 0x11b   : > { %v417_v8 = vsub.f32 %v408_v0, %v416_v7  ;;  %v418_v9 = vsub.f32 %v409_v1, %v416_v7  ;;  %v5862_v0 = vcombine.low %v591_v56, %v595_v57  ;;  %v5869_v1 = vcombine.high %v598_v58, %v602_v60 }
 0x11c   : > { %v5868_v7 = vcombine.low %v598_v58, %v602_v60  ;;  %v5908_v57 = vcombine.low %v638_v50, %v642_v51  ;;  %v646_v58 = vld [vmem:[#allocation2 + $0x200] sm:$0xff]  ;;  %v647_v60 = vld [vmem:[#allocation2 + $0x208] sm:$0xff] }
 0x11d   : > { %v419_v10 = vmul.f32 %v417_v8, %v417_v8  ;;  %v420_v11 = vmul.f32 %v418_v9, %v418_v9  ;;  %1354 = vmatprep.subr.bf16.mxu1 %v5869_v1  ;;  %v654_v1 = vld [vmem:[#allocation2 + $0x240] sm:$0xff] }
 0x11e   : > { %1355 = vmatpush1.bf16.msra.mxu1 %v5868_v7 }
 0x11f   : > { %v421_v12 = vadd.f32 %v420_v11, %v419_v10  ;;  %v614_v11 = vld [vmem:[#allocation2 + $0x100] sm:$0xff] }
 0x121   : > { %422 = vadd.xlane.f32.xlu0 %v421_v12  ;;  %v618_v12 = vld [vmem:[#allocation2 + $0x120] sm:$0xff] }
 0x1ae   : > { %v423_v14 = vpop.xlane.xlu0 %422 }
 0x1af   : > { %v424_v15 = vmul.f32 0.00390625, %v423_v14  ;;  %v615_v14 = vld [vmem:[#allocation2 + $0x108] sm:$0xff] }
 0x1b1   : > { %v425_v16 = vadd.f32 1e-05, %v424_v15  ;;  %v619_v15 = vld [vmem:[#allocation2 + $0x128] sm:$0xff] }
 0x1b3   : > { %6215 = vrsqrt.f32 %v425_v16  ;;  %v5876_v16 = vcombine.low %v606_v3, %v610_v4 }
 0x1bd   : > { %v6216_v18 = vpop.eup %6215 }
 0x1be   : > { %v6656_v19 = vmul.f32 %v6216_v18, %v417_v8  ;;  %v6658_v20 = vmul.f32 %v6216_v18, %v418_v9  ;;  %v5870_v8 = vcombine.low %v599_v61, %v603_v62  ;;  %v5877_v9 = vcombine.high %v606_v3, %v610_v4  ;;  %v651_v61 = vld [vmem:[#allocation2 + $0x228] sm:$0xff] }
 0x1bf   : > { %v5885_v18 = vcombine.high %v614_v11, %v618_v12  ;;  %v5918_v62 = vcombine.low %v647_v60, %v651_v61  ;;  %v5919_v63 = vcombine.high %v647_v60, %v651_v61  ;;  %v655_v3 = vld [vmem:[#allocation2 + $0x248] sm:$0xff] }
 0x1c0   : > { %v434_v22 = vmul.f32 %v432_v17, %v6656_v19  ;;  %v435_v23 = vmul.f32 %v432_v17, %v6658_v20  ;;  %1356 = vmatprep.subr.bf16.mxu1 %v5877_v9  ;;  %v662_v9 = vld [vmem:[#allocation2 + $0x280] sm:$0xff] }
 0x1c1   : > { %1357 = vmatpush1.bf16.msra.mxu1 %v5876_v16  ;;  %v670_v16 = vld [vmem:[#allocation2 + $0x2c0] sm:$0xff] }
 0x1c2   : > { %v440_v24 = vadd.f32 %v438_v21, %v434_v22  ;;  %v441_v25 = vadd.f32 %v438_v21, %v435_v23  ;;  %v5887_v21 = vcombine.high %v615_v14, %v619_v15  ;;  %v622_v22 = vld [vmem:[#allocation2 + $0x140] sm:$0xff]  ;;  %1358 = vmatprep.subr.bf16.mxu1 %v5885_v18 }
 0x1c3   : > { %v626_v23 = vld [vmem:[#allocation2 + $0x160] sm:$0xff] }
 0x1c4   : > { %v444_v26 = vmul.f32 1.442695, %v440_v24  ;;  %v446_v27 = vmul.f32 1.442695, %v441_v25  ;;  %vm442_vm0 = vcmp.gt.f32.partialorder %v440_v24, 0.0  ;;  %vm443_vm1 = vcmp.gt.f32.partialorder %v441_v25, 0.0 }
 0x1c6   : > { %6217 = vpow2.f32 %v444_v26  ;;  %v5884_v26 = vcombine.low %v614_v11, %v618_v12  ;;  %v663_v11 = vld [vmem:[#allocation2 + $0x288] sm:$0xff] }
 0x1c7   : > { %6219 = vpow2.f32 %v446_v27  ;;  %v5886_v27 = vcombine.low %v615_v14, %v619_v15  ;;  %v667_v14 = vld [vmem:[#allocation2 + $0x2a8] sm:$0xff] }
 0x1c8   : > { %1359 = vmatpush1.bf16.msra.mxu1 %v5884_v26  ;;  %v5934_v18 = vcombine.low %v663_v11, %v667_v14  ;;  %v678_v26 = vld [vmem:[#allocation2 + $0x300] sm:$0xff] }
 0x1d0   : > { %v6218_v28 = vpop.eup %6217 }
 0x1d1   : > { %v6220_v29 = vpop.eup %6219  ;;  %v5847_v30 = vadd.f32 -1.0, %v6218_v28  ;;  %v5893_v28 = vcombine.high %v622_v22, %v626_v23 }
 0x1d2   : > { %v5848_v31 = vadd.f32 -1.0, %v6220_v29 }
 0x1d3   : > { %v450_v32 = vmul.f32 1.6732632, %v5847_v30  ;;  %1360 = vmatprep.subr.bf16.mxu1 %v5893_v28  ;;  %v679_v28 = vld [vmem:[#allocation2 + $0x308] sm:$0xff] }
 0x1d4   : > { %v451_v33 = vmul.f32 1.6732632, %v5848_v31 }
 0x1d5   : > { %v452_v34 = vsel %vm442_vm0, %v440_v24, %v450_v32  ;;  %v623_v24 = vld [vmem:[#allocation2 + $0x148] sm:$0xff] }
 0x1d6   : > { %v453_v35 = vsel %vm443_vm1, %v441_v25, %v451_v33  ;;  %v454_v36 = vmul.f32 1.050701, %v452_v34  ;;  %v627_v25 = vld [vmem:[#allocation2 + $0x168] sm:$0xff] }
 0x1d7   : > { %v455_v37 = vmul.f32 1.050701, %v453_v35  ;;  %v5895_v29 = vcombine.high %v623_v24, %v627_v25  ;;  %v5894_v30 = vcombine.low %v623_v24, %v627_v25  ;;  %v675_v24 = vld [vmem:[#allocation2 + $0x2e8] sm:$0xff] }
 0x1d9   : > { %461 = vmatprep.subr.mxu0 %v455_v37 }
 0x1da   : > { %462 = vmatpush1.msra.mxu0 %v454_v36 }
 0x1db   : > { %5849 = vmatmul.mubr.msk.f32.vlgmr.msra.gmra.mrb[0].mxu0 %vm457_vm2, %v456_v38  ;;  %1393 = vmatprep.subr.bf16.mxu0 %v5855_v54  ;;  %v643_v54 = vld [vmem:[#allocation2 + $0x1e8] sm:$0xff] }
 0x1dc   : > { %1394 = vmatpush1.bf16.msra.mxu0 %v5854_v53  ;;  %v5909_v53 = vcombine.high %v638_v50, %v642_v51  ;;  %v5910_v55 = vcombine.low %v639_v52, %v643_v54  ;;  %v5911_v56 = vcombine.high %v639_v52, %v643_v54  ;;  %v706_v54 = vld [vmem:[#allocation2 + $0x3e0] sm:$0xff] }
 0x1dd   : > { %1395 = vmatprep.subr.bf16.mxu0 %v5863_v59  ;;  %v650_v59 = vld [vmem:[#allocation2 + $0x220] sm:$0xff] }
 0x1e0   : > { %1396 = vmatpush1.bf16.msra.mxu0 %v5862_v0  ;;  %v5916_v0 = vcombine.low %v646_v58, %v650_v59 }
 0x1e1   : > { %1397 = vmatprep.subr.bf16.mxu0 %v5871_v2  ;;  %v658_v2 = vld [vmem:[#allocation2 + $0x260] sm:$0xff] }
 0x1e2   : > { %v5925_v4 = vcombine.high %v654_v1, %v658_v2 }
 0x1e4   : > { %1398 = vmatpush1.bf16.msra.mxu0 %v5870_v8  ;;  %v5924_v8 = vcombine.low %v654_v1, %v658_v2  ;;  %v589_v2 = vld [vmem:[#allocation2 + $0x38] sm:$0xff] }
 0x2ae   : > { %v6666_v39 = vpop.f32.mrb[0].mxu0 }
 0x2af   : > { %v533_v40 = vsel %vm532_vm3, %v6666_v39, 0.0  ;;  %v6670_v41 = vpop.f32.mrb[1].mxu0 }
 0x2b0   : > { %v534_v42 = vsel %vm532_vm3, %v6670_v41, 0.0 }
 0x2b1   : > { %v535_v43 = vadd.f32 %v534_v42, %v533_v40  ;;  %v5892_v42 = vcombine.low %v622_v22, %v626_v23  ;;  %v671_v23 = vld [vmem:[#allocation2 + $0x2c8] sm:$0xff] }
 0x2b2   : > { %v5943_v25 = vcombine.high %v671_v23, %v675_v24 }
 0x2b3   : > { %536 = vadd.xlane.f32.xlu0 %v535_v43  ;;  %1361 = vmatpush1.bf16.msra.mxu1 %v5892_v42  ;;  %v630_v43 = vld [vmem:[#allocation2 + $0x180] sm:$0xff] }
 0x2c9   : > { %555 = vperm.xlu0 %6213, %v6675_v44  }
 0x2cd   : > { %6214 = vset.pattern.permute.xlu0 %v6439_v5  ;;  %v607_v5 = vld [vmem:[#allocation2 + $0xc8] sm:$0xff] }
 0x2ce   : > { %v5879_v10 = vcombine.high %v607_v5, %v611_v6  ;;  %v5878_v17 = vcombine.low %v607_v5, %v611_v6  ;;  %v659_v5 = vld [vmem:[#allocation2 + $0x268] sm:$0xff] }
 0x2cf   : > { %v5926_v6 = vcombine.low %v655_v3, %v659_v5  ;;  %v5927_v7 = vcombine.high %v655_v3, %v659_v5 }
 0x2d0   : > { %1399 = vmatprep.subr.bf16.mxu0 %v5879_v10  ;;  %v666_v10 = vld [vmem:[#allocation2 + $0x2a0] sm:$0xff] }
 0x2d1   : > { %1400 = vmatpush1.bf16.msra.mxu0 %v5878_v17  ;;  %v5933_v12 = vcombine.high %v662_v9, %v666_v10  ;;  %v5932_v15 = vcombine.low %v662_v9, %v666_v10  ;;  %v674_v17 = vld [vmem:[#allocation2 + $0x2e0] sm:$0xff] }
 0x2d2   : > { %1401 = vmatprep.subr.bf16.mxu0 %v5887_v21  ;;  %v5935_v21 = vcombine.high %v663_v11, %v667_v14  ;;  %v5941_v22 = vcombine.high %v670_v16, %v674_v17 }
 0x2d5   : > { %1402 = vmatpush1.bf16.msra.mxu0 %v5886_v27  ;;  %v682_v27 = vld [vmem:[#allocation2 + $0x320] sm:$0xff] }
 0x2d6   : > { %1403 = vmatprep.subr.bf16.mxu0 %v5895_v29  ;;  %v683_v29 = vld [vmem:[#allocation2 + $0x328] sm:$0xff]  ;;  %v5948_v42 = vcombine.low %v678_v26, %v682_v27 }
 0x2d9   : > { %1404 = vmatpush1.bf16.msra.mxu0 %v5894_v30  ;;  %v5940_v30 = vcombine.low %v670_v16, %v674_v17 }
 0x340   : > { %v537_v31 = vpop.xlane.xlu0 %536 }
 0x341   : > { %v538_v32 = vmul.f32 0.00390625, %v537_v31  ;;  %v5942_v31 = vcombine.low %v671_v23, %v675_v24 }
 0x343   : > { %v6679_v33 = vsub.f32 %v6666_v39, %v538_v32  ;;  %v6682_v34 = vsub.f32 %v6670_v41, %v538_v32  ;;  %v634_v39 = vld [vmem:[#allocation2 + $0x1a0] sm:$0xff]  ;;  %v635_v41 = vld [vmem:[#allocation2 + $0x1a8] sm:$0xff]  ;;  %v5949_v32 = vcombine.high %v678_v26, %v682_v27 }
 0x344   : > { %v5901_v46 = vcombine.high %v630_v43, %v634_v39  ;;  %v5902_v47 = vcombine.low %v631_v45, %v635_v41  ;;  %v5903_v48 = vcombine.high %v631_v45, %v635_v41  ;;  %v5900_v49 = vcombine.low %v630_v43, %v634_v39  ;;  %v698_v41 = vld [vmem:[#allocation2 + $0x3a0] sm:$0xff] }
 0x345   : > { %v541_v35 = vmul.f32 %v6679_v33, %v6679_v33  ;;  %v542_v36 = vmul.f32 %v6682_v34, %v6682_v34  ;;  %v5950_v43 = vcombine.low %v679_v28, %v683_v29 }
 0x346   : > { %1362 = vmatprep.subr.bf16.mxu1 %v5901_v46  ;;  %1405 = vmatprep.subr.bf16.mxu0 %v5903_v48  ;;  %v694_v46 = vld [vmem:[#allocation2 + $0x380] sm:$0xff]  ;;  %v699_v48 = vld [vmem:[#allocation2 + $0x3a8] sm:$0xff] }
 0x347   : > { %v543_v37 = vsel %vm532_vm3, %v541_v35, 0.0  ;;  %v544_v38 = vsel %vm532_vm3, %v542_v36, 0.0  ;;  %1363 = vmatpush1.bf16.msra.mxu1 %v5900_v49  ;;  %1406 = vmatpush1.bf16.msra.mxu0 %v5902_v47  ;;  %v5951_v35 = vcombine.high %v679_v28, %v683_v29  ;;  %v686_v36 = vld [vmem:[#allocation2 + $0x340] sm:$0xff]  ;;  %v695_v47 = vld [vmem:[#allocation2 + $0x388] sm:$0xff]  ;;  %v5965_v51 = vcombine.high %v694_v46, %v698_v41 }
 0x348   : > { %v545_v40 = vadd.f32 %v544_v38, %v543_v37  ;;  %1364 = vmatprep.subr.bf16.mxu1 %v5909_v53  ;;  %1407 = vmatprep.subr.bf16.mxu0 %v5911_v56  ;;  %v690_v37 = vld [vmem:[#allocation2 + $0x360] sm:$0xff]  ;;  %v687_v38 = vld [vmem:[#allocation2 + $0x348] sm:$0xff]  ;;  %v5967_v52 = vcombine.high %v695_v47, %v699_v48  ;;  %v6691_v10 = vpop.permute.xlu0 %555 }
 0x349   : > { %v5957_v39 = vcombine.high %v686_v36, %v690_v37  ;;  %v5956_v49 = vcombine.low %v686_v36, %v690_v37  ;;  %v702_v53 = vld [vmem:[#allocation2 + $0x3c0] sm:$0xff]  ;;  %v707_v56 = vld [vmem:[#allocation2 + $0x3e8] sm:$0xff]  ;;  %10357 = vst [vmem:[#allocation21_spill] sm:$0xff] %v6691_v10  ;;  %v597_v36 = vld [vmem:[#allocation2 + $0x78] sm:$0xff] }
 0x34a   : > { %546 = vadd.xlane.f32.xlu1 %v545_v40  ;;  %v691_v40 = vld [vmem:[#allocation2 + $0x368] sm:$0xff] }
 0x34b   : > { %1365 = vmatpush1.bf16.msra.mxu1 %v5908_v57  ;;  %1408 = vmatpush1.bf16.msra.mxu0 %v5910_v55  ;;  %v5959_v45 = vcombine.high %v687_v38, %v691_v40  ;;  %v5958_v50 = vcombine.low %v687_v38, %v691_v40  ;;  %v703_v55 = vld [vmem:[#allocation2 + $0x3c8] sm:$0xff]  ;;  %v5964_v57 = vcombine.low %v694_v46, %v698_v41  ;;  %v600_v40 = vld [vmem:[#allocation2 + $0x90] sm:$0xff]  ;;  %v605_v46 = vld [vmem:[#allocation2 + $0xb8] sm:$0xff] }
 0x34c   : > { %1409 = vmatprep.subr.bf16.mxu0 %v5919_v63  ;;  %v5975_v60 = vcombine.high %v703_v55, %v707_v56  ;;  %v5974_v61 = vcombine.low %v703_v55, %v707_v56  ;;  %v588_v63 = vld [vmem:[#allocation2 + $0x30] sm:$0xff] }
 0x34d   : > { %v616_v56 = vld [vmem:[#allocation2 + $0x110] sm:$0xff] }
 0x34f   : > { %1410 = vmatpush1.bf16.msra.mxu0 %v5918_v62  ;;  %v584_v62 = vld [vmem:[#allocation2 + $0x10] sm:$0xff] }
 0x350   : > { %1411 = vmatprep.subr.bf16.mxu0 %v5927_v7  ;;  %v5857_v1 = vcombine.high %v584_v62, %v588_v63  ;;  %v5856_v3 = vcombine.low %v584_v62, %v588_v63  ;;  %v624_v63 = vld [vmem:[#allocation2 + $0x150] sm:$0xff] }
 0x353   : > { %1412 = vmatpush1.bf16.msra.mxu0 %v5926_v6 }
 0x354   : > { %1413 = vmatprep.subr.bf16.mxu0 %v5935_v21 }
 0x357   : > { %1414 = vmatpush1.bf16.msra.mxu0 %v5934_v18 }
 0x358   : > { %1415 = vmatprep.subr.bf16.mxu0 %v5943_v25 }
 0x35b   : > { %561 = vperm.xlu1 %6212, %v6675_v44   ;;  %v5917_v44 = vcombine.high %v646_v58, %v650_v59  ;;  %1416 = vmatpush1.bf16.msra.mxu0 %v5942_v31  ;;  %v5966_v58 = vcombine.low %v695_v47, %v699_v48  ;;  %v5973_v59 = vcombine.high %v702_v53, %v706_v54  ;;  %v608_v48 = vld [vmem:[#allocation2 + $0xd0] sm:$0xff] }
 0x35c   : > { %1417 = vmatprep.subr.bf16.mxu0 %v5951_v35  ;;  %v593_v35 = vld [vmem:[#allocation2 + $0x58] sm:$0xff] }
 0x35d   : > { %1366 = vmatprep.subr.bf16.mxu1 %v5917_v44  ;;  %v5972_v44 = vcombine.low %v702_v53, %v706_v54  ;;  %v5866_v47 = vcombine.low %v593_v35, %v597_v36 }
 0x35e   : > { %1367 = vmatpush1.bf16.msra.mxu1 %v5916_v0  ;;  %v585_v0 = vld [vmem:[#allocation2 + $0x18] sm:$0xff] }
 0x35f   : > { %1368 = vmatprep.subr.bf16.mxu1 %v5925_v4  ;;  %1418 = vmatpush1.bf16.msra.mxu0 %v5950_v43  ;;  %v5858_v4 = vcombine.low %v585_v0, %v589_v2  ;;  %v5859_v5 = vcombine.high %v585_v0, %v589_v2  ;;  %v5867_v43 = vcombine.high %v593_v35, %v597_v36  ;;  %v628_v0 = vld [vmem:[#allocation2 + $0x170] sm:$0xff]  ;;  %v629_v2 = vld [vmem:[#allocation2 + $0x178] sm:$0xff] }
 0x360   : > { %1419 = vmatprep.subr.bf16.mxu0 %v5959_v45  ;;  %v601_v45 = vld [vmem:[#allocation2 + $0x98] sm:$0xff]  ;;  %v656_v36 = vld [vmem:[#allocation2 + $0x250] sm:$0xff] }
 0x361   : > { %v5874_v53 = vcombine.low %v601_v45, %v605_v46 }
 0x362   : > { %1369 = vmatpush1.bf16.msra.mxu1 %v5924_v8 }
 0x363   : > { %1370 = vmatprep.subr.bf16.mxu1 %v5933_v12  ;;  %1420 = vmatpush1.bf16.msra.mxu0 %v5958_v50  ;;  %v609_v50 = vld [vmem:[#allocation2 + $0xd8] sm:$0xff] }
 0x364   : > { %1421 = vmatprep.subr.bf16.mxu0 %v5967_v52 }
 0x366   : > { %1371 = vmatpush1.bf16.msra.mxu1 %v5932_v15 }
 0x367   : > { %1372 = vmatprep.subr.bf16.mxu1 %v5941_v22  ;;  %1422 = vmatpush1.bf16.msra.mxu0 %v5966_v58  ;;  %v617_v58 = vld [vmem:[#allocation2 + $0x118] sm:$0xff] }
 0x368   : > { %1423 = vmatprep.subr.bf16.mxu0 %v5975_v60 }
 0x36a   : > { %1373 = vmatpush1.bf16.msra.mxu1 %v5940_v30  ;;  %v592_v30 = vld [vmem:[#allocation2 + $0x50] sm:$0xff] }
 0x36b   : > { %1374 = vmatprep.subr.bf16.mxu1 %v5949_v32  ;;  %1424 = vmatpush1.bf16.msra.mxu0 %v5974_v61  ;;  %v596_v32 = vld [vmem:[#allocation2 + $0x70] sm:$0xff] }
 0x36c   : > { %1479 = vmatprep.subr.bf16.mxu0 %v5859_v5  ;;  %v5864_v41 = vcombine.low %v592_v30, %v596_v32  ;;  %v5897_v5 = vcombine.high %v624_v63, %v628_v0 }
 0x36e   : > { %1375 = vmatpush1.bf16.msra.mxu1 %v5948_v42  ;;  %v5865_v42 = vcombine.high %v592_v30, %v596_v32 }
 0x36f   : > { %1376 = vmatprep.subr.bf16.mxu1 %v5957_v39  ;;  %v604_v39 = vld [vmem:[#allocation2 + $0xb0] sm:$0xff] }
 0x370   : > { %v5872_v52 = vcombine.low %v600_v40, %v604_v39 }
 0x372   : > { %1377 = vmatpush1.bf16.msra.mxu1 %v5956_v49  ;;  %v612_v49 = vld [vmem:[#allocation2 + $0xf0] sm:$0xff] }
 0x373   : > { %1378 = vmatprep.subr.bf16.mxu1 %v5965_v51  ;;  %v613_v51 = vld [vmem:[#allocation2 + $0xf8] sm:$0xff]  ;;  %v5881_v54 = vcombine.high %v608_v48, %v612_v49  ;;  %v5880_v60 = vcombine.low %v608_v48, %v612_v49 }
 0x374   : > { %v5883_v55 = vcombine.high %v609_v50, %v613_v51 }
 0x376   : > { %1379 = vmatpush1.bf16.msra.mxu1 %v5964_v57  ;;  %v620_v57 = vld [vmem:[#allocation2 + $0x130] sm:$0xff] }
 0x377   : > { %1380 = vmatprep.subr.bf16.mxu1 %v5973_v59  ;;  %v621_v59 = vld [vmem:[#allocation2 + $0x138] sm:$0xff]  ;;  %v5889_v61 = vcombine.high %v616_v56, %v620_v57 }
 0x378   : > { %v5891_v62 = vcombine.high %v617_v58, %v621_v59 }
 0x37a   : > { %1381 = vmatpush1.bf16.msra.mxu1 %v5972_v44  ;;  %v5882_v44 = vcombine.low %v609_v50, %v613_v51 }
 0x37b   : > { %1436 = vmatprep.subr.bf16.mxu1 %v5857_v1  ;;  %v625_v1 = vld [vmem:[#allocation2 + $0x158] sm:$0xff] }
 0x3d7   : > { %v547_v6 = vpop.xlane.xlu1 %546 }
 0x3d8   : > { %v548_v7 = vmul.f32 0.00390625, %v547_v6  ;;  %v5899_v6 = vcombine.high %v625_v1, %v629_v2 }
 0x3da   : > { %v549_v8 = vadd.f32 1e-05, %v548_v7  ;;  %v632_v7 = vld [vmem:[#allocation2 + $0x190] sm:$0xff] }
 0x3db   : > { %v6697_v16 = vpop.permute.xlu1 %561 }
 0x3dc   : > { %6221 = vrsqrt.f32 %v549_v8  ;;  %10358 = vst [vmem:[#allocation22_spill] sm:$0xff] %v6697_v16  ;;  %v636_v8 = vld [vmem:[#allocation2 + $0x1b0] sm:$0xff] }
 0x3e6   : > { %v6222_v9 = vpop.eup %6221 }
 0x3e7   : > { %v551_v11 = vmul.f32 %v6222_v9, %v6679_v33  ;;  %v552_v12 = vmul.f32 %v6222_v9, %v6682_v34  ;;  %v633_v9 = vld [vmem:[#allocation2 + $0x198] sm:$0xff] }
 0x3e9   : > { %v559_v14 = vmul.f32 %v6691_v10, %v552_v12  ;;  %v558_v15 = vmul.f32 %v6691_v10, %v551_v11  ;;  %v637_v11 = vld [vmem:[#allocation2 + $0x1b8] sm:$0xff]  ;;  %v5896_v12 = vcombine.low %v624_v63, %v628_v0  ;;  %v7078_v10 = vstv %s6953_s0  ;;  %s10415_s0 = smov 1  }
 0x3ea   : > { %10402 = vst [vmem:[#allocation62_spill] sm:$0xff] %v7078_v10 }
 0x3eb   : > { %v565_v17 = vadd.f32 %v6697_v16, %v559_v14  ;;  %v564_v18 = vadd.f32 %v6697_v16, %v558_v15  ;;  %v5898_v14 = vcombine.low %v625_v1, %v629_v2  ;;  %v5905_v15 = vcombine.high %v632_v7, %v636_v8 }
 0x3ed   : > { %v570_v21 = vmul.f32 1.442695, %v565_v17  ;;  %v568_v22 = vmul.f32 1.442695, %v564_v18  ;;  %vm567_vm4 = vcmp.gt.f32.partialorder %v565_v17, 0.0  ;;  %vm566_vm5 = vcmp.gt.f32.partialorder %v564_v18, 0.0 }
 0x3ef   : > { %6223 = vpow2.f32 %v570_v21  ;;  %v644_v21 = vld [vmem:[#allocation2 + $0x1f0] sm:$0xff] }
 0x3f0   : > { %6225 = vpow2.f32 %v568_v22  ;;  %v641_v22 = vld [vmem:[#allocation2 + $0x1d8] sm:$0xff] }
 0x3f9   : > { %v6224_v23 = vpop.eup %6223 }
 0x3fa   : > { %v6226_v24 = vpop.eup %6225  ;;  %v5851_v25 = vadd.f32 -1.0, %v6224_v23  ;;  %v645_v23 = vld [vmem:[#allocation2 + $0x1f8] sm:$0xff] }
 0x3fb   : > { %v5850_v33 = vadd.f32 -1.0, %v6226_v24  ;;  %v5904_v24 = vcombine.low %v632_v7, %v636_v8 }
 0x3fc   : > { %v575_v26 = vmul.f32 1.6732632, %v5851_v25  ;;  %v5906_v25 = vcombine.low %v633_v9, %v637_v11 }
 0x3fd   : > { %v574_v34 = vmul.f32 1.6732632, %v5850_v33 }
 0x3fe   : > { %v577_v27 = vsel %vm567_vm4, %v565_v17, %v575_v26  ;;  %v5907_v17 = vcombine.high %v633_v9, %v637_v11  ;;  %v5915_v26 = vcombine.high %v641_v22, %v645_v23 }
 0x3ff   : > { %v579_v28 = vmul.f32 1.050701, %v577_v27  ;;  %v576_v29 = vsel %vm566_vm5, %v564_v18, %v574_v34  ;;  %v640_v18 = vld [vmem:[#allocation2 + $0x1d0] sm:$0xff] }
 0x400   : > { %v578_v31 = vmul.f32 1.050701, %v576_v29  ;;  %v5913_v33 = vcombine.high %v640_v18, %v644_v21  ;;  %v648_v34 = vld [vmem:[#allocation2 + $0x210] sm:$0xff]  ;;  %v653_v29 = vld [vmem:[#allocation2 + $0x238] sm:$0xff]  ;;  %v5912_v30 = vcombine.low %v640_v18, %v644_v21 }
 0x401   : > { %v581_v37 = vpack.c.bf16 %v579_v28, %v6658_v20  ;;  %v5875_v20 = vcombine.high %v601_v45, %v605_v46  ;;  %v652_v27 = vld [vmem:[#allocation2 + $0x230] sm:$0xff]  ;;  %v649_v28 = vld [vmem:[#allocation2 + $0x218] sm:$0xff] }
 0x402   : > { %v6703_v38 = vpack.c.bf16 %v578_v31, %v6656_v19  ;;  %v5873_v19 = vcombine.high %v600_v40, %v604_v39  ;;  %v5914_v31 = vcombine.low %v641_v22, %v645_v23  ;;  %v5921_v32 = vcombine.high %v648_v34, %v652_v27  ;;  %v657_v40 = vld [vmem:[#allocation2 + $0x258] sm:$0xff] }
 0x403   : > { %1382 = vmatprep.mubr.bf16.mxu1 %v581_v37  ;;  %1425 = vmatprep.mubr.bf16.mxu0 %v581_v37  ;;  %v5923_v35 = vcombine.high %v649_v28, %v653_v29  ;;  %v5922_v39 = vcombine.low %v649_v28, %v653_v29 }
 0x404   : > { %1383 = vmatmul.mubr.bf16.vlgmr.msra.gmra.mrb[0].mxu1 %v6703_v38  ;;  %1426 = vmatmul.mubr.bf16.vlgmr.msra.gmra.mrb[4].mxu0 %v6703_v38 }
 0x405   : > { %1437 = vmatpush1.bf16.msra.mxu1 %v5856_v3  ;;  %1480 = vmatpush1.bf16.msra.mxu0 %v5858_v4  ;;  %v5888_v3 = vcombine.low %v616_v56, %v620_v57  ;;  %v5890_v4 = vcombine.low %v617_v58, %v621_v59 }
 0x406   : > { %1468 = vmatprep.mubr.bf16.mxu1 %v581_v37  ;;  %1511 = vmatprep.mubr.bf16.mxu0 %v581_v37  ;;  %v660_v37 = vld [vmem:[#allocation2 + $0x270] sm:$0xff] }
 0x407   : > { %1438 = vmatprep.subr.bf16.mxu1 %v5865_v42  ;;  %1481 = vmatprep.subr.bf16.mxu0 %v5867_v43  ;;  %v661_v42 = vld [vmem:[#allocation2 + $0x278] sm:$0xff]  ;;  %v5920_v43 = vcombine.low %v648_v34, %v652_v27  ;;  %v5929_v45 = vcombine.high %v656_v36, %v660_v37  ;;  %v5928_v48 = vcombine.low %v656_v36, %v660_v37 }
 0x408   : > { %v5931_v46 = vcombine.high %v657_v40, %v661_v42  ;;  %v5930_v49 = vcombine.low %v657_v40, %v661_v42 }
 0x409   : > { %1439 = vmatpush1.bf16.msra.mxu1 %v5864_v41  ;;  %1482 = vmatpush1.bf16.msra.mxu0 %v5866_v47  ;;  %v664_v41 = vld [vmem:[#allocation2 + $0x290] sm:$0xff] }
 0x40a   : > { %1440 = vmatprep.subr.bf16.mxu1 %v5873_v19  ;;  %1483 = vmatprep.subr.bf16.mxu0 %v5875_v20  ;;  %v668_v47 = vld [vmem:[#allocation2 + $0x2b0] sm:$0xff]  ;;  %v665_v19 = vld [vmem:[#allocation2 + $0x298] sm:$0xff] }
 0x40b   : > { %v669_v20 = vld [vmem:[#allocation2 + $0x2b8] sm:$0xff]  ;;  %v5937_v50 = vcombine.high %v664_v41, %v668_v47  ;;  %v5936_v56 = vcombine.low %v664_v41, %v668_v47 }
 0x40c   : > { %v5939_v51 = vcombine.high %v665_v19, %v669_v20  ;;  %v5938_v57 = vcombine.low %v665_v19, %v669_v20 }
 0x40d   : > { %1441 = vmatpush1.bf16.msra.mxu1 %v5872_v52  ;;  %1484 = vmatpush1.bf16.msra.mxu0 %v5874_v53  ;;  %v672_v52 = vld [vmem:[#allocation2 + $0x2d0] sm:$0xff] }
 0x40e   : > { %1442 = vmatprep.subr.bf16.mxu1 %v5881_v54  ;;  %1485 = vmatprep.subr.bf16.mxu0 %v5883_v55  ;;  %v676_v53 = vld [vmem:[#allocation2 + $0x2f0] sm:$0xff]  ;;  %v673_v54 = vld [vmem:[#allocation2 + $0x2d8] sm:$0xff] }
 0x40f   : > { %v677_v55 = vld [vmem:[#allocation2 + $0x2f8] sm:$0xff]  ;;  %v5945_v58 = vcombine.high %v672_v52, %v676_v53  ;;  %v5944_v63 = vcombine.low %v672_v52, %v676_v53 }
 0x410   : > { %v5947_v59 = vcombine.high %v673_v54, %v677_v55  ;;  %v5946_v0 = vcombine.low %v673_v54, %v677_v55  ;;  %v1549_v52 = vld [vmem:[#allocation6] ss:$8 sm:$0xf]  ;;  %v6834_v54 = vstv %s5997_s15  ;;  %v1747_v55 = vld [vmem:[#allocation6 + $0x1] ss:$8 sm:$0xf] }
 0x411   : > { %1443 = vmatpush1.bf16.msra.mxu1 %v5880_v60  ;;  %1486 = vmatpush1.bf16.msra.mxu0 %v5882_v44  ;;  %v680_v60 = vld [vmem:[#allocation2 + $0x310] sm:$0xff]  ;;  %s6871_s15 = sld [smem:[#allocation8 + $0x5]] }
 0x412   : > { %1444 = vmatprep.subr.bf16.mxu1 %v5889_v61  ;;  %1487 = vmatprep.subr.bf16.mxu0 %v5891_v62  ;;  %v684_v44 = vld [vmem:[#allocation2 + $0x330] sm:$0xff]  ;;  %v681_v61 = vld [vmem:[#allocation2 + $0x318] sm:$0xff] }
 0x413   : > { %v685_v62 = vld [vmem:[#allocation2 + $0x338] sm:$0xff]  ;;  %v5953_v1 = vcombine.high %v680_v60, %v684_v44  ;;  %v5952_v7 = vcombine.low %v680_v60, %v684_v44  ;;  %v6847_v60 = vstv %s5998_s20  ;;  %v6853_v44 = vstv %s5996_s28  ;;  %s6881_s20 = sld [smem:[#allocation8 + $0x14]]  ;;  %s6883_s28 = sld [smem:[#allocation8 + $0x16]] }
 0x414   : > { %v5955_v2 = vcombine.high %v681_v61, %v685_v62  ;;  %v5954_v8 = vcombine.low %v681_v61, %v685_v62  ;;  %v1550_v53 = vld [vmem:[#allocation6] ss:$8 sm:$0xf0] }
 0x415   : > { %1445 = vmatpush1.bf16.msra.mxu1 %v5888_v3  ;;  %1488 = vmatpush1.bf16.msra.mxu0 %v5890_v4  ;;  %v688_v3 = vld [vmem:[#allocation2 + $0x350] sm:$0xff] }
 0x416   : > { %1446 = vmatprep.subr.bf16.mxu1 %v5897_v5  ;;  %1489 = vmatprep.subr.bf16.mxu0 %v5899_v6  ;;  %v692_v4 = vld [vmem:[#allocation2 + $0x370] sm:$0xff]  ;;  %v689_v5 = vld [vmem:[#allocation2 + $0x358] sm:$0xff] }
 0x417   : > { %v693_v6 = vld [vmem:[#allocation2 + $0x378] sm:$0xff]  ;;  %v5961_v9 = vcombine.high %v688_v3, %v692_v4  ;;  %v5960_v18 = vcombine.low %v688_v3, %v692_v4 }
 0x418   : > { %v5963_v11 = vcombine.high %v689_v5, %v693_v6  ;;  %v5962_v21 = vcombine.low %v689_v5, %v693_v6  ;;  %v2461_v3 = vld [vmem:[#allocation6 + $0x5] ss:$8 sm:$0xf] }
 0x419   : > { %1447 = vmatpush1.bf16.msra.mxu1 %v5896_v12  ;;  %1490 = vmatpush1.bf16.msra.mxu0 %v5898_v14  ;;  %v696_v12 = vld [vmem:[#allocation2 + $0x390] sm:$0xff] }
 0x41a   : > { %1448 = vmatprep.subr.bf16.mxu1 %v5905_v15  ;;  %1491 = vmatprep.subr.bf16.mxu0 %v5907_v17  ;;  %v700_v14 = vld [vmem:[#allocation2 + $0x3b0] sm:$0xff]  ;;  %v697_v15 = vld [vmem:[#allocation2 + $0x398] sm:$0xff] }
 0x41b   : > { %v701_v17 = vld [vmem:[#allocation2 + $0x3b8] sm:$0xff]  ;;  %v5969_v22 = vcombine.high %v696_v12, %v700_v14  ;;  %v5968_v34 = vcombine.low %v696_v12, %v700_v14 }
 0x41c   : > { %v5971_v23 = vcombine.high %v697_v15, %v701_v17  ;;  %v5970_v27 = vcombine.low %v697_v15, %v701_v17  ;;  %v2462_v4 = vld [vmem:[#allocation6 + $0x5] ss:$8 sm:$0xf0]  ;;  %v2659_v17 = vld [vmem:[#allocation6 + $0x6] ss:$8 sm:$0xf] }
 0x41d   : > { %1449 = vmatpush1.bf16.msra.mxu1 %v5904_v24  ;;  %1492 = vmatpush1.bf16.msra.mxu0 %v5906_v25  ;;  %v704_v24 = vld [vmem:[#allocation2 + $0x3d0] sm:$0xff] }
 0x41e   : > { %1450 = vmatprep.subr.bf16.mxu1 %v5913_v33  ;;  %1493 = vmatprep.subr.bf16.mxu0 %v5915_v26  ;;  %v708_v25 = vld [vmem:[#allocation2 + $0x3f0] sm:$0xff]  ;;  %v705_v33 = vld [vmem:[#allocation2 + $0x3d8] sm:$0xff] }
 0x41f   : > { %v709_v26 = vld [vmem:[#allocation2 + $0x3f8] sm:$0xff]  ;;  %v5977_v28 = vcombine.high %v704_v24, %v708_v25 }
 0x420   : > { %v5979_v29 = vcombine.high %v705_v33, %v709_v26 }
 0x421   : > { %1451 = vmatpush1.bf16.msra.mxu1 %v5912_v30  ;;  %1494 = vmatpush1.bf16.msra.mxu0 %v5914_v31  ;;  %v5976_v30 = vcombine.low %v704_v24, %v708_v25  ;;  %v5978_v31 = vcombine.low %v705_v33, %v709_v26  ;;  %v6943_v25 = vstv %s6830_s16  ;;  %s6958_s16 = sld [smem:[#allocation8 + $0x8]] }
 0x422   : > { %1452 = vmatprep.subr.bf16.mxu1 %v5921_v32  ;;  %1495 = vmatprep.subr.bf16.mxu0 %v5923_v35  ;;  %10373 = vst [vmem:[#allocation37_spill] sm:$0xff] %v6943_v25 }
 0x425   : > { %1453 = vmatpush1.bf16.msra.mxu1 %v5920_v43  ;;  %1496 = vmatpush1.bf16.msra.mxu0 %v5922_v39  ;;  %v5019_v43 = vld [vmem:[%s10059_s5] sm:$0xff] }
 0x426   : > { %1454 = vmatprep.subr.bf16.mxu1 %v5929_v45  ;;  %1497 = vmatprep.subr.bf16.mxu0 %v5931_v46 }
 0x429   : > { %1455 = vmatpush1.bf16.msra.mxu1 %v5928_v48  ;;  %1498 = vmatpush1.bf16.msra.mxu0 %v5930_v49 }
 0x42a   : > { %1456 = vmatprep.subr.bf16.mxu1 %v5937_v50  ;;  %1499 = vmatprep.subr.bf16.mxu0 %v5939_v51  ;;  %v1538_v50 = vlaneseq }
 0x42c   : > { %v6824_v51 = vshrl.u32 %v1538_v50, 7 }
 0x42d   : > { %1457 = vmatpush1.bf16.msra.mxu1 %v5936_v56  ;;  %1500 = vmatpush1.bf16.msra.mxu0 %v5938_v57  ;;  %v1748_v56 = vld [vmem:[#allocation6 + $0x1] ss:$8 sm:$0xf0]  ;;  %v6836_v57 = vor.u32 %v1550_v53, %v1549_v52 }
 0x42e   : > { %1458 = vmatprep.subr.bf16.mxu1 %v5945_v58  ;;  %1501 = vmatprep.subr.bf16.mxu0 %v5947_v59  ;;  %v6839_v58 = vsub.s32 3, %v6824_v51  ;;  %v6845_v59 = vstv %s5995_s18  ;;  %v6864_v62 = vsub.s32 1, %v6824_v51  ;;  %s6873_s18 = sld [smem:[#allocation8 + $0x7]] }
 0x431   : > { %1459 = vmatpush1.bf16.msra.mxu1 %v5944_v63  ;;  %1502 = vmatpush1.bf16.msra.mxu0 %v5946_v0  ;;  %v6867_v63 = vsub.s32 2, %v6824_v51  ;;  %v6869_v0 = vor.u32 %v1748_v56, %v1747_v55 }
 0x432   : > { %1460 = vmatprep.subr.bf16.mxu1 %v5953_v1  ;;  %1503 = vmatprep.subr.bf16.mxu0 %v5955_v2  ;;  %v6879_v2 = vand.u32 127, %v1538_v50 }
 0x433   : > { %v6947_v33 = vrot.slane %v6869_v0, %v6864_v62  ;;  %v6951_v26 = vrot.slane %v6869_v0, %v6867_v63 }
 0x434   : > { %vm1540_vm6 = vcmp.lt.s32.totalorder %v6879_v2, 33  ;;  %vm1737_vm7 = vcmp.lt.s32.totalorder %v6879_v2, 32  ;;  %vm2451_vm8 = vcmp.lt.s32.totalorder %v6879_v2, 127  ;;  %vm2649_vm9 = vcmp.lt.s32.totalorder %v6879_v2, 97 }
 0x435   : > { %1461 = vmatpush1.bf16.msra.mxu1 %v5952_v7  ;;  %1504 = vmatpush1.bf16.msra.mxu0 %v5954_v8  ;;  %10374 = vst [vmem:[#allocation38_spill] sm:$0xff] %v6947_v33  ;;  %10375 = vst [vmem:[#allocation39_spill] sm:$0xff] %v6951_v26  ;;  %vm1935_vm10 = vcmp.lt.s32.totalorder %v6879_v2, 31  ;;  %vm2133_vm11 = vcmp.lt.s32.totalorder %v6879_v2, 1  ;;  %vm2847_vm12 = vcmp.lt.s32.totalorder %v6879_v2, 96  ;;  %vm3045_vm13 = vcmp.lt.s32.totalorder %v6879_v2, 95 }
 0x436   : > { %1462 = vmatprep.subr.bf16.mxu1 %v5961_v9  ;;  %1505 = vmatprep.subr.bf16.mxu0 %v5963_v11  ;;  %v6903_v11 = vrot.slane %v6836_v57, %v6839_v58 }
 0x438   : > { %10366 = vst [vmem:[#allocation30_spill] sm:$0xff] %v6903_v11 }
 0x439   : > { %1463 = vmatpush1.bf16.msra.mxu1 %v5960_v18  ;;  %1506 = vmatpush1.bf16.msra.mxu0 %v5962_v21  ;;  %v2660_v18 = vld [vmem:[#allocation6 + $0x6] ss:$8 sm:$0xf0] }
 0x43a   : > { %1464 = vmatprep.subr.bf16.mxu1 %v5969_v22  ;;  %1507 = vmatprep.subr.bf16.mxu0 %v5971_v23  ;;  %v7013_v55 = vor.u32 %v2660_v18, %v2659_v17 }
 0x43c   : > { %10388 = vst [vmem:[#allocation50_spill] sm:$0xff] %v7013_v55 }
 0x43d   : > { %1465 = vmatpush1.bf16.msra.mxu1 %v5968_v34  ;;  %1508 = vmatpush1.bf16.msra.mxu0 %v5970_v27  ;;  %v1945_v27 = vld [vmem:[#allocation6 + $0x2] ss:$8 sm:$0xf] }
 0x43e   : > { %1466 = vmatprep.subr.bf16.mxu1 %v5977_v28  ;;  %1509 = vmatprep.subr.bf16.mxu0 %v5979_v29  ;;  %v1946_v28 = vld [vmem:[#allocation6 + $0x2] ss:$8 sm:$0xf0] }
 0x43f   : > { %v7044_v29 = vor.u32 %v1946_v28, %v1945_v27 }
 0x441   : > { %1467 = vmatpush1.bf16.msra.mxu1 %v5976_v30  ;;  %1510 = vmatpush1.bf16.msra.mxu0 %v5978_v31  ;;  %v7048_v30 = vstv %s6883_s28  ;;  %s10831_s28 = smov 33  }
 0x444   : > { %1469 = vmatmul.mubr.bf16.vlgmr.msra.gmra.mrb[4].mxu1 %v6703_v38  ;;  %1512 = vmatmul.mubr.bf16.vlgmr.msra.gmra.mrb[8].mxu0 %v6703_v38 }
 0x445   : > { %5091 = vmatprep.mubr.f32.mxu1 %v10087_v13  ;;  %5168 = vmatprep.mubr.f32.mxu0 %v10087_v13 }
 0x4d7   : > { %v1384_v32 = vpop.f32.mrb[0].mxu1  ;;  %v1427_v35 = vpop.f32.mrb[4].mxu0 }
 0x4d8   : > { %v1386_v36 = vpop.f32.mrb[1].mxu1  ;;  %v1429_v37 = vpop.f32.mrb[5].mxu0 }
 0x4d9   : > { %v6711_v40 = vpop.f32.mrb[2].mxu1  ;;  %v6713_v42 = vpop.f32.mrb[6].mxu0  ;;  %5027 = vmatprep.subr.mxu1 %v1386_v36  ;;  %5104 = vmatprep.subr.mxu0 %v1429_v37  ;;  %v6975_v36 = vsub.s32 0, %v6824_v51  ;;  %v6977_v37 = vor.u32 %v2462_v4, %v2461_v3  ;;  %v7024_v3 = vstv %s6871_s15  ;;  %v7027_v4 = vstv %s6873_s18  ;;  %s10397_s15 = smov 95   ;;  %s10457_s18 = smov 127  }
 0x4da   : > { %v6718_v39 = vpop.f32.mrb[7].mxu0  ;;  %5028 = vmatpush1.msra.mxu1 %v1384_v32  ;;  %5105 = vmatpush1.msra.mxu0 %v1427_v35  ;;  %v6720_v38 = vpop.f32.mrb[3].mxu1  ;;  %v6857_v61 = vmul.f32 %v6834_v54, %v6713_v42  ;;  %v6887_v5 = vmul.f32 %v6845_v59, %v6713_v42  ;;  %v6895_v7 = vmul.f32 %v6847_v60, %v6713_v42 }
 0x4db   : > { %1919 = vrot.lane.b32.xlu1 %v6711_v40, %s10081_s27  ;;  %1522 = vrot.lane.b32.xlu0 %v6711_v40, %s10083_s26  ;;  %v6877_v1 = vmul.f32 %v6834_v54, %v6720_v38  ;;  %v6891_v6 = vmul.f32 %v6847_v60, %v6720_v38  ;;  %v6911_v12 = vmul.f32 %v6853_v44, %v6713_v42 }
 0x4dc   : > { %6066 = vmatmul.mubr.msk.f32.vlgmr.msra.gmra.mrb[8].mxu1 %vm457_vm2, %v5019_v43  ;;  %6068 = vmatmul.mubr.msk.f32.vlgmr.msra.gmra.mrb[2].mxu0 %vm457_vm2, %v5019_v43  ;;  %10359 = vst [vmem:[#allocation23_spill] sm:$0xff] %v6857_v61  ;;  %10361 = vst [vmem:[#allocation25_spill] sm:$0xff] %v6887_v5  ;;  %v6915_v14 = vmul.f32 %v6845_v59, %v6720_v38  ;;  %v6919_v15 = vmul.f32 %v6834_v54, %v6718_v39 }
 0x4dd   : > { %5097 = vmatprep.mubr.f32.mxu1 %v10087_v13  ;;  %5174 = vmatprep.mubr.f32.mxu0 %v10087_v13  ;;  %10360 = vst [vmem:[#allocation24_spill] sm:$0xff] %v6877_v1  ;;  %10362 = vst [vmem:[#allocation26_spill] sm:$0xff] %v6891_v6  ;;  %v6927_v21 = vmul.f32 %v6853_v44, %v6720_v38  ;;  %v6931_v22 = vmul.f32 %v6845_v59, %v6718_v39  ;;  %v7121_v1 = vsub.s32 4, %v6824_v51 }
 0x4de   : > { %10363 = vst [vmem:[#allocation27_spill] sm:$0xff] %v6895_v7  ;;  %10367 = vst [vmem:[#allocation31_spill] sm:$0xff] %v6911_v12  ;;  %v6935_v23 = vmul.f32 %v6853_v44, %v6718_v39  ;;  %v6966_v31 = vmul.f32 %v6847_v60, %v6718_v39  ;;  %v6970_v32 = vmul.f32 %v6834_v54, %v6711_v40 }
 0x4df   : > { %2117 = vrot.lane.b32.xlu1 %v6711_v40, %s10071_s23  ;;  %1526 = vrot.lane.b32.xlu0 %v6713_v42, %s10083_s26  ;;  %10368 = vst [vmem:[#allocation32_spill] sm:$0xff] %v6915_v14  ;;  %10369 = vst [vmem:[#allocation33_spill] sm:$0xff] %v6919_v15  ;;  %v6986_v43 = vmul.f32 %v6847_v60, %v6711_v40  ;;  %v7021_v56 = vmul.f32 %v6853_v44, %v6711_v40 }
 0x4e0   : > { %10370 = vst [vmem:[#allocation34_spill] sm:$0xff] %v6927_v21  ;;  %10371 = vst [vmem:[#allocation35_spill] sm:$0xff] %v6931_v22  ;;  %v7058_v18 = vrot.slane %v6977_v37, %v6864_v62  ;;  %v7067_v27 = vrot.slane %v7013_v55, %v6975_v36  ;;  %v7105_v15 = vrot.slane %v7044_v29, %v6864_v62  ;;  %v7128_v21 = vstv %s6981_s2  ;;  %s7215_s2 = sld [smem:[#allocation8 + $0x1e]] }
 0x4e1   : > { %10372 = vst [vmem:[#allocation36_spill] sm:$0xff] %v6935_v23  ;;  %10376 = vst [vmem:[#allocation40_spill] sm:$0xff] %v6966_v31  ;;  %v7112_v23 = vstv %s6958_s16  ;;  %v7132_v14 = vrot.slane %v7044_v29, %v6839_v58  ;;  %s6039_s16 = sld [smem:[#allocation9 + $0x12]] }
 0x4e2   : > { %10377 = vst [vmem:[#allocation41_spill] sm:$0xff] %v6970_v32  ;;  %10378 = vst [vmem:[#allocation42_spill] sm:$0xff] %v6977_v37  ;;  %v7085_v32 = vrot.slane %v7013_v55, %v6864_v62 }
 0x4e3   : > { %2831 = vrot.lane.b32.xlu1 %v6711_v40, %s10075_s11  ;;  %1721 = vrot.lane.b32.xlu0 %v6711_v40, %s10073_s21  ;;  %10379 = vst [vmem:[#allocation43_spill] sm:$0xff] %v6986_v43  ;;  %10389 = vst [vmem:[#allocation51_spill] sm:$0xff] %v7021_v56  ;;  %v7081_v43 = vstv %s6955_s1  ;;  %v7089_v56 = vrot.slane %v6836_v57, %v6864_v62  ;;  %s7201_s1 = sld [smem:[#allocation8 + $0x1c]] }
 0x4e4   : > { %10390 = vst [vmem:[#allocation52_spill] sm:$0xff] %v7024_v3  ;;  %10391 = vst [vmem:[#allocation53_spill] sm:$0xff] %v7027_v4 }
 0x4e5   : > { %10395 = vst [vmem:[#allocation57_spill] sm:$0xff] %v7058_v18  ;;  %10398 = vst [vmem:[#allocation58_spill] sm:$0xff] %v7067_v27 }
 0x4e6   : > { %10403 = vst [vmem:[#allocation63_spill] sm:$0xff] %v7081_v43  ;;  %10404 = vst [vmem:[#allocation64_spill] sm:$0xff] %v7085_v32 }
 0x4e7   : > { %1528 = vrot.lane.b32.xlu1 %v6718_v39, %s10083_s26  ;;  %1725 = vrot.lane.b32.xlu0 %v6713_v42, %s10073_s21  ;;  %10405 = vst [vmem:[#allocation65_spill] sm:$0xff] %v7089_v56  ;;  %10409 = vst [vmem:[#allocation69_spill] sm:$0xff] %v7105_v15 }
 0x4e8   : > { %10411 = vst [vmem:[#allocation71_spill] sm:$0xff] %v7112_v23  ;;  %10414 = vst [vmem:[#allocation74_spill] sm:$0xff] %v7121_v1 }
 0x4e9   : > { %10416 = vst [vmem:[#allocation75_spill] sm:$0xff] %v7128_v21  ;;  %10417 = vst [vmem:[#allocation76_spill] sm:$0xff] %v7132_v14 }
 0x4eb   : > { %1923 = vrot.lane.b32.xlu0 %v6713_v42, %s10081_s27  ;;  %1723 = vrot.lane.b32.xlu1 %v6720_v38, %s10073_s21 }
 0x4ef   : > { %2121 = vrot.lane.b32.xlu0 %v6713_v42, %s10071_s23  ;;  %2437 = vrot.lane.b32.xlu1 %v6720_v38, %s10085_s24 }
 0x4f3   : > { %2435 = vrot.lane.b32.xlu0 %v6711_v40, %s10085_s24  ;;  %2635 = vrot.lane.b32.xlu1 %v6720_v38, %s10079_s17 }
 0x4f7   : > { %2439 = vrot.lane.b32.xlu0 %v6713_v42, %s10085_s24 }
 0x4fb   : > { %2633 = vrot.lane.b32.xlu0 %v6711_v40, %s10079_s17 }
 0x4ff   : > { %2637 = vrot.lane.b32.xlu0 %v6713_v42, %s10079_s17 }
 0x503   : > { %1524 = vrot.lane.b32.xlu0 %v6720_v38, %s10083_s26 }
 0x507   : > { %1727 = vrot.lane.b32.xlu0 %v6718_v39, %s10073_s21 }
 0x50b   : > { %1921 = vrot.lane.b32.xlu0 %v6720_v38, %s10081_s27 }
 0x50f   : > { %1925 = vrot.lane.b32.xlu0 %v6718_v39, %s10081_s27 }
 0x513   : > { %2119 = vrot.lane.b32.xlu0 %v6720_v38, %s10071_s23 }
 0x517   : > { %v1513_v45 = vpop.f32.mrb[8].mxu0  ;;  %2123 = vrot.lane.b32.xlu0 %v6718_v39, %s10071_s23  ;;  %v1470_v46 = vpop.f32.mrb[4].mxu1 }
 0x518   : > { %v1472_v41 = vpop.f32.mrb[5].mxu1  ;;  %v1515_v47 = vpop.f32.mrb[9].mxu0 }
 0x519   : > { %v6772_v19 = vpop.f32.mrb[6].mxu1  ;;  %v6774_v20 = vpop.f32.mrb[10].mxu0  ;;  %5181 = vmatprep.subr.mxu1 %v1472_v41  ;;  %5258 = vmatprep.subr.mxu0 %v1515_v47  ;;  %v2144_v41 = vld [vmem:[#allocation6 + $0x3] ss:$8 sm:$0xf0]  ;;  %v6999_v47 = vmul.f32 %v6845_v59, %v6711_v40 }
 0x51a   : > { %v6776_v48 = vpop.f32.mrb[11].mxu0  ;;  %5182 = vmatpush1.msra.mxu1 %v1470_v46  ;;  %5259 = vmatpush1.msra.mxu0 %v1513_v45  ;;  %v6778_v49 = vpop.f32.mrb[7].mxu1  ;;  %v6995_v45 = vstv %s6843_s25  ;;  %v2143_v46 = vld [vmem:[#allocation6 + $0x3] ss:$8 sm:$0xf]  ;;  %s10396_s25 = smov 32   ;;  %v7187_v23 = vmul.f32 %v6834_v54, %v6772_v19  ;;  %v7205_v15 = vmul.f32 %v6845_v59, %v6774_v20 }
 0x51b   : > { %1530 = vrot.lane.b32.xlu1 %v6772_v19, %s10083_s26  ;;  %2441 = vrot.lane.b32.xlu0 %v6718_v39, %s10085_s24  ;;  %10381 = vst [vmem:[#allocation45_spill] sm:$0xff] %v6995_v45  ;;  %10382 = vst [vmem:[#allocation46_spill] sm:$0xff] %v6999_v47  ;;  %v7075_v16 = vor.u32 %v2144_v41, %v2143_v46  ;;  %v7097_v46 = vrot.slane %v6836_v57, %v6867_v63 }
 0x51c   : > { %v7101_v41 = vrot.slane %v6869_v0, %v6839_v58  ;;  %10432 = vst [vmem:[#allocation91_spill] sm:$0xff] %v7187_v23  ;;  %10435 = vst [vmem:[#allocation94_spill] sm:$0xff] %v7205_v15 }
 0x51d   : > { %10401 = vst [vmem:[#allocation61_spill] sm:$0xff] %v7075_v16  ;;  %10407 = vst [vmem:[#allocation67_spill] sm:$0xff] %v7097_v46  ;;  %v7136_v7 = vrot.slane %v7075_v16, %v6864_v62  ;;  %v7140_v61 = vrot.slane %v7075_v16, %v6867_v63  ;;  %v7287_v23 = vrot.slane %v7075_v16, %v7121_v1 }
 0x51e   : > { %10408 = vst [vmem:[#allocation68_spill] sm:$0xff] %v7101_v41 }
 0x51f   : > { %1729 = vrot.lane.b32.xlu1 %v6772_v19, %s10073_s21  ;;  %2639 = vrot.lane.b32.xlu0 %v6718_v39, %s10079_s17  ;;  %10418 = vst [vmem:[#allocation77_spill] sm:$0xff] %v7136_v7  ;;  %10419 = vst [vmem:[#allocation78_spill] sm:$0xff] %v7140_v61  ;;  %v7163_v7 = vmul.f32 %v6834_v54, %v6776_v48  ;;  %v7183_v61 = vmul.f32 %v6847_v60, %v6774_v20 }
 0x520   : > { %10451 = vst [vmem:[#allocation110_spill] sm:$0xff] %v7287_v23 }
 0x521   : > { %10426 = vst [vmem:[#allocation85_spill] sm:$0xff] %v7163_v7  ;;  %10431 = vst [vmem:[#allocation90_spill] sm:$0xff] %v7183_v61  ;;  %v7279_v61 = vmul.f32 %v6853_v44, %v6778_v49 }
 0x523   : > { %1927 = vrot.lane.b32.xlu1 %v6772_v19, %s10081_s27  ;;  %1534 = vrot.lane.b32.xlu0 %v6774_v20, %s10083_s26  ;;  %10449 = vst [vmem:[#allocation108_spill] sm:$0xff] %v7279_v61  ;;  %v7325_v61 = vstv %s7201_s1  ;;  %s8760_s1 = sld [smem:[#allocation9 + $0x4]] }
 0x524   : > { %10460 = vst [vmem:[#allocation118_spill] sm:$0xff] %v7325_v61 }
 0x527   : > { %1931 = vrot.lane.b32.xlu1 %v6774_v20, %s10081_s27  ;;  %1733 = vrot.lane.b32.xlu0 %v6774_v20, %s10073_s21  ;;  %s6923_s27 = sld [smem:[#allocation8 + $0x1a]] }
 0x52b   : > { %2129 = vrot.lane.b32.xlu1 %v6774_v20, %s10071_s23  ;;  %2125 = vrot.lane.b32.xlu0 %v6772_v19, %s10071_s23  ;;  %s6849_s23 = sld [smem:[#allocation8 + $0x4]] }
 0x52d   : > { %v7073_v34 = vstv %s6923_s27  ;;  %s7217_s27 = sld [smem:[#allocation8 + $0x1d]] }
 0x52e   : > { %10400 = vst [vmem:[#allocation60_spill] sm:$0xff] %v7073_v34  ;;  %v3055_v34 = vld [vmem:[#allocation6 + $0x40] ss:$8 sm:$0xf] }
 0x52f   : > { %2443 = vrot.lane.b32.xlu1 %v6772_v19, %s10085_s24  ;;  %2641 = vrot.lane.b32.xlu0 %v6772_v19, %s10079_s17 }
 0x531   : > { %v7008_v52 = vstv %s6849_s23  ;;  %s7029_s23 = sld [smem:[#allocation8 + $0xd]] }
 0x532   : > { %10386 = vst [vmem:[#allocation48_spill] sm:$0xff] %v7008_v52 }
 0x533   : > { %2447 = vrot.lane.b32.xlu1 %v6774_v20, %s10085_s24  ;;  %1735 = vrot.lane.b32.xlu0 %v6776_v48, %s10073_s21  ;;  %s6851_s21 = sld [smem:[#allocation8 + $0x6]] }
 0x537   : > { %1536 = vrot.lane.b32.xlu1 %v6776_v48, %s10083_s26  ;;  %2833 = vrot.lane.b32.xlu0 %v6720_v38, %s10075_s11 }
 0x539   : > { %v7011_v53 = vstv %s6851_s21  ;;  %s7031_s21 = sld [smem:[#allocation8 + $0xf]] }
 0x53a   : > { %10387 = vst [vmem:[#allocation49_spill] sm:$0xff] %v7011_v53 }
 0x53b   : > { %2835 = vrot.lane.b32.xlu1 %v6713_v42, %s10075_s11  ;;  %2837 = vrot.lane.b32.xlu0 %v6718_v39, %s10075_s11 }
 0x53f   : > { %2645 = vrot.lane.b32.xlu1 %v6774_v20, %s10079_s17  ;;  %2839 = vrot.lane.b32.xlu0 %v6772_v19, %s10075_s11  ;;  %s6921_s17 = sld [smem:[#allocation8 + $0x18]] }
 0x543   : > { %3029 = vrot.lane.b32.xlu1 %v6711_v40, %s10077_s14  ;;  %3031 = vrot.lane.b32.xlu0 %v6720_v38, %s10077_s14  ;;  %v6992_v38 = vstv %s6841_s22  ;;  %s7017_s22 = sld [smem:[#allocation8 + $0xe]]  ;;  %v7039_v40 = vrot.slane %v6977_v37, %v6975_v36 }
 0x545   : > { %10393 = vst [vmem:[#allocation55_spill] sm:$0xff] %v7039_v40  ;;  %v7070_v28 = vstv %s6921_s17  ;;  %s7293_s17 = sld [smem:[#allocation8 + $0x21]] }
 0x546   : > { %10399 = vst [vmem:[#allocation59_spill] sm:$0xff] %v7070_v28  ;;  %v7241_v28 = vmul.f32 %v6847_v60, %v6778_v49 }
 0x547   : > { %3033 = vrot.lane.b32.xlu1 %v6713_v42, %s10077_s14  ;;  %3035 = vrot.lane.b32.xlu0 %v6718_v39, %s10077_s14  ;;  %v6989_v39 = vstv %s6832_s29  ;;  %s7015_s29 = sld [smem:[#allocation8 + $0xc]]  ;;  %v7042_v42 = vstv %s6881_s20  ;;  %s10482_s20 = smov 96  }
 0x548   : > { %10380 = vst [vmem:[#allocation44_spill] sm:$0xff] %v6989_v39  ;;  %10442 = vst [vmem:[#allocation101_spill] sm:$0xff] %v7241_v28 }
 0x549   : > { %v7146_v5 = vstv %s7017_s22  ;;  %s3475_s22 = sld [smem:[#allocation9]] }
 0x54a   : > { %10421 = vst [vmem:[#allocation80_spill] sm:$0xff] %v7146_v5  ;;  %v7179_v5 = vrot.slane %v6977_v37, %v6867_v63 }
 0x54b   : > { %2843 = vrot.lane.b32.xlu1 %v6774_v20, %s10075_s11  ;;  %3037 = vrot.lane.b32.xlu0 %v6772_v19, %s10077_s14  ;;  %s6905_s11 = sld [smem:[#allocation8 + $0x15]]  ;;  %s6907_s14 = sld [smem:[#allocation8 + $0x17]] }
 0x54c   : > { %10430 = vst [vmem:[#allocation89_spill] sm:$0xff] %v7179_v5  ;;  %v7199_v5 = vmul.f32 %v6853_v44, %v6772_v19 }
 0x54d   : > { %v6897_v8 = vpop.permute.xlu1 %1919  ;;  %v6899_v9 = vpop.permute.xlu0 %1522  ;;  %v7143_v12 = vstv %s7015_s29  ;;  %s6040_s29 = sld [smem:[#allocation9 + $0x11]] }
 0x54e   : > { %10364 = vst [vmem:[#allocation28_spill] sm:$0xff] %v6897_v8  ;;  %10365 = vst [vmem:[#allocation29_spill] sm:$0xff] %v6899_v9  ;;  %v7209_v8 = vmul.f32 %v6847_v60, %v6772_v19 }
 0x54f   : > { %1532 = vrot.lane.b32.xlu1 %v6778_v49, %s10083_s26  ;;  %2449 = vrot.lane.b32.xlu0 %v6776_v48, %s10085_s24  ;;  %s6960_s26 = sld [smem:[#allocation8 + $0xa]]  ;;  %s6979_s24 = sld [smem:[#allocation8 + $0x9]]  ;;  %10420 = vst [vmem:[#allocation79_spill] sm:$0xff] %v7143_v12  ;;  %v7167_v12 = vmul.f32 %v6847_v60, %v6776_v48  ;;  %10434 = vst [vmem:[#allocation93_spill] sm:$0xff] %v7199_v5  ;;  %v7221_v5 = vmul.f32 %v6845_v59, %v6776_v48 }
 0x550   : > { %10436 = vst [vmem:[#allocation95_spill] sm:$0xff] %v7209_v8  ;;  %v7260_v60 = vmul.f32 %v6853_v44, %v6774_v20 }
 0x551   : > { %v6972_v35 = vpop.permute.xlu0 %1526  ;;  %v7001_v50 = vpop.permute.xlu1 %2117  ;;  %v7051_v17 = vstv %s6905_s11  ;;  %v7054_v24 = vstv %s6907_s14  ;;  %10427 = vst [vmem:[#allocation86_spill] sm:$0xff] %v7167_v12  ;;  %10438 = vst [vmem:[#allocation97_spill] sm:$0xff] %v7221_v5  ;;  %s7256_s11 = sld [smem:[#allocation8 + $0x20]]  ;;  %s7295_s14 = sld [smem:[#allocation8 + $0x23]] }
 0x552   : > { %10383 = vst [vmem:[#allocation47_spill] sm:$0xff] %v7001_v50  ;;  %10394 = vst [vmem:[#allocation56_spill] sm:$0xff] %v7054_v24  ;;  %v7149_v50 = vstv %s7029_s23  ;;  %s6041_s23 = sld [smem:[#allocation9 + $0x13]] }
 0x553   : > { %1933 = vrot.lane.b32.xlu1 %v6776_v48, %s10384_s3  ;;  %2647 = vrot.lane.b32.xlu0 %v6776_v48, %s10385_s4  ;;  %10422 = vst [vmem:[#allocation81_spill] sm:$0xff] %v7149_v50  ;;  %v7171_v50 = vmul.f32 %v6834_v54, %v6774_v20  ;;  %10445 = vst [vmem:[#allocation104_spill] sm:$0xff] %v7260_v60 }
 0x555   : > { %v7035_v13 = vpop.permute.xlu0 %1721  ;;  %v7091_v47 = vpop.permute.xlu1 %2831  ;;  %v7115_v22 = vstv %s6960_s26  ;;  %v7118_v6 = vstv %s6979_s24  ;;  %10428 = vst [vmem:[#allocation87_spill] sm:$0xff] %v7171_v50  ;;  %s7234_s26 = sld [smem:[#allocation8 + $0x1f]]  ;;  %v7264_v50 = vmul.f32 %v6845_v59, %v6778_v49  ;;  %s7275_s24 = sld [smem:[#allocation8 + $0x22]] }
 0x556   : > { %10392 = vst [vmem:[#allocation54_spill] sm:$0xff] %v7035_v13  ;;  %10406 = vst [vmem:[#allocation66_spill] sm:$0xff] %v7091_v47  ;;  %v7109_v47 = vrot.slane %v7044_v29, %v6867_v63 }
 0x557   : > { %1731 = vrot.lane.b32.xlu1 %v6778_v49, %s10396_s25  ;;  %3039 = vrot.lane.b32.xlu0 %v6778_v49, %s10397_s15  ;;  %10412 = vst [vmem:[#allocation72_spill] sm:$0xff] %v7115_v22  ;;  %10413 = vst [vmem:[#allocation73_spill] sm:$0xff] %v7118_v6  ;;  %v7152_v6 = vstv %s7031_s21  ;;  %v7159_v22 = vrot.slane %v7075_v16, %v6839_v58  ;;  %s6023_s21 = sld [smem:[#allocation9 + $0x2]] }
 0x558   : > { %10410 = vst [vmem:[#allocation70_spill] sm:$0xff] %v7109_v47  ;;  %10423 = vst [vmem:[#allocation82_spill] sm:$0xff] %v7152_v6  ;;  %v7175_v6 = vrot.slane %v6836_v57, %v7121_v1  ;;  %v2858_v47 = vld [vmem:[#allocation6 + $0x7] ss:$8 sm:$0xf0] }
 0x559   : > { %v7093_v31 = vpop.permute.xlu0 %1725  ;;  %10425 = vst [vmem:[#allocation84_spill] sm:$0xff] %v7159_v22  ;;  %v2857_v22 = vld [vmem:[#allocation6 + $0x7] ss:$8 sm:$0xf]  ;;  %v7189_v14 = vpop.permute.xlu1 %1528  ;;  %10446 = vst [vmem:[#allocation105_spill] sm:$0xff] %v7264_v50  ;;  %v7291_v50 = vrot.slane %v6977_v37, %v6839_v58 }
 0x55a   : > { %10429 = vst [vmem:[#allocation88_spill] sm:$0xff] %v7175_v6  ;;  %v7195_v6 = vmul.f32 %v6845_v59, %v6772_v19  ;;  %v7229_v19 = vmul.f32 %v6834_v54, %v6778_v49  ;;  %v1545_v54 = vsel %vm1540_vm6, %v6972_v35, %v7189_v14  ;;  %v7254_v5 = vor.u32 %v2858_v47, %v2857_v22  ;;  %v3056_v47 = vld [vmem:[#allocation6 + $0x40] ss:$8 sm:$0xf0] }
 0x55b   : > { %2131 = vrot.lane.b32.xlu1 %v6776_v48, %s10415_s0  ;;  %3043 = vrot.lane.b32.xlu0 %v6776_v48, %s10397_s15  ;;  %v7273_v22 = vrot.slane %v7044_v29, %v7121_v1  ;;  %10452 = vst [vmem:[#allocation111_spill] sm:$0xff] %v7291_v50  ;;  %v7304_v59 = vrot.slane %v6869_v0, %v6975_v36  ;;  %v7345_v61 = vstv %s7234_s26  ;;  %v7398_v50 = vstv %s7295_s14  ;;  %s8774_s26 = sld [smem:[#allocation9 + $0x7]]  ;;  %s8804_s14 = sld [smem:[#allocation9 + $0xb]] }
 0x55c   : > { %10433 = vst [vmem:[#allocation92_spill] sm:$0xff] %v7195_v6  ;;  %v7225_v6 = vmul.f32 %v6853_v44, %v6776_v48  ;;  %10440 = vst [vmem:[#allocation99_spill] sm:$0xff] %v7229_v19  ;;  %v7312_v19 = vrot.slane %v6836_v57, %v6975_v36  ;;  %v7322_v28 = vrot.slane %v7254_v5, %v6975_v36 }
 0x55d   : > { %v7154_v21 = vpop.permute.xlu0 %1923  ;;  %10444 = vst [vmem:[#allocation103_spill] sm:$0xff] %v7254_v5  ;;  %10448 = vst [vmem:[#allocation107_spill] sm:$0xff] %v7273_v22  ;;  %v1724_v60 = vpop.permute.xlu1 %1723  ;;  %v7327_v12 = vor.u32 %v3056_v47, %v3055_v34  ;;  %v7349_v34 = vrot.slane %v7254_v5, %v6864_v62  ;;  %v7353_v47 = vrot.slane %v7254_v5, %v6867_v63 }
 0x55e   : > { %10424 = vst [vmem:[#allocation83_spill] sm:$0xff] %v7154_v21  ;;  %v7213_v21 = vrot.slane %v6869_v0, %v7121_v1  ;;  %10439 = vst [vmem:[#allocation98_spill] sm:$0xff] %v7225_v6  ;;  %v7248_v6 = vsub.s32 7, %v6824_v51  ;;  %v1743_v7 = vsel %vm1737_vm7, %v1724_v60, %v7093_v31 }
 0x55f   : > { %1929 = vrot.lane.b32.xlu1 %v6778_v49, %s10384_s3  ;;  %10454 = vst [vmem:[#allocation113_spill] sm:$0xff] %v7304_v59  ;;  %10456 = vst [vmem:[#allocation115_spill] sm:$0xff] %v7312_v19  ;;  %v1744_v19 = vsel %vm1737_vm7, %v7035_v13, %v1724_v60  ;;  %v7339_v59 = vstv %s7217_s27  ;;  %s8772_s27 = sld [smem:[#allocation9 + $0x5]] }
 0x560   : > { %10437 = vst [vmem:[#allocation96_spill] sm:$0xff] %v7213_v21  ;;  %10443 = vst [vmem:[#allocation102_spill] sm:$0xff] %v7248_v6  ;;  %v7269_v21 = vrot.slane %v7013_v55, %v6867_v63  ;;  %v7318_v44 = vrot.slane %v6836_v57, %v7248_v6 }
 0x561   : > { %v7231_v15 = vpop.permute.xlu0 %2121  ;;  %10459 = vst [vmem:[#allocation117_spill] sm:$0xff] %v7322_v28  ;;  %10461 = vst [vmem:[#allocation119_spill] sm:$0xff] %v7327_v12  ;;  %v1793_v28 = vmul.f32 %v6951_v26, %v1743_v7  ;;  %v2438_v13 = vpop.permute.xlu1 %2437  ;;  %v7386_v7 = vstv %s7275_s24  ;;  %v7390_v26 = vrot.slane %v7327_v12, %v6867_v63  ;;  %s8792_s24 = sld [smem:[#allocation9 + $0xa]] }
 0x562   : > { %10441 = vst [vmem:[#allocation100_spill] sm:$0xff] %v7231_v15  ;;  %10447 = vst [vmem:[#allocation106_spill] sm:$0xff] %v7269_v21  ;;  %v1596_v15 = vmul.f32 %v6903_v11, %v1545_v54  ;;  %v7300_v54 = vrot.slane %v7013_v55, %v6839_v58  ;;  %v7308_v11 = vrot.slane %v6869_v0, %v7248_v6 }
 0x563   : > { %2127 = vrot.lane.b32.xlu1 %v6778_v49, %s10415_s0  ;;  %10458 = vst [vmem:[#allocation116_spill] sm:$0xff] %v7318_v44  ;;  %10463 = vst [vmem:[#allocation121_spill] sm:$0xff] %v7339_v59  ;;  %v7361_v59 = vsub.s32 5, %v6824_v51 }
 0x564   : > { %10453 = vst [vmem:[#allocation112_spill] sm:$0xff] %v7300_v54  ;;  %10455 = vst [vmem:[#allocation114_spill] sm:$0xff] %v7308_v11  ;;  %v7336_v11 = vstv %s7215_s2  ;;  %v1642_v44 = vmul.f32 %v6992_v38, %v1596_v15  ;;  %v1684_v60 = vmul.f32 %v6995_v45, %v1596_v15  ;;  %s8762_s2 = sld [smem:[#allocation9 + $0x6]] }
 0x565   : > { %v7283_v8 = vpop.permute.xlu0 %2435  ;;  %10462 = vst [vmem:[#allocation120_spill] sm:$0xff] %v7336_v11  ;;  %10464 = vst [vmem:[#allocation122_spill] sm:$0xff] %v7345_v61  ;;  %v7358_v11 = vrot.slane %v7254_v5, %v6839_v58  ;;  %v7364_v61 = vsub.s32 6, %v6824_v51  ;;  %v7373_v5 = vrot.slane %v7327_v12, %v6975_v36 }
 0x566   : > { %10450 = vst [vmem:[#allocation109_spill] sm:$0xff] %v7283_v8  ;;  %10465 = vst [vmem:[#allocation123_spill] sm:$0xff] %v7349_v34  ;;  %v1792_v34 = vmul.f32 %v6947_v33, %v1744_v19  ;;  %v2458_v51 = vsel %vm2451_vm8, %v7283_v8, %v2438_v13  ;;  %v7383_v19 = vstv %s7256_s11  ;;  %v1658_v33 = vrot.slane %v1642_v44, 1  ;;  %s8790_s11 = sld [smem:[#allocation9 + $0x8]] }
 0x567   : > { %2445 = vrot.lane.b32.xlu1 %v6778_v49, %s10457_s18  ;;  %10466 = vst [vmem:[#allocation124_spill] sm:$0xff] %v7353_v47  ;;  %10467 = vst [vmem:[#allocation125_spill] sm:$0xff] %v7358_v11  ;;  %v7377_v11 = vrot.slane %v7327_v12, %v6864_v62  ;;  %v7402_v62 = vrot.slane %v7327_v12, %v6839_v58  ;;  %v1700_v8 = vrot.slane %v1684_v60, 1 }
 0x568   : > { %10468 = vst [vmem:[#allocation126_spill] sm:$0xff] %v7361_v59  ;;  %10469 = vst [vmem:[#allocation127_spill] sm:$0xff] %v7364_v61  ;;  %v7410_v63 = vrot.slane %v6836_v57, %v7364_v61  ;;  %v7414_v44 = vrot.slane %v6977_v37, %v7364_v61  ;;  %v7421_v58 = vmul.f32 %v7024_v3, %v1793_v28 }
 0x569   : > { %v7342_v54 = vpop.permute.xlu0 %2439  ;;  %10470 = vst [vmem:[#allocation128_spill] sm:$0xff] %v7373_v5  ;;  %10471 = vst [vmem:[#allocation129_spill] sm:$0xff] %v7377_v11  ;;  %v7395_v5 = vstv %s7293_s17  ;;  %v2505_v60 = vmul.f32 %v7039_v40, %v2458_v51  ;;  %s8802_s17 = sld [smem:[#allocation9 + $0x9]] }
 0x56a   : > { %10472 = vst [vmem:[#allocation130_spill] sm:$0xff] %v7383_v19  ;;  %10473 = vst [vmem:[#allocation131_spill] sm:$0xff] %v7386_v7  ;;  %v7406_v19 = vrot.slane %v6836_v57, %v7361_v59  ;;  %v1624_v57 = vmul.f32 %v6989_v39, %v1596_v15  ;;  %v2457_v51 = vsel %vm2451_vm8, %v2438_v13, %v7342_v54 }
 0x56b   : > { %2643 = vrot.lane.b32.xlu1 %v6778_v49, %s10385_s4  ;;  %10474 = vst [vmem:[#allocation132_spill] sm:$0xff] %v7390_v26  ;;  %10476 = vst [vmem:[#allocation134_spill] sm:$0xff] %v7395_v5  ;;  %v1606_v26 = vmul.f32 %v6943_v25, %v1596_v15  ;;  %v7418_v5 = vmul.f32 %v7024_v3, %v1792_v34  ;;  %v7450_v15 = vrot.slane %v7044_v29, %v7248_v6 }
 0x56c   : > { %10477 = vst [vmem:[#allocation135_spill] sm:$0xff] %v7398_v50  ;;  %10478 = vst [vmem:[#allocation136_spill] sm:$0xff] %v7402_v62  ;;  %v7452_v50 = vadd.f32 %v1700_v8, %v1624_v57  ;;  %v7462_v13 = vmul.f32 %v7011_v53, %v1793_v28  ;;  %v7467_v7 = vmul.f32 %v7051_v17, %v2505_v60 }
 0x56d   : > { %v7392_v47 = vpop.permute.xlu0 %2633  ;;  %10479 = vst [vmem:[#allocation137_spill] sm:$0xff] %v7406_v19  ;;  %10480 = vst [vmem:[#allocation138_spill] sm:$0xff] %v7410_v63  ;;  %v7428_v63 = vmul.f32 %v7027_v4, %v1792_v34  ;;  %v7435_v19 = vrot.slane %v6977_v37, %v7248_v6  ;;  %v7437_v62 = vadd.f32 %v1658_v33, %v1606_v26 }
 0x56e   : > { %10475 = vst [vmem:[#allocation133_spill] sm:$0xff] %v7392_v47  ;;  %10481 = vst [vmem:[#allocation139_spill] sm:$0xff] %v7414_v44  ;;  %v7431_v44 = vmul.f32 %v7027_v4, %v1793_v28  ;;  %v1802_v37 = vmul.f32 %v7008_v52, %v1792_v34  ;;  %v7456_v33 = vmul.f32 %v7008_v52, %v1793_v28 }
 0x56f   : > { %2841 = vrot.lane.b32.xlu1 %v6778_v49, %s10482_s20  ;;  %10483 = vst [vmem:[#allocation140_spill] sm:$0xff] %v7435_v19  ;;  %v7446_v49 = vrot.slane %v7044_v29, %v6975_v36  ;;  %10486 = vst [vmem:[#allocation143_spill] sm:$0xff] %v7450_v15  ;;  %v7459_v26 = vmul.f32 %v7011_v53, %v1792_v34  ;;  %v7474_v34 = vmul.f32 %v7054_v24, %v2505_v60  ;;  %v2636_v19 = vpop.permute.xlu1 %2635 }
 0x570   : > { %10487 = vst [vmem:[#allocation144_spill] sm:$0xff] %v7467_v7  ;;  %v2506_v28 = vmul.f32 %v7058_v18, %v2457_v51  ;;  %v7478_v15 = vmul.f32 %v7042_v42, %v2505_v60  ;;  %v7489_v57 = vrot.slane %v7013_v55, %v7248_v6  ;;  %v2656_v51 = vsel %vm2649_vm9, %v7392_v47, %v2636_v19 }
 0x571   : > { %v7442_v40 = vpop.permute.xlu0 %2637  ;;  %10485 = vst [vmem:[#allocation142_spill] sm:$0xff] %v7446_v49  ;;  %10488 = vst [vmem:[#allocation145_spill] sm:$0xff] %v7474_v34  ;;  %v7481_v49 = vmul.f32 %v7048_v30, %v2505_v60  ;;  %v7502_v18 = vrot.slane %v6869_v0, %v7361_v59 }
 0x572   : > { %10484 = vst [vmem:[#allocation141_spill] sm:$0xff] %v7442_v40  ;;  %10489 = vst [vmem:[#allocation146_spill] sm:$0xff] %v7478_v15 }
 0x573   : > { %2845 = vrot.lane.b32.xlu1 %v6776_v48, %s10482_s20  ;;  %10490 = vst [vmem:[#allocation147_spill] sm:$0xff] %v7481_v49  ;;  %v7485_v48 = vrot.slane %v7013_v55, %v7364_v61  ;;  %10492 = vst [vmem:[#allocation149_spill] sm:$0xff] %v7489_v57  ;;  %v7521_v49 = vmul.f32 %v7051_v17, %v2506_v28 }
 0x574   : > { %10493 = vst [vmem:[#allocation150_spill] sm:$0xff] %v7502_v18  ;;  %v7518_v18 = vmul.f32 %v7048_v30, %v2506_v28 }
 0x575   : > { %v1525_v11 = vpop.permute.xlu0 %1524  ;;  %10491 = vst [vmem:[#allocation148_spill] sm:$0xff] %v7485_v48  ;;  %10497 = vst [vmem:[#allocation154_spill] sm:$0xff] %v7521_v49 }
 0x576   : > { %v1546_v8 = vsel %vm1540_vm6, %v1525_v11, %v6972_v35  ;;  %v1547_v60 = vsel %vm1540_vm6, %v6899_v9, %v1525_v11  ;;  %v7511_v35 = vrot.slane %v6869_v0, %v7364_v61  ;;  %v7515_v11 = vmul.f32 %v7042_v42, %v2506_v28  ;;  %10496 = vst [vmem:[#allocation153_spill] sm:$0xff] %v7518_v18 }
 0x577   : > { %v1594_v55 = vmul.f32 %v7089_v56, %v1547_v60  ;;  %v1595_v15 = vmul.f32 %v7097_v46, %v1546_v8  ;;  %3041 = vrot.lane.b32.xlu1 %v6774_v20, %s10397_s15  ;;  %v7525_v8 = vmul.f32 %v7054_v24, %v2506_v28  ;;  %v2703_v20 = vmul.f32 %v7067_v27, %v2656_v51 }
 0x578   : > { %10494 = vst [vmem:[#allocation151_spill] sm:$0xff] %v7511_v35  ;;  %10495 = vst [vmem:[#allocation152_spill] sm:$0xff] %v7515_v11  ;;  %v2655_v0 = vsel %vm2649_vm9, %v2636_v19, %v7442_v40 }
 0x579   : > { %10498 = vst [vmem:[#allocation155_spill] sm:$0xff] %v7525_v8  ;;  %v1604_v60 = vmul.f32 %v6943_v25, %v1594_v55  ;;  %v7532_v57 = vpop.permute.xlu0 %1727  ;;  %v1640_v46 = vmul.f32 %v6992_v38, %v1594_v55  ;;  %v1641_v56 = vmul.f32 %v6992_v38, %v1595_v15  ;;  %v1682_v34 = vmul.f32 %v6995_v45, %v1594_v55 }
 0x57a   : > { %10499 = vst [vmem:[#allocation156_spill] sm:$0xff] %v7532_v57  ;;  %v1683_v7 = vmul.f32 %v6995_v45, %v1595_v15  ;;  %v1605_v28 = vmul.f32 %v6943_v25, %v1595_v15  ;;  %v1622_v51 = vmul.f32 %v6989_v39, %v1594_v55  ;;  %v1623_v27 = vmul.f32 %v6989_v39, %v1595_v15 }
 0x57b   : > { %v1742_v19 = vsel %vm1737_vm7, %v7093_v31, %v7532_v57  ;;  %v1656_v35 = vrot.slane %v1640_v46, 1  ;;  %v1657_v48 = vrot.slane %v1641_v56, 1  ;;  %v1698_v47 = vrot.slane %v1682_v34, 1  ;;  %v10502_v46 = vld [vmem:[#allocation59_spill] sm:$0xff]  ;;  %v10504_v34 = vld [vmem:[#allocation60_spill] sm:$0xff]  ;;  %v10514_v56 = vld [vmem:[#allocation70_spill] sm:$0xff] }
 0x57c   : > { %v1699_v9 = vrot.slane %v1683_v7, 1  ;;  %v7546_v18 = vmul.f32 %v7078_v10, %v2703_v20  ;;  %v7549_v11 = vmul.f32 %v7081_v43, %v2703_v20  ;;  %v2704_v23 = vmul.f32 %v7085_v32, %v2655_v0 }
 0x57d   : > { %v1794_v55 = vmul.f32 %v7101_v41, %v1742_v19  ;;  %v1922_v15 = vpop.permute.xlu0 %1921  ;;  %v1672_v22 = vadd.f32 %v1656_v35, %v1604_v60  ;;  %v1673_v21 = vadd.f32 %v1657_v48, %v1605_v28  ;;  %v1714_v40 = vadd.f32 %v1698_v47, %v1622_v51 }
 0x57e   : > { %10500 = vst [vmem:[#allocation157_spill] sm:$0xff] %v7546_v18  ;;  %10501 = vst [vmem:[#allocation158_spill] sm:$0xff] %v7549_v11  ;;  %v1715_v24 = vadd.f32 %v1699_v9, %v1623_v27  ;;  %v7556_v7 = vmul.f32 %v10502_v46, %v2703_v20  ;;  %v7559_v57 = vmul.f32 %v10504_v34, %v2703_v20  ;;  %v10513_v20 = vld [vmem:[#allocation69_spill] sm:$0xff]  ;;  %v10515_v32 = vrot.slane %v7421_v58, 1 }
 0x57f   : > { %v1810_v39 = vadd.f32 %v1802_v37, %v1672_v22  ;;  %v7563_v0 = vrot.slane %v7327_v12, %v7121_v1  ;;  %v7567_v48 = vrot.slane %v7075_v16, %v6975_v36  ;;  %v7571_v9 = vrot.slane %v7075_v16, %v7248_v6  ;;  %v10521_v1 = vld [vmem:[#allocation73_spill] sm:$0xff] }
 0x580   : > { %10503 = vst [vmem:[#allocation159_spill] sm:$0xff] %v7556_v7  ;;  %10505 = vst [vmem:[#allocation160_spill] sm:$0xff] %v7559_v57  ;;  %v1811_v47 = vadd.f32 %v7456_v33, %v1673_v21  ;;  %v1828_v35 = vadd.f32 %v7459_v26, %v1714_v40  ;;  %v1829_v37 = vadd.f32 %v7462_v13, %v1715_v24  ;;  %v10510_v40 = vld [vmem:[#allocation83_spill] sm:$0xff]  ;;  %v10511_v33 = vld [vmem:[#allocation28_spill] sm:$0xff]  ;;  %v10512_v13 = vrot.slane %v7418_v5, 1 }
 0x581   : > { %10506 = vst [vmem:[#allocation161_spill] sm:$0xff] %v7563_v0  ;;  %10507 = vst [vmem:[#allocation162_spill] sm:$0xff] %v7567_v48  ;;  %v7577_v22 = vpop.permute.xlu0 %1925  ;;  %v7581_v60 = vmul.f32 %v10502_v46, %v2704_v23  ;;  %v1804_v36 = vmul.f32 %v7008_v52, %v1794_v55  ;;  %v1822_v28 = vmul.f32 %v7011_v53, %v1794_v55  ;;  %v10516_v11 = vrot.slane %v7428_v63, 1  ;;  %v10518_v5 = vld [vmem:[#allocation76_spill] sm:$0xff]  ;;  %v10522_v63 = vld [vmem:[#allocation75_spill] sm:$0xff] }
 0x582   : > { %10508 = vst [vmem:[#allocation163_spill] sm:$0xff] %v7571_v9  ;;  %v1840_v51 = vmul.f32 %v7024_v3, %v1794_v55  ;;  %v1882_v21 = vmul.f32 %v7027_v4, %v1794_v55  ;;  %v1941_v24 = vsel %vm1935_vm10, %v1922_v15, %v10510_v40  ;;  %v1942_v26 = vsel %vm1935_vm10, %v10511_v33, %v1922_v15 }
 0x583   : > { %10509 = vst [vmem:[#allocation164_spill] sm:$0xff] %v7581_v60  ;;  %v1870_v19 = vadd.f32 %v10512_v13, %v1810_v39  ;;  %v1990_v27 = vmul.f32 %v10513_v20, %v1942_v26  ;;  %v1991_v31 = vmul.f32 %v10514_v56, %v1941_v24  ;;  %v1940_v55 = vsel %vm1935_vm10, %v10510_v40, %v7577_v22  ;;  %v10519_v26 = vld [vmem:[#allocation71_spill] sm:$0xff]  ;;  %v10520_v56 = vld [vmem:[#allocation72_spill] sm:$0xff] }
 0x584   : > { %v1871_v41 = vadd.f32 %v10515_v32, %v1811_v47  ;;  %v1912_v18 = vadd.f32 %v10516_v11, %v1828_v35  ;;  %v10517_v15 = vrot.slane %v7431_v44, 1  ;;  %v1992_v39 = vmul.f32 %v10518_v5, %v1940_v55 }
 0x585   : > { %v2120_v13 = vpop.permute.xlu0 %2119  ;;  %v2000_v20 = vmul.f32 %v10519_v26, %v1990_v27  ;;  %v2001_v24 = vmul.f32 %v10519_v26, %v1991_v31  ;;  %v2018_v7 = vmul.f32 %v10520_v56, %v1990_v27  ;;  %v2019_v40 = vmul.f32 %v10520_v56, %v1991_v31 }
 0x586   : > { %v1913_v57 = vadd.f32 %v10517_v15, %v1829_v37  ;;  %v2036_v58 = vmul.f32 %v10521_v1, %v1990_v27  ;;  %v2037_v32 = vmul.f32 %v10521_v1, %v1991_v31  ;;  %v2078_v11 = vmul.f32 %v10522_v63, %v1990_v27 }
 0x587   : > { %v2079_v44 = vmul.f32 %v10522_v63, %v1991_v31  ;;  %v1812_v47 = vadd.f32 %v1804_v36, %v7437_v62  ;;  %v1830_v35 = vadd.f32 %v1822_v28, %v7452_v50  ;;  %v1856_v37 = vrot.slane %v1840_v51, 1 }
 0x588   : > { %v1898_v55 = vrot.slane %v1882_v21, 1  ;;  %v7620_v15 = vmul.f32 %v10504_v34, %v2704_v23  ;;  %v7623_v5 = vmul.f32 %v7078_v10, %v2704_v23  ;;  %v7626_v48 = vmul.f32 %v7081_v43, %v2704_v23 }
 0x589   : > { %v2008_v0 = vadd.f32 %v2000_v20, %v1870_v19  ;;  %v7628_v9 = vpop.permute.xlu0 %2123  ;;  %v2009_v27 = vadd.f32 %v2001_v24, %v1871_v41  ;;  %v2026_v31 = vadd.f32 %v2018_v7, %v1912_v18  ;;  %v2052_v33 = vrot.slane %v2036_v58, 1  ;;  %v10527_v18 = vld [vmem:[#allocation100_spill] sm:$0xff]  ;;  %v10528_v7 = vld [vmem:[#allocation47_spill] sm:$0xff] }
 0x58a   : > { %10523 = vst [vmem:[#allocation83_spill] sm:$0xff] %v7620_v15  ;;  %10524 = vst [vmem:[#allocation71_spill] sm:$0xff] %v7623_v5  ;;  %v2053_v62 = vrot.slane %v2037_v32, 1  ;;  %v2027_v36 = vadd.f32 %v2019_v40, %v1913_v57  ;;  %v2094_v50 = vrot.slane %v2078_v11, 1  ;;  %v2095_v28 = vrot.slane %v2079_v44, 1  ;;  %v10530_v11 = vld [vmem:[#allocation77_spill] sm:$0xff] }
 0x58b   : > { %10525 = vst [vmem:[#allocation72_spill] sm:$0xff] %v7626_v48  ;;  %v2002_v51 = vmul.f32 %v10519_v26, %v1992_v39  ;;  %v1872_v21 = vadd.f32 %v1856_v37, %v1812_v47  ;;  %v1914_v15 = vadd.f32 %v1898_v55, %v1830_v35  ;;  %v2020_v60 = vmul.f32 %v10520_v56, %v1992_v39  ;;  %v10531_v47 = vld [vmem:[#allocation78_spill] sm:$0xff] }
 0x58c   : > { %v7634_v23 = vrot.slane %v7327_v12, %v7248_v6  ;;  %v2038_v20 = vmul.f32 %v10521_v1, %v1992_v39  ;;  %v2080_v41 = vmul.f32 %v10522_v63, %v1992_v39  ;;  %v2139_v57 = vsel %vm2133_vm11, %v2120_v13, %v10527_v18  ;;  %v10532_v6 = vld [vmem:[#allocation79_spill] sm:$0xff] }
 0x58d   : > { %v2140_v19 = vsel %vm2133_vm11, %v10528_v7, %v2120_v13  ;;  %v7644_v24 = vpop.permute.xlu1 %1530  ;;  %v7646_v40 = vpop.permute.xlu0 %2441  ;;  %v2068_v58 = vadd.f32 %v2052_v33, %v2008_v0  ;;  %v2069_v32 = vadd.f32 %v2053_v62, %v2009_v27  ;;  %v2189_v35 = vmul.f32 %v10531_v47, %v2139_v57  ;;  %v10533_v7 = vld [vmem:[#allocation80_spill] sm:$0xff]  ;;  %v10534_v33 = vld [vmem:[#allocation81_spill] sm:$0xff] }
 0x58e   : > { %10526 = vst [vmem:[#allocation73_spill] sm:$0xff] %v7634_v23  ;;  %10529 = vst [vmem:[#allocation75_spill] sm:$0xff] %v7644_v24  ;;  %v2188_v44 = vmul.f32 %v10530_v11, %v2140_v19  ;;  %v2110_v37 = vadd.f32 %v2094_v50, %v2026_v31  ;;  %v2111_v39 = vadd.f32 %v2095_v28, %v2027_v36  ;;  %v10535_v31 = vld [vmem:[#allocation82_spill] sm:$0xff]  ;;  %v10537_v19 = vld [vmem:[#allocation84_spill] sm:$0xff]  ;;  %v2054_v11 = vrot.slane %v2038_v20, 1 }
 0x58f   : > { %v2010_v55 = vadd.f32 %v2002_v51, %v1872_v21  ;;  %v2138_v12 = vsel %vm2133_vm11, %v10527_v18, %v7628_v9  ;;  %v2199_v23 = vmul.f32 %v10532_v6, %v2189_v35  ;;  %v2217_v0 = vmul.f32 %v10533_v7, %v2189_v35 }
 0x590   : > { %v2198_v13 = vmul.f32 %v10532_v6, %v2188_v44  ;;  %v2216_v8 = vmul.f32 %v10533_v7, %v2188_v44  ;;  %v2234_v27 = vmul.f32 %v10534_v33, %v2188_v44  ;;  %v2235_v62 = vmul.f32 %v10534_v33, %v2189_v35 }
 0x591   : > { %v2276_v36 = vmul.f32 %v10535_v31, %v2188_v44  ;;  %v2277_v50 = vmul.f32 %v10535_v31, %v2189_v35  ;;  %v7662_v28 = vpop.permute.xlu1 %1729  ;;  %v7664_v51 = vpop.permute.xlu0 %2639  ;;  %v2028_v21 = vadd.f32 %v2020_v60, %v1914_v15  ;;  %v2207_v18 = vadd.f32 %v2199_v23, %v2069_v32 }
 0x592   : > { %10536 = vst [vmem:[#allocation100_spill] sm:$0xff] %v7662_v28  ;;  %v2225_v57 = vadd.f32 %v2217_v0, %v2111_v39  ;;  %v2190_v47 = vmul.f32 %v10537_v19, %v2138_v12  ;;  %v2096_v49 = vrot.slane %v2080_v41, 1  ;;  %v2251_v16 = vrot.slane %v2235_v62, 1  ;;  %v10540_v39 = vld [vmem:[#allocation25_spill] sm:$0xff]  ;;  %v10542_v62 = vld [vmem:[#allocation88_spill] sm:$0xff] }
 0x593   : > { %v2293_v43 = vrot.slane %v2277_v50, 1  ;;  %v2206_v10 = vadd.f32 %v2198_v13, %v2068_v58  ;;  %v2224_v34 = vadd.f32 %v2216_v8, %v2110_v37  ;;  %v1544_v44 = vsel %vm1540_vm6, %v7189_v14, %v7644_v24  ;;  %v10541_v13 = vld [vmem:[#allocation31_spill] sm:$0xff]  ;;  %v10543_v50 = vld [vmem:[#allocation89_spill] sm:$0xff] }
 0x594   : > { %v2456_v60 = vsel %vm2451_vm8, %v7342_v54, %v7646_v40  ;;  %v2250_v15 = vrot.slane %v2234_v27, 1  ;;  %v2267_v23 = vadd.f32 %v2251_v16, %v2207_v18  ;;  %v2292_v32 = vrot.slane %v2276_v36, 1 }
 0x595   : > { %v2309_v12 = vadd.f32 %v2293_v43, %v2225_v57  ;;  %v7675_v20 = vpop.permute.xlu1 %1927  ;;  %v7677_v41 = vpop.permute.xlu0 %1534  ;;  %v2200_v8 = vmul.f32 %v10532_v6, %v2190_v47  ;;  %v2218_v58 = vmul.f32 %v10533_v7, %v2190_v47  ;;  %v2236_v35 = vmul.f32 %v10534_v33, %v2190_v47 }
 0x596   : > { %10538 = vst [vmem:[#allocation165_spill] sm:$0xff] %v7675_v20  ;;  %10539 = vst [vmem:[#allocation166_spill] sm:$0xff] %v7677_v41  ;;  %v2278_v14 = vmul.f32 %v10535_v31, %v2190_v47  ;;  %v2327_v16 = vadd.f32 %v10540_v39, %v2267_v23  ;;  %v2070_v0 = vadd.f32 %v2054_v11, %v2010_v55 }
 0x597   : > { %v2345_v43 = vadd.f32 %v10541_v13, %v2309_v12  ;;  %v2112_v27 = vadd.f32 %v2096_v49, %v2028_v21  ;;  %v1597_v36 = vmul.f32 %v10542_v62, %v1544_v44  ;;  %v2507_v18 = vmul.f32 %v10543_v50, %v2456_v60  ;;  %v10558_v62 = vld [vmem:[#allocation56_spill] sm:$0xff] }
 0x598   : > { %v2266_v57 = vadd.f32 %v2250_v15, %v2206_v10  ;;  %v2308_v19 = vadd.f32 %v2292_v32, %v2224_v34  ;;  %v7695_v47 = vrot.slane %v7044_v29, %v7361_v59  ;;  %v7699_v23 = vrot.slane %v7044_v29, %v7364_v61  ;;  %v10548_v34 = vld [vmem:[#allocation23_spill] sm:$0xff] }
 0x599   : > { %v7689_v24 = vpop.permute.xlu1 %1931  ;;  %v7691_v41 = vpop.permute.xlu0 %1733  ;;  %v2208_v11 = vadd.f32 %v2200_v8, %v2070_v0  ;;  %v2226_v49 = vadd.f32 %v2218_v58, %v2112_v27  ;;  %v2252_v55 = vrot.slane %v2236_v35, 1  ;;  %v2294_v21 = vrot.slane %v2278_v14, 1  ;;  %v10550_v32 = vld [vmem:[#allocation27_spill] sm:$0xff]  ;;  %v10552_v58 = vld [vmem:[#allocation44_spill] sm:$0xff] }
 0x59a   : > { %10544 = vst [vmem:[#allocation25_spill] sm:$0xff] %v7689_v24  ;;  %10545 = vst [vmem:[#allocation31_spill] sm:$0xff] %v7691_v41  ;;  %v1643_v44 = vmul.f32 %v6992_v38, %v1597_v36  ;;  %v1685_v10 = vmul.f32 %v6995_v45, %v1597_v36  ;;  %v10549_v60 = vrot.slane %v10548_v34, 1  ;;  %v10551_v12 = vrot.slane %v10550_v32, 1  ;;  %v10553_v27 = vld [vmem:[#allocation156_spill] sm:$0xff]  ;;  %v10560_v24 = vld [vmem:[#allocation141_spill] sm:$0xff] }
 0x59b   : > { %10546 = vst [vmem:[#allocation167_spill] sm:$0xff] %v7695_v47  ;;  %10547 = vst [vmem:[#allocation168_spill] sm:$0xff] %v7699_v23  ;;  %v1607_v13 = vmul.f32 %v6943_v25, %v1597_v36  ;;  %v2517_v54 = vmul.f32 %v7042_v42, %v2507_v18  ;;  %v2535_v29 = vmul.f32 %v7048_v30, %v2507_v18  ;;  %v10571_v45 = vld [vmem:[#allocation110_spill] sm:$0xff] }
 0x59c   : > { %v2387_v15 = vadd.f32 %v10549_v60, %v2327_v16  ;;  %v2429_v39 = vadd.f32 %v10551_v12, %v2345_v43  ;;  %v2553_v8 = vmul.f32 %v7051_v17, %v2507_v18  ;;  %v1625_v35 = vmul.f32 %v10552_v58, %v1597_v36  ;;  %v10556_v60 = vld [vmem:[#allocation32_spill] sm:$0xff]  ;;  %v10557_v12 = vld [vmem:[#allocation34_spill] sm:$0xff]  ;;  %v10570_v58 = vld [vmem:[#allocation107_spill] sm:$0xff] }
 0x59d   : > { %v1659_v14 = vrot.slane %v1643_v44, 1  ;;  %v1701_v0 = vrot.slane %v1685_v10, 1  ;;  %v1741_v16 = vsel %vm1737_vm7, %v10553_v27, %v7662_v28  ;;  %v7716_v34 = vpop.permute.xlu1 %2129  ;;  %v7718_v43 = vpop.permute.xlu0 %2125  ;;  %v2326_v32 = vadd.f32 %v10556_v60, %v2266_v57  ;;  %v10559_v44 = vld [vmem:[#allocation96_spill] sm:$0xff] }
 0x59e   : > { %10554 = vst [vmem:[#allocation23_spill] sm:$0xff] %v7716_v34  ;;  %10555 = vst [vmem:[#allocation27_spill] sm:$0xff] %v7718_v43  ;;  %v2344_v37 = vadd.f32 %v10557_v12, %v2308_v19  ;;  %v2268_v50 = vadd.f32 %v2252_v55, %v2208_v11  ;;  %v2595_v23 = vmul.f32 %v10558_v62, %v2507_v18  ;;  %v2569_v5 = vrot.slane %v2553_v8, 1 }
 0x59f   : > { %v1675_v47 = vadd.f32 %v1659_v14, %v1607_v13  ;;  %v1717_v36 = vadd.f32 %v1701_v0, %v1625_v35  ;;  %v1795_v10 = vmul.f32 %v10559_v44, %v1741_v16  ;;  %v2654_v27 = vsel %vm2649_vm9, %v10560_v24, %v7664_v51  ;;  %v10563_v14 = vld [vmem:[#allocation106_spill] sm:$0xff] }
 0x5a0   : > { %v2310_v28 = vadd.f32 %v2294_v21, %v2226_v49  ;;  %v2525_v34 = vadd.f32 %v2517_v54, %v2387_v15  ;;  %v2543_v48 = vadd.f32 %v2535_v29, %v2429_v39  ;;  %v2611_v35 = vrot.slane %v2595_v23, 1  ;;  %v10564_v29 = vld [vmem:[#allocation24_spill] sm:$0xff]  ;;  %v10566_v23 = vld [vmem:[#allocation26_spill] sm:$0xff] }
 0x5a1   : > { %v1805_v57 = vmul.f32 %v7008_v52, %v1795_v10  ;;  %v1823_v19 = vmul.f32 %v7011_v53, %v1795_v10  ;;  %v1841_v11 = vmul.f32 %v7024_v3, %v1795_v10  ;;  %v1883_v18 = vmul.f32 %v7027_v4, %v1795_v10  ;;  %v7732_v55 = vpop.permute.xlu1 %2443  ;;  %v7734_v13 = vpop.permute.xlu0 %2641  ;;  %v10568_v10 = vld [vmem:[#allocation35_spill] sm:$0xff] }
 0x5a2   : > { %10561 = vst [vmem:[#allocation156_spill] sm:$0xff] %v7732_v55  ;;  %10562 = vst [vmem:[#allocation32_spill] sm:$0xff] %v7734_v13  ;;  %v2705_v0 = vmul.f32 %v10563_v14, %v2654_v27  ;;  %v1939_v24 = vsel %vm1935_vm10, %v7577_v22, %v7675_v20  ;;  %v2137_v54 = vsel %vm2133_vm11, %v7628_v9, %v7718_v43  ;;  %v10565_v8 = vrot.slane %v10564_v29, 1  ;;  %v10569_v14 = vld [vmem:[#allocation36_spill] sm:$0xff]  ;;  %v10602_v43 = vld [vmem:[#allocation154_spill] sm:$0xff] }
 0x5a3   : > { %v1813_v49 = vadd.f32 %v1805_v57, %v1675_v47  ;;  %v1831_v21 = vadd.f32 %v1823_v19, %v1717_v36  ;;  %v1857_v15 = vrot.slane %v1841_v11, 1  ;;  %v1899_v39 = vrot.slane %v1883_v18, 1  ;;  %v10574_v29 = vld [vmem:[#allocation40_spill] sm:$0xff] }
 0x5a4   : > { %v2386_v16 = vadd.f32 %v10565_v8, %v2326_v32  ;;  %v10567_v60 = vrot.slane %v10566_v23, 1  ;;  %v2328_v27 = vadd.f32 %v10568_v10, %v2268_v50  ;;  %v2346_v44 = vadd.f32 %v10569_v14, %v2310_v28 }
 0x5a5   : > { %v1873_v22 = vadd.f32 %v1857_v15, %v1813_v49  ;;  %v1915_v20 = vadd.f32 %v1899_v39, %v1831_v21  ;;  %v1993_v25 = vmul.f32 %v10570_v58, %v1939_v24  ;;  %v2191_v9 = vmul.f32 %v10571_v45, %v2137_v54  ;;  %v7753_v47 = vpop.permute.xlu1 %2447  ;;  %v1736_v36 = vpop.permute.xlu0 %1735  ;;  %v10572_v21 = vld [vmem:[#allocation33_spill] sm:$0xff] }
 0x5a6   : > { %v2428_v12 = vadd.f32 %v10567_v60, %v2344_v37  ;;  %v2585_v57 = vadd.f32 %v2569_v5, %v2525_v34  ;;  %v2627_v19 = vadd.f32 %v2611_v35, %v2543_v48  ;;  %v2715_v32 = vmul.f32 %v10502_v46, %v2705_v0 }
 0x5a7   : > { %v2455_v37 = vsel %vm2451_vm8, %v7646_v40, %v7732_v55  ;;  %v2003_v28 = vmul.f32 %v10519_v26, %v1993_v25  ;;  %v2021_v50 = vmul.f32 %v10520_v56, %v1993_v25  ;;  %v2039_v11 = vmul.f32 %v10521_v1, %v1993_v25  ;;  %v10591_v55 = vld [vmem:[#allocation93_spill] sm:$0xff] }
 0x5a8   : > { %v2081_v18 = vmul.f32 %v10522_v63, %v1993_v25  ;;  %v2201_v14 = vmul.f32 %v10532_v6, %v2191_v9  ;;  %v2219_v5 = vmul.f32 %v10533_v7, %v2191_v9  ;;  %v2237_v48 = vmul.f32 %v10534_v33, %v2191_v9  ;;  %v10576_v25 = vld [vmem:[#allocation111_spill] sm:$0xff] }
 0x5a9   : > { %v2279_v34 = vmul.f32 %v10535_v31, %v2191_v9  ;;  %v2011_v35 = vadd.f32 %v2003_v28, %v1873_v22  ;;  %v2029_v24 = vadd.f32 %v2021_v50, %v1915_v20  ;;  %v2055_v54 = vrot.slane %v2039_v11, 1  ;;  %v1537_v49 = vpop.permute.xlu1 %1536  ;;  %v7777_v28 = vpop.permute.xlu0 %2833  ;;  %v10604_v33 = vld [vmem:[#allocation155_spill] sm:$0xff] }
 0x5aa   : > { %v2097_v40 = vrot.slane %v2081_v18, 1  ;;  %v10573_v15 = vrot.slane %v10572_v21, 1  ;;  %v10575_v8 = vrot.slane %v10574_v29, 1  ;;  %v2508_v60 = vmul.f32 %v10576_v25, %v2455_v37  ;;  %v10577_v37 = vld [vmem:[#allocation60_spill] sm:$0xff]  ;;  %v10579_v29 = vld [vmem:[#allocation62_spill] sm:$0xff]  ;;  %v10580_v25 = vld [vmem:[#allocation63_spill] sm:$0xff] }
 0x5ab   : > { %v2653_v10 = vsel %vm2649_vm9, %v7664_v51, %v7734_v13  ;;  %v2071_v45 = vadd.f32 %v2055_v54, %v2011_v35  ;;  %v2253_v22 = vrot.slane %v2237_v48, 1  ;;  %v2295_v20 = vrot.slane %v2279_v34, 1  ;;  %v10578_v35 = vld [vmem:[#allocation112_spill] sm:$0xff] }
 0x5ac   : > { %v2388_v39 = vadd.f32 %v10573_v15, %v2328_v27  ;;  %v2430_v23 = vadd.f32 %v10575_v8, %v2346_v44  ;;  %v2113_v9 = vadd.f32 %v2097_v40, %v2029_v24  ;;  %v2518_v50 = vmul.f32 %v7042_v42, %v2508_v60 }
 0x5ad   : > { %v2536_v27 = vmul.f32 %v7048_v30, %v2508_v60  ;;  %v2554_v11 = vmul.f32 %v7051_v17, %v2508_v60  ;;  %v2596_v44 = vmul.f32 %v10558_v62, %v2508_v60  ;;  %v2733_v18 = vmul.f32 %v10577_v37, %v2705_v0  ;;  %v7786_v15 = vpop.permute.xlu1 %2835  ;;  %v10581_v60 = vld [vmem:[#allocation61_spill] sm:$0xff] }
 0x5ae   : > { %v2209_v21 = vadd.f32 %v2201_v14, %v2071_v45  ;;  %v2227_v51 = vadd.f32 %v2219_v5, %v2113_v9  ;;  %v2706_v24 = vmul.f32 %v10578_v35, %v2653_v10  ;;  %v2526_v48 = vadd.f32 %v2518_v50, %v2388_v39  ;;  %v10586_v50 = vld [vmem:[#allocation153_spill] sm:$0xff]  ;;  %v10597_v35 = vld [vmem:[#allocation66_spill] sm:$0xff] }
 0x5af   : > { %v2544_v34 = vadd.f32 %v2536_v27, %v2430_v23  ;;  %v2570_v54 = vrot.slane %v2554_v11, 1  ;;  %v2612_v40 = vrot.slane %v2596_v44, 1  ;;  %v7789_v8 = vmul.f32 %v10579_v29, %v2705_v0  ;;  %v10584_v23 = vld [vmem:[#allocation54_spill] sm:$0xff] }
 0x5b0   : > { %v7792_v58 = vmul.f32 %v10580_v25, %v2705_v0  ;;  %v7796_v13 = vrot.slane %v10581_v60, %v7361_v59  ;;  %v7800_v45 = vrot.slane %v10581_v60, %v7364_v61  ;;  %v2269_v14 = vadd.f32 %v2253_v22, %v2209_v21  ;;  %v10585_v0 = vld [vmem:[#allocation152_spill] sm:$0xff]  ;;  %v7812_v60 = vpop.permute.xlu0 %2837 }
 0x5b1   : > { %v2311_v5 = vadd.f32 %v2295_v20, %v2227_v51  ;;  %v1738_v39 = vsel %vm1737_vm7, %v7691_v41, %v1736_v36  ;;  %v1745_v10 = vsel %vm1737_vm7, %v1736_v36, %v10584_v23  ;;  %v2524_v9 = vadd.f32 %v10585_v0, %v2386_v16  ;;  %v10587_v23 = vld [vmem:[#allocation113_spill] sm:$0xff]  ;;  %v10588_v0 = vld [vmem:[#allocation114_spill] sm:$0xff] }
 0x5b2   : > { %10582 = vst [vmem:[#allocation34_spill] sm:$0xff] %v7796_v13  ;;  %10583 = vst [vmem:[#allocation56_spill] sm:$0xff] %v7800_v45  ;;  %v2542_v27 = vadd.f32 %v10586_v50, %v2428_v12  ;;  %v2752_v11 = vmul.f32 %v10579_v29, %v2706_v24  ;;  %v2794_v44 = vmul.f32 %v10580_v25, %v2706_v24  ;;  %v10589_v50 = vld [vmem:[#allocation92_spill] sm:$0xff]  ;;  %v10603_v31 = vrot.slane %v10602_v43, 1  ;;  %v10606_v43 = vld [vmem:[#allocation37_spill] sm:$0xff] }
 0x5b3   : > { %v7814_v22 = vadd.f32 %v2715_v32, %v2585_v57  ;;  %v7816_v20 = vadd.f32 %v2733_v18, %v2627_v19  ;;  %v2586_v21 = vadd.f32 %v2570_v54, %v2526_v48  ;;  %v2628_v51 = vadd.f32 %v2612_v40, %v2544_v34  ;;  %v7830_v32 = vpop.permute.xlu1 %2645  ;;  %v10593_v34 = vld [vmem:[#allocation166_spill] sm:$0xff]  ;;  %v10594_v40 = vld [vmem:[#allocation29_spill] sm:$0xff]  ;;  %v10607_v13 = vld [vmem:[#allocation44_spill] sm:$0xff] }
 0x5b4   : > { %v1791_v16 = vmul.f32 %v10587_v23, %v1745_v10  ;;  %v1798_v12 = vmul.f32 %v10588_v0, %v1738_v39  ;;  %v7823_v61 = vadd.f32 %v10589_v50, %v2269_v14  ;;  %v7826_v59 = vadd.f32 %v10591_v55, %v2311_v5  ;;  %v10595_v55 = vld [vmem:[#allocation115_spill] sm:$0xff]  ;;  %v10596_v50 = vld [vmem:[#allocation116_spill] sm:$0xff]  ;;  %v10600_v0 = vld [vmem:[#allocation45_spill] sm:$0xff] }
 0x5b5   : > { %v2716_v57 = vmul.f32 %v10502_v46, %v2706_v24  ;;  %v2734_v19 = vmul.f32 %v10577_v37, %v2706_v24  ;;  %v2768_v18 = vrot.slane %v2752_v11, 1  ;;  %v2810_v48 = vrot.slane %v2794_v44, 1  ;;  %v10614_v37 = vld [vmem:[#allocation83_spill] sm:$0xff]  ;;  %v10615_v29 = vld [vmem:[#allocation118_spill] sm:$0xff] }
 0x5b6   : > { %10590 = vst [vmem:[#allocation141_spill] sm:$0xff] %v7823_v61  ;;  %10592 = vst [vmem:[#allocation24_spill] sm:$0xff] %v7826_v59  ;;  %v1541_v54 = vsel %vm1540_vm6, %v10593_v34, %v1537_v49  ;;  %v1548_v14 = vsel %vm1540_vm6, %v1537_v49, %v10594_v40  ;;  %v7841_v24 = vmul.f32 %v7008_v52, %v1791_v16  ;;  %v10605_v6 = vrot.slane %v10604_v33, 1 }
 0x5b7   : > { %v2724_v39 = vadd.f32 %v2716_v57, %v2586_v21  ;;  %v2742_v10 = vadd.f32 %v2734_v19, %v2628_v51  ;;  %v1593_v5 = vmul.f32 %v10595_v55, %v1548_v14  ;;  %v1600_v36 = vmul.f32 %v10596_v50, %v1541_v54  ;;  %v7853_v21 = vpop.permute.xlu0 %2839  ;;  %v7879_v45 = vpop.permute.xlu1 %3029 }
 0x5b8   : > { %v7844_v11 = vmul.f32 %v7008_v52, %v1798_v12  ;;  %v7847_v44 = vmul.f32 %v7024_v3, %v1791_v16  ;;  %v2854_v49 = vsel %vm2847_vm12, %v10597_v35, %v7777_v28  ;;  %v7856_v51 = vmul.f32 %v7011_v53, %v1791_v16 }
 0x5b9   : > { %v7859_v57 = vmul.f32 %v7024_v3, %v1798_v12  ;;  %v7862_v19 = vmul.f32 %v7027_v4, %v1791_v16  ;;  %v7865_v54 = vmul.f32 %v7027_v4, %v1798_v12  ;;  %v1639_v40 = vmul.f32 %v6992_v38, %v1593_v5  ;;  %v10601_v16 = vld [vmem:[#allocation117_spill] sm:$0xff] }
 0x5ba   : > { %v1646_v14 = vmul.f32 %v6992_v38, %v1600_v36  ;;  %v1681_v50 = vmul.f32 %v10600_v0, %v1593_v5  ;;  %v1688_v23 = vmul.f32 %v10600_v0, %v1600_v36  ;;  %v7871_v55 = vadd.f32 %v2768_v18, %v2724_v39 }
 0x5bb   : > { %10598 = vst [vmem:[#allocation26_spill] sm:$0xff] %v7862_v19  ;;  %10599 = vst [vmem:[#allocation35_spill] sm:$0xff] %v7865_v54  ;;  %v7873_v35 = vadd.f32 %v2810_v48, %v2742_v10  ;;  %v7876_v59 = vmul.f32 %v7011_v53, %v1798_v12  ;;  %v2901_v61 = vmul.f32 %v10601_v16, %v2854_v49  ;;  %v1655_v39 = vrot.slane %v1639_v40, 1  ;;  %v10610_v53 = vld [vmem:[#allocation123_spill] sm:$0xff]  ;;  %v10611_v40 = vld [vmem:[#allocation122_spill] sm:$0xff]  ;;  %v3034_v19 = vpop.permute.xlu1 %3033 }
 0x5bc   : > { %v2584_v7 = vadd.f32 %v10603_v31, %v2524_v9  ;;  %v2626_v4 = vadd.f32 %v10605_v6, %v2542_v27  ;;  %v2853_v18 = vsel %vm2847_vm12, %v7777_v28, %v7786_v15  ;;  %v1662_v10 = vrot.slane %v1646_v14, 1  ;;  %v3032_v6 = vpop.permute.xlu0 %3031  ;;  %v10608_v28 = vld [vmem:[#allocation121_spill] sm:$0xff]  ;;  %v10613_v49 = vld [vmem:[#allocation164_spill] sm:$0xff] }
 0x5bd   : > { %v1603_v31 = vmul.f32 %v10606_v43, %v1593_v5  ;;  %v1697_v9 = vrot.slane %v1681_v50, 1  ;;  %v1704_v33 = vrot.slane %v1688_v23, 1  ;;  %v1610_v27 = vmul.f32 %v10606_v43, %v1600_v36 }
 0x5be   : > { %v1621_v16 = vmul.f32 %v10607_v13, %v1593_v5  ;;  %v7898_v3 = vmul.f32 %v10608_v28, %v2901_v61  ;;  %v2902_v12 = vmul.f32 %v10610_v53, %v2853_v18  ;;  %v1628_v48 = vmul.f32 %v10607_v13, %v1600_v36  ;;  %v10617_v5 = vld [vmem:[#allocation120_spill] sm:$0xff] }
 0x5bf   : > { %v7903_v14 = vmul.f32 %v10611_v40, %v2901_v61  ;;  %v2722_v52 = vadd.f32 %v10613_v49, %v2584_v7  ;;  %v2740_v50 = vadd.f32 %v10614_v37, %v2626_v4  ;;  %v1671_v23 = vadd.f32 %v1655_v39, %v1603_v31  ;;  %v10623_v53 = vld [vmem:[#allocation72_spill] sm:$0xff] }
 0x5c0   : > { %10609 = vst [vmem:[#allocation36_spill] sm:$0xff] %v7898_v3  ;;  %v1678_v25 = vadd.f32 %v1662_v10, %v1610_v27  ;;  %v7908_v46 = vmul.f32 %v10615_v29, %v2901_v61  ;;  %v7911_v41 = vmul.f32 %v10617_v5, %v2901_v61  ;;  %v1713_v54 = vadd.f32 %v1697_v9, %v1621_v16  ;;  %v10619_v10 = vld [vmem:[#allocation124_spill] sm:$0xff]  ;;  %v3036_v9 = vpop.permute.xlu0 %3035 }
 0x5c1   : > { %10612 = vst [vmem:[#allocation33_spill] sm:$0xff] %v7903_v14  ;;  %v1720_v18 = vadd.f32 %v1704_v33, %v1628_v48  ;;  %v2852_v36 = vsel %vm2847_vm12, %v7786_v15, %v7812_v60  ;;  %v2851_v4 = vsel %vm2847_vm12, %v7812_v60, %v7853_v21  ;;  %v2912_v37 = vmul.f32 %v10615_v29, %v2902_v12  ;;  %v10620_v15 = vld [vmem:[#allocation125_spill] sm:$0xff]  ;;  %v10621_v33 = vld [vmem:[#allocation71_spill] sm:$0xff] }
 0x5c2   : > { %10616 = vst [vmem:[#allocation40_spill] sm:$0xff] %v7908_v46  ;;  %10618 = vst [vmem:[#allocation61_spill] sm:$0xff] %v7911_v41  ;;  %v2930_v61 = vmul.f32 %v10617_v5, %v2902_v12  ;;  %v2948_v39 = vmul.f32 %v10608_v28, %v2902_v12  ;;  %v2990_v48 = vmul.f32 %v10611_v40, %v2902_v12  ;;  %v10622_v27 = vrot.slane %v10621_v33, 1 }
 0x5c3   : > { %v2903_v49 = vmul.f32 %v10619_v10, %v2852_v36  ;;  %v2904_v31 = vmul.f32 %v10620_v15, %v2851_v4  ;;  %v10624_v7 = vrot.slane %v10623_v53, 1  ;;  %v10625_v41 = vrot.slane %v7789_v8, 1  ;;  %v7945_v8 = vpop.permute.xlu1 %2843 }
 0x5c4   : > { %v2782_v60 = vadd.f32 %v10622_v27, %v2722_v52  ;;  %v3051_v16 = vsel %vm3045_vm13, %v3032_v6, %v3034_v19  ;;  %v2964_v27 = vrot.slane %v2948_v39, 1  ;;  %v10626_v53 = vrot.slane %v7792_v58, 1  ;;  %v10627_v58 = vld [vmem:[#allocation129_spill] sm:$0xff] }
 0x5c5   : > { %v2824_v3 = vadd.f32 %v10624_v7, %v2740_v50  ;;  %v2783_v46 = vadd.f32 %v10625_v41, %v7814_v22  ;;  %v2913_v12 = vmul.f32 %v10615_v29, %v2903_v49  ;;  %v2931_v36 = vmul.f32 %v10617_v5, %v2903_v49 }
 0x5c6   : > { %v2949_v4 = vmul.f32 %v10608_v28, %v2903_v49  ;;  %v2991_v15 = vmul.f32 %v10611_v40, %v2903_v49  ;;  %v2920_v33 = vadd.f32 %v2912_v37, %v2782_v60  ;;  %v2825_v50 = vadd.f32 %v10626_v53, %v7816_v20  ;;  %v7958_v53 = vpop.permute.xlu0 %3037 }
 0x5c7   : > { %v2938_v52 = vadd.f32 %v2930_v61, %v2824_v3  ;;  %v3006_v41 = vrot.slane %v2990_v48, 1  ;;  %v2914_v22 = vmul.f32 %v10615_v29, %v2904_v31  ;;  %v2932_v7 = vmul.f32 %v10617_v5, %v2904_v31 }
 0x5c8   : > { %v3052_v10 = vsel %vm3045_vm13, %v7879_v45, %v3032_v6  ;;  %v7953_v49 = vadd.f32 %v7841_v24, %v1671_v23  ;;  %v2950_v3 = vmul.f32 %v10608_v28, %v2904_v31  ;;  %v2992_v37 = vmul.f32 %v10611_v40, %v2904_v31  ;;  %v10628_v23 = vld [vmem:[#allocation128_spill] sm:$0xff]  ;;  %v10671_v40 = vld [vmem:[#allocation149_spill] sm:$0xff] }
 0x5c9   : > { %v3100_v20 = vmul.f32 %v10627_v58, %v3051_v16  ;;  %v2921_v61 = vadd.f32 %v2913_v12, %v2783_v46  ;;  %v2939_v39 = vadd.f32 %v2931_v36, %v2825_v50  ;;  %v2965_v48 = vrot.slane %v2949_v4, 1  ;;  %v10630_v4 = vld [vmem:[#allocation135_spill] sm:$0xff]  ;;  %v10631_v50 = vld [vmem:[#allocation130_spill] sm:$0xff] }
 0x5ca   : > { %v3007_v60 = vrot.slane %v2991_v15, 1  ;;  %v7961_v14 = vadd.f32 %v7844_v11, %v1678_v25  ;;  %v7964_v6 = vadd.f32 %v7856_v51, %v1713_v54  ;;  %v7967_v24 = vadd.f32 %v7876_v59, %v1720_v18  ;;  %v1533_v51 = vpop.permute.xlu1 %1532  ;;  %v10629_v18 = vld [vmem:[#allocation131_spill] sm:$0xff] }
 0x5cb   : > { %v3099_v28 = vmul.f32 %v10628_v23, %v3052_v10  ;;  %v2922_v31 = vadd.f32 %v2914_v22, %v7871_v55  ;;  %v2940_v46 = vadd.f32 %v2932_v7, %v7873_v35  ;;  %v2980_v16 = vadd.f32 %v2964_v27, %v2920_v33  ;;  %v10633_v33 = vld [vmem:[#allocation134_spill] sm:$0xff]  ;;  %v10635_v27 = vld [vmem:[#allocation132_spill] sm:$0xff]  ;;  %v2450_v23 = vpop.permute.xlu0 %2449 }
 0x5cc   : > { %v3022_v12 = vadd.f32 %v3006_v41, %v2938_v52  ;;  %v2966_v15 = vrot.slane %v2950_v3, 1  ;;  %v3008_v36 = vrot.slane %v2992_v37, 1  ;;  %v3050_v25 = vsel %vm3045_vm13, %v3034_v19, %v3036_v9  ;;  %v10636_v19 = vld [vmem:[#allocation136_spill] sm:$0xff]  ;;  %v10638_v37 = vld [vmem:[#allocation75_spill] sm:$0xff] }
 0x5cd   : > { %v3049_v11 = vsel %vm3045_vm13, %v3036_v9, %v7958_v53  ;;  %v2981_v59 = vadd.f32 %v2965_v48, %v2921_v61  ;;  %v3023_v54 = vadd.f32 %v3007_v60, %v2939_v39  ;;  %v3128_v10 = vmul.f32 %v10629_v18, %v3100_v20 }
 0x5ce   : > { %v3188_v55 = vmul.f32 %v10630_v4, %v3100_v20  ;;  %v7980_v35 = vmul.f32 %v10631_v50, %v3099_v28  ;;  %v7983_v52 = vmul.f32 %v10633_v33, %v3099_v28  ;;  %v3101_v41 = vmul.f32 %v10635_v27, %v3050_v25 }
 0x5cf   : > { %v3102_v22 = vmul.f32 %v10636_v19, %v3049_v11  ;;  %v7988_v7 = vmul.f32 %v10629_v18, %v3099_v28  ;;  %v3110_v9 = vmul.f32 %v10631_v50, %v3100_v20  ;;  %v1542_v3 = vsel %vm1540_vm6, %v1533_v51, %v10593_v34 }
 0x5d0   : > { %10632 = vst [vmem:[#allocation54_spill] sm:$0xff] %v7980_v35  ;;  %10634 = vst [vmem:[#allocation152_spill] sm:$0xff] %v7983_v52  ;;  %v1543_v61 = vsel %vm1540_vm6, %v10638_v37, %v1533_v51  ;;  %v2982_v39 = vadd.f32 %v2966_v15, %v2922_v31  ;;  %v3024_v48 = vadd.f32 %v3008_v36, %v2940_v46  ;;  %v3204_v27 = vrot.slane %v3188_v55, 1  ;;  %v10641_v51 = vld [vmem:[#allocation138_spill] sm:$0xff] }
 0x5d1   : > { %10637 = vst [vmem:[#allocation153_spill] sm:$0xff] %v7988_v7  ;;  %v3129_v60 = vmul.f32 %v10629_v18, %v3101_v41  ;;  %v3189_v25 = vmul.f32 %v10630_v4, %v3101_v41  ;;  %v3136_v11 = vadd.f32 %v3128_v10, %v3022_v12  ;;  %v3146_v19 = vmul.f32 %v10633_v33, %v3100_v20  ;;  %v10640_v7 = vld [vmem:[#allocation137_spill] sm:$0xff] }
 0x5d2   : > { %v3130_v58 = vmul.f32 %v10629_v18, %v3102_v22  ;;  %v8003_v34 = vmul.f32 %v10630_v4, %v3099_v28  ;;  %v1598_v35 = vmul.f32 %v10640_v7, %v1543_v61  ;;  %v1599_v31 = vmul.f32 %v10641_v51, %v1542_v3  ;;  %v10647_v51 = vld [vmem:[#allocation139_spill] sm:$0xff] }
 0x5d3   : > { %v3118_v46 = vadd.f32 %v3110_v9, %v2980_v16  ;;  %v3111_v15 = vmul.f32 %v10631_v50, %v3101_v41  ;;  %v3147_v36 = vmul.f32 %v10633_v33, %v3101_v41  ;;  %v3190_v12 = vmul.f32 %v10630_v4, %v3102_v22 }
 0x5d4   : > { %10639 = vst [vmem:[#allocation92_spill] sm:$0xff] %v8003_v34  ;;  %v3137_v20 = vadd.f32 %v3129_v60, %v3023_v54  ;;  %v3205_v10 = vrot.slane %v3189_v25, 1  ;;  %v3112_v55 = vmul.f32 %v10631_v50, %v3102_v22  ;;  %v3148_v37 = vmul.f32 %v10633_v33, %v3102_v22 }
 0x5d5   : > { %v3162_v28 = vrot.slane %v3146_v19, 1  ;;  %v8012_v52 = vadd.f32 %v3204_v27, %v3136_v11  ;;  %v3138_v61 = vadd.f32 %v3130_v58, %v3024_v48  ;;  %v3206_v7 = vrot.slane %v3190_v12, 1  ;;  %v10644_v48 = vld [vmem:[#allocation109_spill] sm:$0xff] }
 0x5d6   : > { %v1644_v9 = vmul.f32 %v6992_v38, %v1598_v35  ;;  %v1645_v41 = vmul.f32 %v6992_v38, %v1599_v31  ;;  %v1686_v3 = vmul.f32 %v10600_v0, %v1598_v35  ;;  %v3119_v54 = vadd.f32 %v3111_v15, %v2981_v59  ;;  %v10662_v38 = vld [vmem:[#allocation35_spill] sm:$0xff] }
 0x5d7   : > { %10642 = vst [vmem:[#allocation93_spill] sm:$0xff] %v8012_v52  ;;  %v3163_v60 = vrot.slane %v3147_v36, 1  ;;  %v1687_v25 = vmul.f32 %v10600_v0, %v1599_v31  ;;  %v2452_v19 = vsel %vm2451_vm8, %v7753_v47, %v2450_v23  ;;  %v8022_v27 = vadd.f32 %v3205_v10, %v3137_v20  ;;  %v1934_v20 = vpop.permute.xlu1 %1933 }
 0x5d8   : > { %v3120_v58 = vadd.f32 %v3112_v55, %v2982_v39  ;;  %v3164_v22 = vrot.slane %v3148_v37, 1  ;;  %v2459_v11 = vsel %vm2451_vm8, %v2450_v23, %v10644_v48  ;;  %v8027_v12 = vadd.f32 %v3162_v28, %v3118_v46  ;;  %v10649_v23 = vld [vmem:[#allocation140_spill] sm:$0xff]  ;;  %v10656_v48 = vld [vmem:[#allocation143_spill] sm:$0xff] }
 0x5d9   : > { %10643 = vst [vmem:[#allocation166_spill] sm:$0xff] %v8022_v27  ;;  %v8030_v59 = vadd.f32 %v3206_v7, %v3138_v61  ;;  %v1660_v15 = vrot.slane %v1644_v9, 1  ;;  %v1661_v0 = vrot.slane %v1645_v41, 1  ;;  %v1702_v36 = vrot.slane %v1686_v3, 1  ;;  %v10669_v27 = vld [vmem:[#allocation31_spill] sm:$0xff] }
 0x5da   : > { %10645 = vst [vmem:[#allocation29_spill] sm:$0xff] %v8027_v12  ;;  %v1703_v16 = vrot.slane %v1687_v25, 1  ;;  %v2511_v34 = vmul.f32 %v10647_v51, %v2452_v19  ;;  %v8033_v10 = vadd.f32 %v3163_v60, %v3119_v54  ;;  %v1608_v39 = vmul.f32 %v10606_v43, %v1598_v35  ;;  %v10652_v60 = vld [vmem:[#allocation25_spill] sm:$0xff]  ;;  %v2648_v25 = vpop.permute.xlu0 %2647 }
 0x5db   : > { %10646 = vst [vmem:[#allocation45_spill] sm:$0xff] %v8030_v59  ;;  %v1609_v55 = vmul.f32 %v10606_v43, %v1599_v31  ;;  %v2512_v46 = vmul.f32 %v10649_v23, %v2459_v11  ;;  %v8039_v28 = vadd.f32 %v3164_v22, %v3120_v58  ;;  %v1626_v7 = vmul.f32 %v10607_v13, %v1598_v35  ;;  %v10668_v59 = vld [vmem:[#allocation148_spill] sm:$0xff] }
 0x5dc   : > { %10648 = vst [vmem:[#allocation154_spill] sm:$0xff] %v8033_v10  ;;  %v1627_v61 = vmul.f32 %v10607_v13, %v1599_v31  ;;  %v8044_v41 = vadd.f32 %v1660_v15, %v1608_v39  ;;  %v10651_v3 = vrot.slane %v7847_v44, 1  ;;  %v1936_v43 = vsel %vm1935_vm10, %v10652_v60, %v1934_v20 }
 0x5dd   : > { %10650 = vst [vmem:[#allocation155_spill] sm:$0xff] %v8039_v28  ;;  %v8052_v19 = vadd.f32 %v1661_v0, %v1609_v55  ;;  %v8054_v58 = vadd.f32 %v1702_v36, %v1626_v7  ;;  %v8059_v13 = vmul.f32 %v7042_v42, %v2511_v34  ;;  %v8062_v31 = vmul.f32 %v7042_v42, %v2512_v46  ;;  %v10659_v0 = vld [vmem:[#allocation142_spill] sm:$0xff]  ;;  %v1732_v55 = vpop.permute.xlu1 %1731 }
 0x5de   : > { %v1869_v54 = vadd.f32 %v10651_v3, %v7953_v49  ;;  %v8056_v35 = vadd.f32 %v1703_v16, %v1627_v61  ;;  %v8065_v44 = vmul.f32 %v7048_v30, %v2511_v34  ;;  %v10655_v49 = vld [vmem:[#allocation28_spill] sm:$0xff]  ;;  %v1996_v11 = vmul.f32 %v10656_v48, %v1936_v43 }
 0x5df   : > { %10653 = vst [vmem:[#allocation37_spill] sm:$0xff] %v8059_v13  ;;  %10654 = vst [vmem:[#allocation44_spill] sm:$0xff] %v8062_v31  ;;  %v1943_v22 = vsel %vm1935_vm10, %v1934_v20, %v10655_v49  ;;  %v8072_v15 = vmul.f32 %v7051_v17, %v2511_v34  ;;  %v8075_v16 = vmul.f32 %v7051_v17, %v2512_v46  ;;  %v10661_v49 = vrot.slane %v7859_v57, 1  ;;  %v10666_v57 = vld [vmem:[#allocation26_spill] sm:$0xff] }
 0x5e0   : > { %v1989_v36 = vmul.f32 %v10659_v0, %v1943_v22  ;;  %v2650_v39 = vsel %vm2649_vm9, %v7830_v32, %v2648_v25  ;;  %v2006_v7 = vmul.f32 %v10519_v26, %v1996_v11  ;;  %v2024_v61 = vmul.f32 %v10520_v56, %v1996_v11 }
 0x5e1   : > { %10657 = vst [vmem:[#allocation164_spill] sm:$0xff] %v8072_v15  ;;  %10658 = vst [vmem:[#allocation83_spill] sm:$0xff] %v8075_v16  ;;  %v2042_v20 = vmul.f32 %v10521_v1, %v1996_v11  ;;  %v2084_v3 = vmul.f32 %v10522_v63, %v1996_v11  ;;  %v8086_v43 = vmul.f32 %v10558_v62, %v2511_v34  ;;  %v10663_v23 = vrot.slane %v10662_v38, 1  ;;  %v10664_v11 = vld [vmem:[#allocation133_spill] sm:$0xff]  ;;  %v2132_v29 = vpop.permute.xlu1 %2131 }
 0x5e2   : > { %v1876_v22 = vadd.f32 %v10661_v49, %v7961_v14  ;;  %v1999_v9 = vmul.f32 %v10519_v26, %v1989_v36  ;;  %v2035_v37 = vmul.f32 %v10521_v1, %v1989_v36  ;;  %v2017_v48 = vmul.f32 %v10520_v56, %v1989_v36 }
 0x5e3   : > { %10660 = vst [vmem:[#allocation71_spill] sm:$0xff] %v8086_v43  ;;  %v1918_v51 = vadd.f32 %v10663_v23, %v7967_v24  ;;  %v2077_v0 = vmul.f32 %v10522_v63, %v1989_v36  ;;  %v2657_v34 = vsel %vm2649_vm9, %v2648_v25, %v10664_v11  ;;  %v8102_v28 = vmul.f32 %v10558_v62, %v2512_v46 }
 0x5e4   : > { %v10667_v14 = vrot.slane %v10666_v57, 1  ;;  %v2709_v10 = vmul.f32 %v10668_v59, %v2650_v39  ;;  %v1739_v24 = vsel %vm1737_vm7, %v1732_v55, %v10669_v27  ;;  %v2014_v38 = vadd.f32 %v2006_v7, %v1876_v22  ;;  %v10672_v7 = vld [vmem:[#allocation100_spill] sm:$0xff]  ;;  %v8128_v22 = vpop.permute.xlu0 %3039  ;;  %v10691_v59 = vld [vmem:[#allocation49_spill] sm:$0xff] }
 0x5e5   : > { %10665 = vst [vmem:[#allocation72_spill] sm:$0xff] %v8102_v28  ;;  %v2032_v23 = vadd.f32 %v2024_v61, %v1918_v51  ;;  %v2058_v36 = vrot.slane %v2042_v20, 1  ;;  %v2100_v12 = vrot.slane %v2084_v3, 1  ;;  %v8112_v52 = vmul.f32 %v7048_v30, %v2512_v46  ;;  %v10673_v61 = vld [vmem:[#allocation151_spill] sm:$0xff]  ;;  %10676 = vst [vmem:[#allocation130_spill] sm:$0xff] %v8128_v22  ;;  %v10679_v51 = vld [vmem:[#allocation62_spill] sm:$0xff] }
 0x5e6   : > { %v1911_v49 = vadd.f32 %v10667_v14, %v7964_v6  ;;  %v2007_v25 = vadd.f32 %v1999_v9, %v1869_v54  ;;  %v2051_v11 = vrot.slane %v2035_v37, 1  ;;  %v2710_v5 = vmul.f32 %v10671_v40, %v2657_v34  ;;  %v10674_v20 = vld [vmem:[#allocation59_spill] sm:$0xff]  ;;  %v10686_v6 = vld [vmem:[#allocation60_spill] sm:$0xff] }
 0x5e7   : > { %10670 = vst [vmem:[#allocation131_spill] sm:$0xff] %v8112_v52  ;;  %v2093_v14 = vrot.slane %v2077_v0, 1  ;;  %v1740_v46 = vsel %vm1737_vm7, %v10672_v7, %v1732_v55  ;;  %v1797_v9 = vmul.f32 %v10673_v61, %v1739_v24  ;;  %v2074_v37 = vadd.f32 %v2058_v36, %v2014_v38  ;;  %v10681_v24 = vld [vmem:[#allocation150_spill] sm:$0xff]  ;;  %v10683_v36 = vld [vmem:[#allocation63_spill] sm:$0xff]  ;;  %v10707_v52 = vld [vmem:[#allocation168_spill] sm:$0xff] }
 0x5e8   : > { %v2025_v57 = vadd.f32 %v2017_v48, %v1911_v49  ;;  %v8123_v54 = vadd.f32 %v2100_v12, %v2032_v23  ;;  %v8126_v3 = vmul.f32 %v10674_v20, %v2709_v10  ;;  %v10677_v48 = vld [vmem:[#allocation23_spill] sm:$0xff]  ;;  %v2067_v34 = vadd.f32 %v2051_v11, %v2007_v25  ;;  %v10688_v11 = vld [vmem:[#allocation48_spill] sm:$0xff] }
 0x5e9   : > { %v2134_v0 = vsel %vm2133_vm11, %v10677_v48, %v2132_v29  ;;  %v8134_v49 = vmul.f32 %v10674_v20, %v2710_v5  ;;  %v8137_v55 = vmul.f32 %v10679_v51, %v2709_v10  ;;  %v1796_v38 = vmul.f32 %v10681_v24, %v1740_v46  ;;  %v10692_v24 = vld [vmem:[#allocation52_spill] sm:$0xff] }
 0x5ea   : > { %10675 = vst [vmem:[#allocation135_spill] sm:$0xff] %v8126_v3  ;;  %v2109_v12 = vadd.f32 %v2093_v14, %v2025_v57  ;;  %v8141_v23 = vmul.f32 %v10679_v51, %v2710_v5  ;;  %v8144_v7 = vmul.f32 %v10683_v36, %v2709_v10  ;;  %v8147_v39 = vmul.f32 %v10683_v36, %v2710_v5  ;;  %v10689_v57 = vld [vmem:[#allocation163_spill] sm:$0xff] }
 0x5eb   : > { %10678 = vst [vmem:[#allocation75_spill] sm:$0xff] %v8134_v49  ;;  %10680 = vst [vmem:[#allocation109_spill] sm:$0xff] %v8137_v55  ;;  %v8150_v25 = vmul.f32 %v10686_v6, %v2709_v10  ;;  %v1807_v27 = vmul.f32 %v10688_v11, %v1797_v9  ;;  %v3048_v46 = vsel %vm3045_vm13, %v7958_v53, %v8128_v22  ;;  %v10693_v3 = vld [vmem:[#allocation47_spill] sm:$0xff]  ;;  %v10694_v53 = vld [vmem:[#allocation53_spill] sm:$0xff] }
 0x5ec   : > { %10682 = vst [vmem:[#allocation25_spill] sm:$0xff] %v8141_v23  ;;  %10684 = vst [vmem:[#allocation28_spill] sm:$0xff] %v8144_v7  ;;  %v2194_v14 = vmul.f32 %v10689_v57, %v2134_v0  ;;  %v8159_v40 = vmul.f32 %v10686_v6, %v2710_v5  ;;  %v1825_v61 = vmul.f32 %v10691_v59, %v1797_v9  ;;  %v10697_v55 = vld [vmem:[#allocation79_spill] sm:$0xff]  ;;  %v10698_v0 = vld [vmem:[#allocation81_spill] sm:$0xff] }
 0x5ed   : > { %10685 = vst [vmem:[#allocation35_spill] sm:$0xff] %v8147_v39  ;;  %10687 = vst [vmem:[#allocation133_spill] sm:$0xff] %v8150_v25  ;;  %v1843_v49 = vmul.f32 %v10692_v24, %v1797_v9  ;;  %v2141_v10 = vsel %vm2133_vm11, %v2132_v29, %v10693_v3  ;;  %v1806_v28 = vmul.f32 %v10688_v11, %v1796_v38  ;;  %v10696_v3 = vld [vmem:[#allocation162_spill] sm:$0xff] }
 0x5ee   : > { %10690 = vst [vmem:[#allocation26_spill] sm:$0xff] %v8159_v40  ;;  %v1824_v16 = vmul.f32 %v10691_v59, %v1796_v38  ;;  %v1885_v22 = vmul.f32 %v10694_v53, %v1797_v9  ;;  %v10695_v40 = vld [vmem:[#allocation161_spill] sm:$0xff]  ;;  %v1815_v43 = vadd.f32 %v1807_v27, %v8052_v19  ;;  %v1842_v29 = vmul.f32 %v10692_v24, %v1796_v38  ;;  %v8184_v27 = vpop.permute.xlu0 %3043 }
 0x5ef   : > { %v3103_v15 = vmul.f32 %v10695_v40, %v3048_v46  ;;  %v2187_v25 = vmul.f32 %v10696_v3, %v2141_v10  ;;  %v2204_v11 = vmul.f32 %v10697_v55, %v2194_v14  ;;  %v1833_v59 = vadd.f32 %v1825_v61, %v8056_v35  ;;  %10699 = vst [vmem:[#allocation31_spill] sm:$0xff] %v8184_v27  ;;  %v10702_v35 = vld [vmem:[#allocation80_spill] sm:$0xff] }
 0x5f0   : > { %v1859_v13 = vrot.slane %v1843_v49, 1  ;;  %v1884_v9 = vmul.f32 %v10694_v53, %v1796_v38  ;;  %v2240_v23 = vmul.f32 %v10698_v0, %v2194_v14  ;;  %v1814_v5 = vadd.f32 %v1806_v28, %v8044_v41  ;;  %v1930_v38 = vpop.permute.xlu1 %1929 }
 0x5f1   : > { %v1832_v57 = vadd.f32 %v1824_v16, %v8054_v58  ;;  %v1901_v46 = vrot.slane %v1885_v22, 1  ;;  %v2197_v19 = vmul.f32 %v10697_v55, %v2187_v25  ;;  %v8187_v24 = vmul.f32 %v10631_v50, %v3103_v15  ;;  %v10703_v58 = vld [vmem:[#allocation82_spill] sm:$0xff] }
 0x5f2   : > { %v8190_v10 = vmul.f32 %v10629_v18, %v3103_v15  ;;  %v2215_v61 = vmul.f32 %v10702_v35, %v2187_v25  ;;  %v2233_v49 = vmul.f32 %v10698_v0, %v2187_v25  ;;  %v1858_v53 = vrot.slane %v1842_v29, 1 }
 0x5f3   : > { %10700 = vst [vmem:[#allocation100_spill] sm:$0xff] %v8187_v24  ;;  %v2212_v28 = vadd.f32 %v2204_v11, %v2074_v37  ;;  %v2256_v41 = vrot.slane %v2240_v23, 1  ;;  %v2275_v16 = vmul.f32 %v10703_v58, %v2187_v25  ;;  %v1875_v22 = vadd.f32 %v1859_v13, %v1815_v43  ;;  %v10704_v37 = vld [vmem:[#allocation165_spill] sm:$0xff] }
 0x5f4   : > { %10701 = vst [vmem:[#allocation59_spill] sm:$0xff] %v8190_v10  ;;  %v2205_v40 = vadd.f32 %v2197_v19, %v2067_v34  ;;  %v2249_v3 = vrot.slane %v2233_v49, 1  ;;  %v3053_v24 = vsel %vm3045_vm13, %v8184_v27, %v7879_v45  ;;  %v1900_v39 = vrot.slane %v1884_v9, 1  ;;  %v10705_v9 = vld [vmem:[#allocation73_spill] sm:$0xff]  ;;  %v10706_v49 = vld [vmem:[#allocation167_spill] sm:$0xff] }
 0x5f5   : > { %v8200_v10 = vmul.f32 %v10633_v33, %v3103_v15  ;;  %v1937_v29 = vsel %vm1935_vm10, %v1930_v38, %v10652_v60  ;;  %v1938_v23 = vsel %vm1935_vm10, %v10704_v37, %v1930_v38  ;;  %v8209_v13 = vmul.f32 %v10630_v4, %v3103_v15 }
 0x5f6   : > { %v2222_v43 = vmul.f32 %v10702_v35, %v2194_v14  ;;  %v2223_v34 = vadd.f32 %v2215_v61, %v2109_v12  ;;  %v2282_v45 = vmul.f32 %v10703_v58, %v2194_v14  ;;  %v2272_v25 = vadd.f32 %v2256_v41, %v2212_v28  ;;  %v2128_v14 = vpop.permute.xlu1 %2127 }
 0x5f7   : > { %v2291_v11 = vrot.slane %v2275_v16, 1  ;;  %v8214_v19 = vmul.f32 %v10705_v9, %v3053_v24  ;;  %v1994_v33 = vmul.f32 %v10706_v49, %v1938_v23  ;;  %v1874_v60 = vadd.f32 %v1858_v53, %v1814_v5 }
 0x5f8   : > { %v1917_v27 = vadd.f32 %v1901_v46, %v1833_v59  ;;  %v2265_v7 = vadd.f32 %v2249_v3, %v2205_v40  ;;  %v1995_v38 = vmul.f32 %v10707_v52, %v1937_v29  ;;  %v1916_v37 = vadd.f32 %v1900_v39, %v1832_v57  ;;  %v10708_v3 = vld [vmem:[#allocation97_spill] sm:$0xff]  ;;  %v10709_v57 = vld [vmem:[#allocation46_spill] sm:$0xff] }
 0x5f9   : > { %v2004_v31 = vmul.f32 %v10519_v26, %v1994_v33  ;;  %v2022_v12 = vmul.f32 %v10520_v56, %v1994_v33  ;;  %v2230_v24 = vadd.f32 %v2222_v43, %v8123_v54  ;;  %v2298_v59 = vrot.slane %v2282_v45, 1 }
 0x5fa   : > { %v2005_v28 = vmul.f32 %v10519_v26, %v1995_v38  ;;  %v2023_v5 = vmul.f32 %v10520_v56, %v1995_v38  ;;  %v2307_v40 = vadd.f32 %v2291_v11, %v2223_v34  ;;  %v2332_v46 = vadd.f32 %v10708_v3, %v2272_v25  ;;  %v10710_v25 = vld [vmem:[#allocation27_spill] sm:$0xff]  ;;  %v10711_v3 = vld [vmem:[#allocation34_spill] sm:$0xff] }
 0x5fb   : > { %v8228_v39 = vmul.f32 %v10631_v50, %v8214_v19  ;;  %v2325_v53 = vadd.f32 %v10709_v57, %v2265_v7  ;;  %v2012_v41 = vadd.f32 %v2004_v31, %v1874_v60  ;;  %v2040_v16 = vmul.f32 %v10521_v1, %v1994_v33 }
 0x5fc   : > { %v2135_v54 = vsel %vm2133_vm11, %v2128_v14, %v10677_v48  ;;  %v2013_v26 = vadd.f32 %v2005_v28, %v1875_v22  ;;  %v2030_v29 = vadd.f32 %v2022_v12, %v1916_v37  ;;  %v2041_v56 = vmul.f32 %v10521_v1, %v1995_v38  ;;  %v10712_v48 = vld [vmem:[#allocation51_spill] sm:$0xff]  ;;  %v10713_v1 = vld [vmem:[#allocation56_spill] sm:$0xff] }
 0x5fd   : > { %v2082_v23 = vmul.f32 %v10522_v63, %v1994_v33  ;;  %v2031_v43 = vadd.f32 %v2023_v5, %v1917_v27  ;;  %v2056_v34 = vrot.slane %v2040_v16, 1  ;;  %v2083_v45 = vmul.f32 %v10522_v63, %v1995_v38  ;;  %v10714_v33 = vld [vmem:[#allocation41_spill] sm:$0xff] }
 0x5fe   : > { %v2136_v31 = vsel %vm2133_vm11, %v10710_v25, %v2128_v14  ;;  %v2314_v7 = vadd.f32 %v2298_v59, %v2230_v24  ;;  %v2057_v11 = vrot.slane %v2041_v56, 1  ;;  %v2343_v22 = vadd.f32 %v10712_v48, %v2307_v40 }
 0x5ff   : > { %v2098_v60 = vrot.slane %v2082_v23, 1  ;;  %v2192_v57 = vmul.f32 %v10711_v3, %v2136_v31  ;;  %v2072_v37 = vadd.f32 %v2056_v34, %v2012_v41  ;;  %v2099_v12 = vrot.slane %v2083_v45, 1  ;;  %v10716_v41 = vld [vmem:[#allocation98_spill] sm:$0xff]  ;;  %v10717_v34 = vld [vmem:[#allocation43_spill] sm:$0xff] }
 0x600   : > { %v2193_v28 = vmul.f32 %v10713_v1, %v2135_v54  ;;  %v10715_v27 = vrot.slane %v10714_v33, 1  ;;  %v8248_v63 = vmul.f32 %v10629_v18, %v8214_v19  ;;  %v2073_v24 = vadd.f32 %v2057_v11, %v2013_v26  ;;  %v10719_v11 = vld [vmem:[#allocation146_spill] sm:$0xff] }
 0x601   : > { %v2114_v38 = vadd.f32 %v2098_v60, %v2030_v29  ;;  %v2202_v14 = vmul.f32 %v10697_v55, %v2192_v57  ;;  %v2115_v59 = vadd.f32 %v2099_v12, %v2031_v43  ;;  %v2220_v40 = vmul.f32 %v10702_v35, %v2192_v57  ;;  %v2446_v43 = vpop.permute.xlu1 %2445  ;;  %v10720_v33 = vld [vmem:[#allocation74_spill] sm:$0xff] }
 0x602   : > { %v2385_v5 = vadd.f32 %v10715_v27, %v2325_v53  ;;  %v2203_v16 = vmul.f32 %v10697_v55, %v2193_v28  ;;  %v2350_v56 = vadd.f32 %v10716_v41, %v2314_v7  ;;  %v2221_v54 = vmul.f32 %v10702_v35, %v2193_v28  ;;  %v10721_v27 = vld [vmem:[#allocation42_spill] sm:$0xff] }
 0x603   : > { %v2210_v23 = vadd.f32 %v2202_v14, %v2072_v37  ;;  %v2238_v53 = vmul.f32 %v10698_v0, %v2192_v57  ;;  %v10718_v45 = vrot.slane %v10717_v34, 1  ;;  %v2228_v31 = vadd.f32 %v2220_v40, %v2114_v38  ;;  %v10723_v40 = vld [vmem:[#allocation126_spill] sm:$0xff]  ;;  %v10730_v34 = vld [vmem:[#allocation105_spill] sm:$0xff] }
 0x604   : > { %v2239_v29 = vmul.f32 %v10698_v0, %v2193_v28  ;;  %v2280_v26 = vmul.f32 %v10703_v58, %v2192_v57  ;;  %v2523_v55 = vadd.f32 %v10719_v11, %v2385_v5  ;;  %v2229_v60 = vadd.f32 %v2221_v54, %v2115_v59  ;;  %v10725_v5 = vld [vmem:[#allocation85_spill] sm:$0xff]  ;;  %v10729_v54 = vld [vmem:[#allocation156_spill] sm:$0xff] }
 0x605   : > { %v2427_v25 = vadd.f32 %v10718_v45, %v2343_v22  ;;  %v2254_v48 = vrot.slane %v2238_v53, 1  ;;  %v2281_v7 = vmul.f32 %v10703_v58, %v2193_v28  ;;  %v2211_v37 = vadd.f32 %v2203_v16, %v2073_v24  ;;  %v10727_v28 = vld [vmem:[#allocation86_spill] sm:$0xff] }
 0x606   : > { %v2255_v12 = vrot.slane %v2239_v29, 1  ;;  %v2296_v35 = vrot.slane %v2280_v26, 1  ;;  %v8264_v14 = vrot.slane %v10721_v27, %v10720_v33  ;;  %v8268_v0 = vrot.slane %v10721_v27, %v10723_v40  ;;  %v10731_v26 = vld [vmem:[#allocation147_spill] sm:$0xff]  ;;  %v10734_v27 = vld [vmem:[#allocation108_spill] sm:$0xff] }
 0x607   : > { %v2270_v22 = vadd.f32 %v2254_v48, %v2210_v23  ;;  %v2297_v38 = vrot.slane %v2281_v7, 1  ;;  %v2453_v57 = vsel %vm2451_vm8, %v2446_v43, %v7753_v47  ;;  %v10726_v59 = vrot.slane %v10725_v5, 1  ;;  %v10735_v5 = vld [vmem:[#allocation141_spill] sm:$0xff] }
 0x608   : > { %10722 = vst [vmem:[#allocation23_spill] sm:$0xff] %v8264_v14  ;;  %10724 = vst [vmem:[#allocation62_spill] sm:$0xff] %v8268_v0  ;;  %v10728_v24 = vrot.slane %v10727_v28, 1  ;;  %v2312_v41 = vadd.f32 %v2296_v35, %v2228_v31  ;;  %v2454_v23 = vsel %vm2451_vm8, %v10729_v54, %v2446_v43  ;;  %v2510_v47 = vmul.f32 %v8268_v0, %v2453_v57  ;;  %v10736_v31 = vld [vmem:[#allocation91_spill] sm:$0xff]  ;;  %v2644_v28 = vpop.permute.xlu1 %2643 }
 0x609   : > { %v8275_v58 = vadd.f32 %v10726_v59, %v2332_v46  ;;  %v2313_v53 = vadd.f32 %v2297_v38, %v2229_v60  ;;  %v2330_v45 = vadd.f32 %v10730_v34, %v2270_v22  ;;  %v2509_v29 = vmul.f32 %v8264_v14, %v2454_v23  ;;  %v10732_v46 = vld [vmem:[#allocation144_spill] sm:$0xff]  ;;  %v10739_v38 = vld [vmem:[#allocation95_spill] sm:$0xff]  ;;  %v10743_v34 = vld [vmem:[#allocation101_spill] sm:$0xff] }
 0x60a   : > { %v8279_v16 = vadd.f32 %v10728_v24, %v2350_v56  ;;  %v2541_v11 = vadd.f32 %v10731_v26, %v2427_v25  ;;  %v10733_v48 = vrot.slane %v10732_v46, 1  ;;  %v2348_v56 = vadd.f32 %v10734_v27, %v2312_v41  ;;  %v10738_v60 = vld [vmem:[#allocation24_spill] sm:$0xff]  ;;  %v10741_v54 = vld [vmem:[#allocation99_spill] sm:$0xff] }
 0x60b   : > { %v10737_v35 = vrot.slane %v10736_v31, 1  ;;  %v2271_v43 = vadd.f32 %v2255_v12, %v2211_v37  ;;  %v10740_v22 = vrot.slane %v10739_v38, 1  ;;  %v10742_v23 = vrot.slane %v10741_v54, 1  ;;  %v10747_v37 = vld [vmem:[#allocation104_spill] sm:$0xff]  ;;  %v10862_v14 = vld [vmem:[#allocation115_spill] sm:$0xff] }
 0x60c   : > { %v2583_v7 = vadd.f32 %v10733_v48, %v2523_v55  ;;  %v2519_v25 = vmul.f32 %v7042_v42, %v2509_v29  ;;  %v10744_v26 = vrot.slane %v10743_v34, 1  ;;  %v2520_v41 = vmul.f32 %v7042_v42, %v2510_v47  ;;  %v10745_v48 = vld [vmem:[#allocation50_spill] sm:$0xff] }
 0x60d   : > { %v2389_v59 = vadd.f32 %v10737_v35, %v10735_v5  ;;  %v2431_v24 = vadd.f32 %v10740_v22, %v10738_v60  ;;  %v2390_v57 = vadd.f32 %v10742_v23, %v2330_v45  ;;  %v2537_v46 = vmul.f32 %v7048_v30, %v2509_v29 }
 0x60e   : > { %v2432_v55 = vadd.f32 %v10744_v26, %v2348_v56  ;;  %v8306_v27 = vrot.slane %v10745_v48, %v10723_v40  ;;  %v2349_v12 = vadd.f32 %v10747_v37, %v2313_v53  ;;  %v2555_v5 = vmul.f32 %v7051_v17, %v2509_v29  ;;  %v10749_v26 = vld [vmem:[#allocation32_spill] sm:$0xff] }
 0x60f   : > { %v8312_v45 = vrot.slane %v10745_v48, %v10720_v33  ;;  %v2651_v56 = vsel %vm2649_vm9, %v2644_v28, %v7830_v32  ;;  %v2527_v31 = vadd.f32 %v2519_v25, %v2389_v59  ;;  %v2528_v42 = vadd.f32 %v2520_v41, %v2390_v57  ;;  %v10750_v59 = vld [vmem:[#allocation145_spill] sm:$0xff] }
 0x610   : > { %10746 = vst [vmem:[#allocation63_spill] sm:$0xff] %v8306_v27  ;;  %v2538_v35 = vmul.f32 %v7048_v30, %v2510_v47  ;;  %v2556_v60 = vmul.f32 %v7051_v17, %v2510_v47  ;;  %v2545_v38 = vadd.f32 %v2537_v46, %v2431_v24  ;;  %v2571_v22 = vrot.slane %v2555_v5, 1  ;;  %v10752_v30 = vld [vmem:[#allocation94_spill] sm:$0xff] }
 0x611   : > { %10748 = vst [vmem:[#allocation60_spill] sm:$0xff] %v8312_v45  ;;  %v2597_v53 = vmul.f32 %v10558_v62, %v2509_v29  ;;  %v2598_v54 = vmul.f32 %v10558_v62, %v2510_v47  ;;  %v2652_v48 = vsel %vm2649_vm9, %v10749_v26, %v2644_v28  ;;  %v2708_v32 = vmul.f32 %v8306_v27, %v2651_v56  ;;  %v10753_v46 = vld [vmem:[#allocation90_spill] sm:$0xff] }
 0x612   : > { %v2546_v23 = vadd.f32 %v2538_v35, %v2432_v55  ;;  %v2572_v34 = vrot.slane %v2556_v60, 1  ;;  %v10751_v57 = vrot.slane %v10750_v59, 1  ;;  %v2331_v41 = vadd.f32 %v10752_v30, %v2271_v43 }
 0x613   : > { %v2613_v17 = vrot.slane %v2597_v53, 1  ;;  %v2707_v24 = vmul.f32 %v8312_v45, %v2652_v48  ;;  %v10754_v29 = vrot.slane %v10753_v46, 1  ;;  %v2587_v62 = vadd.f32 %v2571_v22, %v2527_v31  ;;  %v10755_v53 = vld [vmem:[#allocation103_spill] sm:$0xff] }
 0x614   : > { %v2625_v25 = vadd.f32 %v10751_v57, %v2541_v11  ;;  %v2588_v47 = vadd.f32 %v2572_v34, %v2528_v42  ;;  %v2614_v55 = vrot.slane %v2598_v54, 1  ;;  %v2718_v28 = vmul.f32 %v10674_v20, %v2708_v32  ;;  %v10757_v31 = vld [vmem:[#allocation87_spill] sm:$0xff] }
 0x615   : > { %v2433_v37 = vadd.f32 %v10754_v29, %v2349_v12  ;;  %v2629_v5 = vadd.f32 %v2613_v17, %v2545_v38  ;;  %v2717_v35 = vmul.f32 %v10674_v20, %v2707_v24  ;;  %v2735_v56 = vmul.f32 %v10686_v6, %v2707_v24  ;;  %v2842_v12 = vpop.permute.xlu1 %2841  ;;  %v10760_v17 = vld [vmem:[#allocation44_spill] sm:$0xff]  ;;  %v10761_v46 = vld [vmem:[#allocation159_spill] sm:$0xff] }
 0x616   : > { %v2630_v60 = vadd.f32 %v2614_v55, %v2546_v23  ;;  %v2753_v11 = vmul.f32 %v10679_v51, %v2707_v24  ;;  %v2795_v43 = vmul.f32 %v10683_v36, %v2707_v24  ;;  %v8338_v26 = vrot.slane %v10755_v53, %v10720_v33  ;;  %v10762_v55 = vld [vmem:[#allocation131_spill] sm:$0xff] }
 0x617   : > { %v10758_v42 = vrot.slane %v10757_v31, 1  ;;  %v2726_v38 = vadd.f32 %v2718_v28, %v2588_v47  ;;  %v2736_v54 = vmul.f32 %v10686_v6, %v2708_v32  ;;  %v2754_v20 = vmul.f32 %v10679_v51, %v2708_v32  ;;  %v10764_v28 = vld [vmem:[#allocation37_spill] sm:$0xff] }
 0x618   : > { %10756 = vst [vmem:[#allocation48_spill] sm:$0xff] %v8338_v26  ;;  %v2725_v34 = vadd.f32 %v2717_v35, %v2587_v62  ;;  %v2743_v48 = vadd.f32 %v2735_v56, %v2629_v5  ;;  %v2796_v23 = vmul.f32 %v10683_v36, %v2708_v32  ;;  %v8347_v59 = vrot.slane %v10755_v53, %v10723_v40  ;;  %v10763_v5 = vld [vmem:[#allocation160_spill] sm:$0xff] }
 0x619   : > { %v2391_v22 = vadd.f32 %v10758_v42, %v2331_v41  ;;  %v2769_v57 = vrot.slane %v2753_v11, 1  ;;  %v2811_v33 = vrot.slane %v2795_v43, 1  ;;  %v2849_v30 = vsel %vm2847_vm12, %v2842_v12, %v7945_v8  ;;  %v10766_v42 = vld [vmem:[#allocation120_spill] sm:$0xff] }
 0x61a   : > { %10759 = vst [vmem:[#allocation49_spill] sm:$0xff] %v8347_v59  ;;  %v2850_v6 = vsel %vm2847_vm12, %v7853_v21, %v2842_v12  ;;  %v8357_v51 = vmul.f32 %v10630_v4, %v8214_v19  ;;  %v2547_v36 = vadd.f32 %v8065_v44, %v2433_v37  ;;  %v2744_v32 = vadd.f32 %v2736_v54, %v2630_v60  ;;  %v2846_v44 = vpop.permute.xlu1 %2845  ;;  %v10765_v12 = vld [vmem:[#allocation118_spill] sm:$0xff]  ;;  %v10767_v54 = vld [vmem:[#allocation121_spill] sm:$0xff] }
 0x61b   : > { %v2905_v41 = vmul.f32 %v8338_v26, %v2850_v6  ;;  %v2530_v24 = vadd.f32 %v10760_v17, %v8275_v58  ;;  %v2721_v29 = vadd.f32 %v10761_v46, %v2583_v7  ;;  %v2770_v62 = vrot.slane %v2754_v20, 1 }
 0x61c   : > { %v2906_v47 = vmul.f32 %v8347_v59, %v2849_v30  ;;  %v2548_v21 = vadd.f32 %v10762_v55, %v8279_v16  ;;  %v2739_v35 = vadd.f32 %v10763_v5, %v2625_v25  ;;  %v2529_v56 = vadd.f32 %v10764_v28, %v2391_v22  ;;  %v10768_v30 = vld [vmem:[#allocation71_spill] sm:$0xff]  ;;  %v10770_v16 = vld [vmem:[#allocation157_spill] sm:$0xff] }
 0x61d   : > { %v2812_v11 = vrot.slane %v2796_v23, 1  ;;  %v2785_v37 = vadd.f32 %v2769_v57, %v2725_v34  ;;  %v2786_v60 = vadd.f32 %v2770_v62, %v2726_v38  ;;  %v2827_v43 = vadd.f32 %v2811_v33, %v2743_v48  ;;  %v10772_v34 = vld [vmem:[#allocation122_spill] sm:$0xff]  ;;  %v10775_v62 = vld [vmem:[#allocation164_spill] sm:$0xff]  ;;  %v10777_v28 = vld [vmem:[#allocation83_spill] sm:$0xff] }
 0x61e   : > { %v2915_v31 = vmul.f32 %v10765_v12, %v2905_v41  ;;  %v2933_v7 = vmul.f32 %v10766_v42, %v2905_v41  ;;  %v2951_v20 = vmul.f32 %v10767_v54, %v2905_v41  ;;  %v10769_v6 = vrot.slane %v10768_v30, 1  ;;  %v10773_v48 = vld [vmem:[#allocation158_spill] sm:$0xff] }
 0x61f   : > { %v2828_v58 = vadd.f32 %v2812_v11, %v2744_v32  ;;  %v10771_v46 = vrot.slane %v10770_v16, 1  ;;  %v2916_v22 = vmul.f32 %v10765_v12, %v2906_v47  ;;  %v2952_v23 = vmul.f32 %v10767_v54, %v2906_v47  ;;  %v10779_v16 = vld [vmem:[#allocation72_spill] sm:$0xff] }
 0x620   : > { %v2631_v17 = vadd.f32 %v10769_v6, %v2547_v36  ;;  %v2993_v38 = vmul.f32 %v10772_v34, %v2905_v41  ;;  %v10774_v57 = vrot.slane %v10773_v48, 1  ;;  %v2934_v32 = vmul.f32 %v10766_v42, %v2906_v47  ;;  %v10781_v48 = vld [vmem:[#allocation133_spill] sm:$0xff] }
 0x621   : > { %v2781_v25 = vadd.f32 %v10771_v46, %v2721_v29  ;;  %v10776_v55 = vrot.slane %v10775_v62, 1  ;;  %v10778_v11 = vrot.slane %v10777_v28, 1  ;;  %v2923_v30 = vadd.f32 %v2915_v31, %v2785_v37  ;;  %v10782_v62 = vld [vmem:[#allocation127_spill] sm:$0xff] }
 0x622   : > { %v2823_v33 = vadd.f32 %v10774_v57, %v2739_v35  ;;  %v2924_v6 = vadd.f32 %v2916_v22, %v2786_v60  ;;  %v2994_v29 = vmul.f32 %v10772_v34, %v2906_v47  ;;  %v10780_v46 = vrot.slane %v10779_v16, 1  ;;  %v3042_v57 = vpop.permute.xlu1 %3041  ;;  %v10786_v47 = vld [vmem:[#allocation135_spill] sm:$0xff]  ;;  %v10790_v22 = vld [vmem:[#allocation130_spill] sm:$0xff] }
 0x623   : > { %v2589_v5 = vadd.f32 %v10776_v55, %v2529_v56  ;;  %v2590_v36 = vadd.f32 %v10778_v11, %v2530_v24  ;;  %v2941_v61 = vadd.f32 %v2933_v7, %v2827_v43  ;;  %v2942_v41 = vadd.f32 %v2934_v32, %v2828_v58  ;;  %v10784_v24 = vld [vmem:[#allocation102_spill] sm:$0xff]  ;;  %v10788_v58 = vld [vmem:[#allocation119_spill] sm:$0xff] }
 0x624   : > { %v2632_v15 = vadd.f32 %v10780_v46, %v2548_v21  ;;  %v2967_v9 = vrot.slane %v2951_v20, 1  ;;  %v2745_v35 = vadd.f32 %v10781_v48, %v2631_v17  ;;  %v2968_v59 = vrot.slane %v2952_v23, 1  ;;  %v10787_v43 = vld [vmem:[#allocation66_spill] sm:$0xff]  ;;  %v10796_v16 = vld [vmem:[#allocation31_spill] sm:$0xff] }
 0x625   : > { %v3009_v26 = vrot.slane %v2993_v38, 1  ;;  %v8392_v56 = vrot.slane %v10755_v53, %v10782_v62  ;;  %v8396_v37 = vrot.slane %v10755_v53, %v10784_v24  ;;  %v2727_v60 = vadd.f32 %v10786_v47, %v2589_v5  ;;  %v10791_v38 = vld [vmem:[#allocation75_spill] sm:$0xff]  ;;  %v10793_v5 = vld [vmem:[#allocation28_spill] sm:$0xff] }
 0x626   : > { %v2848_v21 = vsel %vm2847_vm12, %v7945_v8, %v2846_v44  ;;  %v2855_v31 = vsel %vm2847_vm12, %v2846_v44, %v10787_v43  ;;  %v8407_v7 = vrot.slane %v10788_v58, %v10723_v40  ;;  %v3010_v20 = vrot.slane %v2994_v29, 1  ;;  %v10792_v8 = vld [vmem:[#allocation26_spill] sm:$0xff] }
 0x627   : > { %10783 = vst [vmem:[#allocation52_spill] sm:$0xff] %v8392_v56  ;;  %10785 = vst [vmem:[#allocation47_spill] sm:$0xff] %v8396_v37  ;;  %v2907_v17 = vmul.f32 %v8392_v56, %v2848_v21  ;;  %v2908_v53 = vmul.f32 %v8396_v37, %v2855_v31  ;;  %v3047_v23 = vsel %vm3045_vm13, %v10790_v22, %v3042_v57  ;;  %v10794_v28 = vrot.slane %v10793_v5, 1  ;;  %v10799_v22 = vld [vmem:[#allocation40_spill] sm:$0xff]  ;;  %v10802_v5 = vld [vmem:[#allocation61_spill] sm:$0xff] }
 0x628   : > { %10789 = vst [vmem:[#allocation53_spill] sm:$0xff] %v8407_v7  ;;  %v2728_v32 = vadd.f32 %v10791_v38, %v2590_v36  ;;  %v2746_v55 = vadd.f32 %v10792_v8, %v2632_v15  ;;  %v8420_v40 = vrot.slane %v10788_v58, %v10782_v62  ;;  %v2983_v11 = vadd.f32 %v2967_v9, %v2923_v30  ;;  %v10797_v36 = vld [vmem:[#allocation109_spill] sm:$0xff] }
 0x629   : > { %v2829_v44 = vadd.f32 %v10794_v28, %v2745_v35  ;;  %v2935_v29 = vmul.f32 %v10766_v42, %v2907_v17  ;;  %v3046_v46 = vsel %vm3045_vm13, %v3042_v57, %v10796_v16  ;;  %v3104_v48 = vmul.f32 %v8407_v7, %v3047_v23  ;;  %v10800_v23 = vld [vmem:[#allocation35_spill] sm:$0xff]  ;;  %v10859_v7 = vld [vmem:[#allocation65_spill] sm:$0xff] }
 0x62a   : > { %10795 = vst [vmem:[#allocation79_spill] sm:$0xff] %v8420_v40  ;;  %v2984_v24 = vadd.f32 %v2968_v59, %v2924_v6  ;;  %v10798_v47 = vrot.slane %v10797_v36, 1  ;;  %v2917_v21 = vmul.f32 %v10765_v12, %v2907_v17  ;;  %v2995_v35 = vmul.f32 %v10772_v34, %v2907_v17  ;;  %v10805_v36 = vld [vmem:[#allocation36_spill] sm:$0xff] }
 0x62b   : > { %v3025_v43 = vadd.f32 %v3009_v26, %v2941_v61  ;;  %v2936_v62 = vmul.f32 %v10766_v42, %v2908_v53  ;;  %v2953_v9 = vmul.f32 %v10767_v54, %v2907_v17  ;;  %v2996_v30 = vmul.f32 %v10772_v34, %v2908_v53  ;;  %v10803_v26 = vld [vmem:[#allocation25_spill] sm:$0xff] }
 0x62c   : > { %v2787_v15 = vadd.f32 %v10798_v47, %v2727_v60  ;;  %v2943_v31 = vadd.f32 %v2935_v29, %v2829_v44  ;;  %v3011_v58 = vrot.slane %v2995_v35, 1  ;;  %v3105_v57 = vmul.f32 %v8420_v40, %v3046_v46  ;;  %v10807_v35 = vld [vmem:[#allocation59_spill] sm:$0xff] }
 0x62d   : > { %v2919_v59 = vadd.f32 %v10799_v22, %v2781_v25  ;;  %v3026_v6 = vadd.f32 %v3010_v20, %v2942_v41  ;;  %v10801_v60 = vrot.slane %v10800_v23, 1  ;;  %v3132_v8 = vmul.f32 %v10629_v18, %v3104_v48 }
 0x62e   : > { %v2937_v61 = vadd.f32 %v10802_v5, %v2823_v33  ;;  %v10804_v42 = vrot.slane %v10803_v26, 1  ;;  %v2918_v17 = vmul.f32 %v10765_v12, %v2908_v53  ;;  %v2925_v34 = vadd.f32 %v2917_v21, %v2787_v15  ;;  %v10808_v15 = vld [vmem:[#allocation33_spill] sm:$0xff]  ;;  %v10813_v5 = vld [vmem:[#allocation100_spill] sm:$0xff] }
 0x62f   : > { %v2830_v38 = vadd.f32 %v10801_v60, %v2746_v55  ;;  %v2954_v44 = vmul.f32 %v10767_v54, %v2908_v53  ;;  %v2969_v16 = vrot.slane %v2953_v9, 1  ;;  %v3012_v46 = vrot.slane %v2996_v30, 1  ;;  %v10810_v9 = vld [vmem:[#allocation134_spill] sm:$0xff]  ;;  %v10812_v60 = vld [vmem:[#allocation153_spill] sm:$0xff]  ;;  %v10814_v26 = vld [vmem:[#allocation92_spill] sm:$0xff] }
 0x630   : > { %v2788_v28 = vadd.f32 %v10804_v42, %v2728_v32  ;;  %v3192_v25 = vmul.f32 %v10630_v4, %v3104_v48  ;;  %v3027_v41 = vadd.f32 %v3011_v58, %v2943_v31  ;;  %v3133_v20 = vmul.f32 %v10629_v18, %v3105_v57 }
 0x631   : > { %v2944_v29 = vadd.f32 %v2936_v62, %v2830_v38  ;;  %v3193_v55 = vmul.f32 %v10630_v4, %v3105_v57  ;;  %v10806_v33 = vrot.slane %v10805_v36, 1  ;;  %v3139_v32 = vadd.f32 %v10807_v35, %v3025_v43  ;;  %v10811_v4 = vld [vmem:[#allocation54_spill] sm:$0xff] }
 0x632   : > { %v3140_v22 = vadd.f32 %v3132_v8, %v3026_v6  ;;  %v3208_v12 = vrot.slane %v3192_v25, 1  ;;  %v10809_v21 = vrot.slane %v10808_v15, 1  ;;  %v2926_v53 = vadd.f32 %v2918_v17, %v2788_v28 }
 0x633   : > { %v2979_v47 = vadd.f32 %v10806_v33, %v2919_v59  ;;  %v3114_v62 = vmul.f32 %v10631_v50, %v3104_v48  ;;  %v3150_v30 = vmul.f32 %v10810_v9, %v3104_v48  ;;  %v3151_v31 = vmul.f32 %v10810_v9, %v3105_v57  ;;  %v10819_v33 = vld [vmem:[#allocation93_spill] sm:$0xff] }
 0x634   : > { %v3021_v54 = vadd.f32 %v10809_v21, %v2937_v61  ;;  %v2970_v18 = vrot.slane %v2954_v44, 1  ;;  %v3028_v58 = vadd.f32 %v3012_v46, %v2944_v29  ;;  %v2985_v38 = vadd.f32 %v2969_v16, %v2925_v34  ;;  %v10817_v16 = vld [vmem:[#allocation152_spill] sm:$0xff] }
 0x635   : > { %v3117_v23 = vadd.f32 %v10811_v4, %v2979_v47  ;;  %v3115_v43 = vmul.f32 %v10631_v50, %v3105_v57  ;;  %v3209_v6 = vrot.slane %v3193_v55, 1  ;;  %v3141_v8 = vadd.f32 %v3133_v20, %v3027_v41 }
 0x636   : > { %v3135_v59 = vadd.f32 %v10812_v60, %v3021_v54  ;;  %v3121_v61 = vadd.f32 %v10813_v5, %v2983_v11  ;;  %v10815_v42 = vrot.slane %v10814_v26, 1  ;;  %v10816_v48 = vrot.slane %v8209_v13, 1  ;;  %v10821_v13 = vld [vmem:[#allocation29_spill] sm:$0xff] }
 0x637   : > { %v3224_v25 = vadd.f32 %v3208_v12, %v3140_v22  ;;  %v3122_v44 = vadd.f32 %v3114_v62, %v2984_v24  ;;  %v3166_v29 = vrot.slane %v3150_v30, 1  ;;  %v3167_v46 = vrot.slane %v3151_v31, 1  ;;  %v10822_v12 = vld [vmem:[#allocation166_spill] sm:$0xff] }
 0x638   : > { %v3219_v28 = vadd.f32 %v10815_v42, %v3135_v59  ;;  %v3223_v17 = vadd.f32 %v10816_v48, %v3139_v32  ;;  %v2986_v36 = vadd.f32 %v2970_v18, %v2926_v53  ;;  %v3142_v34 = vadd.f32 %v8248_v63, %v3028_v58  ;;  %v10824_v63 = vld [vmem:[#allocation154_spill] sm:$0xff]  ;;  %v10826_v58 = vld [vmem:[#allocation45_spill] sm:$0xff] }
 0x639   : > { %v10818_v50 = vrot.slane %v10817_v16, 1  ;;  %v3123_v20 = vadd.f32 %v3115_v43, %v2985_v38  ;;  %v3210_v11 = vrot.slane %v8357_v51, 1  ;;  %v3225_v55 = vadd.f32 %v3209_v6, %v3141_v8 }
 0x63a   : > { %v3235_v41 = vrot.slane %v3219_v28, 7  ;;  %v10820_v47 = vrot.slane %v10819_v33, 7  ;;  %v3239_v24 = vrot.slane %v3223_v17, 7  ;;  %v3240_v32 = vrot.slane %v3224_v25, 7 }
 0x63b   : > { %v3177_v57 = vadd.f32 %v10818_v50, %v3117_v23  ;;  %v10823_v15 = vrot.slane %v10822_v12, 7  ;;  %v3152_v54 = vmul.f32 %v10810_v9, %v8214_v19  ;;  %v10825_v51 = vrot.slane %v8200_v10, 1  ;;  %v10828_v23 = vld [vmem:[#allocation155_spill] sm:$0xff] }
 0x63c   : > { %v3253_v35 = vsel %vm3251_vm14, %v10821_v13, %v10820_v47  ;;  %v3182_v31 = vadd.f32 %v3166_v29, %v3122_v44  ;;  %v3226_v18 = vadd.f32 %v3210_v11, %v3142_v34  ;;  %v10827_v4 = vrot.slane %v10826_v58, 7 }
 0x63d   : > { %v3252_v22 = vsel %vm3251_vm14, %v3177_v57, %v3235_v41  ;;  %v3254_v21 = vsel %vm3251_vm14, %v10824_v63, %v10823_v15  ;;  %v3181_v53 = vadd.f32 %v10825_v51, %v3121_v61  ;;  %v3261_v30 = vsel %vm532_vm3, %v3253_v35, 0.0 }
 0x63e   : > { %v3260_v62 = vsel %vm532_vm3, %v3252_v22, 0.0  ;;  %v3255_v60 = vsel %vm3251_vm14, %v10828_v23, %v10827_v4  ;;  %v3124_v38 = vadd.f32 %v8228_v39, %v2986_v36  ;;  %v3263_v43 = vsel %vm532_vm3, %v3254_v21, 0.0 }
 0x63f   : > { %v3262_v59 = vadd.f32 %v3261_v30, %v3260_v62  ;;  %v3241_v19 = vrot.slane %v3225_v55, 7  ;;  %v3256_v10 = vsel %vm3251_vm14, %v3181_v53, %v3239_v24  ;;  %v3257_v9 = vsel %vm3251_vm14, %v3182_v31, %v3240_v32 }
 0x640   : > { %v3265_v8 = vsel %vm532_vm3, %v3255_v60, 0.0  ;;  %v3168_v5 = vrot.slane %v3152_v54, 1  ;;  %v3183_v61 = vadd.f32 %v3167_v46, %v3123_v20  ;;  %v3242_v26 = vrot.slane %v3226_v18, 7 }
 0x641   : > { %v3264_v6 = vadd.f32 %v3263_v43, %v3262_v59  ;;  %v3267_v28 = vsel %vm532_vm3, %v3256_v10, 0.0  ;;  %v3269_v48 = vsel %vm532_vm3, %v3257_v9, 0.0  ;;  %v8922_v27 = vstv %s8802_s17  ;;  %s9682_s17 = sld [smem:[#allocation9 + $0x23]] }
 0x642   : > { %v3184_v17 = vadd.f32 %v3168_v5, %v3124_v38  ;;  %v3258_v39 = vsel %vm3251_vm14, %v3183_v61, %v3241_v19 }
 0x643   : > { %v3266_v42 = vadd.f32 %v3265_v8, %v3264_v6  ;;  %v3271_v36 = vsel %vm532_vm3, %v3258_v39, 0.0 }
 0x644   : > { %v3259_v44 = vsel %vm3251_vm14, %v3184_v17, %v3242_v26 }
 0x645   : > { %v3268_v25 = vadd.f32 %v3267_v28, %v3266_v42  ;;  %v3273_v16 = vsel %vm532_vm3, %v3259_v44, 0.0 }
 0x647   : > { %v3270_v29 = vadd.f32 %v3269_v48, %v3268_v25 }
 0x649   : > { %v3272_v34 = vadd.f32 %v3271_v36, %v3270_v29 }
 0x64b   : > { %v3274_v50 = vadd.f32 %v3273_v16, %v3272_v34 }
 0x64d   : > { %3275 = vadd.xlane.f32.xlu1 %v3274_v50 }
 0x6da   : > { %v3276_v46 = vpop.xlane.xlu1 %3275 }
 0x6db   : > { %v3278_v57 = vmul.f32 0.0009765625, %v3276_v46  ;;  %v10829_v46 = vld [vmem:[#allocation21_spill] sm:$0xff] }
 0x6dd   : > { %v3279_v41 = vsub.f32 %v3252_v22, %v3278_v57  ;;  %v3280_v20 = vsub.f32 %v3253_v35, %v3278_v57  ;;  %v3281_v11 = vsub.f32 %v3254_v21, %v3278_v57  ;;  %v3282_v55 = vsub.f32 %v3255_v60, %v3278_v57 }
 0x6de   : > { %v3283_v33 = vsub.f32 %v3256_v10, %v3278_v57  ;;  %v3284_v32 = vsub.f32 %v3257_v9, %v3278_v57  ;;  %v3285_v51 = vsub.f32 %v3258_v39, %v3278_v57  ;;  %v3286_v22 = vsub.f32 %v3259_v44, %v3278_v57 }
 0x6df   : > { %v3287_v47 = vmul.f32 %v3279_v41, %v3279_v41  ;;  %v3288_v13 = vmul.f32 %v3280_v20, %v3280_v20  ;;  %v3289_v24 = vmul.f32 %v3281_v11, %v3281_v11  ;;  %v3290_v12 = vmul.f32 %v3282_v55, %v3282_v55 }
 0x6e0   : > { %v3291_v53 = vmul.f32 %v3283_v33, %v3283_v33  ;;  %v3292_v35 = vmul.f32 %v3284_v32, %v3284_v32  ;;  %v3293_v18 = vmul.f32 %v3285_v51, %v3285_v51  ;;  %v3294_v23 = vmul.f32 %v3286_v22, %v3286_v22 }
 0x6e1   : > { %v3295_v15 = vsel %vm532_vm3, %v3287_v47, 0.0  ;;  %v3296_v63 = vsel %vm532_vm3, %v3288_v13, 0.0  ;;  %v3298_v62 = vsel %vm532_vm3, %v3289_v24, 0.0  ;;  %v3300_v21 = vsel %vm532_vm3, %v3290_v12, 0.0 }
 0x6e2   : > { %v3297_v54 = vadd.f32 %v3296_v63, %v3295_v15  ;;  %v3302_v58 = vsel %vm532_vm3, %v3291_v53, 0.0  ;;  %v3304_v60 = vsel %vm532_vm3, %v3292_v35, 0.0  ;;  %v3306_v38 = vsel %vm532_vm3, %v3293_v18, 0.0 }
 0x6e3   : > { %v3308_v19 = vsel %vm532_vm3, %v3294_v23, 0.0 }
 0x6e4   : > { %v3299_v30 = vadd.f32 %v3298_v62, %v3297_v54 }
 0x6e6   : > { %v3301_v31 = vadd.f32 %v3300_v21, %v3299_v30 }
 0x6e8   : > { %v3303_v4 = vadd.f32 %v3302_v58, %v3301_v31 }
 0x6ea   : > { %v3305_v59 = vadd.f32 %v3304_v60, %v3303_v4 }
 0x6ec   : > { %v3307_v43 = vadd.f32 %v3306_v38, %v3305_v59 }
 0x6ee   : > { %v3309_v10 = vadd.f32 %v3308_v19, %v3307_v43 }
 0x6f0   : > { %3310 = vadd.xlane.f32.xlu0 %v3309_v10 }
 0x77d   : > { %v3311_v9 = vpop.xlane.xlu0 %3310 }
 0x77e   : > { %v3312_v6 = vmul.f32 0.0009765625, %v3311_v9 }
 0x780   : > { %v3313_v8 = vadd.f32 1e-05, %v3312_v6 }
 0x782   : > { %6227 = vrsqrt.f32 %v3313_v8 }
 0x78c   : > { %v6228_v5 = vpop.eup %6227 }
 0x78d   : > { %v3316_v61 = vmul.f32 %v6228_v5, %v3280_v20  ;;  %v3315_v26 = vmul.f32 %v6228_v5, %v3279_v41  ;;  %v3322_v42 = vmul.f32 %v6228_v5, %v3286_v22  ;;  %v3317_v28 = vmul.f32 %v6228_v5, %v3281_v11 }
 0x78e   : > { %v3318_v48 = vmul.f32 %v6228_v5, %v3282_v55  ;;  %v3319_v17 = vmul.f32 %v6228_v5, %v3283_v33  ;;  %v3320_v39 = vmul.f32 %v6228_v5, %v3284_v32  ;;  %v10830_v55 = vld [vmem:[#allocation22_spill] sm:$0xff]  ;;  %v3321_v63 = vmul.f32 %v6228_v5, %v3285_v51 }
 0x78f   : > { %v3332_v25 = vrot.slane %v3316_v61, 6  ;;  %v3331_v44 = vrot.slane %v3315_v26, 6  ;;  %v3338_v29 = vrot.slane %v3322_v42, 6  ;;  %v3333_v36 = vrot.slane %v3317_v28, 6 }
 0x790   : > { %v3334_v34 = vrot.slane %v3318_v48, 6  ;;  %v3335_v16 = vrot.slane %v3319_v17, 6  ;;  %v3336_v50 = vrot.slane %v3320_v39, 6  ;;  %v3337_v58 = vrot.slane %v3321_v63, 6 }
 0x791   : > { %v3348_v57 = vmul.f32 %v3332_v25, %v10829_v46  ;;  %v3347_v47 = vmul.f32 %v3331_v44, %v10829_v46  ;;  %v3354_v13 = vmul.f32 %v3338_v29, %v10829_v46  ;;  %v3349_v41 = vmul.f32 %v3333_v36, %v10829_v46 }
 0x792   : > { %v3350_v20 = vmul.f32 %v3334_v34, %v10829_v46  ;;  %v3351_v11 = vmul.f32 %v3335_v16, %v10829_v46  ;;  %v3352_v30 = vmul.f32 %v3336_v50, %v10829_v46  ;;  %v3353_v4 = vmul.f32 %v3337_v58, %v10829_v46 }
 0x793   : > { %v3356_v33 = vadd.f32 %v3348_v57, %v10830_v55  ;;  %v3355_v24 = vadd.f32 %v3347_v47, %v10830_v55  ;;  %v3362_v32 = vadd.f32 %v3354_v13, %v10830_v55  ;;  %v3357_v12 = vadd.f32 %v3349_v41, %v10830_v55 }
 0x794   : > { %v3358_v15 = vadd.f32 %v3350_v20, %v10830_v55  ;;  %v8517_v62 = vadd.f32 %v3351_v11, %v10830_v55  ;;  %v8522_v18 = vadd.f32 %v3352_v30, %v10830_v55  ;;  %v8527_v60 = vadd.f32 %v3353_v4, %v10830_v55 }
 0x795   : > { %v3373_v54 = vmul.f32 1.442695, %v3356_v33  ;;  %v3371_v53 = vmul.f32 1.442695, %v3355_v24  ;;  %v3385_v22 = vmul.f32 1.442695, %v3362_v32  ;;  %v8925_v46 = vstv %s8804_s14 }
 0x796   : > { %v3375_v35 = vmul.f32 1.442695, %v3357_v12  ;;  %v3377_v21 = vmul.f32 1.442695, %v3358_v15  ;;  %v3379_v31 = vmul.f32 1.442695, %v8517_v62 }
 0x797   : > { %6229 = vpow2.f32 %v3373_v54  ;;  %v3381_v51 = vmul.f32 1.442695, %v8522_v18  ;;  %vm3364_vm15 = vcmp.gt.f32.partialorder %v3356_v33, 0.0  ;;  %vm3363_vm0 = vcmp.gt.f32.partialorder %v3355_v24, 0.0 }
 0x798   : > { %6231 = vpow2.f32 %v3371_v53  ;;  %v3383_v26 = vmul.f32 1.442695, %v8527_v60  ;;  %vm3370_vm1 = vcmp.gt.f32.partialorder %v3362_v32, 0.0  ;;  %vm3365_vm4 = vcmp.gt.f32.partialorder %v3357_v12, 0.0 }
 0x799   : > { %6233 = vpow2.f32 %v3385_v22  ;;  %vm3366_vm5 = vcmp.gt.f32.partialorder %v3358_v15, 0.0 }
 0x79a   : > { %6235 = vpow2.f32 %v3375_v35 }
 0x79b   : > { %6237 = vpow2.f32 %v3377_v21 }
 0x79c   : > { %6239 = vpow2.f32 %v3379_v31 }
 0x79d   : > { %6241 = vpow2.f32 %v3381_v51 }
 0x79e   : > { %6243 = vpow2.f32 %v3383_v26  ;;  %v8705_v26 = vstv %s6041_s23  ;;  %s8870_s23 = sld [smem:[#allocation9 + $0x17]] }
 0x7a1   : > { %v6230_v23 = vpop.eup %6229 }
 0x7a2   : > { %v6232_v59 = vpop.eup %6231  ;;  %v6016_v38 = vadd.f32 -1.0, %v6230_v23 }
 0x7a3   : > { %v6234_v43 = vpop.eup %6233  ;;  %v6015_v19 = vadd.f32 -1.0, %v6232_v59  ;;  %v4094_v59 = vstv %s6039_s16  ;;  %s8846_s16 = sld [smem:[#allocation9 + $0x14]] }
 0x7a4   : > { %v6236_v10 = vpop.eup %6235  ;;  %v3396_v9 = vmul.f32 1.6732632, %v6016_v38  ;;  %v6022_v6 = vadd.f32 -1.0, %v6234_v43 }
 0x7a5   : > { %v6238_v8 = vpop.eup %6237  ;;  %v3395_v5 = vmul.f32 1.6732632, %v6015_v19  ;;  %v6017_v61 = vadd.f32 -1.0, %v6236_v10 }
 0x7a6   : > { %v3404_v42 = vsel %vm3364_vm15, %v3356_v33, %v3396_v9  ;;  %v3402_v28 = vmul.f32 1.6732632, %v6022_v6  ;;  %v6018_v48 = vadd.f32 -1.0, %v6238_v8  ;;  %v6240_v17 = vpop.eup %6239  ;;  %vm3367_vm15 = vcmp.gt.f32.partialorder %v8517_v62, 0.0 }
 0x7a7   : > { %v8530_v39 = vmul.f32 1.050701, %v3404_v42  ;;  %v3403_v25 = vsel %vm3363_vm0, %v3355_v24, %v3395_v5  ;;  %v3397_v44 = vmul.f32 1.6732632, %v6017_v61  ;;  %v6019_v20 = vadd.f32 -1.0, %v6240_v17  ;;  %v6242_v11 = vpop.eup %6241 }
 0x7a8   : > { %v8532_v29 = vmul.f32 1.050701, %v3403_v25  ;;  %v3410_v36 = vsel %vm3370_vm1, %v3362_v32, %v3402_v28  ;;  %v3398_v34 = vmul.f32 1.6732632, %v6018_v48  ;;  %v6020_v63 = vadd.f32 -1.0, %v6242_v11  ;;  %v6244_v30 = vpop.eup %6243 }
 0x7a9   : > { %v8535_v16 = vrot.slane %v8530_v39, 2  ;;  %v8537_v50 = vmul.f32 1.050701, %v3410_v36  ;;  %v3405_v57 = vsel %vm3365_vm4, %v3357_v12, %v3397_v44  ;;  %v3399_v12 = vmul.f32 1.6732632, %v6019_v20 }
 0x7aa   : > { %v8540_v47 = vrot.slane %v8532_v29, 2  ;;  %v8542_v13 = vmul.f32 1.050701, %v3405_v57  ;;  %v3406_v41 = vsel %vm3366_vm5, %v3358_v15, %v3398_v34  ;;  %v3400_v53 = vmul.f32 1.6732632, %v6020_v63 }
 0x7ab   : > { %3445 = vrot.lane.b32.xlu1 %v8535_v16, %s10831_s28  ;;  %v8549_v33 = vrot.slane %v8537_v50, 2  ;;  %v8551_v24 = vmul.f32 1.050701, %v3406_v41  ;;  %v3407_v54 = vsel %vm3367_vm15, %v8517_v62, %v3399_v12  ;;  %vm3368_vm0 = vcmp.gt.f32.partialorder %v8522_v18, 0.0 }
 0x7ac   : > { %3443 = vrot.lane.b32.xlu0 %v8540_v47, %s10831_s28  ;;  %v8554_v32 = vrot.slane %v8542_v13, 2  ;;  %v8569_v22 = vmul.f32 1.050701, %v3407_v54  ;;  %v3408_v35 = vsel %vm3368_vm0, %v8522_v18, %v3400_v53  ;;  %v6021_v21 = vadd.f32 -1.0, %v6244_v30 }
 0x7ad   : > { %v8561_v15 = vrot.slane %v8551_v24, 2  ;;  %v8580_v31 = vmul.f32 1.050701, %v3408_v35  ;;  %vm3369_vm1 = vcmp.gt.f32.partialorder %v8527_v60, 0.0  ;;  %v8680_v43 = vmul.f32 %v4094_v59, %v8530_v39 }
 0x7ae   : > { %v8578_v62 = vrot.slane %v8569_v22, 2  ;;  %v3401_v58 = vmul.f32 1.6732632, %v6021_v21  ;;  %v8686_v10 = vmul.f32 %v4094_v59, %v8532_v29  ;;  %v8691_v6 = vstv %s6040_s29  ;;  %s8848_s29 = sld [smem:[#allocation9 + $0x16]] }
 0x7af   : > { %3457 = vrot.lane.b32.xlu1 %v8549_v33, %s10831_s28  ;;  %v8587_v18 = vrot.slane %v8580_v31, 2  ;;  %v8695_v8 = vstv %s3475_s22  ;;  %v8700_v5 = vmul.f32 %v4094_v59, %v8542_v13  ;;  %v8709_v42 = vstv %s6023_s21  ;;  %s8868_s22 = sld [smem:[#allocation9 + $0x15]]  ;;  %s8884_s21 = sld [smem:[#allocation9 + $0x18]] }
 0x7b0   : > { %3447 = vrot.lane.b32.xlu0 %v8554_v32, %s10831_s28  ;;  %v3409_v51 = vsel %vm3369_vm1, %v8527_v60, %v3401_v58  ;;  %v8713_v48 = vmul.f32 %v4094_v59, %v8551_v24  ;;  %v8721_v36 = vmul.f32 %v4094_v59, %v8569_v22  ;;  %v8729_v20 = vmul.f32 %v4094_v59, %v8580_v31 }
 0x7b1   : > { %v8595_v4 = vmul.f32 1.050701, %v3409_v51  ;;  %10832 = vst [vmem:[#allocation81_spill] sm:$0xff] %v8700_v5  ;;  %v8733_v11 = vmul.f32 %v8691_v6, %v8532_v29  ;;  %v8741_v54 = vmul.f32 %v8705_v26, %v8532_v29  ;;  %v8745_v53 = vmul.f32 %v8691_v6, %v8530_v39 }
 0x7b2   : > { %10834 = vst [vmem:[#allocation82_spill] sm:$0xff] %v8713_v48  ;;  %10836 = vst [vmem:[#allocation167_spill] sm:$0xff] %v8721_v36  ;;  %v8755_v35 = vmul.f32 %v8705_v26, %v8530_v39  ;;  %v8779_v30 = vmul.f32 %v4094_v59, %v8537_v50  ;;  %v8783_v21 = vmul.f32 %v8691_v6, %v8542_v13  ;;  %v8879_v44 = vstv %s8760_s1  ;;  %s8898_s1 = sld [smem:[#allocation9 + $0x1b]] }
 0x7b3   : > { %3449 = vrot.lane.b32.xlu1 %v8561_v15, %s10831_s28  ;;  %v8602_v23 = vrot.slane %v8595_v4, 2  ;;  %10838 = vst [vmem:[#allocation46_spill] sm:$0xff] %v8729_v20  ;;  %10839 = vst [vmem:[#allocation27_spill] sm:$0xff] %v8733_v11  ;;  %v8770_v51 = vmul.f32 %v4094_v59, %v8595_v4  ;;  %v8798_v59 = vmul.f32 %v8705_v26, %v8542_v13  ;;  %v8882_v25 = vstv %s8762_s2  ;;  %s8980_s2 = sld [smem:[#allocation9 + $0x1e]] }
 0x7b4   : > { %3595 = vrot.lane.b32.xlu0 %v8540_v47, %s10396_s25  ;;  %10840 = vst [vmem:[#allocation51_spill] sm:$0xff] %v8741_v54  ;;  %10841 = vst [vmem:[#allocation41_spill] sm:$0xff] %v8745_v53  ;;  %v8838_v63 = vmul.f32 %v8691_v6, %v8580_v31  ;;  %v8857_v12 = vmul.f32 %v8691_v6, %v8537_v50  ;;  %v8876_v57 = vmul.f32 %v8705_v26, %v8537_v50 }
 0x7b5   : > { %10842 = vst [vmem:[#allocation98_spill] sm:$0xff] %v8755_v35  ;;  %10845 = vst [vmem:[#allocation74_spill] sm:$0xff] %v8770_v51  ;;  %v8891_v28 = vstv %s8772_s27  ;;  %v8952_v0 = vstv %s8848_s29  ;;  %s9521_s27 = sld [smem:[#allocation9 + $0x1f]] }
 0x7b6   : > { %10846 = vst [vmem:[#allocation42_spill] sm:$0xff] %v8779_v30  ;;  %10847 = vst [vmem:[#allocation126_spill] sm:$0xff] %v8783_v21 }
 0x7b7   : > { %3597 = vrot.lane.b32.xlu1 %v8535_v16, %s10396_s25  ;;  %10848 = vst [vmem:[#allocation85_spill] sm:$0xff] %v8798_v59  ;;  %10853 = vst [vmem:[#allocation144_spill] sm:$0xff] %v8838_v63 }
 0x7b8   : > { %3609 = vrot.lane.b32.xlu0 %v8549_v33, %s10396_s25  ;;  %10856 = vst [vmem:[#allocation91_spill] sm:$0xff] %v8857_v12  ;;  %10858 = vst [vmem:[#allocation95_spill] sm:$0xff] %v8876_v57 }
 0x7b9   : > { %10861 = vst [vmem:[#allocation101_spill] sm:$0xff] %v8952_v0  ;;  %v9016_v0 = vstv %s8980_s2 }
 0x7ba   : > { %10874 = vst [vmem:[#allocation87_spill] sm:$0xff] %v9016_v0 }
 0x7bb   : > { %3451 = vrot.lane.b32.xlu1 %v8578_v62, %s10831_s28 }
 0x7bc   : > { %3599 = vrot.lane.b32.xlu0 %v8554_v32, %s10396_s25 }
 0x7bf   : > { %3453 = vrot.lane.b32.xlu1 %v8587_v18, %s10831_s28 }
 0x7c0   : > { %3601 = vrot.lane.b32.xlu0 %v8561_v15, %s10396_s25 }
 0x7c3   : > { %3747 = vrot.lane.b32.xlu1 %v8540_v47, %s10384_s3 }
 0x7c4   : > { %3749 = vrot.lane.b32.xlu0 %v8535_v16, %s10384_s3 }
 0x7c7   : > { %3761 = vrot.lane.b32.xlu1 %v8549_v33, %s10384_s3 }
 0x7c8   : > { %3455 = vrot.lane.b32.xlu0 %v8602_v23, %s10831_s28  ;;  %s8818_s28 = sld [smem:[#allocation9 + $0xe]] }
 0x7cb   : > { %3603 = vrot.lane.b32.xlu1 %v8578_v62, %s10396_s25 }
 0x7cc   : > { %3751 = vrot.lane.b32.xlu0 %v8554_v32, %s10384_s3 }
 0x7cf   : > { %3605 = vrot.lane.b32.xlu1 %v8587_v18, %s10396_s25 }
 0x7d0   : > { %3753 = vrot.lane.b32.xlu0 %v8561_v15, %s10384_s3 }
 0x7d3   : > { %3899 = vrot.lane.b32.xlu1 %v8540_v47, %s10415_s0 }
 0x7d4   : > { %3901 = vrot.lane.b32.xlu0 %v8535_v16, %s10415_s0 }
 0x7d7   : > { %3913 = vrot.lane.b32.xlu1 %v8549_v33, %s10415_s0 }
 0x7d8   : > { %3607 = vrot.lane.b32.xlu0 %v8602_v23, %s10396_s25  ;;  %s8697_s25 = sld [smem:[#allocation9 + $0x1]] }
 0x7db   : > { %3755 = vrot.lane.b32.xlu1 %v8578_v62, %s10384_s3 }
 0x7dc   : > { %3903 = vrot.lane.b32.xlu0 %v8554_v32, %s10415_s0 }
 0x7df   : > { %3757 = vrot.lane.b32.xlu1 %v8587_v18, %s10384_s3 }
 0x7e0   : > { %3905 = vrot.lane.b32.xlu0 %v8561_v15, %s10415_s0 }
 0x7e3   : > { %3759 = vrot.lane.b32.xlu1 %v8602_v23, %s10384_s3  ;;  %s6038_s3 = sld [smem:[#allocation9 + $0x10]] }
 0x7e4   : > { %3907 = vrot.lane.b32.xlu0 %v8578_v62, %s10415_s0 }
 0x7e7   : > { %3909 = vrot.lane.b32.xlu1 %v8587_v18, %s10415_s0 }
 0x7e8   : > { %4219 = vrot.lane.b32.xlu0 %v8540_v47, %s10457_s18 }
 0x7e9   : > { %v4052_v60 = vstv %s6038_s3  ;;  %s8832_s3 = sld [smem:[#allocation9 + $0xf]] }
 0x7ea   : > { %v8677_v38 = vmul.f32 %v4052_v60, %v8530_v39  ;;  %v8683_v19 = vmul.f32 %v4052_v60, %v8532_v29  ;;  %v8689_v9 = vmul.f32 %v4052_v60, %v8542_v13  ;;  %v8703_v61 = vmul.f32 %v4052_v60, %v8551_v24 }
 0x7eb   : > { %4221 = vrot.lane.b32.xlu1 %v8535_v16, %s10457_s18  ;;  %v8716_v17 = vmul.f32 %v4052_v60, %v8569_v22  ;;  %v8724_v34 = vmul.f32 %v4052_v60, %v8580_v31  ;;  %v8758_v29 = vmul.f32 %v4052_v60, %v8595_v4  ;;  %v8767_v58 = vmul.f32 %v4052_v60, %v8537_v50 }
 0x7ec   : > { %4223 = vrot.lane.b32.xlu0 %v8554_v32, %s10457_s18  ;;  %10833 = vst [vmem:[#allocation80_spill] sm:$0xff] %v8703_v61  ;;  %v8788_v60 = vstv %s8697_s25  ;;  %v8810_v39 = vmul.f32 %v8691_v6, %v8551_v24  ;;  %v8842_v13 = vmul.f32 %v8705_v26, %v8580_v31  ;;  %v8861_v31 = vmul.f32 %v8705_v26, %v8595_v4  ;;  %s8886_s25 = sld [smem:[#allocation9 + $0x1a]] }
 0x7ed   : > { %10835 = vst [vmem:[#allocation165_spill] sm:$0xff] %v8716_v17  ;;  %10837 = vst [vmem:[#allocation97_spill] sm:$0xff] %v8724_v34  ;;  %v8894_v50 = vstv %s8774_s26  ;;  %s9664_s26 = sld [smem:[#allocation9 + $0x20]] }
 0x7ee   : > { %10843 = vst [vmem:[#allocation43_spill] sm:$0xff] %v8758_v29  ;;  %10844 = vst [vmem:[#allocation146_spill] sm:$0xff] %v8767_v58  ;;  %v8961_v58 = vstv %s8868_s22  ;;  %v8964_v29 = vstv %s8870_s23  ;;  %s395_s23 = sand.u32 1, %s6420_s10  }
 0x7ef   : > { %3911 = vrot.lane.b32.xlu1 %v8602_v23, %s10415_s0  ;;  %s8749_s0 = sld [smem:[#allocation9 + $0x3]]  ;;  %10849 = vst [vmem:[#allocation86_spill] sm:$0xff] %v8810_v39  ;;  %10854 = vst [vmem:[#allocation108_spill] sm:$0xff] %v8842_v13  ;;  %v8939_v56 = vstv %s8832_s3  ;;  %v8967_v39 = vstv %s8884_s21  ;;  %s5842_s21 = sshll.u32 %s395_s23, 7 }
 0x7f0   : > { %4225 = vrot.lane.b32.xlu0 %v8561_v15, %s10457_s18  ;;  %10857 = vst [vmem:[#allocation24_spill] sm:$0xff] %v8861_v31  ;;  %10864 = vst [vmem:[#allocation50_spill] sm:$0xff] %v8961_v58 }
 0x7f1   : > { %10865 = vst [vmem:[#allocation104_spill] sm:$0xff] %v8964_v29  ;;  %10866 = vst [vmem:[#allocation32_spill] sm:$0xff] %v8967_v39 }
 0x7f3   : > { %4227 = vrot.lane.b32.xlu1 %v8578_v62, %s10457_s18 }
 0x7f4   : > { %4371 = vrot.lane.b32.xlu0 %v8540_v47, %s10385_s4 }
 0x7f5   : > { %v8866_v41 = vstv %s8749_s0  ;;  %s8896_s0 = sld [smem:[#allocation9 + $0x19]] }
 0x7f7   : > { %4373 = vrot.lane.b32.xlu1 %v8535_v16, %s10385_s4 }
 0x7f8   : > { %4375 = vrot.lane.b32.xlu0 %v8554_v32, %s10385_s4 }
 0x7fb   : > { %4229 = vrot.lane.b32.xlu1 %v8587_v18, %s10457_s18 }
 0x7fc   : > { %4377 = vrot.lane.b32.xlu0 %v8561_v15, %s10385_s4 }
 0x7ff   : > { %4231 = vrot.lane.b32.xlu1 %v8602_v23, %s10457_s18 }
 0x800   : > { %4379 = vrot.lane.b32.xlu0 %v8578_v62, %s10385_s4 }
 0x803   : > { %4523 = vrot.lane.b32.xlu1 %v8540_v47, %s10482_s20 }
 0x804   : > { %4525 = vrot.lane.b32.xlu0 %v8535_v16, %s10482_s20 }
 0x807   : > { %4527 = vrot.lane.b32.xlu1 %v8554_v32, %s10482_s20 }
 0x808   : > { %4233 = vrot.lane.b32.xlu0 %v8549_v33, %s10457_s18  ;;  %s8816_s18 = sld [smem:[#allocation9 + $0xc]] }
 0x80b   : > { %4381 = vrot.lane.b32.xlu1 %v8587_v18, %s10385_s4 }
 0x80c   : > { %4529 = vrot.lane.b32.xlu0 %v8561_v15, %s10482_s20 }
 0x80e   : > { %v8928_v40 = vstv %s8816_s18 }
 0x80f   : > { %4383 = vrot.lane.b32.xlu1 %v8602_v23, %s10385_s4 }
 0x810   : > { %4531 = vrot.lane.b32.xlu0 %v8578_v62, %s10482_s20 }
 0x813   : > { %4675 = vrot.lane.b32.xlu1 %v8540_v47, %s10397_s15  ;;  %v8828_v47 = vmul.f32 %v8705_v26, %v8569_v22 }
 0x814   : > { %4677 = vrot.lane.b32.xlu0 %v8535_v16, %s10397_s15  ;;  %v8814_v16 = vmul.f32 %v8705_v26, %v8551_v24  ;;  %v8853_v24 = vmul.f32 %v8691_v6, %v8595_v4  ;;  %v8916_v26 = vstv %s8792_s24  ;;  %s9672_s24 = sld [smem:[#allocation9 + $0x21]] }
 0x815   : > { %10852 = vst [vmem:[#allocation147_spill] sm:$0xff] %v8828_v47 }
 0x816   : > { %10850 = vst [vmem:[#allocation156_spill] sm:$0xff] %v8814_v16  ;;  %10855 = vst [vmem:[#allocation141_spill] sm:$0xff] %v8853_v24  ;;  %v8949_v24 = vstv %s8846_s16 }
 0x817   : > { %4679 = vrot.lane.b32.xlu1 %v8554_v32, %s10397_s15  ;;  %v8824_v32 = vmul.f32 %v8691_v6, %v8569_v22  ;;  %10860 = vst [vmem:[#allocation99_spill] sm:$0xff] %v8949_v24 }
 0x818   : > { %4385 = vrot.lane.b32.xlu0 %v8549_v33, %s10385_s4  ;;  %s8830_s4 = sld [smem:[#allocation9 + $0xd]] }
 0x819   : > { %10851 = vst [vmem:[#allocation105_spill] sm:$0xff] %v8824_v32  ;;  %v10863_v32 = vld [vmem:[#allocation67_spill] sm:$0xff] }
 0x81b   : > { %4533 = vrot.lane.b32.xlu1 %v8587_v18, %s10482_s20 }
 0x81c   : > { %4681 = vrot.lane.b32.xlu0 %v8561_v15, %s10397_s15  ;;  %v8913_v15 = vstv %s8790_s11  ;;  %s9670_s11 = sld [smem:[#allocation9 + $0x22]] }
 0x81d   : > { %v3446_v4 = vpop.permute.xlu1 %3445 }
 0x81e   : > { %v3444_v6 = vpop.permute.xlu0 %3443  ;;  %v8936_v31 = vstv %s8830_s4 }
 0x81f   : > { %v3465_v22 = vsel %vm1540_vm6, %v3444_v6, %v3446_v4  ;;  %4535 = vrot.lane.b32.xlu1 %v8602_v23, %s10482_s20 }
 0x820   : > { %v3468_v37 = vmul.f32 %v3465_v22, %v10859_v7  ;;  %4683 = vrot.lane.b32.xlu0 %v8578_v62, %s10397_s15  ;;  %v8931_v7 = vstv %s8818_s28 }
 0x821   : > { %v8919_v55 = vpop.permute.xlu1 %3457 }
 0x822   : > { %v3514_v62 = vmul.f32 %v8788_v60, %v3468_v37  ;;  %v3556_v22 = vmul.f32 %v8866_v41, %v3468_v37  ;;  %v3448_v45 = vpop.permute.xlu0 %3447  ;;  %v3466_v57 = vsel %vm1540_vm6, %v8919_v55, %v3444_v6  ;;  %v3496_v30 = vmul.f32 %v8709_v42, %v3468_v37 }
 0x823   : > { %v3464_v12 = vsel %vm1540_vm6, %v3446_v4, %v3448_v45  ;;  %4537 = vrot.lane.b32.xlu1 %v8549_v33, %s10482_s20  ;;  %v3467_v47 = vmul.f32 %v3466_v57, %v10862_v14  ;;  %v3478_v4 = vmul.f32 %v8695_v8, %v3468_v37  ;;  %v8973_v14 = vstv %s8896_s0  ;;  %s8978_s20 = sld [smem:[#allocation9 + $0x1c]]  ;;  %s6097_s0 = sshll.u32 %s6523_s13, 11 }
 0x824   : > { %v3530_v13 = vrot.slane %v3514_v62, 1  ;;  %v3572_v63 = vrot.slane %v3556_v22, 1  ;;  %v3469_v6 = vmul.f32 %v3464_v12, %v10863_v32  ;;  %4685 = vrot.lane.b32.xlu0 %v8587_v18, %s10397_s15  ;;  %v8970_v62 = vstv %s8886_s25  ;;  %10868 = vst [vmem:[#allocation94_spill] sm:$0xff] %v8973_v14  ;;  %s9984_s25 = scalar_lea.vmem [#allocation11], %s5842_s21  ;;  %s10013_s13 = scalar_lea.sflag [#allocation4], %s395_s23 }
 0x825   : > { %v3450_v51 = vpop.permute.xlu1 %3449  ;;  %10867 = vst [vmem:[#allocation145_spill] sm:$0xff] %v8970_v62  ;;  %v8976_v57 = vstv %s8898_s1  ;;  %v3513_v12 = vmul.f32 %v8788_v60, %v3467_v47  ;;  %v3555_v32 = vmul.f32 %v8866_v41, %v3467_v47  ;;  %v3477_v22 = vmul.f32 %v8695_v8, %v3467_v47  ;;  %s5712_s1 = sshll.u32 %s9984_s25, 4  ;;  %s10005_s1 = int_to_ptr.vmem [resolvable:$true] %s5712_s1 }
 0x826   : > { %v3596_v16 = vpop.permute.xlu0 %3595  ;;  %10869 = vst [vmem:[#allocation90_spill] sm:$0xff] %v8976_v57  ;;  %v3546_v18 = vadd.f32 %v3530_v13, %v3478_v4  ;;  %v3588_v37 = vadd.f32 %v3572_v63, %v3496_v30  ;;  %v3515_v62 = vmul.f32 %v8788_v60, %v3469_v6  ;;  %v3557_v14 = vmul.f32 %v8866_v41, %v3469_v6  ;;  %v10870_v4 = vld [vmem:[#allocation30_spill] sm:$0xff] }
 0x827   : > { %4687 = vrot.lane.b32.xlu1 %v8602_v23, %s10397_s15  ;;  %v3463_v57 = vsel %vm1540_vm6, %v3448_v45, %v3450_v51  ;;  %v3495_v63 = vmul.f32 %v8709_v42, %v3467_v47  ;;  %v3529_v30 = vrot.slane %v3513_v12, 1  ;;  %v3571_v13 = vrot.slane %v3555_v32, 1 }
 0x828   : > { %4689 = vrot.lane.b32.xlu0 %v8549_v33, %s10397_s15  ;;  %v3470_v39 = vmul.f32 %v3463_v57, %v10870_v4  ;;  %v3479_v23 = vmul.f32 %v8695_v8, %v3469_v6  ;;  %v3531_v21 = vrot.slane %v3515_v62, 1  ;;  %v3573_v1 = vrot.slane %v3557_v14, 1  ;;  %v10871_v4 = vld [vmem:[#allocation38_spill] sm:$0xff]  ;;  %s9518_s15 = sld [smem:[#allocation9 + $0x1d]] }
 0x829   : > { %v3598_v59 = vpop.permute.xlu1 %3597  ;;  %v3545_v45 = vadd.f32 %v3529_v30, %v3477_v22  ;;  %v3587_v58 = vadd.f32 %v3571_v13, %v3495_v63  ;;  %v3497_v33 = vmul.f32 %v8709_v42, %v3469_v6  ;;  %v9010_v30 = vstv %s8978_s20  ;;  %v10873_v13 = vld [vmem:[#allocation113_spill] sm:$0xff] }
 0x82a   : > { %v3617_v20 = vsel %vm1737_vm7, %v3596_v16, %v3598_v59  ;;  %v8998_v29 = vpop.permute.xlu0 %3609  ;;  %v3480_v47 = vmul.f32 %v8695_v8, %v3470_v39  ;;  %v3547_v12 = vadd.f32 %v3531_v21, %v3479_v23  ;;  %v3498_v57 = vmul.f32 %v8709_v42, %v3470_v39  ;;  %10872 = vst [vmem:[#allocation103_spill] sm:$0xff] %v9010_v30 }
 0x82b   : > { %v3516_v32 = vmul.f32 %v8788_v60, %v3470_v39  ;;  %v3558_v62 = vmul.f32 %v8866_v41, %v3470_v39  ;;  %v3589_v14 = vadd.f32 %v3573_v1, %v3497_v33  ;;  %v3620_v34 = vmul.f32 %v3617_v20, %v10871_v4 }
 0x82c   : > { %v3618_v22 = vsel %vm1737_vm7, %v8998_v29, %v3596_v16 }
 0x82d   : > { %v3452_v63 = vpop.permute.xlu1 %3451  ;;  %v3532_v6 = vrot.slane %v3516_v32, 1  ;;  %v3619_v36 = vmul.f32 %v3618_v22, %v10873_v13  ;;  %v3630_v1 = vmul.f32 %v8879_v44, %v3620_v34  ;;  %v3648_v20 = vmul.f32 %v8882_v25, %v3620_v34 }
 0x82e   : > { %v3462_v21 = vsel %vm1540_vm6, %v3450_v51, %v3452_v63  ;;  %v3600_v23 = vpop.permute.xlu0 %3599  ;;  %v3666_v39 = vmul.f32 %v8891_v28, %v3620_v34  ;;  %v3708_v16 = vmul.f32 %v8894_v50, %v3620_v34  ;;  %v3574_v4 = vrot.slane %v3558_v62, 1 }
 0x82f   : > { %v9022_v33 = vadd.f32 %v3532_v6, %v3480_v47  ;;  %v3629_v32 = vmul.f32 %v8879_v44, %v3619_v36  ;;  %v3647_v22 = vmul.f32 %v8882_v25, %v3619_v36  ;;  %v3638_v13 = vadd.f32 %v3630_v1, %v3546_v18  ;;  %v10875_v6 = vld [vmem:[#allocation88_spill] sm:$0xff] }
 0x830   : > { %v3656_v51 = vadd.f32 %v3648_v20, %v3588_v37  ;;  %v3682_v30 = vrot.slane %v3666_v39, 1  ;;  %v3724_v24 = vrot.slane %v3708_v16, 1  ;;  %v3665_v53 = vmul.f32 %v8891_v28, %v3619_v36  ;;  %v10876_v20 = vld [vmem:[#allocation39_spill] sm:$0xff] }
 0x831   : > { %v9026_v0 = vpop.permute.xlu1 %3453  ;;  %v3637_v17 = vadd.f32 %v3629_v32, %v3545_v45  ;;  %v3655_v35 = vadd.f32 %v3647_v22, %v3587_v58  ;;  %v3707_v54 = vmul.f32 %v8894_v50, %v3619_v36  ;;  %v3471_v11 = vmul.f32 %v3462_v21, %v10875_v6 }
 0x832   : > { %v9030_v34 = vpop.permute.xlu0 %3601  ;;  %v3698_v47 = vadd.f32 %v3682_v30, %v3638_v13  ;;  %v3740_v62 = vadd.f32 %v3724_v24, %v3656_v51  ;;  %v3616_v18 = vsel %vm1737_vm7, %v3598_v59, %v3600_v23  ;;  %v3681_v37 = vrot.slane %v3665_v53, 1 }
 0x833   : > { %v3723_v1 = vrot.slane %v3707_v54, 1  ;;  %v3621_v39 = vmul.f32 %v3616_v18, %v10876_v20  ;;  %v3461_v58 = vsel %vm1540_vm6, %v3452_v63, %v9026_v0  ;;  %v3481_v45 = vmul.f32 %v8695_v8, %v3471_v11 }
 0x834   : > { %v3499_v36 = vmul.f32 %v8709_v42, %v3471_v11  ;;  %v3517_v30 = vmul.f32 %v8788_v60, %v3471_v11  ;;  %v3559_v24 = vmul.f32 %v8866_v41, %v3471_v11  ;;  %v9043_v16 = vadd.f32 %v3681_v37, %v3637_v17  ;;  %v10877_v11 = vld [vmem:[#allocation137_spill] sm:$0xff] }
 0x835   : > { %v3748_v21 = vpop.permute.xlu1 %3747  ;;  %v9045_v59 = vadd.f32 %v3723_v1, %v3655_v35  ;;  %v3631_v54 = vmul.f32 %v8879_v44, %v3621_v39  ;;  %v3649_v53 = vmul.f32 %v8882_v25, %v3621_v39  ;;  %v3667_v13 = vmul.f32 %v8891_v28, %v3621_v39 }
 0x836   : > { %v9049_v32 = vpop.permute.xlu0 %3749  ;;  %v3533_v63 = vrot.slane %v3517_v30, 1  ;;  %v3575_v22 = vrot.slane %v3559_v24, 1  ;;  %v3709_v51 = vmul.f32 %v8894_v50, %v3621_v39  ;;  %v3472_v20 = vmul.f32 %v3461_v58, %v10877_v11 }
 0x837   : > { %v3639_v6 = vadd.f32 %v3631_v54, %v3547_v12  ;;  %v3657_v18 = vadd.f32 %v3649_v53, %v3589_v14  ;;  %v3615_v17 = vsel %vm1737_vm7, %v3600_v23, %v9030_v34  ;;  %v3590_v35 = vadd.f32 %v3574_v4, %v3498_v57  ;;  %v10878_v23 = vld [vmem:[#allocation68_spill] sm:$0xff]  ;;  %v10879_v53 = vld [vmem:[#allocation69_spill] sm:$0xff] }
 0x838   : > { %v9057_v37 = vadd.f32 %v3533_v63, %v3481_v45  ;;  %v3683_v1 = vrot.slane %v3667_v13, 1  ;;  %v3725_v3 = vrot.slane %v3709_v51, 1  ;;  %v9061_v30 = vadd.f32 %v3575_v22, %v3499_v36 }
 0x839   : > { %v9059_v48 = vpop.permute.xlu1 %3761  ;;  %v3482_v24 = vmul.f32 %v8695_v8, %v3472_v20  ;;  %v3518_v12 = vmul.f32 %v8788_v60, %v3472_v20  ;;  %v3560_v14 = vmul.f32 %v8866_v41, %v3472_v20  ;;  %v3622_v57 = vmul.f32 %v3615_v17, %v10878_v23 }
 0x83a   : > { %v9066_v39 = vadd.f32 %v3683_v1, %v3639_v6  ;;  %v9068_v58 = vadd.f32 %v3725_v3, %v3657_v18  ;;  %v3769_v4 = vsel %vm1935_vm10, %v3748_v21, %v9049_v32  ;;  %v3456_v45 = vpop.permute.xlu0 %3455  ;;  %v3500_v36 = vmul.f32 %v8709_v42, %v3472_v20 }
 0x83b   : > { %v3534_v54 = vrot.slane %v3518_v12, 1  ;;  %v3772_v63 = vmul.f32 %v3769_v4, %v10879_v53  ;;  %v3770_v22 = vsel %vm1935_vm10, %v9059_v48, %v3748_v21  ;;  %v3632_v13 = vmul.f32 %v8879_v44, %v3622_v57 }
 0x83c   : > { %v3650_v3 = vmul.f32 %v8882_v25, %v3622_v57  ;;  %v3668_v51 = vmul.f32 %v8891_v28, %v3622_v57  ;;  %v3710_v6 = vmul.f32 %v8894_v50, %v3622_v57  ;;  %v3576_v11 = vrot.slane %v3560_v14, 1  ;;  %v10880_v14 = vld [vmem:[#allocation142_spill] sm:$0xff] }
 0x83d   : > { %v9083_v18 = vadd.f32 %v3534_v54, %v3482_v24  ;;  %v3782_v20 = vmul.f32 %v8913_v15, %v3772_v63  ;;  %v3800_v17 = vmul.f32 %v8916_v26, %v3772_v63  ;;  %v3640_v1 = vadd.f32 %v3632_v13, %v9022_v33  ;;  %v3604_v5 = vpop.permute.xlu1 %3603 }
 0x83e   : > { %v3658_v12 = vadd.f32 %v3650_v3, %v3590_v35  ;;  %v3684_v23 = vrot.slane %v3668_v51, 1  ;;  %v3726_v21 = vrot.slane %v3710_v6, 1  ;;  %v3818_v61 = vmul.f32 %v8922_v27, %v3772_v63  ;;  %v3752_v35 = vpop.permute.xlu0 %3751 }
 0x83f   : > { %v3790_v4 = vadd.f32 %v3782_v20, %v3698_v47  ;;  %v3808_v53 = vadd.f32 %v3800_v17, %v3740_v62  ;;  %v3860_v52 = vmul.f32 %v8925_v46, %v3772_v63  ;;  %v3771_v54 = vmul.f32 %v3770_v22, %v10880_v14  ;;  %v10881_v62 = vld [vmem:[#allocation116_spill] sm:$0xff] }
 0x840   : > { %v9090_v57 = vadd.f32 %v3684_v23, %v3640_v1  ;;  %v9092_v24 = vadd.f32 %v3726_v21, %v3658_v12  ;;  %v3459_v33 = vsel %vm1540_vm6, %v3456_v45, %v8919_v55  ;;  %v3834_v13 = vrot.slane %v3818_v61, 1 }
 0x841   : > { %v3876_v3 = vrot.slane %v3860_v52, 1  ;;  %v3460_v47 = vsel %vm1540_vm6, %v9026_v0, %v3456_v45  ;;  %v3474_v63 = vmul.f32 %v3459_v33, %v10881_v62  ;;  %v3781_v51 = vmul.f32 %v8913_v15, %v3771_v54  ;;  %v10882_v52 = vld [vmem:[#allocation138_spill] sm:$0xff] }
 0x842   : > { %v3799_v6 = vmul.f32 %v8916_v26, %v3771_v54  ;;  %v3817_v20 = vmul.f32 %v8922_v27, %v3771_v54  ;;  %v3859_v22 = vmul.f32 %v8925_v46, %v3771_v54  ;;  %v9106_v17 = vadd.f32 %v3576_v11, %v3500_v36  ;;  %v9119_v11 = vpop.permute.xlu1 %3605  ;;  %v9127_v33 = vpop.permute.xlu0 %3753 }
 0x843   : > { %v9108_v55 = vadd.f32 %v3834_v13, %v3790_v4  ;;  %v9110_v61 = vadd.f32 %v3876_v3, %v3808_v53  ;;  %v3473_v1 = vmul.f32 %v3460_v47, %v10882_v52  ;;  %v3789_v0 = vadd.f32 %v3781_v51, %v9043_v16 }
 0x844   : > { %v3807_v45 = vadd.f32 %v3799_v6, %v9045_v59  ;;  %v3833_v12 = vrot.slane %v3817_v20, 1  ;;  %v3875_v23 = vrot.slane %v3859_v22, 1  ;;  %v3484_v14 = vmul.f32 %v8695_v8, %v3474_v63  ;;  %v10883_v6 = vld [vmem:[#allocation96_spill] sm:$0xff] }
 0x845   : > { %v3483_v21 = vmul.f32 %v8695_v8, %v3473_v1  ;;  %v3501_v54 = vmul.f32 %v8709_v42, %v3473_v1  ;;  %v3519_v36 = vmul.f32 %v8788_v60, %v3473_v1  ;;  %v3520_v16 = vmul.f32 %v8788_v60, %v3474_v63  ;;  %v10884_v60 = vld [vmem:[#allocation70_spill] sm:$0xff] }
 0x846   : > { %v9121_v4 = vadd.f32 %v3833_v12, %v3789_v0  ;;  %v9123_v53 = vadd.f32 %v3875_v23, %v3807_v45  ;;  %v3561_v59 = vmul.f32 %v8866_v41, %v3473_v1  ;;  %v3562_v3 = vmul.f32 %v8866_v41, %v3474_v63 }
 0x847   : > { %v3535_v13 = vrot.slane %v3519_v36, 1  ;;  %v3614_v8 = vsel %vm1737_vm7, %v9030_v34, %v3604_v5  ;;  %v3768_v47 = vsel %vm1935_vm10, %v9049_v32, %v3752_v35  ;;  %v3536_v62 = vrot.slane %v3520_v16, 1  ;;  %v3900_v36 = vpop.permute.xlu1 %3899 }
 0x848   : > { %v3577_v51 = vrot.slane %v3561_v59, 1  ;;  %v3623_v20 = vmul.f32 %v3614_v8, %v10883_v6  ;;  %v3773_v22 = vmul.f32 %v3768_v47, %v10884_v60  ;;  %v3502_v52 = vmul.f32 %v8709_v42, %v3474_v63 }
 0x849   : > { %v9139_v1 = vadd.f32 %v3535_v13, %v3483_v21  ;;  %v3578_v0 = vrot.slane %v3562_v3, 1  ;;  %v3613_v41 = vsel %vm1737_vm7, %v3604_v5, %v9119_v11  ;;  %v9144_v34 = vadd.f32 %v3536_v62, %v3484_v14  ;;  %v9160_v13 = vpop.permute.xlu0 %3901 }
 0x84a   : > { %v3633_v45 = vmul.f32 %v8879_v44, %v3623_v20  ;;  %v3651_v32 = vmul.f32 %v8882_v25, %v3623_v20  ;;  %v3767_v12 = vsel %vm1935_vm10, %v3752_v35, %v9127_v33  ;;  %v9151_v23 = vadd.f32 %v3577_v51, %v3501_v54  ;;  %v10885_v51 = vld [vmem:[#allocation150_spill] sm:$0xff] }
 0x84b   : > { %v3669_v42 = vmul.f32 %v8891_v28, %v3623_v20  ;;  %v3711_v63 = vmul.f32 %v8894_v50, %v3623_v20  ;;  %v3783_v21 = vmul.f32 %v8913_v15, %v3773_v22  ;;  %v3801_v16 = vmul.f32 %v8916_v26, %v3773_v22 }
 0x84c   : > { %v3641_v5 = vadd.f32 %v3633_v45, %v9057_v37  ;;  %v3659_v14 = vadd.f32 %v3651_v32, %v9061_v30  ;;  %v3819_v59 = vmul.f32 %v8922_v27, %v3773_v22  ;;  %v3861_v8 = vmul.f32 %v8925_v46, %v3773_v22  ;;  %v10886_v37 = vld [vmem:[#allocation76_spill] sm:$0xff] }
 0x84d   : > { %v3685_v35 = vrot.slane %v3669_v42, 1  ;;  %v3727_v54 = vrot.slane %v3711_v63, 1  ;;  %v3791_v3 = vadd.f32 %v3783_v21, %v9066_v39  ;;  %v3809_v47 = vadd.f32 %v3801_v16, %v9068_v58 }
 0x84e   : > { %v3835_v62 = vrot.slane %v3819_v59, 1  ;;  %v3624_v6 = vmul.f32 %v3613_v41, %v10885_v51  ;;  %v3774_v20 = vmul.f32 %v3767_v12, %v10886_v37  ;;  %v3877_v45 = vrot.slane %v3861_v8, 1  ;;  %v10887_v37 = vld [vmem:[#allocation77_spill] sm:$0xff] }
 0x84f   : > { %v9167_v30 = vadd.f32 %v3685_v35, %v3641_v5  ;;  %v9169_v60 = vadd.f32 %v3727_v54, %v3659_v14  ;;  %v3921_v32 = vsel %vm2133_vm11, %v3900_v36, %v9160_v13  ;;  %v9184_v5 = vpop.permute.xlu1 %3913  ;;  %v3594_v54 = vadd.f32 %v3578_v0, %v3502_v52  ;;  %v10888_v0 = vld [vmem:[#allocation162_spill] sm:$0xff] }
 0x850   : > { %v9174_v42 = vadd.f32 %v3835_v62, %v3791_v3  ;;  %v3634_v39 = vmul.f32 %v8879_v44, %v3624_v6  ;;  %v3652_v58 = vmul.f32 %v8882_v25, %v3624_v6  ;;  %v3670_v22 = vmul.f32 %v8891_v28, %v3624_v6  ;;  %v3608_v62 = vpop.permute.xlu0 %3607 }
 0x851   : > { %v9179_v41 = vadd.f32 %v3877_v45, %v3809_v47  ;;  %v3712_v12 = vmul.f32 %v8894_v50, %v3624_v6  ;;  %v3784_v63 = vmul.f32 %v8913_v15, %v3774_v20  ;;  %v3802_v21 = vmul.f32 %v8916_v26, %v3774_v20 }
 0x852   : > { %v3642_v14 = vadd.f32 %v3634_v39, %v9083_v18  ;;  %v3660_v16 = vadd.f32 %v3652_v58, %v9106_v17  ;;  %v3686_v59 = vrot.slane %v3670_v22, 1  ;;  %v3820_v35 = vmul.f32 %v8922_v27, %v3774_v20 }
 0x853   : > { %v3728_v3 = vrot.slane %v3712_v12, 1  ;;  %v3792_v8 = vadd.f32 %v3784_v63, %v9090_v57  ;;  %v3862_v47 = vmul.f32 %v8925_v46, %v3774_v20  ;;  %v3924_v45 = vmul.f32 %v3921_v32, %v10887_v37 }
 0x854   : > { %v9191_v51 = vadd.f32 %v3686_v59, %v3642_v14  ;;  %v3836_v6 = vrot.slane %v3820_v35, 1  ;;  %v3922_v18 = vsel %vm2133_vm11, %v9184_v5, %v3900_v36  ;;  %v3810_v39 = vadd.f32 %v3802_v21, %v9092_v24  ;;  %v3756_v35 = vpop.permute.xlu1 %3755 }
 0x855   : > { %v9197_v17 = vadd.f32 %v3728_v3, %v3660_v16  ;;  %v3878_v52 = vrot.slane %v3862_v47, 1  ;;  %v3923_v58 = vmul.f32 %v3922_v18, %v10888_v0  ;;  %v3934_v57 = vmul.f32 %v8928_v40, %v3924_v45  ;;  %v10889_v18 = vld [vmem:[#allocation114_spill] sm:$0xff] }
 0x856   : > { %v3952_v20 = vmul.f32 %v8931_v7, %v3924_v45  ;;  %v3970_v22 = vmul.f32 %v8936_v31, %v3924_v45  ;;  %v3611_v32 = vsel %vm1737_vm7, %v3608_v62, %v8998_v29  ;;  %v9207_v12 = vadd.f32 %v3836_v6, %v3792_v8  ;;  %v3904_v6 = vpop.permute.xlu0 %3903 }
 0x857   : > { %v4012_v36 = vmul.f32 %v8939_v56, %v3924_v45  ;;  %v3933_v63 = vmul.f32 %v8928_v40, %v3923_v58  ;;  %v3951_v24 = vmul.f32 %v8931_v7, %v3923_v58  ;;  %v3942_v21 = vadd.f32 %v3934_v57, %v9108_v55 }
 0x858   : > { %v3960_v14 = vadd.f32 %v3952_v20, %v9110_v61  ;;  %v3986_v16 = vrot.slane %v3970_v22, 1  ;;  %v3969_v59 = vmul.f32 %v8936_v31, %v3923_v58  ;;  %v4011_v8 = vmul.f32 %v8939_v56, %v3923_v58  ;;  %v10890_v20 = vld [vmem:[#allocation151_spill] sm:$0xff] }
 0x859   : > { %v4028_v3 = vrot.slane %v4012_v36, 1  ;;  %v3941_v47 = vadd.f32 %v3933_v63, %v9121_v4  ;;  %v3959_v29 = vadd.f32 %v3951_v24, %v9123_v53  ;;  %v3612_v55 = vsel %vm1737_vm7, %v9119_v11, %v3608_v62 }
 0x85a   : > { %v4002_v37 = vadd.f32 %v3986_v16, %v3942_v21  ;;  %v3985_v45 = vrot.slane %v3969_v59, 1  ;;  %v3626_v61 = vmul.f32 %v3611_v32, %v10889_v18  ;;  %v4027_v57 = vrot.slane %v4011_v8, 1 }
 0x85b   : > { %v4044_v0 = vadd.f32 %v4028_v3, %v3960_v14  ;;  %v3625_v22 = vmul.f32 %v3612_v55, %v10890_v20  ;;  %v3766_v4 = vsel %vm1935_vm10, %v9127_v33, %v3756_v35  ;;  %v10891_v53 = vrot.slane %v8677_v38, 2 }
 0x85c   : > { %v4001_v36 = vadd.f32 %v3985_v45, %v3941_v47  ;;  %v3636_v63 = vmul.f32 %v8879_v44, %v3626_v61  ;;  %v3654_v24 = vmul.f32 %v8882_v25, %v3626_v61  ;;  %v10892_v11 = vrot.slane %v8680_v43, 2  ;;  %v3758_v47 = vpop.permute.xlu1 %3757 }
 0x85d   : > { %v9228_v58 = vadd.f32 %v10891_v53, %v4002_v37  ;;  %v4043_v32 = vadd.f32 %v4027_v57, %v3959_v29  ;;  %v3635_v21 = vmul.f32 %v8879_v44, %v3625_v22  ;;  %v3653_v14 = vmul.f32 %v8882_v25, %v3625_v22  ;;  %v9252_v29 = vpop.permute.xlu0 %3905 }
 0x85e   : > { %v9234_v62 = vadd.f32 %v10892_v11, %v4044_v0  ;;  %v10893_v33 = vrot.slane %v8683_v19, 2  ;;  %v3644_v38 = vadd.f32 %v3636_v63, %v9144_v34  ;;  %v3662_v59 = vadd.f32 %v3654_v24, %v3594_v54  ;;  %v10895_v54 = vld [vmem:[#allocation107_spill] sm:$0xff] }
 0x85f   : > { %v3671_v3 = vmul.f32 %v8891_v28, %v3625_v22  ;;  %v9244_v8 = vadd.f32 %v3878_v52, %v3810_v39  ;;  %v10894_v43 = vrot.slane %v8686_v10, 2  ;;  %v3643_v44 = vadd.f32 %v3635_v21, %v9139_v1 }
 0x860   : > { %v9240_v16 = vadd.f32 %v10893_v33, %v4001_v36  ;;  %v3672_v25 = vmul.f32 %v8891_v28, %v3626_v61  ;;  %v3713_v45 = vmul.f32 %v8894_v50, %v3625_v22  ;;  %v3714_v34 = vmul.f32 %v8894_v50, %v3626_v61 }
 0x861   : > { %v9248_v37 = vadd.f32 %v10894_v43, %v4043_v32  ;;  %v3687_v19 = vrot.slane %v3671_v3, 1  ;;  %v3775_v55 = vmul.f32 %v3766_v4, %v10895_v54  ;;  %v3661_v39 = vadd.f32 %v3653_v14, %v9151_v23 }
 0x862   : > { %v3688_v52 = vrot.slane %v3672_v25, 1  ;;  %v3920_v10 = vsel %vm2133_vm11, %v9160_v13, %v3904_v6  ;;  %v3765_v1 = vsel %vm1935_vm10, %v3756_v35, %v3758_v47  ;;  %v3729_v28 = vrot.slane %v3713_v45, 1  ;;  %v10896_v35 = vld [vmem:[#allocation78_spill] sm:$0xff] }
 0x863   : > { %v3730_v18 = vrot.slane %v3714_v34, 1  ;;  %v3785_v0 = vmul.f32 %v8913_v15, %v3775_v55  ;;  %v3919_v50 = vsel %vm2133_vm11, %v3904_v6, %v9252_v29  ;;  %v3803_v57 = vmul.f32 %v8916_v26, %v3775_v55 }
 0x864   : > { %v3704_v61 = vadd.f32 %v3688_v52, %v3644_v38  ;;  %v3821_v23 = vmul.f32 %v8922_v27, %v3775_v55  ;;  %v3863_v20 = vmul.f32 %v8925_v46, %v3775_v55  ;;  %v3703_v22 = vadd.f32 %v3687_v19, %v3643_v44 }
 0x865   : > { %v3746_v13 = vadd.f32 %v3730_v18, %v3662_v59  ;;  %v3793_v4 = vadd.f32 %v3785_v0, %v9167_v30  ;;  %v3925_v53 = vmul.f32 %v3920_v10, %v10896_v35  ;;  %v3811_v36 = vadd.f32 %v3803_v57, %v9169_v60  ;;  %v3760_v60 = vpop.permute.xlu1 %3759  ;;  %v10900_v57 = vld [vmem:[#allocation81_spill] sm:$0xff] }
 0x866   : > { %v3837_v63 = vrot.slane %v3821_v23, 1  ;;  %v3879_v24 = vrot.slane %v3863_v20, 1  ;;  %v3776_v11 = vmul.f32 %v3765_v1, %v10706_v49  ;;  %v3745_v33 = vadd.f32 %v3729_v28, %v3661_v39  ;;  %v10897_v39 = vld [vmem:[#allocation84_spill] sm:$0xff]  ;;  %v10898_v28 = vld [vmem:[#allocation143_spill] sm:$0xff] }
 0x867   : > { %v3935_v6 = vmul.f32 %v8928_v40, %v3925_v53  ;;  %v3953_v32 = vmul.f32 %v8931_v7, %v3925_v53  ;;  %v3971_v21 = vmul.f32 %v8936_v31, %v3925_v53  ;;  %v4013_v14 = vmul.f32 %v8939_v56, %v3925_v53 }
 0x868   : > { %v9278_v38 = vadd.f32 %v3837_v63, %v3793_v4  ;;  %v3786_v30 = vmul.f32 %v8913_v15, %v3776_v11  ;;  %v3804_v59 = vmul.f32 %v8916_v26, %v3776_v11  ;;  %v9284_v25 = vadd.f32 %v3879_v24, %v3811_v36  ;;  %v3908_v4 = vpop.permute.xlu0 %3907  ;;  %v10902_v24 = vld [vmem:[#allocation168_spill] sm:$0xff] }
 0x869   : > { %v3943_v3 = vadd.f32 %v3935_v6, %v9174_v42  ;;  %v3961_v49 = vadd.f32 %v3953_v32, %v9179_v41  ;;  %v3987_v43 = vrot.slane %v3971_v21, 1  ;;  %v4029_v44 = vrot.slane %v4013_v14, 1  ;;  %v9309_v36 = vpop.permute.xlu1 %3909 }
 0x86a   : > { %v3794_v19 = vadd.f32 %v3786_v30, %v9191_v51  ;;  %v3822_v45 = vmul.f32 %v8922_v27, %v3776_v11  ;;  %v3864_v34 = vmul.f32 %v8925_v46, %v3776_v11  ;;  %v3926_v52 = vmul.f32 %v3919_v50, %v10897_v39  ;;  %v10903_v39 = vld [vmem:[#allocation80_spill] sm:$0xff] }
 0x86b   : > { %v4003_v54 = vadd.f32 %v3987_v43, %v3943_v3  ;;  %v4045_v55 = vadd.f32 %v4029_v44, %v3961_v49  ;;  %v3763_v42 = vsel %vm1935_vm10, %v3760_v60, %v9059_v48  ;;  %v3812_v41 = vadd.f32 %v3804_v59, %v9197_v17 }
 0x86c   : > { %v3838_v10 = vrot.slane %v3822_v45, 1  ;;  %v3764_v1 = vsel %vm1935_vm10, %v3758_v47, %v3760_v60  ;;  %v3778_v51 = vmul.f32 %v3763_v42, %v10898_v28  ;;  %v10899_v18 = vrot.slane %v8689_v9, 2 }
 0x86d   : > { %v10901_v23 = vrot.slane %v10900_v57, 2  ;;  %v3936_v50 = vmul.f32 %v8928_v40, %v3926_v52  ;;  %v3954_v48 = vmul.f32 %v8931_v7, %v3926_v52  ;;  %v3880_v35 = vrot.slane %v3864_v34, 1  ;;  %v10907_v57 = vld [vmem:[#allocation110_spill] sm:$0xff] }
 0x86e   : > { %v9299_v0 = vadd.f32 %v10899_v18, %v4003_v54  ;;  %v3854_v17 = vadd.f32 %v3838_v10, %v3794_v19  ;;  %v3972_v53 = vmul.f32 %v8936_v31, %v3926_v52  ;;  %v4014_v47 = vmul.f32 %v8939_v56, %v3926_v52 }
 0x86f   : > { %v9303_v20 = vadd.f32 %v10901_v23, %v4045_v55  ;;  %v3944_v9 = vadd.f32 %v3936_v50, %v9207_v12  ;;  %v3962_v63 = vadd.f32 %v3954_v48, %v9244_v8  ;;  %v3777_v11 = vmul.f32 %v3764_v1, %v10902_v24  ;;  %v9323_v55 = vpop.permute.xlu0 %4219  ;;  %v10908_v50 = vld [vmem:[#allocation34_spill] sm:$0xff] }
 0x870   : > { %v3788_v6 = vmul.f32 %v8913_v15, %v3778_v51  ;;  %v3988_v32 = vrot.slane %v3972_v53, 1  ;;  %v4030_v21 = vrot.slane %v4014_v47, 1  ;;  %v3806_v14 = vmul.f32 %v8916_v26, %v3778_v51  ;;  %v10911_v53 = vld [vmem:[#allocation51_spill] sm:$0xff] }
 0x871   : > { %v3824_v30 = vmul.f32 %v8922_v27, %v3778_v51  ;;  %v3787_v59 = vmul.f32 %v8913_v15, %v3777_v11  ;;  %v3805_v3 = vmul.f32 %v8916_v26, %v3777_v11  ;;  %v3823_v49 = vmul.f32 %v8922_v27, %v3777_v11 }
 0x872   : > { %v3796_v60 = vadd.f32 %v3788_v6, %v3704_v61  ;;  %v4004_v12 = vadd.f32 %v3988_v32, %v3944_v9  ;;  %v4046_v43 = vadd.f32 %v4030_v21, %v3962_v63  ;;  %v3814_v8 = vadd.f32 %v3806_v14, %v3746_v13  ;;  %v10905_v61 = vld [vmem:[#allocation82_spill] sm:$0xff] }
 0x873   : > { %v3840_v44 = vrot.slane %v3824_v30, 1  ;;  %v3896_v19 = vadd.f32 %v3880_v35, %v3812_v41  ;;  %v3795_v45 = vadd.f32 %v3787_v59, %v3703_v22  ;;  %v3839_v34 = vrot.slane %v3823_v49, 1  ;;  %v4222_v41 = vpop.permute.xlu1 %4221  ;;  %v10909_v35 = vld [vmem:[#allocation27_spill] sm:$0xff]  ;;  %v9368_v59 = vpop.permute.xlu0 %4223 }
 0x874   : > { %v9321_v54 = vmul.f32 %v8925_v46, %v3777_v11  ;;  %v10904_v52 = vrot.slane %v10903_v39, 2  ;;  %v10906_v26 = vrot.slane %v10905_v61, 2  ;;  %v3866_v13 = vmul.f32 %v8925_v46, %v3778_v51  ;;  %v10915_v39 = vld [vmem:[#allocation55_spill] sm:$0xff]  ;;  %v10916_v61 = vld [vmem:[#allocation98_spill] sm:$0xff] }
 0x875   : > { %v9333_v27 = vadd.f32 %v3840_v44, %v3796_v60  ;;  %v3813_v22 = vadd.f32 %v3805_v3, %v3745_v33  ;;  %v9336_v10 = vadd.f32 %v3839_v34, %v3795_v45  ;;  %v3918_v1 = vsel %vm2133_vm11, %v9252_v29, %v3908_v4 }
 0x876   : > { %v9327_v15 = vadd.f32 %v10904_v52, %v4004_v12  ;;  %v9331_v42 = vadd.f32 %v10906_v26, %v4046_v43  ;;  %v3917_v28 = vsel %vm2133_vm11, %v3908_v4, %v9309_v36  ;;  %v3882_v18 = vrot.slane %v3866_v13, 1  ;;  %v10913_v4 = vld [vmem:[#allocation41_spill] sm:$0xff] }
 0x877   : > { %v3927_v23 = vmul.f32 %v3918_v1, %v10907_v57  ;;  %v3928_v48 = vmul.f32 %v3917_v28, %v10908_v50  ;;  %v10910_v46 = vrot.slane %v10909_v35, 3  ;;  %v3881_v33 = vrot.slane %v9321_v54, 1  ;;  %v3912_v12 = vpop.permute.xlu1 %3911 }
 0x878   : > { %v10912_v47 = vrot.slane %v10911_v53, 3  ;;  %v4241_v29 = vsel %vm2451_vm8, %v9323_v55, %v4222_v41  ;;  %v10914_v63 = vrot.slane %v10913_v4, 3  ;;  %v9359_v11 = vadd.f32 %v3882_v18, %v3814_v8  ;;  %v10926_v4 = vld [vmem:[#allocation50_spill] sm:$0xff] }
 0x879   : > { %v4169_v51 = vadd.f32 %v10910_v46, %v9240_v16  ;;  %v3937_v6 = vmul.f32 %v8928_v40, %v3927_v23  ;;  %v3955_v16 = vmul.f32 %v8931_v7, %v3927_v23  ;;  %v3973_v32 = vmul.f32 %v8936_v31, %v3927_v23 }
 0x87a   : > { %v4211_v9 = vadd.f32 %v10912_v47, %v9248_v37  ;;  %v4170_v24 = vadd.f32 %v10914_v63, %v9228_v58  ;;  %v4015_v21 = vmul.f32 %v8939_v56, %v3927_v23  ;;  %v3938_v37 = vmul.f32 %v8928_v40, %v3928_v48  ;;  %v10920_v23 = vld [vmem:[#allocation99_spill] sm:$0xff]  ;;  %v10924_v47 = vld [vmem:[#allocation97_spill] sm:$0xff] }
 0x87b   : > { %v3956_v14 = vmul.f32 %v8931_v7, %v3928_v48  ;;  %v3974_v30 = vmul.f32 %v8936_v31, %v3928_v48  ;;  %v3945_v58 = vadd.f32 %v3937_v6, %v9278_v38  ;;  %v3963_v60 = vadd.f32 %v3955_v16, %v9284_v25  ;;  %v4226_v16 = vpop.permute.xlu0 %4225 }
 0x87c   : > { %v3989_v3 = vrot.slane %v3973_v32, 1  ;;  %v4016_v49 = vmul.f32 %v8939_v56, %v3928_v48  ;;  %v4031_v43 = vrot.slane %v4015_v21, 1  ;;  %v3946_v8 = vadd.f32 %v3938_v37, %v3854_v17  ;;  %v10921_v48 = vld [vmem:[#allocation101_spill] sm:$0xff]  ;;  %v10928_v32 = vld [vmem:[#allocation46_spill] sm:$0xff] }
 0x87d   : > { %v3964_v44 = vadd.f32 %v3956_v14, %v3896_v19  ;;  %v3990_v45 = vrot.slane %v3974_v30, 1  ;;  %v4243_v52 = vmul.f32 %v4241_v29, %v10915_v39  ;;  %v10917_v26 = vrot.slane %v10916_v61, 3  ;;  %v10918_v19 = vld [vmem:[#allocation165_spill] sm:$0xff]  ;;  %v10932_v61 = vld [vmem:[#allocation56_spill] sm:$0xff] }
 0x87e   : > { %v4005_v34 = vadd.f32 %v3989_v3, %v3945_v58  ;;  %v4032_v54 = vrot.slane %v4016_v49, 1  ;;  %v4047_v1 = vadd.f32 %v4031_v43, %v3963_v60  ;;  %v4240_v25 = vsel %vm2451_vm8, %v4222_v41, %v9368_v59  ;;  %v10930_v58 = vld [vmem:[#allocation57_spill] sm:$0xff] }
 0x87f   : > { %v4212_v13 = vadd.f32 %v10917_v26, %v9234_v62  ;;  %v4006_v38 = vadd.f32 %v3990_v45, %v3946_v8  ;;  %v3915_v17 = vsel %vm2133_vm11, %v3912_v12, %v9184_v5  ;;  %v10919_v28 = vrot.slane %v10918_v19, 2  ;;  %v10922_v62 = vld [vmem:[#allocation167_spill] sm:$0xff]  ;;  %v10927_v5 = vld [vmem:[#allocation104_spill] sm:$0xff] }
 0x880   : > { %v4048_v57 = vadd.f32 %v4032_v54, %v3964_v44  ;;  %v4253_v50 = vmul.f32 %v10920_v23, %v4243_v52  ;;  %v4271_v35 = vmul.f32 %v10921_v48, %v4243_v52  ;;  %v10923_v46 = vrot.slane %v10922_v62, 2  ;;  %v10931_v8 = vld [vmem:[#allocation163_spill] sm:$0xff] }
 0x881   : > { %v9385_v18 = vadd.f32 %v10919_v28, %v4005_v34  ;;  %v10925_v29 = vrot.slane %v10924_v47, 2  ;;  %v4289_v63 = vmul.f32 %v10926_v4, %v4243_v52  ;;  %v4331_v6 = vmul.f32 %v10927_v5, %v4243_v52 }
 0x882   : > { %v9391_v53 = vadd.f32 %v10923_v46, %v4047_v1  ;;  %v10929_v21 = vrot.slane %v10928_v32, 2  ;;  %v4261_v14 = vadd.f32 %v4253_v50, %v4169_v51  ;;  %v4279_v30 = vadd.f32 %v4271_v35, %v4211_v9  ;;  %v9412_v51 = vpop.permute.xlu1 %4227 }
 0x883   : > { %v9395_v41 = vadd.f32 %v10925_v29, %v4006_v38  ;;  %v4244_v60 = vmul.f32 %v4240_v25, %v10930_v58  ;;  %v4305_v3 = vrot.slane %v4289_v63, 1  ;;  %v4347_v49 = vrot.slane %v4331_v6, 1  ;;  %v10933_v29 = vld [vmem:[#allocation126_spill] sm:$0xff] }
 0x884   : > { %v9401_v37 = vadd.f32 %v10929_v21, %v4048_v57  ;;  %v3916_v43 = vsel %vm2133_vm11, %v9309_v36, %v3912_v12  ;;  %v3930_v44 = vmul.f32 %v3915_v17, %v10931_v8  ;;  %v3897_v9 = vadd.f32 %v3881_v33, %v3813_v22  ;;  %v9424_v22 = vpop.permute.xlu0 %4371 }
 0x885   : > { %v4254_v45 = vmul.f32 %v10920_v23, %v4244_v60  ;;  %v4272_v34 = vmul.f32 %v10921_v48, %v4244_v60  ;;  %v4290_v54 = vmul.f32 %v10926_v4, %v4244_v60  ;;  %v4332_v39 = vmul.f32 %v10927_v5, %v4244_v60 }
 0x886   : > { %v9414_v52 = vadd.f32 %v4305_v3, %v4261_v14  ;;  %v3929_v26 = vmul.f32 %v3916_v43, %v10932_v61  ;;  %v3940_v1 = vmul.f32 %v8928_v40, %v3930_v44  ;;  %v9418_v36 = vadd.f32 %v4347_v49, %v4279_v30  ;;  %v4374_v32 = vpop.permute.xlu1 %4373  ;;  %v10935_v14 = vld [vmem:[#allocation85_spill] sm:$0xff] }
 0x887   : > { %v4262_v12 = vadd.f32 %v4254_v45, %v4170_v24  ;;  %v4280_v38 = vadd.f32 %v4272_v34, %v4212_v13  ;;  %v4306_v25 = vrot.slane %v4290_v54, 1  ;;  %v3958_v57 = vmul.f32 %v8931_v7, %v3930_v44  ;;  %v10939_v43 = vld [vmem:[#allocation89_spill] sm:$0xff] }
 0x888   : > { %v3939_v17 = vmul.f32 %v8928_v40, %v3929_v26  ;;  %v3948_v19 = vadd.f32 %v3940_v1, %v9333_v27  ;;  %v3957_v28 = vmul.f32 %v8931_v7, %v3929_v26  ;;  %v4348_v50 = vrot.slane %v4332_v39, 1  ;;  %v4376_v54 = vpop.permute.xlu0 %4375  ;;  %v10942_v39 = vld [vmem:[#allocation43_spill] sm:$0xff] }
 0x889   : > { %v9426_v33 = vadd.f32 %v4306_v25, %v4262_v12  ;;  %v3975_v35 = vmul.f32 %v8936_v31, %v3929_v26  ;;  %v3976_v62 = vmul.f32 %v8936_v31, %v3930_v44  ;;  %v3966_v40 = vadd.f32 %v3958_v57, %v9359_v11  ;;  %v10937_v11 = vld [vmem:[#allocation86_spill] sm:$0xff] }
 0x88a   : > { %v3947_v24 = vadd.f32 %v3939_v17, %v9336_v10  ;;  %v3965_v13 = vadd.f32 %v3957_v28, %v3897_v9  ;;  %v4017_v27 = vmul.f32 %v8939_v56, %v3929_v26  ;;  %v4018_v7 = vmul.f32 %v8939_v56, %v3930_v44  ;;  %v10940_v44 = vld [vmem:[#allocation156_spill] sm:$0xff]  ;;  %v10944_v26 = vld [vmem:[#allocation146_spill] sm:$0xff] }
 0x88b   : > { %v3991_v46 = vrot.slane %v3975_v35, 1  ;;  %v3992_v47 = vrot.slane %v3976_v62, 1  ;;  %v10934_v63 = vrot.slane %v10933_v29, 3  ;;  %v10936_v31 = vrot.slane %v10935_v14, 3  ;;  %v10946_v25 = vld [vmem:[#allocation74_spill] sm:$0xff] }
 0x88c   : > { %v4033_v21 = vrot.slane %v4017_v27, 1  ;;  %v4239_v10 = vsel %vm2451_vm8, %v9368_v59, %v4226_v16  ;;  %v10938_v58 = vrot.slane %v10937_v11, 3  ;;  %v4034_v49 = vrot.slane %v4018_v7, 1  ;;  %v10948_v35 = vld [vmem:[#allocation42_spill] sm:$0xff]  ;;  %v9478_v7 = vpop.permute.xlu1 %4229 }
 0x88d   : > { %v4171_v6 = vadd.f32 %v10934_v63, %v9299_v0  ;;  %v4213_v30 = vadd.f32 %v10936_v31, %v9303_v20  ;;  %v4007_v3 = vadd.f32 %v3991_v46, %v3947_v24  ;;  %v4008_v56 = vadd.f32 %v3992_v47, %v3948_v19  ;;  %v10951_v46 = vld [vmem:[#allocation58_spill] sm:$0xff] }
 0x88e   : > { %v4172_v60 = vadd.f32 %v10938_v58, %v9327_v15  ;;  %v4245_v8 = vmul.f32 %v4239_v10, %v10939_v43  ;;  %v4049_v0 = vadd.f32 %v4033_v21, %v3965_v13  ;;  %v10941_v45 = vrot.slane %v10940_v44, 3 }
 0x88f   : > { %v4238_v20 = vsel %vm2451_vm8, %v4226_v16, %v9412_v51  ;;  %v4393_v59 = vsel %vm2649_vm9, %v9424_v22, %v4374_v32  ;;  %v4050_v15 = vadd.f32 %v4034_v49, %v3966_v40  ;;  %v10943_v9 = vrot.slane %v10942_v39, 2  ;;  %v10950_v40 = vld [vmem:[#allocation111_spill] sm:$0xff]  ;;  %v10953_v49 = vld [vmem:[#allocation145_spill] sm:$0xff]  ;;  %v10955_v39 = vld [vmem:[#allocation90_spill] sm:$0xff] }
 0x890   : > { %v4214_v34 = vadd.f32 %v10941_v45, %v9331_v42  ;;  %v10945_v1 = vrot.slane %v10944_v26, 2  ;;  %v4255_v42 = vmul.f32 %v10920_v23, %v4245_v8  ;;  %v10947_v17 = vrot.slane %v10946_v25, 2 }
 0x891   : > { %v9458_v61 = vadd.f32 %v10943_v9, %v4007_v3  ;;  %v4273_v16 = vmul.f32 %v10921_v48, %v4245_v8  ;;  %v4291_v28 = vmul.f32 %v10926_v4, %v4245_v8  ;;  %v4333_v57 = vmul.f32 %v10927_v5, %v4245_v8 }
 0x892   : > { %v9462_v12 = vadd.f32 %v10945_v1, %v4008_v56  ;;  %v9467_v19 = vadd.f32 %v10947_v17, %v4049_v0  ;;  %v10949_v62 = vrot.slane %v10948_v35, 2  ;;  %v4263_v13 = vadd.f32 %v4255_v42, %v4171_v6  ;;  %v10952_v6 = vld [vmem:[#allocation32_spill] sm:$0xff] }
 0x893   : > { %v4246_v27 = vmul.f32 %v4238_v20, %v10950_v40  ;;  %v4395_v47 = vmul.f32 %v4393_v59, %v10951_v46  ;;  %v4364_v29 = vadd.f32 %v4348_v50, %v4280_v38  ;;  %v4281_v63 = vadd.f32 %v4273_v16, %v4213_v30  ;;  %v4378_v38 = vpop.permute.xlu0 %4377  ;;  %v10954_v59 = vld [vmem:[#allocation94_spill] sm:$0xff]  ;;  %v10956_v42 = vld [vmem:[#allocation64_spill] sm:$0xff] }
 0x894   : > { %v9474_v24 = vadd.f32 %v10949_v62, %v4050_v15  ;;  %v4307_v21 = vrot.slane %v4291_v28, 1  ;;  %v4349_v14 = vrot.slane %v4333_v57, 1  ;;  %v4392_v8 = vsel %vm2649_vm9, %v4374_v32, %v4376_v54  ;;  %v10957_v32 = vld [vmem:[#allocation105_spill] sm:$0xff] }
 0x895   : > { %v4256_v31 = vmul.f32 %v10920_v23, %v4246_v27  ;;  %v4274_v10 = vmul.f32 %v10921_v48, %v4246_v27  ;;  %v4292_v11 = vmul.f32 %v10926_v4, %v4246_v27  ;;  %v4334_v58 = vmul.f32 %v10927_v5, %v4246_v27 }
 0x896   : > { %v4323_v3 = vadd.f32 %v4307_v21, %v4263_v13  ;;  %v4405_v56 = vmul.f32 %v10952_v6, %v4395_v47  ;;  %v4423_v43 = vmul.f32 %v10953_v49, %v4395_v47  ;;  %v4365_v50 = vadd.f32 %v4349_v14, %v4281_v63 }
 0x897   : > { %v4264_v30 = vadd.f32 %v4256_v31, %v4172_v60  ;;  %v4282_v0 = vadd.f32 %v4274_v10, %v4214_v34  ;;  %v4308_v44 = vrot.slane %v4292_v11, 1  ;;  %v4350_v45 = vrot.slane %v4334_v58, 1  ;;  %v9498_v60 = vpop.permute.xlu1 %4231  ;;  %v9516_v21 = vpop.permute.xlu0 %4379 }
 0x898   : > { %v4413_v20 = vadd.f32 %v4405_v56, %v9414_v52  ;;  %v4441_v15 = vmul.f32 %v10954_v59, %v4395_v47  ;;  %v4483_v9 = vmul.f32 %v10955_v39, %v4395_v47  ;;  %v4431_v1 = vadd.f32 %v4423_v43, %v9418_v36  ;;  %v10959_v52 = vld [vmem:[#allocation147_spill] sm:$0xff] }
 0x899   : > { %v9491_v26 = vadd.f32 %v4308_v44, %v4264_v30  ;;  %v4396_v25 = vmul.f32 %v4392_v8, %v10956_v42  ;;  %v10958_v17 = vrot.slane %v10957_v32, 3  ;;  %v10960_v57 = vrot.slane %v10959_v52, 3  ;;  %v10961_v47 = vld [vmem:[#allocation23_spill] sm:$0xff]  ;;  %v10962_v30 = vld [vmem:[#allocation106_spill] sm:$0xff] }
 0x89a   : > { %v4457_v34 = vrot.slane %v4441_v15, 1  ;;  %v4499_v28 = vrot.slane %v4483_v9, 1  ;;  %v4237_v62 = vsel %vm2451_vm8, %v9412_v51, %v9478_v7  ;;  %v4366_v27 = vadd.f32 %v4350_v45, %v4282_v0 }
 0x89b   : > { %v4173_v16 = vadd.f32 %v10958_v17, %v9385_v18  ;;  %v4215_v35 = vadd.f32 %v10960_v57, %v9391_v53  ;;  %v4406_v36 = vmul.f32 %v10952_v6, %v4396_v25  ;;  %v4424_v13 = vmul.f32 %v10953_v49, %v4396_v25  ;;  %v9535_v45 = vpop.permute.xlu1 %4523 }
 0x89c   : > { %v4442_v40 = vmul.f32 %v10954_v59, %v4396_v25  ;;  %v4484_v18 = vmul.f32 %v10955_v39, %v4396_v25  ;;  %v9511_v46 = vadd.f32 %v4457_v34, %v4413_v20  ;;  %v4247_v63 = vmul.f32 %v4237_v62, %v10961_v47  ;;  %v10967_v47 = vld [vmem:[#allocation62_spill] sm:$0xff] }
 0x89d   : > { %v4391_v53 = vsel %vm2649_vm9, %v4376_v54, %v4378_v38  ;;  %v4414_v51 = vadd.f32 %v4406_v36, %v9426_v33  ;;  %v4432_v14 = vadd.f32 %v4424_v13, %v4364_v29  ;;  %v9527_v54 = vadd.f32 %v4499_v28, %v4431_v1  ;;  %v10963_v33 = vld [vmem:[#allocation144_spill] sm:$0xff] }
 0x89e   : > { %v4458_v31 = vrot.slane %v4442_v40, 1  ;;  %v4500_v10 = vrot.slane %v4484_v18, 1  ;;  %v4257_v11 = vmul.f32 %v10920_v23, %v4247_v63  ;;  %v4275_v58 = vmul.f32 %v10921_v48, %v4247_v63 }
 0x89f   : > { %v4293_v56 = vmul.f32 %v10926_v4, %v4247_v63  ;;  %v4335_v43 = vmul.f32 %v10927_v5, %v4247_v63  ;;  %v4397_v0 = vmul.f32 %v4391_v53, %v10962_v30  ;;  %v10964_v29 = vrot.slane %v10963_v33, 3 }
 0x8a0   : > { %v9529_v8 = vadd.f32 %v4458_v31, %v4414_v51  ;;  %v4265_v20 = vadd.f32 %v4257_v11, %v4173_v16  ;;  %v4283_v15 = vadd.f32 %v4275_v58, %v4215_v35  ;;  %v4516_v34 = vadd.f32 %v4500_v10, %v4432_v14  ;;  %v4526_v35 = vpop.permute.xlu0 %4525  ;;  %v10968_v14 = vld [vmem:[#allocation112_spill] sm:$0xff] }
 0x8a1   : > { %v4174_v44 = vadd.f32 %v10964_v29, %v9395_v41  ;;  %v4309_v9 = vrot.slane %v4293_v56, 1  ;;  %v4351_v42 = vrot.slane %v4335_v43, 1  ;;  %v4407_v25 = vmul.f32 %v10952_v6, %v4397_v0  ;;  %v10965_v41 = vld [vmem:[#allocation108_spill] sm:$0xff] }
 0x8a2   : > { %v4425_v1 = vmul.f32 %v10953_v49, %v4397_v0  ;;  %v4443_v32 = vmul.f32 %v10954_v59, %v4397_v0  ;;  %v4485_v17 = vmul.f32 %v10955_v39, %v4397_v0  ;;  %v10966_v52 = vrot.slane %v10965_v41, 3 }
 0x8a3   : > { %v9541_v28 = vadd.f32 %v4309_v9, %v4265_v20  ;;  %v4236_v57 = vsel %vm2451_vm8, %v9478_v7, %v9498_v60  ;;  %v9550_v62 = vadd.f32 %v4351_v42, %v4283_v15  ;;  %v4415_v36 = vadd.f32 %v4407_v25, %v4323_v3 }
 0x8a4   : > { %v4216_v16 = vadd.f32 %v10966_v52, %v9401_v37  ;;  %v4433_v13 = vadd.f32 %v4425_v1, %v4365_v50  ;;  %v4459_v40 = vrot.slane %v4443_v32, 1  ;;  %v4501_v18 = vrot.slane %v4485_v17, 1  ;;  %v4528_v50 = vpop.permute.xlu1 %4527  ;;  %v4234_v32 = vpop.permute.xlu0 %4233  ;;  %v10969_v52 = vld [vmem:[#allocation117_spill] sm:$0xff] }
 0x8a5   : > { %v4248_v63 = vmul.f32 %v4236_v57, %v10967_v47  ;;  %v4390_v53 = vsel %vm2649_vm9, %v4378_v38, %v9516_v21  ;;  %v9557_v51 = vstv %s9518_s15  ;;  %v9563_v7 = vstv %s9521_s27  ;;  %s10003_s15 = scalar_lea.hbm %s10063_s9, %s6097_s0  ;;  %s6350_s27 = scalar_lea.vmem %s10005_s1, 2048 }
 0x8a6   : > { %v9559_v37 = vadd.f32 %v4459_v40, %v4415_v36  ;;  %v4398_v31 = vmul.f32 %v4390_v53, %v10968_v14  ;;  %v4545_v3 = vsel %vm2847_vm12, %v9535_v45, %v4526_v35  ;;  %v9576_v9 = vadd.f32 %v4501_v18, %v4433_v13  ;;  %v10971_v18 = vld [vmem:[#allocation141_spill] sm:$0xff]  ;;  %v10974_v14 = vld [vmem:[#allocation87_spill] sm:$0xff]  ;;  %p6351_p8 = scmp.ne.s32.totalorder %s10005_s1, %s6350_s27 }
 0x8a7   : > { %v4258_v10 = vmul.f32 %v10920_v23, %v4248_v63  ;;  %v4276_v11 = vmul.f32 %v10921_v48, %v4248_v63  ;;  %v4294_v58 = vmul.f32 %v10926_v4, %v4248_v63  ;;  %v4336_v38 = vmul.f32 %v10927_v5, %v4248_v63  ;;  %v10973_v63 = vld [vmem:[#allocation103_spill] sm:$0xff] }
 0x8a8   : > { %v4408_v56 = vmul.f32 %v10952_v6, %v4398_v31  ;;  %v4426_v43 = vmul.f32 %v10953_v49, %v4398_v31  ;;  %v4444_v30 = vmul.f32 %v10954_v59, %v4398_v31  ;;  %v4486_v0 = vmul.f32 %v10955_v39, %v4398_v31  ;;  %v4382_v47 = vpop.permute.xlu1 %4381  ;;  %p6352_p13 = pnand %p6351_p8, %p11004_p11 }
 0x8a9   : > { %v4266_v33 = vadd.f32 %v4258_v10, %v4174_v44  ;;  %v4284_v29 = vadd.f32 %v4276_v11, %v4216_v16  ;;  %v4310_v20 = vrot.slane %v4294_v58, 1  ;;  %v4352_v15 = vrot.slane %v4336_v38, 1  ;;  %v10970_v16 = vld [vmem:[#allocation123_spill] sm:$0xff] }
 0x8aa   : > { %v4416_v42 = vadd.f32 %v4408_v56, %v9491_v26  ;;  %v4434_v25 = vadd.f32 %v4426_v43, %v4366_v27  ;;  %v4460_v1 = vrot.slane %v4444_v30, 1  ;;  %v4502_v41 = vrot.slane %v4486_v0, 1  ;;  %p6353_p5 = pneg %p6352_p13 }
 0x8ab   : > { %v9579_v17 = vadd.f32 %v4310_v20, %v4266_v33  ;;  %v4547_v57 = vmul.f32 %v4545_v3, %v10969_v52  ;;  %v4544_v36 = vsel %vm2847_vm12, %v4526_v35, %v4528_v50  ;;  %v9584_v40 = vadd.f32 %v4352_v15, %v4284_v29  ;;  %v4530_v15 = vpop.permute.xlu0 %4529  ;;  %v10975_v52 = vld [vmem:[#allocation91_spill] sm:$0xff] }
 0x8ac   : > { %v9586_v44 = vadd.f32 %v4460_v1, %v4416_v42  ;;  %v4548_v13 = vmul.f32 %v4544_v36, %v10970_v16  ;;  %v10972_v26 = vrot.slane %v10971_v18, 3  ;;  %v9603_v42 = vadd.f32 %v4502_v41, %v4434_v25  ;;  %v9623_v41 = vpop.permute.xlu1 %4383 }
 0x8ad   : > { %v4557_v53 = vmul.f32 %v10973_v63, %v4547_v57  ;;  %v4575_v31 = vmul.f32 %v10974_v14, %v4547_v57  ;;  %v4593_v3 = vmul.f32 %v9557_v51, %v4547_v57  ;;  %v4635_v10 = vmul.f32 %v9563_v7, %v4547_v57 }
 0x8ae   : > { %v4175_v27 = vadd.f32 %v10972_v26, %v9458_v61  ;;  %v4558_v35 = vmul.f32 %v10973_v63, %v4548_v13  ;;  %v4576_v11 = vmul.f32 %v10974_v14, %v4548_v13  ;;  %v4594_v58 = vmul.f32 %v9557_v51, %v4548_v13 }
 0x8af   : > { %v4636_v38 = vmul.f32 %v9563_v7, %v4548_v13  ;;  %v4565_v56 = vadd.f32 %v4557_v53, %v9511_v46  ;;  %v4583_v61 = vadd.f32 %v4575_v31, %v9527_v54  ;;  %v4609_v43 = vrot.slane %v4593_v3, 1  ;;  %v10977_v46 = vld [vmem:[#allocation24_spill] sm:$0xff]  ;;  %v10981_v53 = vld [vmem:[#allocation139_spill] sm:$0xff] }
 0x8b0   : > { %v4651_v30 = vrot.slane %v4635_v10, 1  ;;  %v4566_v0 = vadd.f32 %v4558_v35, %v9529_v8  ;;  %v4584_v33 = vadd.f32 %v4576_v11, %v4516_v34  ;;  %v4610_v29 = vrot.slane %v4594_v58, 1  ;;  %v10979_v8 = vld [vmem:[#allocation95_spill] sm:$0xff]  ;;  %v10982_v10 = vld [vmem:[#allocation140_spill] sm:$0xff] }
 0x8b1   : > { %v4652_v20 = vrot.slane %v4636_v38, 1  ;;  %v9605_v1 = vadd.f32 %v4609_v43, %v4565_v56  ;;  %v10976_v57 = vrot.slane %v10975_v52, 3  ;;  %v10978_v16 = vrot.slane %v10977_v46, 3  ;;  %v10984_v58 = vld [vmem:[#allocation124_spill] sm:$0xff] }
 0x8b2   : > { %v9613_v13 = vadd.f32 %v4651_v30, %v4583_v61  ;;  %v9615_v18 = vadd.f32 %v4610_v29, %v4566_v0  ;;  %v10980_v34 = vrot.slane %v10979_v8, 3  ;;  %v4235_v25 = vsel %vm2451_vm8, %v9498_v60, %v4234_v32  ;;  %v10983_v60 = vld [vmem:[#allocation60_spill] sm:$0xff]  ;;  %v9647_v0 = vpop.permute.xlu0 %4531 }
 0x8b3   : > { %v4176_v36 = vadd.f32 %v10976_v57, %v9462_v12  ;;  %v4217_v54 = vadd.f32 %v10978_v16, %v9467_v19  ;;  %v4242_v12 = vsel %vm2451_vm8, %v4234_v32, %v9323_v55  ;;  %v4249_v19 = vmul.f32 %v4235_v25, %v10981_v53 }
 0x8b4   : > { %v4218_v26 = vadd.f32 %v10980_v34, %v9474_v24  ;;  %v4389_v31 = vsel %vm2649_vm9, %v9516_v21, %v4382_v47  ;;  %v4543_v3 = vsel %vm2847_vm12, %v4528_v50, %v4530_v15  ;;  %v9634_v24 = vadd.f32 %v4652_v20, %v4584_v33 }
 0x8b5   : > { %v4250_v35 = vmul.f32 %v4242_v12, %v10982_v10  ;;  %v4399_v11 = vmul.f32 %v4389_v31, %v10983_v60  ;;  %v4549_v38 = vmul.f32 %v4543_v3, %v10984_v58  ;;  %v4259_v56 = vmul.f32 %v10920_v23, %v4249_v19 }
 0x8b6   : > { %v4277_v55 = vmul.f32 %v10921_v48, %v4249_v19  ;;  %v4295_v32 = vmul.f32 %v10926_v4, %v4249_v19  ;;  %v4337_v61 = vmul.f32 %v10927_v5, %v4249_v19  ;;  %v4388_v8 = vsel %vm2649_vm9, %v4382_v47, %v9623_v41 }
 0x8b7   : > { %v4260_v21 = vmul.f32 %v10920_v23, %v4250_v35  ;;  %v4278_v50 = vmul.f32 %v10921_v48, %v4250_v35  ;;  %v4296_v43 = vmul.f32 %v10926_v4, %v4250_v35  ;;  %v4338_v30 = vmul.f32 %v10927_v5, %v4250_v35  ;;  %v9652_v23 = vpop.permute.xlu1 %4675  ;;  %v4678_v35 = vpop.permute.xlu0 %4677 }
 0x8b8   : > { %v4267_v33 = vadd.f32 %v4259_v56, %v4175_v27  ;;  %v4285_v29 = vadd.f32 %v4277_v55, %v4217_v54  ;;  %v4311_v20 = vrot.slane %v4295_v32, 1  ;;  %v4353_v52 = vrot.slane %v4337_v61, 1 }
 0x8b9   : > { %v4268_v57 = vadd.f32 %v4260_v21, %v4176_v36  ;;  %v4286_v46 = vadd.f32 %v4278_v50, %v4218_v26  ;;  %v4312_v16 = vrot.slane %v4296_v43, 1  ;;  %v4354_v4 = vrot.slane %v4338_v30, 1 }
 0x8ba   : > { %v9654_v48 = vadd.f32 %v4311_v20, %v4267_v33  ;;  %v4409_v5 = vmul.f32 %v10952_v6, %v4399_v11  ;;  %v4427_v34 = vmul.f32 %v10953_v49, %v4399_v11  ;;  %v9660_v54 = vadd.f32 %v4353_v52, %v4285_v29  ;;  %v10986_v33 = vld [vmem:[#allocation125_spill] sm:$0xff] }
 0x8bb   : > { %v9658_v27 = vadd.f32 %v4312_v16, %v4268_v57  ;;  %v4445_v36 = vmul.f32 %v10954_v59, %v4399_v11  ;;  %v4487_v26 = vmul.f32 %v10955_v39, %v4399_v11  ;;  %v4559_v12 = vmul.f32 %v10973_v63, %v4549_v38 }
 0x8bc   : > { %v4417_v47 = vadd.f32 %v4409_v5, %v9541_v28  ;;  %v4435_v25 = vadd.f32 %v4427_v34, %v9550_v62  ;;  %v4577_v53 = vmul.f32 %v10974_v14, %v4549_v38  ;;  %v4595_v3 = vmul.f32 %v9557_v51, %v4549_v38  ;;  %v10985_v62 = vld [vmem:[#allocation63_spill] sm:$0xff]  ;;  %v4386_v34 = vpop.permute.xlu0 %4385 }
 0x8bd   : > { %v4461_v19 = vrot.slane %v4445_v36, 1  ;;  %v4503_v31 = vrot.slane %v4487_v26, 1  ;;  %v4637_v10 = vmul.f32 %v9563_v7, %v4549_v38  ;;  %v4567_v60 = vadd.f32 %v4559_v12, %v9559_v37  ;;  %v4680_v38 = vpop.permute.xlu1 %4679 }
 0x8be   : > { %v4585_v28 = vadd.f32 %v4577_v53, %v9576_v9  ;;  %v4400_v11 = vmul.f32 %v4388_v8, %v10985_v62  ;;  %v4542_v58 = vsel %vm2847_vm12, %v4530_v15, %v9647_v0  ;;  %v9684_v56 = vadd.f32 %v4354_v4, %v4286_v46 }
 0x8bf   : > { %v9686_v55 = vadd.f32 %v4461_v19, %v4417_v47  ;;  %v4611_v32 = vrot.slane %v4595_v3, 1  ;;  %v4653_v61 = vrot.slane %v4637_v10, 1  ;;  %v9692_v15 = vadd.f32 %v4503_v31, %v4435_v25 }
 0x8c0   : > { %v4410_v21 = vmul.f32 %v10952_v6, %v4400_v11  ;;  %v4428_v37 = vmul.f32 %v10953_v49, %v4400_v11  ;;  %v4446_v9 = vmul.f32 %v10954_v59, %v4400_v11  ;;  %v4488_v50 = vmul.f32 %v10955_v39, %v4400_v11  ;;  %v10988_v11 = vld [vmem:[#allocation129_spill] sm:$0xff] }
 0x8c1   : > { %v9694_v43 = vadd.f32 %v4611_v32, %v4567_v60  ;;  %v9696_v30 = vadd.f32 %v4653_v61, %v4585_v28  ;;  %v4550_v29 = vmul.f32 %v4542_v58, %v10986_v33  ;;  %v9708_v26 = vstv %s9664_s26  ;;  %v4534_v19 = vpop.permute.xlu1 %4533  ;;  %s6449_s26 = smov [#allocation11]  }
 0x8c2   : > { %v4418_v20 = vadd.f32 %v4410_v21, %v9579_v17  ;;  %v4436_v52 = vadd.f32 %v4428_v37, %v9584_v40  ;;  %v4462_v57 = vrot.slane %v4446_v9, 1  ;;  %v4504_v46 = vrot.slane %v4488_v50, 1  ;;  %v10989_v21 = vld [vmem:[#allocation148_spill] sm:$0xff] }
 0x8c3   : > { %v4560_v16 = vmul.f32 %v10973_v63, %v4550_v29  ;;  %v4578_v8 = vmul.f32 %v10974_v14, %v4550_v29  ;;  %v4596_v4 = vmul.f32 %v9557_v51, %v4550_v29  ;;  %v4638_v5 = vmul.f32 %v9563_v7, %v4550_v29 }
 0x8c4   : > { %v9705_v36 = vadd.f32 %v4462_v57, %v4418_v20  ;;  %v9711_v47 = vstv %s9670_s11  ;;  %v9714_v17 = vstv %s9672_s24  ;;  %v9719_v31 = vstv %s9682_s17  ;;  %v4682_v57 = vpop.permute.xlu0 %4681  ;;  %s6354_s11 = sshll.u32 %s6449_s26, 4  ;;  %s6355_s11 = int_to_ptr.vmem [resolvable:$false] %s6354_s11 }
 0x8c5   : > { %v4568_v40 = vadd.f32 %v4560_v16, %v9586_v44  ;;  %v4586_v25 = vadd.f32 %v4578_v8, %v9603_v42  ;;  %v4612_v12 = vrot.slane %v4596_v4, 1  ;;  %v4654_v53 = vrot.slane %v4638_v5, 1  ;;  %v10987_v42 = vld [vmem:[#allocation128_spill] sm:$0xff]  ;;  %s6356_s24 = scalar_lea.vmem %s6355_s11, 4096  ;;  %p6357_p6 = scmp.lt.s32.totalorder %s10005_s1, %s6355_s11 }
 0x8c6   : > { %v4697_v3 = vsel %vm3045_vm13, %v9652_v23, %v4678_v35  ;;  %v4696_v10 = vsel %vm3045_vm13, %v4678_v35, %v4680_v38  ;;  %v4387_v60 = vsel %vm2649_vm9, %v9623_v41, %v4386_v34  ;;  %v9729_v28 = vadd.f32 %v4504_v46, %v4436_v52  ;;  %p6358_p9 = scmp.lt.s32.totalorder %s6356_s24, %s6350_s27 }
 0x8c7   : > { %v9731_v44 = vadd.f32 %v4612_v12, %v4568_v40  ;;  %v4699_v62 = vmul.f32 %v4697_v3, %v10987_v42  ;;  %v4700_v58 = vmul.f32 %v4696_v10, %v10988_v11  ;;  %v9735_v32 = vadd.f32 %v4654_v53, %v4586_v25  ;;  %v10990_v12 = vld [vmem:[#allocation149_spill] sm:$0xff] }
 0x8c8   : > { %v4394_v61 = vsel %vm2649_vm9, %v4386_v34, %v9424_v22  ;;  %v4401_v35 = vmul.f32 %v4387_v60, %v10989_v21  ;;  %v4541_v41 = vsel %vm2847_vm12, %v9647_v0, %v4534_v19  ;;  %v4695_v10 = vsel %vm3045_vm13, %v4680_v38, %v4682_v57  ;;  %p6359_p10 = por %p6358_p9, %p6357_p6 }
 0x8c9   : > { %v4709_v37 = vmul.f32 %v9708_v26, %v4699_v62  ;;  %v4727_v9 = vmul.f32 %v9711_v47, %v4699_v62  ;;  %v4745_v50 = vmul.f32 %v9714_v17, %v4699_v62  ;;  %v4787_v33 = vmul.f32 %v9719_v31, %v4699_v62 }
 0x8ca   : > { %v4710_v29 = vmul.f32 %v9708_v26, %v4700_v58  ;;  %v4728_v20 = vmul.f32 %v9711_v47, %v4700_v58  ;;  %v4746_v22 = vmul.f32 %v9714_v17, %v4700_v58  ;;  %v4788_v52 = vmul.f32 %v9719_v31, %v4700_v58  ;;  %p6360_p0 = pnand %p6359_p10, %p6353_p5 }
 0x8cb   : > { %v4717_v46 = vadd.f32 %v4709_v37, %v9605_v1  ;;  %v4735_v0 = vadd.f32 %v4727_v9, %v9613_v13  ;;  %v4761_v16 = vrot.slane %v4745_v50, 1  ;;  %v4803_v8 = vrot.slane %v4787_v33, 1  ;;  %v4536_v9 = vpop.permute.xlu1 %4535 }
 0x8cc   : > { %v4718_v4 = vadd.f32 %v4710_v29, %v9615_v18  ;;  %v4736_v5 = vadd.f32 %v4728_v20, %v9634_v24  ;;  %v4762_v34 = vrot.slane %v4746_v22, 1  ;;  %v4804_v40 = vrot.slane %v4788_v52, 1  ;;  %v10991_v52 = vld [vmem:[#allocation48_spill] sm:$0xff] }
 0x8cd   : > { %v4819_v25 = vadd.f32 %v4803_v8, %v4735_v0  ;;  %v4402_v53 = vmul.f32 %v4394_v61, %v10990_v12  ;;  %v4411_v3 = vmul.f32 %v10952_v6, %v4401_v35  ;;  %v4777_v60 = vadd.f32 %v4761_v16, %v4717_v46  ;;  %v10992_v0 = vld [vmem:[#allocation132_spill] sm:$0xff] }
 0x8ce   : > { %v4820_v1 = vadd.f32 %v4804_v40, %v4736_v5  ;;  %v4429_v13 = vmul.f32 %v10953_v49, %v4401_v35  ;;  %v4447_v42 = vmul.f32 %v10954_v59, %v4401_v35  ;;  %v4778_v18 = vadd.f32 %v4762_v34, %v4718_v4  ;;  %v10993_v4 = vld [vmem:[#allocation49_spill] sm:$0xff] }
 0x8cf   : > { %v4835_v62 = vrot.slane %v4819_v25, 7  ;;  %v4412_v24 = vmul.f32 %v10952_v6, %v4402_v53  ;;  %v4430_v11 = vmul.f32 %v10953_v49, %v4402_v53  ;;  %v4419_v61 = vadd.f32 %v4411_v3, %v9654_v48 }
 0x8d0   : > { %v4836_v58 = vrot.slane %v4820_v1, 7  ;;  %v4448_v21 = vmul.f32 %v10954_v59, %v4402_v53  ;;  %v4463_v37 = vrot.slane %v4447_v42, 1  ;;  %v4437_v33 = vadd.f32 %v4429_v13, %v9660_v54  ;;  %v4684_v59 = vpop.permute.xlu0 %4683  ;;  %v4538_v1 = vpop.permute.xlu1 %4537 }
 0x8d1   : > { %v9767_v38 = vsel %vm3251_vm14, %v4777_v60, %v4835_v62  ;;  %v4420_v50 = vadd.f32 %v4412_v24, %v9658_v27  ;;  %v4489_v29 = vmul.f32 %v10955_v39, %v4401_v35  ;;  %v4438_v49 = vadd.f32 %v4430_v11, %v9684_v56 }
 0x8d2   : > { %v9773_v6 = vsel %vm3251_vm14, %v4778_v18, %v4836_v58  ;;  %v4464_v20 = vrot.slane %v4448_v21, 1  ;;  %v4490_v48 = vmul.f32 %v10955_v39, %v4402_v53  ;;  %v4551_v46 = vmul.f32 %v4541_v41, %v10991_v52 }
 0x8d3   : > { %v4505_v22 = vrot.slane %v4489_v29, 1  ;;  %v4701_v16 = vmul.f32 %v4695_v10, %v10992_v0  ;;  %v4540_v27 = vsel %vm2847_vm12, %v4534_v19, %v4536_v9  ;;  %v9781_v54 = vadd.f32 %v4463_v37, %v4419_v61 }
 0x8d4   : > { %v9783_v35 = vadd.f32 %v4464_v20, %v4420_v50  ;;  %v4506_v8 = vrot.slane %v4490_v48, 1  ;;  %v4552_v5 = vmul.f32 %v4540_v27, %v10993_v4  ;;  %v4561_v56 = vmul.f32 %v10973_v63, %v4551_v46 }
 0x8d5   : > { %v4579_v39 = vmul.f32 %v10974_v14, %v4551_v46  ;;  %v4597_v34 = vmul.f32 %v9557_v51, %v4551_v46  ;;  %v4694_v41 = vsel %vm3045_vm13, %v4682_v57, %v4684_v59  ;;  %v4521_v40 = vadd.f32 %v4505_v22, %v4437_v33  ;;  %v10994_v33 = vld [vmem:[#allocation136_spill] sm:$0xff] }
 0x8d6   : > { %v4639_v25 = vmul.f32 %v9563_v7, %v4551_v46  ;;  %v4711_v19 = vmul.f32 %v9708_v26, %v4701_v16  ;;  %v4729_v12 = vmul.f32 %v9711_v47, %v4701_v16  ;;  %v4569_v53 = vadd.f32 %v4561_v56, %v9686_v55 }
 0x8d7   : > { %v4587_v3 = vadd.f32 %v4579_v39, %v9692_v15  ;;  %v4613_v10 = vrot.slane %v4597_v34, 1  ;;  %v4747_v60 = vmul.f32 %v9714_v17, %v4701_v16  ;;  %v4522_v13 = vadd.f32 %v4506_v8, %v4438_v49  ;;  %v10995_v34 = vld [vmem:[#allocation52_spill] sm:$0xff] }
 0x8d8   : > { %v4655_v42 = vrot.slane %v4639_v25, 1  ;;  %v4737_v62 = vadd.f32 %v4729_v12, %v9696_v30  ;;  %v4789_v57 = vmul.f32 %v9719_v31, %v4701_v16  ;;  %v4719_v24 = vadd.f32 %v4711_v19, %v9694_v43  ;;  %v4688_v16 = vpop.permute.xlu1 %4687  ;;  %v10996_v25 = vld [vmem:[#allocation47_spill] sm:$0xff] }
 0x8d9   : > { %v9799_v18 = vadd.f32 %v4613_v10, %v4569_v53  ;;  %v4562_v11 = vmul.f32 %v10973_v63, %v4552_v5  ;;  %v4580_v55 = vmul.f32 %v10974_v14, %v4552_v5  ;;  %v4763_v58 = vrot.slane %v4747_v60, 1 }
 0x8da   : > { %v4805_v15 = vrot.slane %v4789_v57, 1  ;;  %v4598_v61 = vmul.f32 %v9557_v51, %v4552_v5  ;;  %v4640_v21 = vmul.f32 %v9563_v7, %v4552_v5  ;;  %v4671_v37 = vadd.f32 %v4655_v42, %v4587_v3 }
 0x8db   : > { %v4570_v50 = vadd.f32 %v4562_v11, %v9705_v36  ;;  %v4588_v30 = vadd.f32 %v4580_v55, %v9729_v28  ;;  %v4702_v29 = vmul.f32 %v4694_v41, %v10994_v33  ;;  %v4539_v48 = vsel %vm2847_vm12, %v4536_v9, %v4538_v1  ;;  %v4686_v36 = vpop.permute.xlu0 %4685  ;;  %v10998_v11 = vld [vmem:[#allocation53_spill] sm:$0xff] }
 0x8dc   : > { %v9809_v49 = vadd.f32 %v4805_v15, %v4737_v62  ;;  %v4614_v43 = vrot.slane %v4598_v61, 1  ;;  %v4656_v20 = vrot.slane %v4640_v21, 1  ;;  %v9817_v28 = vadd.f32 %v4763_v58, %v4719_v24 }
 0x8dd   : > { %v4712_v22 = vmul.f32 %v9708_v26, %v4702_v29  ;;  %v4730_v52 = vmul.f32 %v9711_v47, %v4702_v29  ;;  %v4748_v46 = vmul.f32 %v9714_v17, %v4702_v29  ;;  %v4790_v0 = vmul.f32 %v9719_v31, %v4702_v29 }
 0x8de   : > { %v4837_v27 = vrot.slane %v9809_v49, 7  ;;  %v4630_v8 = vadd.f32 %v4614_v43, %v4570_v50  ;;  %v4546_v4 = vsel %vm2847_vm12, %v4538_v1, %v9535_v45  ;;  %v4553_v41 = vmul.f32 %v4539_v48, %v10995_v34  ;;  %v10997_v45 = vld [vmem:[#allocation161_spill] sm:$0xff] }
 0x8df   : > { %v4720_v9 = vadd.f32 %v4712_v22, %v9731_v44  ;;  %v4738_v5 = vadd.f32 %v4730_v52, %v9735_v32  ;;  %v4764_v56 = vrot.slane %v4748_v46, 1  ;;  %v4806_v39 = vrot.slane %v4790_v0, 1 }
 0x8e0   : > { %v4554_v19 = vmul.f32 %v4546_v4, %v10996_v25  ;;  %v4693_v12 = vsel %vm3045_vm13, %v4684_v59, %v4686_v36  ;;  %v4692_v53 = vsel %vm3045_vm13, %v4686_v36, %v4688_v16  ;;  %v4672_v3 = vadd.f32 %v4656_v20, %v4588_v30 }
 0x8e1   : > { %v4780_v10 = vadd.f32 %v4764_v56, %v4720_v9  ;;  %v4822_v60 = vadd.f32 %v4806_v39, %v4738_v5  ;;  %v4703_v1 = vmul.f32 %v4693_v12, %v10997_v45  ;;  %v4563_v44 = vmul.f32 %v10973_v63, %v4553_v41  ;;  %v10999_v12 = vld [vmem:[#allocation79_spill] sm:$0xff] }
 0x8e2   : > { %v4564_v32 = vmul.f32 %v10973_v63, %v4554_v19  ;;  %v4581_v42 = vmul.f32 %v10974_v14, %v4553_v41  ;;  %v4582_v62 = vmul.f32 %v10974_v14, %v4554_v19  ;;  %v4599_v57 = vmul.f32 %v9557_v51, %v4553_v41 }
 0x8e3   : > { %v4600_v59 = vmul.f32 %v9557_v51, %v4554_v19  ;;  %v4641_v24 = vmul.f32 %v9563_v7, %v4553_v41  ;;  %v4704_v55 = vmul.f32 %v4692_v53, %v10998_v11  ;;  %v4571_v58 = vadd.f32 %v4563_v44, %v9781_v54 }
 0x8e4   : > { %v4572_v15 = vadd.f32 %v4564_v32, %v9783_v35  ;;  %v4589_v61 = vadd.f32 %v4581_v42, %v4521_v40  ;;  %v4590_v21 = vadd.f32 %v4582_v62, %v4522_v13  ;;  %v4615_v50 = vrot.slane %v4599_v57, 1  ;;  %v4690_v35 = vpop.permute.xlu0 %4689 }
 0x8e5   : > { %v4616_v63 = vrot.slane %v4600_v59, 1  ;;  %v4642_v30 = vmul.f32 %v9563_v7, %v4554_v19  ;;  %v4657_v33 = vrot.slane %v4641_v24, 1  ;;  %v4713_v14 = vmul.f32 %v9708_v26, %v4703_v1 }
 0x8e6   : > { %v4731_v29 = vmul.f32 %v9711_v47, %v4703_v1  ;;  %v4749_v51 = vmul.f32 %v9714_v17, %v4703_v1  ;;  %v4791_v43 = vmul.f32 %v9719_v31, %v4703_v1  ;;  %v4838_v20 = vrot.slane %v4822_v60, 7  ;;  %v11000_v60 = vld [vmem:[#allocation73_spill] sm:$0xff] }
 0x8e7   : > { %v4631_v48 = vadd.f32 %v4615_v50, %v4571_v58  ;;  %v4632_v54 = vadd.f32 %v4616_v63, %v4572_v15  ;;  %v4658_v22 = vrot.slane %v4642_v30, 1  ;;  %v4721_v40 = vadd.f32 %v4713_v14, %v9799_v18 }
 0x8e8   : > { %v4739_v13 = vadd.f32 %v4731_v29, %v4671_v37  ;;  %v4765_v52 = vrot.slane %v4749_v51, 1  ;;  %v4807_v46 = vrot.slane %v4791_v43, 1  ;;  %v4673_v7 = vadd.f32 %v4657_v33, %v4589_v61 }
 0x8e9   : > { %v4714_v0 = vmul.f32 %v9708_v26, %v4704_v55  ;;  %v4732_v36 = vmul.f32 %v9711_v47, %v4704_v55  ;;  %v4750_v4 = vmul.f32 %v9714_v17, %v4704_v55  ;;  %v4674_v9 = vadd.f32 %v4658_v22, %v4590_v21 }
 0x8ea   : > { %v4823_v5 = vadd.f32 %v4807_v46, %v4739_v13  ;;  %v4792_v56 = vmul.f32 %v9719_v31, %v4704_v55  ;;  %v4691_v39 = vsel %vm3045_vm13, %v4688_v16, %v4690_v35  ;;  %v4698_v37 = vsel %vm3045_vm13, %v4690_v35, %v9652_v23 }
 0x8eb   : > { %v4722_v34 = vadd.f32 %v4714_v0, %v4630_v8  ;;  %v4740_v41 = vadd.f32 %v4732_v36, %v4672_v3  ;;  %v4766_v18 = vrot.slane %v4750_v4, 1  ;;  %v4781_v25 = vadd.f32 %v4765_v52, %v4721_v40 }
 0x8ec   : > { %v4808_v19 = vrot.slane %v4792_v56, 1  ;;  %v4705_v53 = vmul.f32 %v4691_v39, %v10999_v12  ;;  %v4706_v45 = vmul.f32 %v4698_v37, %v11000_v60  ;;  %v4839_v1 = vrot.slane %v4823_v5, 7 }
 0x8ed   : > { %v4782_v44 = vadd.f32 %v4766_v18, %v4722_v34  ;;  %v4853_v16 = vsel %vm3251_vm14, %v9817_v28, %v4837_v27  ;;  %v4854_v8 = vsel %vm3251_vm14, %v4780_v10, %v4838_v20  ;;  %v4860_v50 = vsel %vm532_vm3, %v9773_v6, 0.0 }
 0x8ee   : > { %v4824_v3 = vadd.f32 %v4808_v19, %v4740_v41  ;;  %v4715_v32 = vmul.f32 %v9708_v26, %v4705_v53  ;;  %v4716_v2 = vmul.f32 %v9708_v26, %v4706_v45  ;;  %v4733_v23 = vmul.f32 %v9711_v47, %v4705_v53 }
 0x8ef   : > { %v4734_v42 = vmul.f32 %v9711_v47, %v4706_v45  ;;  %v4751_v62 = vmul.f32 %v9714_v17, %v4705_v53  ;;  %v4752_v57 = vmul.f32 %v9714_v17, %v4706_v45  ;;  %v4793_v49 = vmul.f32 %v9719_v31, %v4705_v53 }
 0x8f0   : > { %v4840_v59 = vrot.slane %v4824_v3, 7  ;;  %v4723_v24 = vadd.f32 %v4715_v32, %v4631_v48  ;;  %v4741_v28 = vadd.f32 %v4733_v23, %v4673_v7  ;;  %v4794_v27 = vmul.f32 %v9719_v31, %v4706_v45 }
 0x8f1   : > { %v4742_v10 = vadd.f32 %v4734_v42, %v4674_v9  ;;  %v4767_v11 = vrot.slane %v4751_v62, 1  ;;  %v4768_v55 = vrot.slane %v4752_v57, 1  ;;  %v4809_v58 = vrot.slane %v4793_v49, 1 }
 0x8f2   : > { %v4810_v26 = vrot.slane %v4794_v27, 1  ;;  %v4724_v15 = vadd.f32 %v4716_v2, %v4632_v54  ;;  %v4855_v61 = vsel %vm3251_vm14, %v4781_v25, %v4839_v1  ;;  %v4856_v47 = vsel %vm3251_vm14, %v4782_v44, %v4840_v59 }
 0x8f3   : > { %v4825_v21 = vadd.f32 %v4809_v58, %v4741_v28  ;;  %v4859_v17 = vsel %vm532_vm3, %v9767_v38, 0.0  ;;  %v4862_v63 = vsel %vm532_vm3, %v4853_v16, 0.0  ;;  %v4783_v33 = vadd.f32 %v4767_v11, %v4723_v24 }
 0x8f4   : > { %v4826_v31 = vadd.f32 %v4810_v26, %v4742_v10  ;;  %v4861_v30 = vadd.f32 %v4860_v50, %v4859_v17  ;;  %v4864_v29 = vsel %vm532_vm3, %v4854_v8, 0.0  ;;  %v4784_v51 = vadd.f32 %v4768_v55, %v4724_v15  ;;  %v5020_v10 = vld [vmem:[%s10059_s5 + $0x8] sm:$0xff]  ;;  %v6263_v55 = vld [vmem:[%s10059_s5] sm:$0xff] }
 0x8f5   : > { %v4841_v14 = vrot.slane %v4825_v21, 7  ;;  %v4866_v54 = vsel %vm532_vm3, %v4855_v61, 0.0  ;;  %v4868_v40 = vsel %vm532_vm3, %v4856_v47, 0.0  ;;  %6067 = vmatmul.mubr.msk.f32.gmra.mrb[10].mxu1 %vm457_vm2, %v5020_v10  ;;  %6069 = vmatmul.mubr.msk.f32.gmra.mrb[12].mxu0 %vm457_vm2, %v5020_v10  ;;  %v11001_v11 = vmov 0.0  }
 0x8f6   : > { %v4842_v43 = vrot.slane %v4826_v31, 7  ;;  %v4863_v20 = vadd.f32 %v4862_v63, %v4861_v30  ;;  %5245 = vmatprep.mubr.f32.mxu1 %v11001_v11  ;;  %5322 = vmatprep.mubr.f32.mxu0 %v11001_v11  ;;  %vm5351_vm7 = vcmask 15360  }
 0x8f7   : > { %v4857_v48 = vsel %vm3251_vm14, %v4783_v33, %v4841_v14 }
 0x8f8   : > { %v4858_v22 = vsel %vm3251_vm14, %v4784_v51, %v4842_v43  ;;  %v4865_v35 = vadd.f32 %v4864_v29, %v4863_v20  ;;  %v4870_v46 = vsel %vm532_vm3, %v4857_v48, 0.0 }
 0x8f9   : > { %v4872_v0 = vsel %vm532_vm3, %v4858_v22, 0.0  ;;  %6070 = vmatmul.mubr.msk.f32.vlgmr.msra.gmra.mrb[12].mxu1 %vm457_vm2, %v6263_v55  ;;  %6072 = vmatmul.mubr.msk.f32.vlgmr.msra.gmra.mrb[14].mxu0 %vm457_vm2, %v6263_v55 }
 0x8fa   : > { %v4867_v13 = vadd.f32 %v4866_v54, %v4865_v35  ;;  %5251 = vmatprep.mubr.f32.mxu1 %v11001_v11  ;;  %5328 = vmatprep.mubr.f32.mxu0 %v11001_v11  ;;  %v11002_v35 = vld [vmem:[#allocation21_spill] sm:$0xff] }
 0x8fc   : > { %v4869_v52 = vadd.f32 %v4868_v40, %v4867_v13 }
 0x8fd   : > { %6071 = vmatmul.mubr.msk.f32.gmra.mrb[14].mxu1 %vm457_vm2, %v5020_v10  ;;  %6073 = vmatmul.mubr.msk.f32.gmra.mrb[16].mxu0 %vm457_vm2, %v5020_v10 }
 0x8fe   : > { %v4871_v7 = vadd.f32 %v4870_v46, %v4869_v52  ;;  %5438 = vmatprep.mubr.f32.mxu1 %v11001_v11  ;;  %5515 = vmatprep.mubr.f32.mxu0 %v11001_v11 }
 0x900   : > { %v4873_v36 = vadd.f32 %v4872_v0, %v4871_v7 }
 0x902   : > { %4874 = vadd.xlane.f32.xlu1 %v4873_v36 }
 0x98f   : > { %v4875_v4 = vpop.xlane.xlu1 %4874 }
 0x990   : > { %v4876_v9 = vmul.f32 0.0009765625, %v4875_v4 }
 0x992   : > { %v4877_v5 = vsub.f32 %v9767_v38, %v4876_v9  ;;  %v4878_v56 = vsub.f32 %v9773_v6, %v4876_v9  ;;  %v4879_v39 = vsub.f32 %v4853_v16, %v4876_v9  ;;  %v4880_v34 = vsub.f32 %v4854_v8, %v4876_v9 }
 0x993   : > { %v4881_v41 = vsub.f32 %v4855_v61, %v4876_v9  ;;  %v4882_v19 = vsub.f32 %v4856_v47, %v4876_v9  ;;  %v4883_v1 = vsub.f32 %v4857_v48, %v4876_v9  ;;  %v4884_v32 = vsub.f32 %v4858_v22, %v4876_v9  ;;  %v11003_v9 = vld [vmem:[#allocation22_spill] sm:$0xff] }
 0x994   : > { %v4885_v18 = vmul.f32 %v4877_v5, %v4877_v5  ;;  %v4886_v37 = vmul.f32 %v4878_v56, %v4878_v56  ;;  %v4887_v25 = vmul.f32 %v4879_v39, %v4879_v39  ;;  %v4888_v12 = vmul.f32 %v4880_v34, %v4880_v34 }
 0x995   : > { %v4889_v44 = vmul.f32 %v4881_v41, %v4881_v41  ;;  %v4890_v6 = vmul.f32 %v4882_v19, %v4882_v19  ;;  %v4891_v2 = vmul.f32 %v4883_v1, %v4883_v1  ;;  %v4892_v62 = vmul.f32 %v4884_v32, %v4884_v32 }
 0x996   : > { %v4893_v53 = vsel %vm532_vm3, %v4885_v18, 0.0  ;;  %v4894_v60 = vsel %vm532_vm3, %v4886_v37, 0.0  ;;  %v4896_v3 = vsel %vm532_vm3, %v4887_v25, 0.0  ;;  %v4898_v16 = vsel %vm532_vm3, %v4888_v12, 0.0 }
 0x997   : > { %v4895_v45 = vadd.f32 %v4894_v60, %v4893_v53  ;;  %v4900_v23 = vsel %vm532_vm3, %v4889_v44, 0.0  ;;  %v4902_v57 = vsel %vm532_vm3, %v4890_v6, 0.0  ;;  %v4904_v59 = vsel %vm532_vm3, %v4891_v2, 0.0 }
 0x998   : > { %v4906_v28 = vsel %vm532_vm3, %v4892_v62, 0.0 }
 0x999   : > { %v4897_v38 = vadd.f32 %v4896_v3, %v4895_v45 }
 0x99b   : > { %v4899_v8 = vadd.f32 %v4898_v16, %v4897_v38 }
 0x99d   : > { %v4901_v42 = vadd.f32 %v4900_v23, %v4899_v8 }
 0x99f   : > { %v4903_v49 = vadd.f32 %v4902_v57, %v4901_v42 }
 0x9a1   : > { %v4905_v24 = vadd.f32 %v4904_v59, %v4903_v49 }
 0x9a3   : > { %v4907_v27 = vadd.f32 %v4906_v28, %v4905_v24 }
 0x9a5   : > { %4908 = vadd.xlane.f32.xlu0 %v4907_v27 }
 0xa32   : > { %v4909_v58 = vpop.xlane.xlu0 %4908 }
 0xa33   : > { %v4910_v26 = vmul.f32 0.0009765625, %v4909_v58 }
 0xa35   : > { %v4911_v15 = vadd.f32 1e-05, %v4910_v26 }
 0xa37   : > { %6245 = vrsqrt.f32 %v4911_v15 }
 0xa41   : > { %v6246_v61 = vpop.eup %6245 }
 0xa42   : > { %v4914_v47 = vmul.f32 %v6246_v61, %v4878_v56  ;;  %v4916_v21 = vmul.f32 %v6246_v61, %v4880_v34  ;;  %v4913_v17 = vmul.f32 %v6246_v61, %v4877_v5  ;;  %v4915_v50 = vmul.f32 %v6246_v61, %v4879_v39 }
 0xa43   : > { %v4918_v63 = vmul.f32 %v6246_v61, %v4882_v19  ;;  %v4920_v31 = vmul.f32 %v6246_v61, %v4884_v32  ;;  %v4917_v30 = vmul.f32 %v6246_v61, %v4881_v41  ;;  %v4919_v33 = vmul.f32 %v6246_v61, %v4883_v1 }
 0xa44   : > { %v4930_v14 = vrot.slane %v4914_v47, 4  ;;  %v4932_v29 = vrot.slane %v4916_v21, 4  ;;  %v4929_v51 = vrot.slane %v4913_v17, 4  ;;  %v4931_v43 = vrot.slane %v4915_v50, 4 }
 0xa45   : > { %v4934_v20 = vrot.slane %v4918_v63, 4  ;;  %v4936_v48 = vrot.slane %v4920_v31, 4  ;;  %v4933_v54 = vrot.slane %v4917_v30, 4  ;;  %v4935_v22 = vrot.slane %v4919_v33, 4 }
 0xa46   : > { %v4946_v40 = vmul.f32 %v4930_v14, %v11002_v35  ;;  %v4948_v13 = vmul.f32 %v4932_v29, %v11002_v35  ;;  %v4945_v52 = vmul.f32 %v4929_v51, %v11002_v35  ;;  %v4947_v46 = vmul.f32 %v4931_v43, %v11002_v35 }
 0xa47   : > { %v4950_v7 = vmul.f32 %v4934_v20, %v11002_v35  ;;  %v4952_v0 = vmul.f32 %v4936_v48, %v11002_v35  ;;  %v4949_v36 = vmul.f32 %v4933_v54, %v11002_v35  ;;  %v4951_v4 = vmul.f32 %v4935_v22, %v11002_v35  ;;  %v5017_v48 = vld [vmem:[%s10060_s6] sm:$0xff] }
 0xa48   : > { %v4954_v5 = vadd.f32 %v4946_v40, %v11003_v9  ;;  %v4956_v56 = vadd.f32 %v4948_v13, %v11003_v9  ;;  %v4953_v39 = vadd.f32 %v4945_v52, %v11003_v9  ;;  %v4955_v34 = vadd.f32 %v4947_v46, %v11003_v9 }
 0xa49   : > { %v4958_v41 = vadd.f32 %v4950_v7, %v11003_v9  ;;  %v9928_v18 = vadd.f32 %v4952_v0, %v11003_v9  ;;  %v9931_v19 = vadd.f32 %v4949_v36, %v11003_v9  ;;  %v9934_v60 = vadd.f32 %v4951_v4, %v11003_v9 }
 0xa4a   : > { %v4971_v37 = vmul.f32 1.442695, %v4954_v5  ;;  %v4975_v25 = vmul.f32 1.442695, %v4956_v56  ;;  %v4969_v12 = vmul.f32 1.442695, %v4953_v39 }
 0xa4b   : > { %v4973_v53 = vmul.f32 1.442695, %v4955_v34  ;;  %v4979_v45 = vmul.f32 1.442695, %v4958_v41  ;;  %v4983_v1 = vmul.f32 1.442695, %v9928_v18 }
 0xa4c   : > { %6247 = vpow2.f32 %v4971_v37  ;;  %v4977_v44 = vmul.f32 1.442695, %v9931_v19  ;;  %v4981_v3 = vmul.f32 1.442695, %v9934_v60  ;;  %vm4962_vm2 = vcmp.gt.f32.partialorder %v4954_v5, 0.0 }
 0xa4d   : > { %6249 = vpow2.f32 %v4975_v25  ;;  %vm4964_vm6 = vcmp.gt.f32.partialorder %v4956_v56, 0.0  ;;  %vm4961_vm8 = vcmp.gt.f32.partialorder %v4953_v39, 0.0  ;;  %vm4963_vm9 = vcmp.gt.f32.partialorder %v4955_v34, 0.0 }
 0xa4e   : > { %6251 = vpow2.f32 %v4969_v12  ;;  %vm4966_vm10 = vcmp.gt.f32.partialorder %v4958_v41, 0.0  ;;  %vm4968_vm11 = vcmp.gt.f32.partialorder %v9928_v18, 0.0  ;;  %vm4965_vm12 = vcmp.gt.f32.partialorder %v9931_v19, 0.0 }
 0xa4f   : > { %6253 = vpow2.f32 %v4973_v53  ;;  %vm4967_vm13 = vcmp.gt.f32.partialorder %v9934_v60, 0.0 }
 0xa50   : > { %6255 = vpow2.f32 %v4979_v45 }
 0xa51   : > { %6257 = vpow2.f32 %v4983_v1 }
 0xa52   : > { %6259 = vpow2.f32 %v4977_v44 }
 0xa53   : > { %6261 = vpow2.f32 %v4981_v3 }
 0xa56   : > { %v6248_v38 = vpop.eup %6247 }
 0xa57   : > { %v6250_v32 = vpop.eup %6249  ;;  %v6059_v6 = vadd.f32 -1.0, %v6248_v38 }
 0xa58   : > { %v6252_v16 = vpop.eup %6251  ;;  %v6061_v8 = vadd.f32 -1.0, %v6250_v32 }
 0xa59   : > { %v6254_v2 = vpop.eup %6253  ;;  %v4994_v23 = vmul.f32 1.6732632, %v6059_v6  ;;  %v6058_v42 = vadd.f32 -1.0, %v6252_v16 }
 0xa5a   : > { %v6256_v62 = vpop.eup %6255  ;;  %v4996_v57 = vmul.f32 1.6732632, %v6061_v8  ;;  %v6060_v49 = vadd.f32 -1.0, %v6254_v2 }
 0xa5b   : > { %v6258_v59 = vpop.eup %6257  ;;  %v5002_v24 = vsel %vm4962_vm2, %v4954_v5, %v4994_v23  ;;  %v4993_v28 = vmul.f32 1.6732632, %v6058_v42  ;;  %v6063_v27 = vadd.f32 -1.0, %v6256_v62  ;;  %v5018_v5 = vld [vmem:[%s10060_s6 + $0x8] sm:$0xff] }
 0xa5c   : > { %v6260_v10 = vpop.eup %6259  ;;  %v5010_v55 = vmul.f32 1.050701, %v5002_v24  ;;  %v5004_v58 = vsel %vm4964_vm6, %v4956_v56, %v4996_v57  ;;  %v4995_v26 = vmul.f32 1.6732632, %v6060_v49  ;;  %v6065_v15 = vadd.f32 -1.0, %v6258_v59 }
 0xa5d   : > { %v6262_v61 = vpop.eup %6261  ;;  %v5012_v47 = vmul.f32 1.050701, %v5004_v58  ;;  %v5001_v21 = vsel %vm4961_vm8, %v4953_v39, %v4993_v28  ;;  %v4998_v17 = vmul.f32 1.6732632, %v6063_v27  ;;  %v6062_v50 = vadd.f32 -1.0, %v6260_v10 }
 0xa5e   : > { %v5344_v63 = vrot.slane %v5010_v55, 4  ;;  %v5009_v31 = vmul.f32 1.050701, %v5001_v21  ;;  %v5003_v30 = vsel %vm4963_vm9, %v4955_v34, %v4995_v26  ;;  %v5000_v33 = vmul.f32 1.6732632, %v6065_v15 }
 0xa5f   : > { %v5346_v14 = vrot.slane %v5012_v47, 4  ;;  %v5011_v29 = vmul.f32 1.050701, %v5003_v30  ;;  %v5006_v51 = vsel %vm4966_vm10, %v4958_v41, %v4998_v17  ;;  %v4997_v43 = vmul.f32 1.6732632, %v6062_v50 }
 0xa60   : > { %6074 = vmatprep.subr.msk.mxu1 %vm532_vm3, %v5344_v63  ;;  %v5343_v20 = vrot.slane %v5009_v31, 4  ;;  %v5014_v54 = vmul.f32 1.050701, %v5006_v51  ;;  %v5008_v22 = vsel %vm4968_vm11, %v9928_v18, %v5000_v33  ;;  %v6064_v35 = vadd.f32 -1.0, %v6262_v61 }
 0xa61   : > { %6078 = vmatprep.subr.msk.mxu0 %vm532_vm3, %v5346_v14  ;;  %v5345_v40 = vrot.slane %v5011_v29, 4  ;;  %v5016_v13 = vmul.f32 1.050701, %v5008_v22  ;;  %v5005_v52 = vsel %vm4965_vm12, %v9931_v19, %v4997_v43 }
 0xa62   : > { %6075 = vmatpush1.msk.msra.mxu1 %vm532_vm3, %v5343_v20  ;;  %v5348_v46 = vrot.slane %v5014_v54, 4  ;;  %v5013_v7 = vmul.f32 1.050701, %v5005_v52  ;;  %v4999_v0 = vmul.f32 1.6732632, %v6064_v35 }
 0xa63   : > { %6079 = vmatpush1.msk.msra.mxu0 %vm532_vm3, %v5345_v40  ;;  %6076 = vmatmul.mubr.msk.f32.vlgmr.msra.gmra.mrb[8].mxu1 %vm5351_vm7, %v5017_v48  ;;  %v5350_v36 = vrot.slane %v5016_v13, 4 }
 0xa64   : > { %6080 = vmatmul.mubr.msk.f32.vlgmr.msra.gmra.mrb[2].mxu0 %vm5351_vm7, %v5017_v48  ;;  %6082 = vmatprep.subr.msk.mxu1 %vm532_vm3, %v5348_v46  ;;  %v5347_v4 = vrot.slane %v5013_v7, 4  ;;  %v5007_v9 = vsel %vm4967_vm13, %v9934_v60, %v4999_v0 }
 0xa65   : > { %6086 = vmatprep.subr.msk.mxu0 %vm532_vm3, %v5350_v36  ;;  %v5015_v56 = vmul.f32 1.050701, %v5007_v9  ;;  %5444 = vmatprep.mubr.f32.mxu1 %v11001_v11 }
 0xa66   : > { %6083 = vmatpush1.msk.msra.mxu1 %vm532_vm3, %v5347_v4  ;;  %5521 = vmatprep.mubr.f32.mxu0 %v11001_v11 }
 0xa67   : > { %v5349_v39 = vrot.slane %v5015_v56, 4  ;;  %6077 = vmatmul.mubr.msk.f32.gmra.mrb[10].mxu1 %vm5351_vm7, %v5018_v5 }
 0xa68   : > { %6081 = vmatmul.mubr.msk.f32.gmra.mrb[12].mxu0 %vm5351_vm7, %v5018_v5  ;;  %5592 = vmatprep.mubr.f32.mxu1 %v11001_v11 }
 0xa69   : > { %6087 = vmatpush1.msk.msra.mxu0 %vm532_vm3, %v5349_v39  ;;  %5669 = vmatprep.mubr.f32.mxu0 %v11001_v11 }
 0xa6b   : > { %6084 = vmatmul.mubr.msk.f32.vlgmr.msra.gmra.mrb[12].mxu1 %vm5351_vm7, %v5017_v48 }
 0xa6c   : > { %6088 = vmatmul.mubr.msk.f32.vlgmr.msra.gmra.mrb[14].mxu0 %vm5351_vm7, %v5017_v48  ;;  %5598 = vmatprep.mubr.f32.mxu1 %v11001_v11 }
 0xa6d   : > { %5675 = vmatprep.mubr.f32.mxu0 %v11001_v11 }
 0xa6f   : > { %6085 = vmatmul.mubr.msk.f32.gmra.mrb[14].mxu1 %vm5351_vm7, %v5018_v5 }
 0xa70   : > { %6089 = vmatmul.mubr.msk.f32.gmra.mrb[16].mxu0 %vm5351_vm7, %v5018_v5 }
 0xb36   : > { %v5440_v34 = vpop.f32.mrb[8].mxu1 }
 0xb37   : > { %5682 = vst [vmem:[%s9984_s25] sm:$0xff] %v5440_v34  ;;  %v5517_v11 = vpop.f32.mrb[2].mxu0  ;;  %v5442_v41 = vpop.f32.mrb[9].mxu1 }
 0xb38   : > { %5684 = vst [vmem:[%s9984_s25 + $0x10] sm:$0xff] %v5517_v11  ;;  %5683 = vst [vmem:[%s9984_s25 + $0x8] sm:$0xff] %v5442_v41  ;;  %v5519_v18 = vpop.f32.mrb[3].mxu0 }
 0xb39   : > { %5685 = vst [vmem:[%s9984_s25 + $0x18] sm:$0xff] %v5519_v18 }
 0xb3a   : > { %v5446_v37 = vpop.f32.mrb[10].mxu1 }
 0xb3b   : > { %5690 = vst [vmem:[%s9984_s25 + $0x40] sm:$0xff] %v5446_v37  ;;  %v5523_v25 = vpop.f32.mrb[12].mxu0  ;;  %v5448_v19 = vpop.f32.mrb[11].mxu1 }
 0xb3c   : > { %5692 = vst [vmem:[%s9984_s25 + $0x50] sm:$0xff] %v5523_v25  ;;  %5691 = vst [vmem:[%s9984_s25 + $0x48] sm:$0xff] %v5448_v19  ;;  %v5525_v12 = vpop.f32.mrb[13].mxu0 }
 0xb3d   : > { %5693 = vst [vmem:[%s9984_s25 + $0x58] sm:$0xff] %v5525_v12 }
 0xb3e   : > { %v5594_v53 = vpop.f32.mrb[12].mxu1 }
 0xb3f   : > { %5686 = vst [vmem:[%s9984_s25 + $0x20] sm:$0xff] %v5594_v53  ;;  %v5671_v60 = vpop.f32.mrb[14].mxu0  ;;  %v5596_v45 = vpop.f32.mrb[13].mxu1 }
 0xb40   : > { %5688 = vst [vmem:[%s9984_s25 + $0x30] sm:$0xff] %v5671_v60  ;;  %5687 = vst [vmem:[%s9984_s25 + $0x28] sm:$0xff] %v5596_v45  ;;  %v5673_v1 = vpop.f32.mrb[15].mxu0 }
 0xb41   : > { %5689 = vst [vmem:[%s9984_s25 + $0x38] sm:$0xff] %v5673_v1 }
 0xb42   : > { %v5600_v44 = vpop.f32.mrb[14].mxu1 }
 0xb43   : > { %5694 = vst [vmem:[%s9984_s25 + $0x60] sm:$0xff] %v5600_v44  ;;  %v5677_v3 = vpop.f32.mrb[16].mxu0  ;;  %v5602_v38 = vpop.f32.mrb[15].mxu1 }
 0xb44   : > { %5696 = vst [vmem:[%s9984_s25 + $0x70] sm:$0xff] %v5677_v3  ;;  %5695 = vst [vmem:[%s9984_s25 + $0x68] sm:$0xff] %v5602_v38  ;;  %v5679_v32 = vpop.f32.mrb[17].mxu0 }
 0xb45   : > { %5697 = vst [vmem:[%s9984_s25 + $0x78] sm:$0xff] %v5679_v32 }
 0xb46   : > { %6363 = shalt.err (!%p6360_p0)
}
 0xb47   : > { %s6364_s17 = scalar_lea.hbm %s10003_s15, 2048  ;;  %s6368_s28 = scalar_lea.hbm %s10063_s9, 4096 }
 0xb48   : > { %p6365_p1 = scmp.ne.s32.totalorder %s10003_s15, %s6364_s17  ;;  %p6369_p3 = scmp.lt.u32.totalorder %s10003_s15, %s10063_s9 }
 0xb49   : > { %p6370_p4 = scmp.lt.u32.totalorder %s6368_s28, %s6364_s17  ;;  %p6372_p8 = scmp.lt.u32.totalorder %s6364_s17, %s10003_s15 }
 0xb4a   : > { %p6366_p2 = pnand %p6365_p1, %p11004_p11 }
 0xb4b   : > { %p6371_p7 = por %p6370_p4, %p6369_p3 }
 0xb4c   : > { %p6367_p12 = pneg %p6366_p2 }
 0xb4d   : > { %p6373_p13 = por %p6372_p8, %p6371_p7 }
 0xb4f   : > { %p6374_p5 = pnand %p6373_p13, %p6367_p12 }
 0xb51   : > { %6377 = shalt.err (!%p6374_p5)
}
 0xb52   : > { %s6450_s16 = smov 1024   ;;  %s6451_s29 = smov 64  }
 0xb53   : > { %6130 = dma.vmem_to_hbm [thread:$0]  (%p11004_p11), %s10005_s1, 2048, %s10003_s15, %s10013_s13, %s6450_s16, %s6450_s16, %s6451_s29  }
 0xb54 PF: > { %s11005_s22 = sld [smem:[#allocation20_spill]]  ;;  %p6157_p6 = scmp.ge.s32.totalorder %s6428_s12, 2 }
 0xb55   : > { %s5727_s23 = sand.u32 1, %s6416_s30  }
 0xb56   : > { %s5728_s21 = scalar_lea.sflag [#allocation4], %s5727_s23 }
 0xb5a   : > { %p11006_p9 = scmp.ne.s32.totalorder %s11005_s22, 0 }
 0xb5c   : > { %p6146_p10 = pnand %p6157_p6, %p11006_p9 }
 0xb5e   : > { %6411 = dma.done.wait (!%p6146_p10), %s5728_s21, 2048  }
 0xb5f   : > { %6413 = vsyncadd (!%p6146_p10), %s5728_s21, 4294965248  ;;  %s11007_s12 = sld [smem:[#allocation18_spill]]  ;;  %s11008_s25 = sld [smem:[#allocation17_spill]] }
 0xb60   : > { %s11009_s11 = sld [smem:[#allocation19_spill]]  ;;  %s11010_s30 = smov %s6420_s10 }
 0xb65   : > { %p23_p0 = scmp.ge.s32.totalorder %s11007_s12, 4   ;;  %s11011_s10 = smov %s11008_s25 }
 0xb67   :  { %25 = sbr.rel (!%p23_p0) target bundleno = 13 (0xd), region = 119 }
 0xb6e   :  { %5733 = vsyncpa [#allocation3], 1 }
 0xb6f   :  { %5735 = vsyncpa [#allocation3 + $0x1], 1 }
 0xb70   :  { %5736 = vsyncpa [#allocation7], 1 }
 0xb71   :  { %5737 = vsyncpa [#allocation4], 1 }
 0xb72   :  { %5739 = vsyncpa [#allocation4 + $0x1], 1 }
 0xb73   :  { %5740 = vsyncpa [#allocation5], 1 }
 0xb74   :  { %5742 = vsyncpa [#allocation5 + $0x1], 1 }
 0xb75   :  { %5743 = vsyncpa [#allocation10], 1 }

</bundles_post_ra>
